<compile_context>
chip_gen: v6e
topology: v6e:2x2x1
jax: 0.10.0
libtpu: 0.0.40
codegen_flags: <defaults>
</compile_context>

<pallas_src>
import jax
import jax.numpy as jnp
from jax import lax
from jax.experimental import pallas as pl
from jax.experimental.pallas import tpu as pltpu

EPS = 1e-5
MAX_TILE_ROWS = 1024                       # 512-1024 rows per review
_VMEM_LIMIT = 32 * 1024 * 1024             # <= 48 MiB so v7x (64 MiB) is safe


def _row_tile(n):
    """Largest row tile <= MAX_TILE_ROWS that evenly divides n."""
    if n <= MAX_TILE_ROWS:
        return n
    for t in range(MAX_TILE_ROWS, 7, -8):
        if n % t == 0:
            return t
    return n  # fallback: single full block


# ------------------------------ Pallas kernels ------------------------------

def _mm_bias_stats_kernel(x_ref, w_ref, b_ref, y_ref, s1_ref, s2_ref):
    """y = x @ w + b (bf16 operands, f32 accumulation) for one (phase, row
    tile); per-channel sum / sum-of-squares accumulate across the row grid."""
    y = jnp.dot(x_ref[0], w_ref[0], preferred_element_type=jnp.float32)
    y = y + b_ref[...]
    y_ref[0] = y

    @pl.when(pl.program_id(1) == 0)
    def _init():
        s1_ref[...] = jnp.zeros_like(s1_ref)
        s2_ref[...] = jnp.zeros_like(s2_ref)

    s1_ref[0] = s1_ref[0] + jnp.sum(y, axis=0, keepdims=True)
    s2_ref[0] = s2_ref[0] + jnp.sum(y * y, axis=0, keepdims=True)


def _mm_bias_kernel(x_ref, w_ref, b_ref, y_ref):
    y = jnp.dot(x_ref[0], w_ref[0], preferred_element_type=jnp.float32)
    y_ref[0] = y + b_ref[...]


def _scale_shift_relu_kernel(y_ref, sc_ref, sh_ref, o_ref):
    # Folded training-mode BN affine + ReLU; math in f32, store in bf16.
    o_ref[...] = jnp.maximum(y_ref[...] * sc_ref[...] + sh_ref[...],
                             0.0).astype(o_ref.dtype)


# ------------------------------ Pallas wrappers ------------------------------

def _grouped_matmul_bias(x, w, b, *, emit_stats):
    """x: (G, N, K), w: (G, K, C), b: (C,). Returns y (G, N, C) f32 and, when
    emit_stats, per-group channel sums / sums-of-squares of shape (G, 1, C)."""
    G, N, K = x.shape
    C = w.shape[2]
    tn = _row_tile(N)
    nt = N // tn

    x_spec = pl.BlockSpec((1, tn, K), lambda g, i: (g, i, 0))
    w_spec = pl.BlockSpec((1, K, C), lambda g, i: (g, 0, 0))   # weight resident
    b_spec = pl.BlockSpec((1, C), lambda g, i: (0, 0))
    y_spec = pl.BlockSpec((1, tn, C), lambda g, i: (g, i, 0))

    if emit_stats:
        kernel = _mm_bias_stats_kernel
        s_spec = pl.BlockSpec((1, 1, C), lambda g, i: (g, 0, 0))
        out_specs = (y_spec, s_spec, s_spec)
        out_shape = (jax.ShapeDtypeStruct((G, N, C), jnp.float32),
                     jax.ShapeDtypeStruct((G, 1, C), jnp.float32),
                     jax.ShapeDtypeStruct((G, 1, C), jnp.float32))
        dims = ("parallel", "arbitrary")      # stats reduce over the row axis
    else:
        kernel = _mm_bias_kernel
        out_specs = y_spec
        out_shape = jax.ShapeDtypeStruct((G, N, C), jnp.float32)
        dims = ("parallel", "parallel")

    return pl.pallas_call(
        kernel,
        grid=(G, nt),
        in_specs=[x_spec, w_spec, b_spec],
        out_specs=out_specs,
        out_shape=out_shape,
        compiler_params=pltpu.CompilerParams(
            dimension_semantics=dims, vmem_limit_bytes=_VMEM_LIMIT),
    )(x.astype(jnp.bfloat16), w.astype(jnp.bfloat16),
      b.reshape(1, C).astype(jnp.float32))


def _bn_relu_apply(y, scale, shift):
    """max(y*scale + shift, 0) -> bf16.  Small channel counts are folded so the
    stored slab is >=128 lanes wide (lane-dense stores)."""
    N, C = y.shape
    f = max(1, 128 // C)
    if N % f:
        f = 1
    yf = y.reshape(N // f, C * f)
    sc = jnp.tile(scale, f).reshape(1, C * f)
    sh = jnp.tile(shift, f).reshape(1, C * f)
    Nf, Cf = yf.shape
    tn = _row_tile(Nf)
    out = pl.pallas_call(
        _scale_shift_relu_kernel,
        grid=(Nf // tn,),
        in_specs=[pl.BlockSpec((tn, Cf), lambda i: (i, 0)),
                  pl.BlockSpec((1, Cf), lambda i: (0, 0)),
                  pl.BlockSpec((1, Cf), lambda i: (0, 0))],
        out_specs=pl.BlockSpec((tn, Cf), lambda i: (i, 0)),
        out_shape=jax.ShapeDtypeStruct((Nf, Cf), jnp.bfloat16),
        compiler_params=pltpu.CompilerParams(
            dimension_semantics=("parallel",), vmem_limit_bytes=_VMEM_LIMIT),
    )(yf, sc, sh)
    return out.reshape(N, C)


# ------------------------------- layer glue ---------------------------------

def _bn_scale_shift(s1, s2, count, gamma, beta):
    """Fold training-mode (biased) BN stats into a per-channel affine.  The
    sums may come from a wider matmul whose columns are (position, channel)
    with channel fastest (conv2); the reshape folds those positions in."""
    c = gamma.shape[0]
    tot1 = s1.reshape(-1, c).sum(axis=0)
    tot2 = s2.reshape(-1, c).sum(axis=0)
    mean = tot1 / count
    var = tot2 / count - mean * mean
    scale = gamma * lax.rsqrt(var + EPS)
    shift = beta - mean * scale
    return scale, shift


def _phase_patches(x, W):
    """Sub-pixel decomposition of ConvTranspose2d(k=4, s=2, p=1), NHWC input.

    Returns patches (4, B*H*W, 4*Cin) and weights (4, 4*Cin, Cout) such that
    phase g = ry*2+rx of the output is patches[g] @ weights[g], with
    out[b, 2*jy+ry, 2*jx+rx, :] given by that phase's row (b, jy, jx).
    No zero-dilated tensor is built and no zero taps are multiplied."""
    B, H, Wd, Cin = x.shape
    assert W.shape[2] == 4 and W.shape[3] == 4
    Cout = W.shape[1]
    xpad = jnp.pad(x, ((0, 0), (1, 1), (1, 1), (0, 0)))
    patches, wmats = [], []
    for ry in range(2):
        for rx in range(2):
            win = xpad[:, ry:ry + H + 1, rx:rx + Wd + 1, :]
            cols = [win[:, dy:dy + H, dx:dx + Wd, :].reshape(B * H * Wd, Cin)
                    for dy in range(2) for dx in range(2)]
            patches.append(jnp.concatenate(cols, axis=1))        # (N, 4*Cin)
            # tap (dy, dx) uses kernel element (3-ry-2*dy, 3-rx-2*dx)
            wp = W[:, :, (3 - ry)::-2, (3 - rx)::-2]             # (Cin,Cout,2,2)
            wmats.append(wp.transpose(2, 3, 0, 1).reshape(4 * Cin, Cout))
    return jnp.stack(patches, axis=0), jnp.stack(wmats, axis=0)


def _interleave_phases(y, B, H, Wd, C):
    """y: (4, B*H*W, C) with phase index ry*2+rx -> NHWC (B, 2H, 2W, C)."""
    y = y.reshape(2, 2, B, H, Wd, C)
    y = y.transpose(2, 3, 0, 4, 1, 5)          # (b, jy, ry, jx, rx, c)
    return y.reshape(B, 2 * H, 2 * Wd, C)


def _deconv1_bn_relu(z, W, b, gamma, beta):
    """conv1: ConvTranspose2d(D, 512, 1, 1, 0) on (B, D) latents + BN + ReLU."""
    B, D = z.shape
    C = W.shape[1]
    y, s1, s2 = _grouped_matmul_bias(z[None], W.reshape(D, C)[None], b,
                                     emit_stats=True)
    scale, shift = _bn_scale_shift(s1, s2, B, gamma, beta)
    a = _bn_relu_apply(y[0], scale, shift)
    return a.reshape(B, 1, 1, C)


def _deconv2_bn_relu(x, W, b, gamma, beta):
    """conv2: ConvTranspose2d(512, 64, 4, 1, 0) on a 1x1 map == one dense
    matmul with (kh, kw, cout) as output columns."""
    B = x.shape[0]
    Cin, Cout, k = W.shape[0], W.shape[1], W.shape[2]
    wm = W.transpose(0, 2, 3, 1).reshape(Cin, k * k * Cout)
    y, s1, s2 = _grouped_matmul_bias(x.reshape(1, B, Cin), wm[None],
                                     jnp.tile(b, k * k), emit_stats=True)
    scale, shift = _bn_scale_shift(s1, s2, B * k * k, gamma, beta)
    a = _bn_relu_apply(y.reshape(B * k * k, Cout), scale, shift)
    return a.reshape(B, k, k, Cout)


def _deconv_s2_bn_relu(x, W, b, gamma, beta):
    """ConvTranspose2d(k=4, s=2, p=1) + training-mode BN + ReLU, NHWC."""
    B, H, Wd, _ = x.shape
    Cout = W.shape[1]
    xg, wg = _phase_patches(x, W)
    y, s1, s2 = _grouped_matmul_bias(xg, wg, b, emit_stats=True)
    n = y.shape[1]
    scale, shift = _bn_scale_shift(s1, s2, 4 * n, gamma, beta)
    a = _bn_relu_apply(y.reshape(4 * n, Cout), scale, shift)
    return _interleave_phases(a.reshape(4, n, Cout), B, H, Wd, Cout)


def _deconv_s2_final(x, W, b, lane_pad=128):
    """conv_final: ConvTranspose2d(32, C, 4, 2, 1); output channels are zero-
    padded to `lane_pad` so the kernel's stores are lane-dense."""
    B, H, Wd, _ = x.shape
    Cout = W.shape[1]
    xg, wg = _phase_patches(x, W)
    pad = lane_pad - Cout
    y = _grouped_matmul_bias(xg,
                             jnp.pad(wg, ((0, 0), (0, 0), (0, pad))),
                             jnp.pad(b, (0, pad)),
                             emit_stats=False)
    y = y[..., :Cout]
    return _interleave_phases(y, B, H, Wd, Cout)


def conv_decoder_forward(z, params):
    p1, p2, p3, p4, p5, p6 = params
    h = _deconv1_bn_relu(z, p1["W"], p1["b"], *p1["bn"])        # (B,1,1,512)
    h = _deconv2_bn_relu(h, p2["W"], p2["b"], *p2["bn"])        # (B,4,4,64)
    h = _deconv_s2_bn_relu(h, p3["W"], p3["b"], *p3["bn"])      # (B,8,8,64)
    h = _deconv_s2_bn_relu(h, p4["W"], p4["b"], *p4["bn"])      # (B,16,16,32)
    h = _deconv_s2_bn_relu(h, p5["W"], p5["b"], *p5["bn"])      # (B,32,32,32)
    mu = _deconv_s2_final(h, p6["W"], p6["b"])                  # (B,64,64,C)
    return mu.transpose(0, 3, 1, 2)                             # NCHW once


# ------------------------------ params & refs -------------------------------

_LAYER_SPECS = [  # (Cin, Cout, k, stride, pad, has_bn); None -> from ctor args
    (None, 512, 1, 1, 0, True),
    (512, 64, 4, 1, 0, True),
    (64, 64, 4, 2, 1, True),
    (64, 32, 4, 2, 1, True),
    (32, 32, 4, 2, 1, True),
    (32, None, 4, 2, 1, False),
]


def init_params(key, input_dim, num_channels):
    params = []
    for i, (cin, cout, k, _, _, has_bn) in enumerate(_LAYER_SPECS):
        cin = input_dim if cin is None else cin
        cout = num_channels if cout is None else cout
        kw_, kb_, kg_, kt_ = jax.random.split(jax.random.fold_in(key, i), 4)
        W = 0.05 * jax.random.normal(kw_, (cin, cout, k, k), jnp.float32)
        b = 0.05 * jax.random.normal(kb_, (cout,), jnp.float32)
        bn = None
        if has_bn:
            gamma = 1.0 + 0.1 * jax.random.normal(kg_, (cout,), jnp.float32)
            beta = 0.1 * jax.random.normal(kt_, (cout,), jnp.float32)
            bn = (gamma, beta)
        params.append(dict(W=W, b=b, bn=bn))
    return params


def _ref_deconv(x, W, b, stride, pad, precision=None):
    k = W.shape[2]
    Wt = jnp.flip(W, (2, 3)).transpose(1, 0, 2, 3).astype(x.dtype)
    out = lax.conv_general_dilated(
        x, Wt, window_strides=(1, 1),
        padding=[(k - 1 - pad, k - 1 - pad)] * 2,
        lhs_dilation=(stride, stride),
        dimension_numbers=("NCHW", "OIHW", "NCHW"),
        preferred_element_type=jnp.float32,
        precision=precision)
    return out + b.reshape(1, -1, 1, 1)


def _ref_bn_relu(x, gamma, beta):
    mean = x.mean(axis=(0, 2, 3), keepdims=True)
    var = ((x - mean) ** 2).mean(axis=(0, 2, 3), keepdims=True)
    y = (x - mean) * lax.rsqrt(var + EPS)
    y = y * gamma.reshape(1, -1, 1, 1) + beta.reshape(1, -1, 1, 1)
    return jnp.maximum(y, 0.0)


def ref_forward(z, params, *, matmul_dtype=jnp.float32):
    """Pure-JAX NCHW reference.  matmul_dtype=bfloat16 reproduces the kernel's
    MXU numerics (bf16 operands, f32 accumulation, bf16 activations)."""
    bf16 = matmul_dtype == jnp.bfloat16
    precision = None if bf16 else lax.Precision.HIGHEST
    h = z.reshape(z.shape[0], z.shape[1], 1, 1).astype(matmul_dtype)
    for p, (_, _, _, s, pd, has_bn) in zip(params, _LAYER_SPECS):
        y = _ref_deconv(h, p["W"], p["b"], s, pd, precision=precision)
        if has_bn:
            y = _ref_bn_relu(y, *p["bn"])
            h = y.astype(matmul_dtype)
        else:
            h = y
    return h


# ----------------------------------- main ------------------------------------

if __name__ == "__main__":
    key = jax.random.PRNGKey(0)
    batch, input_dim, num_channels = 4, 10, 3

    params = init_params(jax.random.fold_in(key, 100), input_dim, num_channels)
    z = jax.random.normal(jax.random.fold_in(key, 200),
                          (batch, input_dim), jnp.float32)

    fwd = jax.jit(conv_decoder_forward)
    out = jax.block_until_ready(fwd(z, params))
    assert out.shape == (batch, num_channels, 64, 64), out.shape

    # Strict check against a reference with the same bf16 x bf16 -> f32 matmul
    # numerics as the kernels (verifies the deconv/BN/ReLU structure).
    ref_b = jax.block_until_ready(ref_forward(z, params,
                                              matmul_dtype=jnp.bfloat16))
    err = float(jnp.max(jnp.abs(out - ref_b)))
    assert jnp.allclose(out, ref_b, atol=5e-3, rtol=5e-3), err

    # Loose sanity check of the bf16 fast path against the full-f32 module
    # (training-mode BN on a tiny batch amplifies any precision change, hence
    # the relative-Frobenius bound instead of elementwise tolerance).
    ref_f = jax.block_until_ready(ref_forward(z, params))
    rel = float(jnp.linalg.norm(out - ref_f) / jnp.linalg.norm(ref_f))
    assert rel < 1e-1, rel

    print("KERNEL_OK")
</pallas_src>

<mosaic_0001>
module attributes {stable_mosaic.version = 11 : i64} {
  func.func @_scale_shift_relu_kernel(%arg0: i32, %arg1: memref<4x512xf32, #tpu.memory_space<vmem>>, %arg2: memref<1x512xf32, #tpu.memory_space<vmem>>, %arg3: memref<1x512xf32, #tpu.memory_space<vmem>>, %arg4: memref<4x512xbf16, #tpu.memory_space<vmem>>) attributes {dimension_semantics = [#tpu.dimension_semantics<parallel>], iteration_bounds = array<i64: 1>, scalar_prefetch = 0 : i64, scratch_operands = 0 : i64, tpu.core_type = #tpu.core_type<tc>, window_params = [{transform_indices = @transform_0, window_bounds = array<i64: 4, 512>}, {pipeline_mode = #tpu.pipeline_mode<synchronous>, transform_indices = @transform_1, window_bounds = array<i64: 1, 512>}, {pipeline_mode = #tpu.pipeline_mode<synchronous>, transform_indices = @transform_2, window_bounds = array<i64: 1, 512>}, {transform_indices = @transform_3, window_bounds = array<i64: 4, 512>}]} {
    %c0 = arith.constant 0 : index
    %c0_0 = arith.constant 0 : index
    %0 = vector.load %arg1[%c0, %c0_0] : memref<4x512xf32, #tpu.memory_space<vmem>>, vector<4x512xf32>
    %c0_1 = arith.constant 0 : index
    %c0_2 = arith.constant 0 : index
    %1 = vector.load %arg2[%c0_1, %c0_2] : memref<1x512xf32, #tpu.memory_space<vmem>>, vector<1x512xf32>
    %2 = vector.broadcast %1 : vector<1x512xf32> to vector<4x512xf32>
    %3 = arith.mulf %0, %2 : vector<4x512xf32>
    %c0_3 = arith.constant 0 : index
    %c0_4 = arith.constant 0 : index
    %4 = vector.load %arg3[%c0_3, %c0_4] : memref<1x512xf32, #tpu.memory_space<vmem>>, vector<1x512xf32>
    %5 = vector.broadcast %4 : vector<1x512xf32> to vector<4x512xf32>
    %6 = arith.addf %3, %5 : vector<4x512xf32>
    %cst = arith.constant 0.000000e+00 : f32
    %7 = vector.broadcast %cst : f32 to vector<4x512xf32>
    %8 = arith.maximumf %6, %7 : vector<4x512xf32>
    %9 = arith.truncf %8 : vector<4x512xf32> to vector<4x512xbf16>
    %c0_5 = arith.constant 0 : index
    %c0_6 = arith.constant 0 : index
    %10 = vector.load %arg4[%c0_5, %c0_6] : memref<4x512xbf16, #tpu.memory_space<vmem>>, vector<4x512xbf16>
    tpu.vector_store %arg4[%c0_5, %c0_6], %9 {strides = array<i32>} : memref<4x512xbf16, #tpu.memory_space<vmem>>, vector<4x512xbf16>,
    return
  }
  func.func @transform_0(%arg0: i32) -> (i32, i32) {
    %c0_i32 = arith.constant 0 : i32
    %c0_i32_0 = arith.constant 0 : i32
    return %arg0, %c0_i32 : i32, i32
  }
  func.func @transform_1(%arg0: i32) -> (i32, i32) {
    %c0_i32 = arith.constant 0 : i32
    %c0_i32_0 = arith.constant 0 : i32
    %c0_i32_1 = arith.constant 0 : i32
    return %c0_i32, %c0_i32_0 : i32, i32
  }
  func.func @transform_2(%arg0: i32) -> (i32, i32) {
    %c0_i32 = arith.constant 0 : i32
    %c0_i32_0 = arith.constant 0 : i32
    %c0_i32_1 = arith.constant 0 : i32
    return %c0_i32, %c0_i32_0 : i32, i32
  }
  func.func @transform_3(%arg0: i32) -> (i32, i32) {
    %c0_i32 = arith.constant 0 : i32
    %c0_i32_0 = arith.constant 0 : i32
    return %arg0, %c0_i32 : i32, i32
  }
}

module attributes {stable_mosaic.version = 11 : i64} {
  func.func @_mm_bias_stats_kernel(%arg0: i32, %arg1: i32, %arg2: memref<1x4x10xbf16, #tpu.memory_space<vmem>>, %arg3: memref<1x10x512xbf16, #tpu.memory_space<vmem>>, %arg4: memref<1x512xf32, #tpu.memory_space<vmem>>, %arg5: memref<1x4x512xf32, #tpu.memory_space<vmem>>, %arg6: memref<1x1x512xf32, #tpu.memory_space<vmem>>, %arg7: memref<1x1x512xf32, #tpu.memory_space<vmem>>) attributes {dimension_semantics = [#tpu.dimension_semantics<parallel>, #tpu.dimension_semantics<arbitrary>], iteration_bounds = array<i64: 1, 1>, scalar_prefetch = 0 : i64, scratch_operands = 0 : i64, tpu.core_type = #tpu.core_type<tc>, window_params = [{transform_indices = @transform_0, window_bounds = array<i64: 1, 4, 10>}, {transform_indices = @transform_1, window_bounds = array<i64: 1, 10, 512>}, {pipeline_mode = #tpu.pipeline_mode<synchronous>, transform_indices = @transform_2, window_bounds = array<i64: 1, 512>}, {transform_indices = @transform_3, window_bounds = array<i64: 1, 4, 512>}, {transform_indices = @transform_4, window_bounds = array<i64: 1, 1, 512>}, {transform_indices = @transform_5, window_bounds = array<i64: 1, 1, 512>}]} {
    %c0 = arith.constant 0 : index
    %c0_0 = arith.constant 0 : index
    %c0_1 = arith.constant 0 : index
    %0 = vector.load %arg2[%c0, %c0_0, %c0_1] : memref<1x4x10xbf16, #tpu.memory_space<vmem>>, vector<1x4x10xbf16>
    %1 = vector.shape_cast %0 : vector<1x4x10xbf16> to vector<4x10xbf16>
    %c0_2 = arith.constant 0 : index
    %c0_3 = arith.constant 0 : index
    %c0_4 = arith.constant 0 : index
    %2 = vector.load %arg3[%c0_2, %c0_3, %c0_4] : memref<1x10x512xbf16, #tpu.memory_space<vmem>>, vector<1x10x512xbf16>
    %3 = vector.shape_cast %2 : vector<1x10x512xbf16> to vector<10x512xbf16>
    %cst = arith.constant dense<0.000000e+00> : vector<4x512xf32>
    %4 = tpu.matmul %1, %3, %cst {dimension_numbers = #tpu.dot_dimension_numbers<[1], [0], [0], [1], [0, 0, 1, 1], [], []>} : vector<4x10xbf16>, vector<10x512xbf16>, vector<4x512xf32> -> vector<4x512xf32>
    %c0_5 = arith.constant 0 : index
    %c0_6 = arith.constant 0 : index
    %5 = vector.load %arg4[%c0_5, %c0_6] : memref<1x512xf32, #tpu.memory_space<vmem>>, vector<1x512xf32>
    %6 = vector.broadcast %5 : vector<1x512xf32> to vector<4x512xf32>
    %7 = arith.addf %4, %6 : vector<4x512xf32>
    %c0_7 = arith.constant 0 : index
    %c0_8 = arith.constant 0 : index
    %c0_9 = arith.constant 0 : index
    %8 = vector.load %arg5[%c0_7, %c0_8, %c0_9] : memref<1x4x512xf32, #tpu.memory_space<vmem>>, vector<1x4x512xf32>
    %9 = vector.shape_cast %8 : vector<1x4x512xf32> to vector<4x512xf32>
    %10 = vector.shape_cast %7 : vector<4x512xf32> to vector<1x4x512xf32>
    tpu.vector_store %arg5[%c0_7, %c0_8, %c0_9], %10 {strides = array<i32>} : memref<1x4x512xf32, #tpu.memory_space<vmem>>, vector<1x4x512xf32>,
    %c0_i32 = arith.constant 0 : i32
    %11 = arith.cmpi eq, %arg1, %c0_i32 : i32
    %12 = arith.extui %11 : i1 to i32
    %c0_i32_10 = arith.constant 0 : i32
    %13 = arith.cmpi ne, %12, %c0_i32_10 : i32
    scf.if %13 {
      %cst_25 = arith.constant 0.000000e+00 : f32
      %31 = vector.broadcast %cst_25 : f32 to vector<1x1x512xf32>
      %c0_26 = arith.constant 0 : index
      %c0_27 = arith.constant 0 : index
      %c0_28 = arith.constant 0 : index
      %32 = vector.load %arg6[%c0_26, %c0_27, %c0_28] : memref<1x1x512xf32, #tpu.memory_space<vmem>>, vector<1x1x512xf32>
      tpu.vector_store %arg6[%c0_26, %c0_27, %c0_28], %31 {strides = array<i32>} : memref<1x1x512xf32, #tpu.memory_space<vmem>>, vector<1x1x512xf32>,
      %cst_29 = arith.constant 0.000000e+00 : f32
      %33 = vector.broadcast %cst_29 : f32 to vector<1x1x512xf32>
      %c0_30 = arith.constant 0 : index
      %c0_31 = arith.constant 0 : index
      %c0_32 = arith.constant 0 : index
      %34 = vector.load %arg7[%c0_30, %c0_31, %c0_32] : memref<1x1x512xf32, #tpu.memory_space<vmem>>, vector<1x1x512xf32>
      tpu.vector_store %arg7[%c0_30, %c0_31, %c0_32], %33 {strides = array<i32>} : memref<1x1x512xf32, #tpu.memory_space<vmem>>, vector<1x1x512xf32>,
    } else {
    }
    %c0_11 = arith.constant 0 : index
    %c0_12 = arith.constant 0 : index
    %c0_13 = arith.constant 0 : index
    %14 = vector.load %arg6[%c0_11, %c0_12, %c0_13] : memref<1x1x512xf32, #tpu.memory_space<vmem>>, vector<1x1x512xf32>
    %15 = vector.shape_cast %14 : vector<1x1x512xf32> to vector<1x512xf32>
    %cst_14 = arith.constant dense<0.000000e+00> : vector<512xf32>
    %16 = vector.multi_reduction <add>, %7, %cst_14 [0] : vector<4x512xf32> to vector<512xf32>
    %17 = vector.shape_cast %16 : vector<512xf32> to vector<1x512xf32>
    %18 = arith.addf %15, %17 : vector<1x512xf32>
    %c0_15 = arith.constant 0 : index
    %c0_16 = arith.constant 0 : index
    %c0_17 = arith.constant 0 : index
    %19 = vector.load %arg6[%c0_15, %c0_16, %c0_17] : memref<1x1x512xf32, #tpu.memory_space<vmem>>, vector<1x1x512xf32>
    %20 = vector.shape_cast %19 : vector<1x1x512xf32> to vector<1x512xf32>
    %21 = vector.shape_cast %18 : vector<1x512xf32> to vector<1x1x512xf32>
    tpu.vector_store %arg6[%c0_15, %c0_16, %c0_17], %21 {strides = array<i32>} : memref<1x1x512xf32, #tpu.memory_space<vmem>>, vector<1x1x512xf32>,
    %c0_18 = arith.constant 0 : index
    %c0_19 = arith.constant 0 : index
    %c0_20 = arith.constant 0 : index
    %22 = vector.load %arg7[%c0_18, %c0_19, %c0_20] : memref<1x1x512xf32, #tpu.memory_space<vmem>>, vector<1x1x512xf32>
    %23 = vector.shape_cast %22 : vector<1x1x512xf32> to vector<1x512xf32>
    %24 = arith.mulf %7, %7 : vector<4x512xf32>
    %cst_21 = arith.constant dense<0.000000e+00> : vector<512xf32>
    %25 = vector.multi_reduction <add>, %24, %cst_21 [0] : vector<4x512xf32> to vector<512xf32>
    %26 = vector.shape_cast %25 : vector<512xf32> to vector<1x512xf32>
    %27 = arith.addf %23, %26 : vector<1x512xf32>
    %c0_22 = arith.constant 0 : index
    %c0_23 = arith.constant 0 : index
    %c0_24 = arith.constant 0 : index
    %28 = vector.load %arg7[%c0_22, %c0_23, %c0_24] : memref<1x1x512xf32, #tpu.memory_space<vmem>>, vector<1x1x512xf32>
    %29 = vector.shape_cast %28 : vector<1x1x512xf32> to vector<1x512xf32>
    %30 = vector.shape_cast %27 : vector<1x512xf32> to vector<1x1x512xf32>
    tpu.vector_store %arg7[%c0_22, %c0_23, %c0_24], %30 {strides = array<i32>} : memref<1x1x512xf32, #tpu.memory_space<vmem>>, vector<1x1x512xf32>,
    return
  }
  func.func @transform_0(%arg0: i32, %arg1: i32) -> (i32, i32, i32) {
    %c0_i32 = arith.constant 0 : i32
    %c0_i32_0 = arith.constant 0 : i32
    return %arg0, %arg1, %c0_i32 : i32, i32, i32
  }
  func.func @transform_1(%arg0: i32, %arg1: i32) -> (i32, i32, i32) {
    %c0_i32 = arith.constant 0 : i32
    %c0_i32_0 = arith.constant 0 : i32
    %c0_i32_1 = arith.constant 0 : i32
    return %arg0, %c0_i32, %c0_i32_0 : i32, i32, i32
  }
  func.func @transform_2(%arg0: i32, %arg1: i32) -> (i32, i32) {
    %c0_i32 = arith.constant 0 : i32
    %c0_i32_0 = arith.constant 0 : i32
    %c0_i32_1 = arith.constant 0 : i32
    return %c0_i32, %c0_i32_0 : i32, i32
  }
  func.func @transform_3(%arg0: i32, %arg1: i32) -> (i32, i32, i32) {
    %c0_i32 = arith.constant 0 : i32
    %c0_i32_0 = arith.constant 0 : i32
    return %arg0, %arg1, %c0_i32 : i32, i32, i32
  }
  func.func @transform_4(%arg0: i32, %arg1: i32) -> (i32, i32, i32) {
    %c0_i32 = arith.constant 0 : i32
    %c0_i32_0 = arith.constant 0 : i32
    %c0_i32_1 = arith.constant 0 : i32
    return %arg0, %c0_i32, %c0_i32_0 : i32, i32, i32
  }
  func.func @transform_5(%arg0: i32, %arg1: i32) -> (i32, i32, i32) {
    %c0_i32 = arith.constant 0 : i32
    %c0_i32_0 = arith.constant 0 : i32
    %c0_i32_1 = arith.constant 0 : i32
    return %arg0, %c0_i32, %c0_i32_0 : i32, i32, i32
  }
}

module attributes {stable_mosaic.version = 11 : i64} {
  func.func @_mm_bias_stats_kernel(%arg0: i32, %arg1: i32, %arg2: memref<1x4x512xbf16, #tpu.memory_space<vmem>>, %arg3: memref<1x512x1024xbf16, #tpu.memory_space<vmem>>, %arg4: memref<1x1024xf32, #tpu.memory_space<vmem>>, %arg5: memref<1x4x1024xf32, #tpu.memory_space<vmem>>, %arg6: memref<1x1x1024xf32, #tpu.memory_space<vmem>>, %arg7: memref<1x1x1024xf32, #tpu.memory_space<vmem>>) attributes {dimension_semantics = [#tpu.dimension_semantics<parallel>, #tpu.dimension_semantics<arbitrary>], iteration_bounds = array<i64: 1, 1>, scalar_prefetch = 0 : i64, scratch_operands = 0 : i64, tpu.core_type = #tpu.core_type<tc>, window_params = [{transform_indices = @transform_0, window_bounds = array<i64: 1, 4, 512>}, {transform_indices = @transform_1, window_bounds = array<i64: 1, 512, 1024>}, {pipeline_mode = #tpu.pipeline_mode<synchronous>, transform_indices = @transform_2, window_bounds = array<i64: 1, 1024>}, {transform_indices = @transform_3, window_bounds = array<i64: 1, 4, 1024>}, {transform_indices = @transform_4, window_bounds = array<i64: 1, 1, 1024>}, {transform_indices = @transform_5, window_bounds = array<i64: 1, 1, 1024>}]} {
    %c0 = arith.constant 0 : index
    %c0_0 = arith.constant 0 : index
    %c0_1 = arith.constant 0 : index
    %0 = vector.load %arg2[%c0, %c0_0, %c0_1] : memref<1x4x512xbf16, #tpu.memory_space<vmem>>, vector<1x4x512xbf16>
    %1 = vector.shape_cast %0 : vector<1x4x512xbf16> to vector<4x512xbf16>
    %c0_2 = arith.constant 0 : index
    %c0_3 = arith.constant 0 : index
    %c0_4 = arith.constant 0 : index
    %2 = vector.load %arg3[%c0_2, %c0_3, %c0_4] : memref<1x512x1024xbf16, #tpu.memory_space<vmem>>, vector<1x512x1024xbf16>
    %3 = vector.shape_cast %2 : vector<1x512x1024xbf16> to vector<512x1024xbf16>
    %cst = arith.constant dense<0.000000e+00> : vector<4x1024xf32>
    %4 = tpu.matmul %1, %3, %cst {dimension_numbers = #tpu.dot_dimension_numbers<[1], [0], [0], [1], [0, 0, 1, 1], [], []>} : vector<4x512xbf16>, vector<512x1024xbf16>, vector<4x1024xf32> -> vector<4x1024xf32>
    %c0_5 = arith.constant 0 : index
    %c0_6 = arith.constant 0 : index
    %5 = vector.load %arg4[%c0_5, %c0_6] : memref<1x1024xf32, #tpu.memory_space<vmem>>, vector<1x1024xf32>
    %6 = vector.broadcast %5 : vector<1x1024xf32> to vector<4x1024xf32>
    %7 = arith.addf %4, %6 : vector<4x1024xf32>
    %c0_7 = arith.constant 0 : index
    %c0_8 = arith.constant 0 : index
    %c0_9 = arith.constant 0 : index
    %8 = vector.load %arg5[%c0_7, %c0_8, %c0_9] : memref<1x4x1024xf32, #tpu.memory_space<vmem>>, vector<1x4x1024xf32>
    %9 = vector.shape_cast %8 : vector<1x4x1024xf32> to vector<4x1024xf32>
    %10 = vector.shape_cast %7 : vector<4x1024xf32> to vector<1x4x1024xf32>
    tpu.vector_store %arg5[%c0_7, %c0_8, %c0_9], %10 {strides = array<i32>} : memref<1x4x1024xf32, #tpu.memory_space<vmem>>, vector<1x4x1024xf32>,
    %c0_i32 = arith.constant 0 : i32
    %11 = arith.cmpi eq, %arg1, %c0_i32 : i32
    %12 = arith.extui %11 : i1 to i32
    %c0_i32_10 = arith.constant 0 : i32
    %13 = arith.cmpi ne, %12, %c0_i32_10 : i32
    scf.if %13 {
      %cst_25 = arith.constant 0.000000e+00 : f32
      %31 = vector.broadcast %cst_25 : f32 to vector<1x1x1024xf32>
      %c0_26 = arith.constant 0 : index
      %c0_27 = arith.constant 0 : index
      %c0_28 = arith.constant 0 : index
      %32 = vector.load %arg6[%c0_26, %c0_27, %c0_28] : memref<1x1x1024xf32, #tpu.memory_space<vmem>>, vector<1x1x1024xf32>
      tpu.vector_store %arg6[%c0_26, %c0_27, %c0_28], %31 {strides = array<i32>} : memref<1x1x1024xf32, #tpu.memory_space<vmem>>, vector<1x1x1024xf32>,
      %cst_29 = arith.constant 0.000000e+00 : f32
      %33 = vector.broadcast %cst_29 : f32 to vector<1x1x1024xf32>
      %c0_30 = arith.constant 0 : index
      %c0_31 = arith.constant 0 : index
      %c0_32 = arith.constant 0 : index
      %34 = vector.load %arg7[%c0_30, %c0_31, %c0_32] : memref<1x1x1024xf32, #tpu.memory_space<vmem>>, vector<1x1x1024xf32>
      tpu.vector_store %arg7[%c0_30, %c0_31, %c0_32], %33 {strides = array<i32>} : memref<1x1x1024xf32, #tpu.memory_space<vmem>>, vector<1x1x1024xf32>,
    } else {
    }
    %c0_11 = arith.constant 0 : index
    %c0_12 = arith.constant 0 : index
    %c0_13 = arith.constant 0 : index
    %14 = vector.load %arg6[%c0_11, %c0_12, %c0_13] : memref<1x1x1024xf32, #tpu.memory_space<vmem>>, vector<1x1x1024xf32>
    %15 = vector.shape_cast %14 : vector<1x1x1024xf32> to vector<1x1024xf32>
    %cst_14 = arith.constant dense<0.000000e+00> : vector<1024xf32>
    %16 = vector.multi_reduction <add>, %7, %cst_14 [0] : vector<4x1024xf32> to vector<1024xf32>
    %17 = vector.shape_cast %16 : vector<1024xf32> to vector<1x1024xf32>
    %18 = arith.addf %15, %17 : vector<1x1024xf32>
    %c0_15 = arith.constant 0 : index
    %c0_16 = arith.constant 0 : index
    %c0_17 = arith.constant 0 : index
    %19 = vector.load %arg6[%c0_15, %c0_16, %c0_17] : memref<1x1x1024xf32, #tpu.memory_space<vmem>>, vector<1x1x1024xf32>
    %20 = vector.shape_cast %19 : vector<1x1x1024xf32> to vector<1x1024xf32>
    %21 = vector.shape_cast %18 : vector<1x1024xf32> to vector<1x1x1024xf32>
    tpu.vector_store %arg6[%c0_15, %c0_16, %c0_17], %21 {strides = array<i32>} : memref<1x1x1024xf32, #tpu.memory_space<vmem>>, vector<1x1x1024xf32>,
    %c0_18 = arith.constant 0 : index
    %c0_19 = arith.constant 0 : index
    %c0_20 = arith.constant 0 : index
    %22 = vector.load %arg7[%c0_18, %c0_19, %c0_20] : memref<1x1x1024xf32, #tpu.memory_space<vmem>>, vector<1x1x1024xf32>
    %23 = vector.shape_cast %22 : vector<1x1x1024xf32> to vector<1x1024xf32>
    %24 = arith.mulf %7, %7 : vector<4x1024xf32>
    %cst_21 = arith.constant dense<0.000000e+00> : vector<1024xf32>
    %25 = vector.multi_reduction <add>, %24, %cst_21 [0] : vector<4x1024xf32> to vector<1024xf32>
    %26 = vector.shape_cast %25 : vector<1024xf32> to vector<1x1024xf32>
    %27 = arith.addf %23, %26 : vector<1x1024xf32>
    %c0_22 = arith.constant 0 : index
    %c0_23 = arith.constant 0 : index
    %c0_24 = arith.constant 0 : index
    %28 = vector.load %arg7[%c0_22, %c0_23, %c0_24] : memref<1x1x1024xf32, #tpu.memory_space<vmem>>, vector<1x1x1024xf32>
    %29 = vector.shape_cast %28 : vector<1x1x1024xf32> to vector<1x1024xf32>
    %30 = vector.shape_cast %27 : vector<1x1024xf32> to vector<1x1x1024xf32>
    tpu.vector_store %arg7[%c0_22, %c0_23, %c0_24], %30 {strides = array<i32>} : memref<1x1x1024xf32, #tpu.memory_space<vmem>>, vector<1x1x1024xf32>,
    return
  }
  func.func @transform_0(%arg0: i32, %arg1: i32) -> (i32, i32, i32) {
    %c0_i32 = arith.constant 0 : i32
    %c0_i32_0 = arith.constant 0 : i32
    return %arg0, %arg1, %c0_i32 : i32, i32, i32
  }
  func.func @transform_1(%arg0: i32, %arg1: i32) -> (i32, i32, i32) {
    %c0_i32 = arith.constant 0 : i32
    %c0_i32_0 = arith.constant 0 : i32
    %c0_i32_1 = arith.constant 0 : i32
    return %arg0, %c0_i32, %c0_i32_0 : i32, i32, i32
  }
  func.func @transform_2(%arg0: i32, %arg1: i32) -> (i32, i32) {
    %c0_i32 = arith.constant 0 : i32
    %c0_i32_0 = arith.constant 0 : i32
    %c0_i32_1 = arith.constant 0 : i32
    return %c0_i32, %c0_i32_0 : i32, i32
  }
  func.func @transform_3(%arg0: i32, %arg1: i32) -> (i32, i32, i32) {
    %c0_i32 = arith.constant 0 : i32
    %c0_i32_0 = arith.constant 0 : i32
    return %arg0, %arg1, %c0_i32 : i32, i32, i32
  }
  func.func @transform_4(%arg0: i32, %arg1: i32) -> (i32, i32, i32) {
    %c0_i32 = arith.constant 0 : i32
    %c0_i32_0 = arith.constant 0 : i32
    %c0_i32_1 = arith.constant 0 : i32
    return %arg0, %c0_i32, %c0_i32_0 : i32, i32, i32
  }
  func.func @transform_5(%arg0: i32, %arg1: i32) -> (i32, i32, i32) {
    %c0_i32 = arith.constant 0 : i32
    %c0_i32_0 = arith.constant 0 : i32
    %c0_i32_1 = arith.constant 0 : i32
    return %arg0, %c0_i32, %c0_i32_0 : i32, i32, i32
  }
}

module attributes {stable_mosaic.version = 11 : i64} {
  func.func @_scale_shift_relu_kernel(%arg0: i32, %arg1: memref<32x128xf32, #tpu.memory_space<vmem>>, %arg2: memref<1x128xf32, #tpu.memory_space<vmem>>, %arg3: memref<1x128xf32, #tpu.memory_space<vmem>>, %arg4: memref<32x128xbf16, #tpu.memory_space<vmem>>) attributes {dimension_semantics = [#tpu.dimension_semantics<parallel>], iteration_bounds = array<i64: 1>, scalar_prefetch = 0 : i64, scratch_operands = 0 : i64, tpu.core_type = #tpu.core_type<tc>, window_params = [{transform_indices = @transform_0, window_bounds = array<i64: 32, 128>}, {pipeline_mode = #tpu.pipeline_mode<synchronous>, transform_indices = @transform_1, window_bounds = array<i64: 1, 128>}, {pipeline_mode = #tpu.pipeline_mode<synchronous>, transform_indices = @transform_2, window_bounds = array<i64: 1, 128>}, {transform_indices = @transform_3, window_bounds = array<i64: 32, 128>}]} {
    %c0 = arith.constant 0 : index
    %c0_0 = arith.constant 0 : index
    %0 = vector.load %arg1[%c0, %c0_0] : memref<32x128xf32, #tpu.memory_space<vmem>>, vector<32x128xf32>
    %c0_1 = arith.constant 0 : index
    %c0_2 = arith.constant 0 : index
    %1 = vector.load %arg2[%c0_1, %c0_2] : memref<1x128xf32, #tpu.memory_space<vmem>>, vector<1x128xf32>
    %2 = vector.broadcast %1 : vector<1x128xf32> to vector<32x128xf32>
    %3 = arith.mulf %0, %2 : vector<32x128xf32>
    %c0_3 = arith.constant 0 : index
    %c0_4 = arith.constant 0 : index
    %4 = vector.load %arg3[%c0_3, %c0_4] : memref<1x128xf32, #tpu.memory_space<vmem>>, vector<1x128xf32>
    %5 = vector.broadcast %4 : vector<1x128xf32> to vector<32x128xf32>
    %6 = arith.addf %3, %5 : vector<32x128xf32>
    %cst = arith.constant 0.000000e+00 : f32
    %7 = vector.broadcast %cst : f32 to vector<32x128xf32>
    %8 = arith.maximumf %6, %7 : vector<32x128xf32>
    %9 = arith.truncf %8 : vector<32x128xf32> to vector<32x128xbf16>
    %c0_5 = arith.constant 0 : index
    %c0_6 = arith.constant 0 : index
    %10 = vector.load %arg4[%c0_5, %c0_6] : memref<32x128xbf16, #tpu.memory_space<vmem>>, vector<32x128xbf16>
    tpu.vector_store %arg4[%c0_5, %c0_6], %9 {strides = array<i32>} : memref<32x128xbf16, #tpu.memory_space<vmem>>, vector<32x128xbf16>,
    return
  }
  func.func @transform_0(%arg0: i32) -> (i32, i32) {
    %c0_i32 = arith.constant 0 : i32
    %c0_i32_0 = arith.constant 0 : i32
    return %arg0, %c0_i32 : i32, i32
  }
  func.func @transform_1(%arg0: i32) -> (i32, i32) {
    %c0_i32 = arith.constant 0 : i32
    %c0_i32_0 = arith.constant 0 : i32
    %c0_i32_1 = arith.constant 0 : i32
    return %c0_i32, %c0_i32_0 : i32, i32
  }
  func.func @transform_2(%arg0: i32) -> (i32, i32) {
    %c0_i32 = arith.constant 0 : i32
    %c0_i32_0 = arith.constant 0 : i32
    %c0_i32_1 = arith.constant 0 : i32
    return %c0_i32, %c0_i32_0 : i32, i32
  }
  func.func @transform_3(%arg0: i32) -> (i32, i32) {
    %c0_i32 = arith.constant 0 : i32
    %c0_i32_0 = arith.constant 0 : i32
    return %arg0, %c0_i32 : i32, i32
  }
}

module attributes {stable_mosaic.version = 11 : i64} {
  func.func @_mm_bias_stats_kernel(%arg0: i32, %arg1: i32, %arg2: memref<1x64x256xbf16, #tpu.memory_space<vmem>>, %arg3: memref<1x256x64xbf16, #tpu.memory_space<vmem>>, %arg4: memref<1x64xf32, #tpu.memory_space<vmem>>, %arg5: memref<1x64x64xf32, #tpu.memory_space<vmem>>, %arg6: memref<1x1x64xf32, #tpu.memory_space<vmem>>, %arg7: memref<1x1x64xf32, #tpu.memory_space<vmem>>) attributes {dimension_semantics = [#tpu.dimension_semantics<parallel>, #tpu.dimension_semantics<arbitrary>], iteration_bounds = array<i64: 4, 1>, scalar_prefetch = 0 : i64, scratch_operands = 0 : i64, tpu.core_type = #tpu.core_type<tc>, window_params = [{transform_indices = @transform_0, window_bounds = array<i64: 1, 64, 256>}, {transform_indices = @transform_1, window_bounds = array<i64: 1, 256, 64>}, {pipeline_mode = #tpu.pipeline_mode<synchronous>, transform_indices = @transform_2, window_bounds = array<i64: 1, 64>}, {transform_indices = @transform_3, window_bounds = array<i64: 1, 64, 64>}, {transform_indices = @transform_4, window_bounds = array<i64: 1, 1, 64>}, {transform_indices = @transform_5, window_bounds = array<i64: 1, 1, 64>}]} {
    %c0 = arith.constant 0 : index
    %c0_0 = arith.constant 0 : index
    %c0_1 = arith.constant 0 : index
    %0 = vector.load %arg2[%c0, %c0_0, %c0_1] : memref<1x64x256xbf16, #tpu.memory_space<vmem>>, vector<1x64x256xbf16>
    %1 = vector.shape_cast %0 : vector<1x64x256xbf16> to vector<64x256xbf16>
    %c0_2 = arith.constant 0 : index
    %c0_3 = arith.constant 0 : index
    %c0_4 = arith.constant 0 : index
    %2 = vector.load %arg3[%c0_2, %c0_3, %c0_4] : memref<1x256x64xbf16, #tpu.memory_space<vmem>>, vector<1x256x64xbf16>
    %3 = vector.shape_cast %2 : vector<1x256x64xbf16> to vector<256x64xbf16>
    %cst = arith.constant dense<0.000000e+00> : vector<64x64xf32>
    %4 = tpu.matmul %1, %3, %cst {dimension_numbers = #tpu.dot_dimension_numbers<[1], [0], [0], [1], [0, 0, 1, 1], [], []>} : vector<64x256xbf16>, vector<256x64xbf16>, vector<64x64xf32> -> vector<64x64xf32>
    %c0_5 = arith.constant 0 : index
    %c0_6 = arith.constant 0 : index
    %5 = vector.load %arg4[%c0_5, %c0_6] : memref<1x64xf32, #tpu.memory_space<vmem>>, vector<1x64xf32>
    %6 = vector.broadcast %5 : vector<1x64xf32> to vector<64x64xf32>
    %7 = arith.addf %4, %6 : vector<64x64xf32>
    %c0_7 = arith.constant 0 : index
    %c0_8 = arith.constant 0 : index
    %c0_9 = arith.constant 0 : index
    %8 = vector.load %arg5[%c0_7, %c0_8, %c0_9] : memref<1x64x64xf32, #tpu.memory_space<vmem>>, vector<1x64x64xf32>
    %9 = vector.shape_cast %8 : vector<1x64x64xf32> to vector<64x64xf32>
    %10 = vector.shape_cast %7 : vector<64x64xf32> to vector<1x64x64xf32>
    tpu.vector_store %arg5[%c0_7, %c0_8, %c0_9], %10 {strides = array<i32>} : memref<1x64x64xf32, #tpu.memory_space<vmem>>, vector<1x64x64xf32>,
    %c0_i32 = arith.constant 0 : i32
    %11 = arith.cmpi eq, %arg1, %c0_i32 : i32
    %12 = arith.extui %11 : i1 to i32
    %c0_i32_10 = arith.constant 0 : i32
    %13 = arith.cmpi ne, %12, %c0_i32_10 : i32
    scf.if %13 {
      %cst_25 = arith.constant 0.000000e+00 : f32
      %31 = vector.broadcast %cst_25 : f32 to vector<1x1x64xf32>
      %c0_26 = arith.constant 0 : index
      %c0_27 = arith.constant 0 : index
      %c0_28 = arith.constant 0 : index
      %32 = vector.load %arg6[%c0_26, %c0_27, %c0_28] : memref<1x1x64xf32, #tpu.memory_space<vmem>>, vector<1x1x64xf32>
      tpu.vector_store %arg6[%c0_26, %c0_27, %c0_28], %31 {strides = array<i32>} : memref<1x1x64xf32, #tpu.memory_space<vmem>>, vector<1x1x64xf32>,
      %cst_29 = arith.constant 0.000000e+00 : f32
      %33 = vector.broadcast %cst_29 : f32 to vector<1x1x64xf32>
      %c0_30 = arith.constant 0 : index
      %c0_31 = arith.constant 0 : index
      %c0_32 = arith.constant 0 : index
      %34 = vector.load %arg7[%c0_30, %c0_31, %c0_32] : memref<1x1x64xf32, #tpu.memory_space<vmem>>, vector<1x1x64xf32>
      tpu.vector_store %arg7[%c0_30, %c0_31, %c0_32], %33 {strides = array<i32>} : memref<1x1x64xf32, #tpu.memory_space<vmem>>, vector<1x1x64xf32>,
    } else {
    }
    %c0_11 = arith.constant 0 : index
    %c0_12 = arith.constant 0 : index
    %c0_13 = arith.constant 0 : index
    %14 = vector.load %arg6[%c0_11, %c0_12, %c0_13] : memref<1x1x64xf32, #tpu.memory_space<vmem>>, vector<1x1x64xf32>
    %15 = vector.shape_cast %14 : vector<1x1x64xf32> to vector<1x64xf32>
    %cst_14 = arith.constant dense<0.000000e+00> : vector<64xf32>
    %16 = vector.multi_reduction <add>, %7, %cst_14 [0] : vector<64x64xf32> to vector<64xf32>
    %17 = vector.shape_cast %16 : vector<64xf32> to vector<1x64xf32>
    %18 = arith.addf %15, %17 : vector<1x64xf32>
    %c0_15 = arith.constant 0 : index
    %c0_16 = arith.constant 0 : index
    %c0_17 = arith.constant 0 : index
    %19 = vector.load %arg6[%c0_15, %c0_16, %c0_17] : memref<1x1x64xf32, #tpu.memory_space<vmem>>, vector<1x1x64xf32>
    %20 = vector.shape_cast %19 : vector<1x1x64xf32> to vector<1x64xf32>
    %21 = vector.shape_cast %18 : vector<1x64xf32> to vector<1x1x64xf32>
    tpu.vector_store %arg6[%c0_15, %c0_16, %c0_17], %21 {strides = array<i32>} : memref<1x1x64xf32, #tpu.memory_space<vmem>>, vector<1x1x64xf32>,
    %c0_18 = arith.constant 0 : index
    %c0_19 = arith.constant 0 : index
    %c0_20 = arith.constant 0 : index
    %22 = vector.load %arg7[%c0_18, %c0_19, %c0_20] : memref<1x1x64xf32, #tpu.memory_space<vmem>>, vector<1x1x64xf32>
    %23 = vector.shape_cast %22 : vector<1x1x64xf32> to vector<1x64xf32>
    %24 = arith.mulf %7, %7 : vector<64x64xf32>
    %cst_21 = arith.constant dense<0.000000e+00> : vector<64xf32>
    %25 = vector.multi_reduction <add>, %24, %cst_21 [0] : vector<64x64xf32> to vector<64xf32>
    %26 = vector.shape_cast %25 : vector<64xf32> to vector<1x64xf32>
    %27 = arith.addf %23, %26 : vector<1x64xf32>
    %c0_22 = arith.constant 0 : index
    %c0_23 = arith.constant 0 : index
    %c0_24 = arith.constant 0 : index
    %28 = vector.load %arg7[%c0_22, %c0_23, %c0_24] : memref<1x1x64xf32, #tpu.memory_space<vmem>>, vector<1x1x64xf32>
    %29 = vector.shape_cast %28 : vector<1x1x64xf32> to vector<1x64xf32>
    %30 = vector.shape_cast %27 : vector<1x64xf32> to vector<1x1x64xf32>
    tpu.vector_store %arg7[%c0_22, %c0_23, %c0_24], %30 {strides = array<i32>} : memref<1x1x64xf32, #tpu.memory_space<vmem>>, vector<1x1x64xf32>,
    return
  }
  func.func @transform_0(%arg0: i32, %arg1: i32) -> (i32, i32, i32) {
    %c0_i32 = arith.constant 0 : i32
    %c0_i32_0 = arith.constant 0 : i32
    return %arg0, %arg1, %c0_i32 : i32, i32, i32
  }
  func.func @transform_1(%arg0: i32, %arg1: i32) -> (i32, i32, i32) {
    %c0_i32 = arith.constant 0 : i32
    %c0_i32_0 = arith.constant 0 : i32
    %c0_i32_1 = arith.constant 0 : i32
    return %arg0, %c0_i32, %c0_i32_0 : i32, i32, i32
  }
  func.func @transform_2(%arg0: i32, %arg1: i32) -> (i32, i32) {
    %c0_i32 = arith.constant 0 : i32
    %c0_i32_0 = arith.constant 0 : i32
    %c0_i32_1 = arith.constant 0 : i32
    return %c0_i32, %c0_i32_0 : i32, i32
  }
  func.func @transform_3(%arg0: i32, %arg1: i32) -> (i32, i32, i32) {
    %c0_i32 = arith.constant 0 : i32
    %c0_i32_0 = arith.constant 0 : i32
    return %arg0, %arg1, %c0_i32 : i32, i32, i32
  }
  func.func @transform_4(%arg0: i32, %arg1: i32) -> (i32, i32, i32) {
    %c0_i32 = arith.constant 0 : i32
    %c0_i32_0 = arith.constant 0 : i32
    %c0_i32_1 = arith.constant 0 : i32
    return %arg0, %c0_i32, %c0_i32_0 : i32, i32, i32
  }
  func.func @transform_5(%arg0: i32, %arg1: i32) -> (i32, i32, i32) {
    %c0_i32 = arith.constant 0 : i32
    %c0_i32_0 = arith.constant 0 : i32
    %c0_i32_1 = arith.constant 0 : i32
    return %arg0, %c0_i32, %c0_i32_0 : i32, i32, i32
  }
}

module attributes {stable_mosaic.version = 11 : i64} {
  func.func @_scale_shift_relu_kernel(%arg0: i32, %arg1: memref<128x128xf32, #tpu.memory_space<vmem>>, %arg2: memref<1x128xf32, #tpu.memory_space<vmem>>, %arg3: memref<1x128xf32, #tpu.memory_space<vmem>>, %arg4: memref<128x128xbf16, #tpu.memory_space<vmem>>) attributes {dimension_semantics = [#tpu.dimension_semantics<parallel>], iteration_bounds = array<i64: 1>, scalar_prefetch = 0 : i64, scratch_operands = 0 : i64, tpu.core_type = #tpu.core_type<tc>, window_params = [{transform_indices = @transform_0, window_bounds = array<i64: 128, 128>}, {pipeline_mode = #tpu.pipeline_mode<synchronous>, transform_indices = @transform_1, window_bounds = array<i64: 1, 128>}, {pipeline_mode = #tpu.pipeline_mode<synchronous>, transform_indices = @transform_2, window_bounds = array<i64: 1, 128>}, {transform_indices = @transform_3, window_bounds = array<i64: 128, 128>}]} {
    %c0 = arith.constant 0 : index
    %c0_0 = arith.constant 0 : index
    %0 = vector.load %arg1[%c0, %c0_0] : memref<128x128xf32, #tpu.memory_space<vmem>>, vector<128x128xf32>
    %c0_1 = arith.constant 0 : index
    %c0_2 = arith.constant 0 : index
    %1 = vector.load %arg2[%c0_1, %c0_2] : memref<1x128xf32, #tpu.memory_space<vmem>>, vector<1x128xf32>
    %2 = vector.broadcast %1 : vector<1x128xf32> to vector<128x128xf32>
    %3 = arith.mulf %0, %2 : vector<128x128xf32>
    %c0_3 = arith.constant 0 : index
    %c0_4 = arith.constant 0 : index
    %4 = vector.load %arg3[%c0_3, %c0_4] : memref<1x128xf32, #tpu.memory_space<vmem>>, vector<1x128xf32>
    %5 = vector.broadcast %4 : vector<1x128xf32> to vector<128x128xf32>
    %6 = arith.addf %3, %5 : vector<128x128xf32>
    %cst = arith.constant 0.000000e+00 : f32
    %7 = vector.broadcast %cst : f32 to vector<128x128xf32>
    %8 = arith.maximumf %6, %7 : vector<128x128xf32>
    %9 = arith.truncf %8 : vector<128x128xf32> to vector<128x128xbf16>
    %c0_5 = arith.constant 0 : index
    %c0_6 = arith.constant 0 : index
    %10 = vector.load %arg4[%c0_5, %c0_6] : memref<128x128xbf16, #tpu.memory_space<vmem>>, vector<128x128xbf16>
    tpu.vector_store %arg4[%c0_5, %c0_6], %9 {strides = array<i32>} : memref<128x128xbf16, #tpu.memory_space<vmem>>, vector<128x128xbf16>,
    return
  }
  func.func @transform_0(%arg0: i32) -> (i32, i32) {
    %c0_i32 = arith.constant 0 : i32
    %c0_i32_0 = arith.constant 0 : i32
    return %arg0, %c0_i32 : i32, i32
  }
  func.func @transform_1(%arg0: i32) -> (i32, i32) {
    %c0_i32 = arith.constant 0 : i32
    %c0_i32_0 = arith.constant 0 : i32
    %c0_i32_1 = arith.constant 0 : i32
    return %c0_i32, %c0_i32_0 : i32, i32
  }
  func.func @transform_2(%arg0: i32) -> (i32, i32) {
    %c0_i32 = arith.constant 0 : i32
    %c0_i32_0 = arith.constant 0 : i32
    %c0_i32_1 = arith.constant 0 : i32
    return %c0_i32, %c0_i32_0 : i32, i32
  }
  func.func @transform_3(%arg0: i32) -> (i32, i32) {
    %c0_i32 = arith.constant 0 : i32
    %c0_i32_0 = arith.constant 0 : i32
    return %arg0, %c0_i32 : i32, i32
  }
}

module attributes {stable_mosaic.version = 11 : i64} {
  func.func @_mm_bias_stats_kernel(%arg0: i32, %arg1: i32, %arg2: memref<1x256x256xbf16, #tpu.memory_space<vmem>>, %arg3: memref<1x256x32xbf16, #tpu.memory_space<vmem>>, %arg4: memref<1x32xf32, #tpu.memory_space<vmem>>, %arg5: memref<1x256x32xf32, #tpu.memory_space<vmem>>, %arg6: memref<1x1x32xf32, #tpu.memory_space<vmem>>, %arg7: memref<1x1x32xf32, #tpu.memory_space<vmem>>) attributes {dimension_semantics = [#tpu.dimension_semantics<parallel>, #tpu.dimension_semantics<arbitrary>], iteration_bounds = array<i64: 4, 1>, scalar_prefetch = 0 : i64, scratch_operands = 0 : i64, tpu.core_type = #tpu.core_type<tc>, window_params = [{transform_indices = @transform_0, window_bounds = array<i64: 1, 256, 256>}, {transform_indices = @transform_1, window_bounds = array<i64: 1, 256, 32>}, {pipeline_mode = #tpu.pipeline_mode<synchronous>, transform_indices = @transform_2, window_bounds = array<i64: 1, 32>}, {transform_indices = @transform_3, window_bounds = array<i64: 1, 256, 32>}, {transform_indices = @transform_4, window_bounds = array<i64: 1, 1, 32>}, {transform_indices = @transform_5, window_bounds = array<i64: 1, 1, 32>}]} {
    %c0 = arith.constant 0 : index
    %c0_0 = arith.constant 0 : index
    %c0_1 = arith.constant 0 : index
    %0 = vector.load %arg2[%c0, %c0_0, %c0_1] : memref<1x256x256xbf16, #tpu.memory_space<vmem>>, vector<1x256x256xbf16>
    %1 = vector.shape_cast %0 : vector<1x256x256xbf16> to vector<256x256xbf16>
    %c0_2 = arith.constant 0 : index
    %c0_3 = arith.constant 0 : index
    %c0_4 = arith.constant 0 : index
    %2 = vector.load %arg3[%c0_2, %c0_3, %c0_4] : memref<1x256x32xbf16, #tpu.memory_space<vmem>>, vector<1x256x32xbf16>
    %3 = vector.shape_cast %2 : vector<1x256x32xbf16> to vector<256x32xbf16>
    %cst = arith.constant dense<0.000000e+00> : vector<256x32xf32>
    %4 = tpu.matmul %1, %3, %cst {dimension_numbers = #tpu.dot_dimension_numbers<[1], [0], [0], [1], [0, 0, 1, 1], [], []>} : vector<256x256xbf16>, vector<256x32xbf16>, vector<256x32xf32> -> vector<256x32xf32>
    %c0_5 = arith.constant 0 : index
    %c0_6 = arith.constant 0 : index
    %5 = vector.load %arg4[%c0_5, %c0_6] : memref<1x32xf32, #tpu.memory_space<vmem>>, vector<1x32xf32>
    %6 = vector.broadcast %5 : vector<1x32xf32> to vector<256x32xf32>
    %7 = arith.addf %4, %6 : vector<256x32xf32>
    %c0_7 = arith.constant 0 : index
    %c0_8 = arith.constant 0 : index
    %c0_9 = arith.constant 0 : index
    %8 = vector.load %arg5[%c0_7, %c0_8, %c0_9] : memref<1x256x32xf32, #tpu.memory_space<vmem>>, vector<1x256x32xf32>
    %9 = vector.shape_cast %8 : vector<1x256x32xf32> to vector<256x32xf32>
    %10 = vector.shape_cast %7 : vector<256x32xf32> to vector<1x256x32xf32>
    tpu.vector_store %arg5[%c0_7, %c0_8, %c0_9], %10 {strides = array<i32>} : memref<1x256x32xf32, #tpu.memory_space<vmem>>, vector<1x256x32xf32>,
    %c0_i32 = arith.constant 0 : i32
    %11 = arith.cmpi eq, %arg1, %c0_i32 : i32
    %12 = arith.extui %11 : i1 to i32
    %c0_i32_10 = arith.constant 0 : i32
    %13 = arith.cmpi ne, %12, %c0_i32_10 : i32
    scf.if %13 {
      %cst_25 = arith.constant 0.000000e+00 : f32
      %31 = vector.broadcast %cst_25 : f32 to vector<1x1x32xf32>
      %c0_26 = arith.constant 0 : index
      %c0_27 = arith.constant 0 : index
      %c0_28 = arith.constant 0 : index
      %32 = vector.load %arg6[%c0_26, %c0_27, %c0_28] : memref<1x1x32xf32, #tpu.memory_space<vmem>>, vector<1x1x32xf32>
      tpu.vector_store %arg6[%c0_26, %c0_27, %c0_28], %31 {strides = array<i32>} : memref<1x1x32xf32, #tpu.memory_space<vmem>>, vector<1x1x32xf32>,
      %cst_29 = arith.constant 0.000000e+00 : f32
      %33 = vector.broadcast %cst_29 : f32 to vector<1x1x32xf32>
      %c0_30 = arith.constant 0 : index
      %c0_31 = arith.constant 0 : index
      %c0_32 = arith.constant 0 : index
      %34 = vector.load %arg7[%c0_30, %c0_31, %c0_32] : memref<1x1x32xf32, #tpu.memory_space<vmem>>, vector<1x1x32xf32>
      tpu.vector_store %arg7[%c0_30, %c0_31, %c0_32], %33 {strides = array<i32>} : memref<1x1x32xf32, #tpu.memory_space<vmem>>, vector<1x1x32xf32>,
    } else {
    }
    %c0_11 = arith.constant 0 : index
    %c0_12 = arith.constant 0 : index
    %c0_13 = arith.constant 0 : index
    %14 = vector.load %arg6[%c0_11, %c0_12, %c0_13] : memref<1x1x32xf32, #tpu.memory_space<vmem>>, vector<1x1x32xf32>
    %15 = vector.shape_cast %14 : vector<1x1x32xf32> to vector<1x32xf32>
    %cst_14 = arith.constant dense<0.000000e+00> : vector<32xf32>
    %16 = vector.multi_reduction <add>, %7, %cst_14 [0] : vector<256x32xf32> to vector<32xf32>
    %17 = vector.shape_cast %16 : vector<32xf32> to vector<1x32xf32>
    %18 = arith.addf %15, %17 : vector<1x32xf32>
    %c0_15 = arith.constant 0 : index
    %c0_16 = arith.constant 0 : index
    %c0_17 = arith.constant 0 : index
    %19 = vector.load %arg6[%c0_15, %c0_16, %c0_17] : memref<1x1x32xf32, #tpu.memory_space<vmem>>, vector<1x1x32xf32>
    %20 = vector.shape_cast %19 : vector<1x1x32xf32> to vector<1x32xf32>
    %21 = vector.shape_cast %18 : vector<1x32xf32> to vector<1x1x32xf32>
    tpu.vector_store %arg6[%c0_15, %c0_16, %c0_17], %21 {strides = array<i32>} : memref<1x1x32xf32, #tpu.memory_space<vmem>>, vector<1x1x32xf32>,
    %c0_18 = arith.constant 0 : index
    %c0_19 = arith.constant 0 : index
    %c0_20 = arith.constant 0 : index
    %22 = vector.load %arg7[%c0_18, %c0_19, %c0_20] : memref<1x1x32xf32, #tpu.memory_space<vmem>>, vector<1x1x32xf32>
    %23 = vector.shape_cast %22 : vector<1x1x32xf32> to vector<1x32xf32>
    %24 = arith.mulf %7, %7 : vector<256x32xf32>
    %cst_21 = arith.constant dense<0.000000e+00> : vector<32xf32>
    %25 = vector.multi_reduction <add>, %24, %cst_21 [0] : vector<256x32xf32> to vector<32xf32>
    %26 = vector.shape_cast %25 : vector<32xf32> to vector<1x32xf32>
    %27 = arith.addf %23, %26 : vector<1x32xf32>
    %c0_22 = arith.constant 0 : index
    %c0_23 = arith.constant 0 : index
    %c0_24 = arith.constant 0 : index
    %28 = vector.load %arg7[%c0_22, %c0_23, %c0_24] : memref<1x1x32xf32, #tpu.memory_space<vmem>>, vector<1x1x32xf32>
    %29 = vector.shape_cast %28 : vector<1x1x32xf32> to vector<1x32xf32>
    %30 = vector.shape_cast %27 : vector<1x32xf32> to vector<1x1x32xf32>
    tpu.vector_store %arg7[%c0_22, %c0_23, %c0_24], %30 {strides = array<i32>} : memref<1x1x32xf32, #tpu.memory_space<vmem>>, vector<1x1x32xf32>,
    return
  }
  func.func @transform_0(%arg0: i32, %arg1: i32) -> (i32, i32, i32) {
    %c0_i32 = arith.constant 0 : i32
    %c0_i32_0 = arith.constant 0 : i32
    return %arg0, %arg1, %c0_i32 : i32, i32, i32
  }
  func.func @transform_1(%arg0: i32, %arg1: i32) -> (i32, i32, i32) {
    %c0_i32 = arith.constant 0 : i32
    %c0_i32_0 = arith.constant 0 : i32
    %c0_i32_1 = arith.constant 0 : i32
    return %arg0, %c0_i32, %c0_i32_0 : i32, i32, i32
  }
  func.func @transform_2(%arg0: i32, %arg1: i32) -> (i32, i32) {
    %c0_i32 = arith.constant 0 : i32
    %c0_i32_0 = arith.constant 0 : i32
    %c0_i32_1 = arith.constant 0 : i32
    return %c0_i32, %c0_i32_0 : i32, i32
  }
  func.func @transform_3(%arg0: i32, %arg1: i32) -> (i32, i32, i32) {
    %c0_i32 = arith.constant 0 : i32
    %c0_i32_0 = arith.constant 0 : i32
    return %arg0, %arg1, %c0_i32 : i32, i32, i32
  }
  func.func @transform_4(%arg0: i32, %arg1: i32) -> (i32, i32, i32) {
    %c0_i32 = arith.constant 0 : i32
    %c0_i32_0 = arith.constant 0 : i32
    %c0_i32_1 = arith.constant 0 : i32
    return %arg0, %c0_i32, %c0_i32_0 : i32, i32, i32
  }
  func.func @transform_5(%arg0: i32, %arg1: i32) -> (i32, i32, i32) {
    %c0_i32 = arith.constant 0 : i32
    %c0_i32_0 = arith.constant 0 : i32
    %c0_i32_1 = arith.constant 0 : i32
    return %arg0, %c0_i32, %c0_i32_0 : i32, i32, i32
  }
}

module attributes {stable_mosaic.version = 11 : i64} {
  func.func @_scale_shift_relu_kernel(%arg0: i32, %arg1: memref<256x128xf32, #tpu.memory_space<vmem>>, %arg2: memref<1x128xf32, #tpu.memory_space<vmem>>, %arg3: memref<1x128xf32, #tpu.memory_space<vmem>>, %arg4: memref<256x128xbf16, #tpu.memory_space<vmem>>) attributes {dimension_semantics = [#tpu.dimension_semantics<parallel>], iteration_bounds = array<i64: 1>, scalar_prefetch = 0 : i64, scratch_operands = 0 : i64, tpu.core_type = #tpu.core_type<tc>, window_params = [{transform_indices = @transform_0, window_bounds = array<i64: 256, 128>}, {pipeline_mode = #tpu.pipeline_mode<synchronous>, transform_indices = @transform_1, window_bounds = array<i64: 1, 128>}, {pipeline_mode = #tpu.pipeline_mode<synchronous>, transform_indices = @transform_2, window_bounds = array<i64: 1, 128>}, {transform_indices = @transform_3, window_bounds = array<i64: 256, 128>}]} {
    %c0 = arith.constant 0 : index
    %c0_0 = arith.constant 0 : index
    %0 = vector.load %arg1[%c0, %c0_0] : memref<256x128xf32, #tpu.memory_space<vmem>>, vector<256x128xf32>
    %c0_1 = arith.constant 0 : index
    %c0_2 = arith.constant 0 : index
    %1 = vector.load %arg2[%c0_1, %c0_2] : memref<1x128xf32, #tpu.memory_space<vmem>>, vector<1x128xf32>
    %2 = vector.broadcast %1 : vector<1x128xf32> to vector<256x128xf32>
    %3 = arith.mulf %0, %2 : vector<256x128xf32>
    %c0_3 = arith.constant 0 : index
    %c0_4 = arith.constant 0 : index
    %4 = vector.load %arg3[%c0_3, %c0_4] : memref<1x128xf32, #tpu.memory_space<vmem>>, vector<1x128xf32>
    %5 = vector.broadcast %4 : vector<1x128xf32> to vector<256x128xf32>
    %6 = arith.addf %3, %5 : vector<256x128xf32>
    %cst = arith.constant 0.000000e+00 : f32
    %7 = vector.broadcast %cst : f32 to vector<256x128xf32>
    %8 = arith.maximumf %6, %7 : vector<256x128xf32>
    %9 = arith.truncf %8 : vector<256x128xf32> to vector<256x128xbf16>
    %c0_5 = arith.constant 0 : index
    %c0_6 = arith.constant 0 : index
    %10 = vector.load %arg4[%c0_5, %c0_6] : memref<256x128xbf16, #tpu.memory_space<vmem>>, vector<256x128xbf16>
    tpu.vector_store %arg4[%c0_5, %c0_6], %9 {strides = array<i32>} : memref<256x128xbf16, #tpu.memory_space<vmem>>, vector<256x128xbf16>,
    return
  }
  func.func @transform_0(%arg0: i32) -> (i32, i32) {
    %c0_i32 = arith.constant 0 : i32
    %c0_i32_0 = arith.constant 0 : i32
    return %arg0, %c0_i32 : i32, i32
  }
  func.func @transform_1(%arg0: i32) -> (i32, i32) {
    %c0_i32 = arith.constant 0 : i32
    %c0_i32_0 = arith.constant 0 : i32
    %c0_i32_1 = arith.constant 0 : i32
    return %c0_i32, %c0_i32_0 : i32, i32
  }
  func.func @transform_2(%arg0: i32) -> (i32, i32) {
    %c0_i32 = arith.constant 0 : i32
    %c0_i32_0 = arith.constant 0 : i32
    %c0_i32_1 = arith.constant 0 : i32
    return %c0_i32, %c0_i32_0 : i32, i32
  }
  func.func @transform_3(%arg0: i32) -> (i32, i32) {
    %c0_i32 = arith.constant 0 : i32
    %c0_i32_0 = arith.constant 0 : i32
    return %arg0, %c0_i32 : i32, i32
  }
}

module attributes {stable_mosaic.version = 11 : i64} {
  func.func @_mm_bias_stats_kernel(%arg0: i32, %arg1: i32, %arg2: memref<1x1024x128xbf16, #tpu.memory_space<vmem>>, %arg3: memref<1x128x32xbf16, #tpu.memory_space<vmem>>, %arg4: memref<1x32xf32, #tpu.memory_space<vmem>>, %arg5: memref<1x1024x32xf32, #tpu.memory_space<vmem>>, %arg6: memref<1x1x32xf32, #tpu.memory_space<vmem>>, %arg7: memref<1x1x32xf32, #tpu.memory_space<vmem>>) attributes {dimension_semantics = [#tpu.dimension_semantics<parallel>, #tpu.dimension_semantics<arbitrary>], iteration_bounds = array<i64: 4, 1>, scalar_prefetch = 0 : i64, scratch_operands = 0 : i64, tpu.core_type = #tpu.core_type<tc>, window_params = [{transform_indices = @transform_0, window_bounds = array<i64: 1, 1024, 128>}, {transform_indices = @transform_1, window_bounds = array<i64: 1, 128, 32>}, {pipeline_mode = #tpu.pipeline_mode<synchronous>, transform_indices = @transform_2, window_bounds = array<i64: 1, 32>}, {transform_indices = @transform_3, window_bounds = array<i64: 1, 1024, 32>}, {transform_indices = @transform_4, window_bounds = array<i64: 1, 1, 32>}, {transform_indices = @transform_5, window_bounds = array<i64: 1, 1, 32>}]} {
    %c0 = arith.constant 0 : index
    %c0_0 = arith.constant 0 : index
    %c0_1 = arith.constant 0 : index
    %0 = vector.load %arg2[%c0, %c0_0, %c0_1] : memref<1x1024x128xbf16, #tpu.memory_space<vmem>>, vector<1x1024x128xbf16>
    %1 = vector.shape_cast %0 : vector<1x1024x128xbf16> to vector<1024x128xbf16>
    %c0_2 = arith.constant 0 : index
    %c0_3 = arith.constant 0 : index
    %c0_4 = arith.constant 0 : index
    %2 = vector.load %arg3[%c0_2, %c0_3, %c0_4] : memref<1x128x32xbf16, #tpu.memory_space<vmem>>, vector<1x128x32xbf16>
    %3 = vector.shape_cast %2 : vector<1x128x32xbf16> to vector<128x32xbf16>
    %cst = arith.constant dense<0.000000e+00> : vector<1024x32xf32>
    %4 = tpu.matmul %1, %3, %cst {dimension_numbers = #tpu.dot_dimension_numbers<[1], [0], [0], [1], [0, 0, 1, 1], [], []>} : vector<1024x128xbf16>, vector<128x32xbf16>, vector<1024x32xf32> -> vector<1024x32xf32>
    %c0_5 = arith.constant 0 : index
    %c0_6 = arith.constant 0 : index
    %5 = vector.load %arg4[%c0_5, %c0_6] : memref<1x32xf32, #tpu.memory_space<vmem>>, vector<1x32xf32>
    %6 = vector.broadcast %5 : vector<1x32xf32> to vector<1024x32xf32>
    %7 = arith.addf %4, %6 : vector<1024x32xf32>
    %c0_7 = arith.constant 0 : index
    %c0_8 = arith.constant 0 : index
    %c0_9 = arith.constant 0 : index
    %8 = vector.load %arg5[%c0_7, %c0_8, %c0_9] : memref<1x1024x32xf32, #tpu.memory_space<vmem>>, vector<1x1024x32xf32>
    %9 = vector.shape_cast %8 : vector<1x1024x32xf32> to vector<1024x32xf32>
    %10 = vector.shape_cast %7 : vector<1024x32xf32> to vector<1x1024x32xf32>
    tpu.vector_store %arg5[%c0_7, %c0_8, %c0_9], %10 {strides = array<i32>} : memref<1x1024x32xf32, #tpu.memory_space<vmem>>, vector<1x1024x32xf32>,
    %c0_i32 = arith.constant 0 : i32
    %11 = arith.cmpi eq, %arg1, %c0_i32 : i32
    %12 = arith.extui %11 : i1 to i32
    %c0_i32_10 = arith.constant 0 : i32
    %13 = arith.cmpi ne, %12, %c0_i32_10 : i32
    scf.if %13 {
      %cst_25 = arith.constant 0.000000e+00 : f32
      %31 = vector.broadcast %cst_25 : f32 to vector<1x1x32xf32>
      %c0_26 = arith.constant 0 : index
      %c0_27 = arith.constant 0 : index
      %c0_28 = arith.constant 0 : index
      %32 = vector.load %arg6[%c0_26, %c0_27, %c0_28] : memref<1x1x32xf32, #tpu.memory_space<vmem>>, vector<1x1x32xf32>
      tpu.vector_store %arg6[%c0_26, %c0_27, %c0_28], %31 {strides = array<i32>} : memref<1x1x32xf32, #tpu.memory_space<vmem>>, vector<1x1x32xf32>,
      %cst_29 = arith.constant 0.000000e+00 : f32
      %33 = vector.broadcast %cst_29 : f32 to vector<1x1x32xf32>
      %c0_30 = arith.constant 0 : index
      %c0_31 = arith.constant 0 : index
      %c0_32 = arith.constant 0 : index
      %34 = vector.load %arg7[%c0_30, %c0_31, %c0_32] : memref<1x1x32xf32, #tpu.memory_space<vmem>>, vector<1x1x32xf32>
      tpu.vector_store %arg7[%c0_30, %c0_31, %c0_32], %33 {strides = array<i32>} : memref<1x1x32xf32, #tpu.memory_space<vmem>>, vector<1x1x32xf32>,
    } else {
    }
    %c0_11 = arith.constant 0 : index
    %c0_12 = arith.constant 0 : index
    %c0_13 = arith.constant 0 : index
    %14 = vector.load %arg6[%c0_11, %c0_12, %c0_13] : memref<1x1x32xf32, #tpu.memory_space<vmem>>, vector<1x1x32xf32>
    %15 = vector.shape_cast %14 : vector<1x1x32xf32> to vector<1x32xf32>
    %cst_14 = arith.constant dense<0.000000e+00> : vector<32xf32>
    %16 = vector.multi_reduction <add>, %7, %cst_14 [0] : vector<1024x32xf32> to vector<32xf32>
    %17 = vector.shape_cast %16 : vector<32xf32> to vector<1x32xf32>
    %18 = arith.addf %15, %17 : vector<1x32xf32>
    %c0_15 = arith.constant 0 : index
    %c0_16 = arith.constant 0 : index
    %c0_17 = arith.constant 0 : index
    %19 = vector.load %arg6[%c0_15, %c0_16, %c0_17] : memref<1x1x32xf32, #tpu.memory_space<vmem>>, vector<1x1x32xf32>
    %20 = vector.shape_cast %19 : vector<1x1x32xf32> to vector<1x32xf32>
    %21 = vector.shape_cast %18 : vector<1x32xf32> to vector<1x1x32xf32>
    tpu.vector_store %arg6[%c0_15, %c0_16, %c0_17], %21 {strides = array<i32>} : memref<1x1x32xf32, #tpu.memory_space<vmem>>, vector<1x1x32xf32>,
    %c0_18 = arith.constant 0 : index
    %c0_19 = arith.constant 0 : index
    %c0_20 = arith.constant 0 : index
    %22 = vector.load %arg7[%c0_18, %c0_19, %c0_20] : memref<1x1x32xf32, #tpu.memory_space<vmem>>, vector<1x1x32xf32>
    %23 = vector.shape_cast %22 : vector<1x1x32xf32> to vector<1x32xf32>
    %24 = arith.mulf %7, %7 : vector<1024x32xf32>
    %cst_21 = arith.constant dense<0.000000e+00> : vector<32xf32>
    %25 = vector.multi_reduction <add>, %24, %cst_21 [0] : vector<1024x32xf32> to vector<32xf32>
    %26 = vector.shape_cast %25 : vector<32xf32> to vector<1x32xf32>
    %27 = arith.addf %23, %26 : vector<1x32xf32>
    %c0_22 = arith.constant 0 : index
    %c0_23 = arith.constant 0 : index
    %c0_24 = arith.constant 0 : index
    %28 = vector.load %arg7[%c0_22, %c0_23, %c0_24] : memref<1x1x32xf32, #tpu.memory_space<vmem>>, vector<1x1x32xf32>
    %29 = vector.shape_cast %28 : vector<1x1x32xf32> to vector<1x32xf32>
    %30 = vector.shape_cast %27 : vector<1x32xf32> to vector<1x1x32xf32>
    tpu.vector_store %arg7[%c0_22, %c0_23, %c0_24], %30 {strides = array<i32>} : memref<1x1x32xf32, #tpu.memory_space<vmem>>, vector<1x1x32xf32>,
    return
  }
  func.func @transform_0(%arg0: i32, %arg1: i32) -> (i32, i32, i32) {
    %c0_i32 = arith.constant 0 : i32
    %c0_i32_0 = arith.constant 0 : i32
    return %arg0, %arg1, %c0_i32 : i32, i32, i32
  }
  func.func @transform_1(%arg0: i32, %arg1: i32) -> (i32, i32, i32) {
    %c0_i32 = arith.constant 0 : i32
    %c0_i32_0 = arith.constant 0 : i32
    %c0_i32_1 = arith.constant 0 : i32
    return %arg0, %c0_i32, %c0_i32_0 : i32, i32, i32
  }
  func.func @transform_2(%arg0: i32, %arg1: i32) -> (i32, i32) {
    %c0_i32 = arith.constant 0 : i32
    %c0_i32_0 = arith.constant 0 : i32
    %c0_i32_1 = arith.constant 0 : i32
    return %c0_i32, %c0_i32_0 : i32, i32
  }
  func.func @transform_3(%arg0: i32, %arg1: i32) -> (i32, i32, i32) {
    %c0_i32 = arith.constant 0 : i32
    %c0_i32_0 = arith.constant 0 : i32
    return %arg0, %arg1, %c0_i32 : i32, i32, i32
  }
  func.func @transform_4(%arg0: i32, %arg1: i32) -> (i32, i32, i32) {
    %c0_i32 = arith.constant 0 : i32
    %c0_i32_0 = arith.constant 0 : i32
    %c0_i32_1 = arith.constant 0 : i32
    return %arg0, %c0_i32, %c0_i32_0 : i32, i32, i32
  }
  func.func @transform_5(%arg0: i32, %arg1: i32) -> (i32, i32, i32) {
    %c0_i32 = arith.constant 0 : i32
    %c0_i32_0 = arith.constant 0 : i32
    %c0_i32_1 = arith.constant 0 : i32
    return %arg0, %c0_i32, %c0_i32_0 : i32, i32, i32
  }
}

module attributes {stable_mosaic.version = 11 : i64} {
  func.func @_scale_shift_relu_kernel(%arg0: i32, %arg1: memref<1024x128xf32, #tpu.memory_space<vmem>>, %arg2: memref<1x128xf32, #tpu.memory_space<vmem>>, %arg3: memref<1x128xf32, #tpu.memory_space<vmem>>, %arg4: memref<1024x128xbf16, #tpu.memory_space<vmem>>) attributes {dimension_semantics = [#tpu.dimension_semantics<parallel>], iteration_bounds = array<i64: 1>, scalar_prefetch = 0 : i64, scratch_operands = 0 : i64, tpu.core_type = #tpu.core_type<tc>, window_params = [{transform_indices = @transform_0, window_bounds = array<i64: 1024, 128>}, {pipeline_mode = #tpu.pipeline_mode<synchronous>, transform_indices = @transform_1, window_bounds = array<i64: 1, 128>}, {pipeline_mode = #tpu.pipeline_mode<synchronous>, transform_indices = @transform_2, window_bounds = array<i64: 1, 128>}, {transform_indices = @transform_3, window_bounds = array<i64: 1024, 128>}]} {
    %c0 = arith.constant 0 : index
    %c0_0 = arith.constant 0 : index
    %0 = vector.load %arg1[%c0, %c0_0] : memref<1024x128xf32, #tpu.memory_space<vmem>>, vector<1024x128xf32>
    %c0_1 = arith.constant 0 : index
    %c0_2 = arith.constant 0 : index
    %1 = vector.load %arg2[%c0_1, %c0_2] : memref<1x128xf32, #tpu.memory_space<vmem>>, vector<1x128xf32>
    %2 = vector.broadcast %1 : vector<1x128xf32> to vector<1024x128xf32>
    %3 = arith.mulf %0, %2 : vector<1024x128xf32>
    %c0_3 = arith.constant 0 : index
    %c0_4 = arith.constant 0 : index
    %4 = vector.load %arg3[%c0_3, %c0_4] : memref<1x128xf32, #tpu.memory_space<vmem>>, vector<1x128xf32>
    %5 = vector.broadcast %4 : vector<1x128xf32> to vector<1024x128xf32>
    %6 = arith.addf %3, %5 : vector<1024x128xf32>
    %cst = arith.constant 0.000000e+00 : f32
    %7 = vector.broadcast %cst : f32 to vector<1024x128xf32>
    %8 = arith.maximumf %6, %7 : vector<1024x128xf32>
    %9 = arith.truncf %8 : vector<1024x128xf32> to vector<1024x128xbf16>
    %c0_5 = arith.constant 0 : index
    %c0_6 = arith.constant 0 : index
    %10 = vector.load %arg4[%c0_5, %c0_6] : memref<1024x128xbf16, #tpu.memory_space<vmem>>, vector<1024x128xbf16>
    tpu.vector_store %arg4[%c0_5, %c0_6], %9 {strides = array<i32>} : memref<1024x128xbf16, #tpu.memory_space<vmem>>, vector<1024x128xbf16>,
    return
  }
  func.func @transform_0(%arg0: i32) -> (i32, i32) {
    %c0_i32 = arith.constant 0 : i32
    %c0_i32_0 = arith.constant 0 : i32
    return %arg0, %c0_i32 : i32, i32
  }
  func.func @transform_1(%arg0: i32) -> (i32, i32) {
    %c0_i32 = arith.constant 0 : i32
    %c0_i32_0 = arith.constant 0 : i32
    %c0_i32_1 = arith.constant 0 : i32
    return %c0_i32, %c0_i32_0 : i32, i32
  }
  func.func @transform_2(%arg0: i32) -> (i32, i32) {
    %c0_i32 = arith.constant 0 : i32
    %c0_i32_0 = arith.constant 0 : i32
    %c0_i32_1 = arith.constant 0 : i32
    return %c0_i32, %c0_i32_0 : i32, i32
  }
  func.func @transform_3(%arg0: i32) -> (i32, i32) {
    %c0_i32 = arith.constant 0 : i32
    %c0_i32_0 = arith.constant 0 : i32
    return %arg0, %c0_i32 : i32, i32
  }
}

module attributes {stable_mosaic.version = 11 : i64} {
  func.func @_mm_bias_kernel(%arg0: i32, %arg1: i32, %arg2: memref<1x1024x128xbf16, #tpu.memory_space<vmem>>, %arg3: memref<1x128x128xbf16, #tpu.memory_space<vmem>>, %arg4: memref<1x128xf32, #tpu.memory_space<vmem>>, %arg5: memref<1x1024x128xf32, #tpu.memory_space<vmem>>) attributes {dimension_semantics = [#tpu.dimension_semantics<parallel>, #tpu.dimension_semantics<parallel>], iteration_bounds = array<i64: 4, 4>, scalar_prefetch = 0 : i64, scratch_operands = 0 : i64, tpu.core_type = #tpu.core_type<tc>, window_params = [{transform_indices = @transform_0, window_bounds = array<i64: 1, 1024, 128>}, {transform_indices = @transform_1, window_bounds = array<i64: 1, 128, 128>}, {pipeline_mode = #tpu.pipeline_mode<synchronous>, transform_indices = @transform_2, window_bounds = array<i64: 1, 128>}, {transform_indices = @transform_3, window_bounds = array<i64: 1, 1024, 128>}]} {
    %c0 = arith.constant 0 : index
    %c0_0 = arith.constant 0 : index
    %c0_1 = arith.constant 0 : index
    %0 = vector.load %arg2[%c0, %c0_0, %c0_1] : memref<1x1024x128xbf16, #tpu.memory_space<vmem>>, vector<1x1024x128xbf16>
    %1 = vector.shape_cast %0 : vector<1x1024x128xbf16> to vector<1024x128xbf16>
    %c0_2 = arith.constant 0 : index
    %c0_3 = arith.constant 0 : index
    %c0_4 = arith.constant 0 : index
    %2 = vector.load %arg3[%c0_2, %c0_3, %c0_4] : memref<1x128x128xbf16, #tpu.memory_space<vmem>>, vector<1x128x128xbf16>
    %3 = vector.shape_cast %2 : vector<1x128x128xbf16> to vector<128x128xbf16>
    %cst = arith.constant dense<0.000000e+00> : vector<1024x128xf32>
    %4 = tpu.matmul %1, %3, %cst {dimension_numbers = #tpu.dot_dimension_numbers<[1], [0], [0], [1], [0, 0, 1, 1], [], []>} : vector<1024x128xbf16>, vector<128x128xbf16>, vector<1024x128xf32> -> vector<1024x128xf32>
    %c0_5 = arith.constant 0 : index
    %c0_6 = arith.constant 0 : index
    %5 = vector.load %arg4[%c0_5, %c0_6] : memref<1x128xf32, #tpu.memory_space<vmem>>, vector<1x128xf32>
    %6 = vector.broadcast %5 : vector<1x128xf32> to vector<1024x128xf32>
    %7 = arith.addf %4, %6 : vector<1024x128xf32>
    %c0_7 = arith.constant 0 : index
    %c0_8 = arith.constant 0 : index
    %c0_9 = arith.constant 0 : index
    %8 = vector.load %arg5[%c0_7, %c0_8, %c0_9] : memref<1x1024x128xf32, #tpu.memory_space<vmem>>, vector<1x1024x128xf32>
    %9 = vector.shape_cast %8 : vector<1x1024x128xf32> to vector<1024x128xf32>
    %10 = vector.shape_cast %7 : vector<1024x128xf32> to vector<1x1024x128xf32>
    tpu.vector_store %arg5[%c0_7, %c0_8, %c0_9], %10 {strides = array<i32>} : memref<1x1024x128xf32, #tpu.memory_space<vmem>>, vector<1x1024x128xf32>,
    return
  }
  func.func @transform_0(%arg0: i32, %arg1: i32) -> (i32, i32, i32) {
    %c0_i32 = arith.constant 0 : i32
    %c0_i32_0 = arith.constant 0 : i32
    return %arg0, %arg1, %c0_i32 : i32, i32, i32
  }
  func.func @transform_1(%arg0: i32, %arg1: i32) -> (i32, i32, i32) {
    %c0_i32 = arith.constant 0 : i32
    %c0_i32_0 = arith.constant 0 : i32
    %c0_i32_1 = arith.constant 0 : i32
    return %arg0, %c0_i32, %c0_i32_0 : i32, i32, i32
  }
  func.func @transform_2(%arg0: i32, %arg1: i32) -> (i32, i32) {
    %c0_i32 = arith.constant 0 : i32
    %c0_i32_0 = arith.constant 0 : i32
    %c0_i32_1 = arith.constant 0 : i32
    return %c0_i32, %c0_i32_0 : i32, i32
  }
  func.func @transform_3(%arg0: i32, %arg1: i32) -> (i32, i32, i32) {
    %c0_i32 = arith.constant 0 : i32
    %c0_i32_0 = arith.constant 0 : i32
    return %arg0, %arg1, %c0_i32 : i32, i32, i32
  }
}

</mosaic_0001>

<bundles_post_ra>
// kernel: tile.52
= control target key start
LH: loop header
LB: loop body
LE: loop exit
PB: predicated region body
PF: predicated region fallthrough
CT: control target
= control target key end

     0   :  { %2 = vsyncpa [#allocation1], 0  ;;  %s45_s6 = smov [#allocation0]   ;;  %s65_s0 = inlined_call_operand.hbm [shape: f32[64], index: 0, kind: input, shape index: {}]   ;;  %s66_s1 = inlined_call_operand.vmem [shape: f32[16,64], index: 1, kind: output, shape index: {}]  }
   0x1   :  { %s9_s7 = sshll.u32 %s45_s6, 4  ;;  %s10_s7 = int_to_ptr.vmem [resolvable:$true] %s9_s7 }
   0x2   :  { %s31_s8 = scalar_lea.vmem %s10_s7, 16  ;;  %s35_s9 = scalar_lea.vmem %s10_s7, 32 }
   0x3   :  { %p32_p0 = scmp.ne.s32.totalorder %s10_s7, %s31_s8  ;;  %p36_p1 = scmp.lt.s32.totalorder %s10_s7, %s10_s7 }
   0x4   :  { %p37_p2 = scmp.lt.s32.totalorder %s35_s9, %s31_s8 }
   0x6   :  { %p38_p3 = por %p37_p2, %p36_p1 }
   0x8   :  { %p39_p4 = pnand %p38_p3, %p32_p0 }
   0xa   :  { %42 = shalt.err (!%p39_p4)
}
   0xb   :  { %12 = dma.hbm_to_vmem [thread:$0]  %s65_s0, 16, %s10_s7, [#allocation1]  }
   0xc   :  { %43 = dma.done.wait [#allocation1], 16  }
   0xd   :  { %44 = vsyncadd [#allocation1], 4294967280  ;;  %v16_v0 = vld [vmem:[#allocation0] ss:$0 sm:$0xff] }
   0xe   :  { %17 = vst [vmem:[%s66_s1] sm:$0xff] %v16_v0  ;;  %21 = vst [vmem:[%s66_s1 + $0x8] sm:$0xff] %v16_v0 }
   0xf   :  { %20 = vsyncpa [#allocation1], 1 }

// kernel: tile.53
= control target key start
LH: loop header
LB: loop body
LE: loop exit
PB: predicated region body
PF: predicated region fallthrough
CT: control target
= control target key end

     0   :  { %vm3_vm0 = vcmask 523264   ;;  %vm10_vm1 = vcmask 1048064   ;;  %s125_s0 = inlined_call_operand.vmem [shape: f32[16,64], index: 0, kind: input, shape index: {}]   ;;  %s126_s1 = inlined_call_operand.vmem [shape: f32[1,1024], index: 1, kind: output, shape index: {}]  }
   0x1   :  { %v75_v0 = vld [vmem:[%s125_s0 + $0x1] ss:$2 sm:$0xff]   ;;  %v2_v1 = vld [vmem:[%s125_s0] ss:$2 sm:$0xff]   ;;  %s84_s0 = smov 64  }
   0x2   :  { %8 = vrot.lane.b32.xlu0 %v75_v0, %s84_s0  ;;  %4 = vst.msk [vmem:[#allocation0] ss:$8 sm:$0xf] %vm3_vm0, %v2_v1   ;;  %5 = vst.msk [vmem:[#allocation0] ss:$8 sm:$0xf0] %vm3_vm0, %v2_v1  }
  0x74   :  { %v9_v2 = vpop.permute.xlu0 %8  }
  0x75   :  { %11 = vst.msk [vmem:[#allocation0] ss:$8 sm:$0xf] %vm10_vm1, %v9_v2   ;;  %12 = vst.msk [vmem:[#allocation0] ss:$8 sm:$0xf0] %vm10_vm1, %v9_v2  }
  0x7c   :  { %v17_v3 = vld [vmem:[#allocation0] sm:$0x1]  ;;  %v22_v4 = vld [vmem:[#allocation0 + $0x8] sm:$0x1]  ;;  %v28_v5 = vld [vmem:[#allocation0 + $0x10] sm:$0x1] }
  0x7d   :  { %20 = vst [vmem:[%s126_s1] sm:$0x1] %v17_v3  ;;  %76 = vst [vmem:[%s126_s1 + $0x1] sm:$0x1] %v22_v4  ;;  %v35_v6 = vld [vmem:[#allocation0 + $0x18] sm:$0x1] }
  0x7e   :  { %77 = vst [vmem:[%s126_s1 + $0x2] sm:$0x1] %v28_v5  ;;  %v42_v7 = vld [vmem:[#allocation0 + $0x20] sm:$0x1]  ;;  %v49_v8 = vld [vmem:[#allocation0 + $0x28] sm:$0x1] }
  0x7f   :  { %78 = vst [vmem:[%s126_s1 + $0x3] sm:$0x1] %v35_v6  ;;  %79 = vst [vmem:[%s126_s1 + $0x4] sm:$0x1] %v42_v7  ;;  %v56_v9 = vld [vmem:[#allocation0 + $0x30] sm:$0x1] }
  0x80   :  { %80 = vst [vmem:[%s126_s1 + $0x5] sm:$0x1] %v49_v8  ;;  %v63_v10 = vld [vmem:[#allocation0 + $0x38] sm:$0x1]  ;;  %81 = vst [vmem:[%s126_s1 + $0x6] sm:$0x1] %v56_v9 }
  0x81   :  { %82 = vst [vmem:[%s126_s1 + $0x7] sm:$0x1] %v63_v10 }

// kernel: conv_decoder_forward.12
= control target key start
LH: loop header
LB: loop body
LE: loop exit
PB: predicated region body
PF: predicated region fallthrough
CT: control target
= control target key end

     0   :  { %v18_v0 = vlaneseq  ;;  %v106_v20 = vmov 1983009808   ;;  %s142_s1 = inlined_call_operand.vmem [shape: f32[1,512], index: 1, kind: input, shape index: {}]   ;;  %s143_s2 = inlined_call_operand.vmem [shape: f32[1,512], index: 2, kind: input, shape index: {}]   ;;  %s144_s0 = inlined_call_operand.vmem [shape: f32[4,512], index: 0, kind: input, shape index: {}]   ;;  %s145_s3 = inlined_call_operand.vmem [shape: bf16[4,512], index: 3, kind: output, shape index: {}]  }
   0x1   :  { %v16_v2 = vld [vmem:[%s142_s1] sm:$0xf]  ;;  %v15_v13 = vld [vmem:[%s144_s0 + $0x8] sm:$0xff]  ;;  %v83_v21 = vunpack.c.l.s4 %v106_v20 }
   0x2   :  { %v19_v1 = vshrl.u32 %v18_v0, 7  ;;  %v40_v7 = vld [vmem:[%s143_s2] sm:$0xf] }
   0x3   :  { %v14_v12 = vld [vmem:[%s144_s0] sm:$0xff]  ;;  %v84_v28 = vunpack.c.0.s8 %v83_v21 }
   0x4   :  { %v20_v3 = vsub.s32 0, %v19_v1  ;;  %v24_v4 = vsub.s32 1, %v19_v1  ;;  %v28_v5 = vsub.s32 2, %v19_v1  ;;  %v32_v6 = vsub.s32 3, %v19_v1 }
   0x5   :  { %v87_v33 = vsub.s32 %v84_v28, %v19_v1 }
   0x6   :  { %v21_v8 = vrot.slane %v16_v2, %v20_v3  ;;  %v25_v9 = vrot.slane %v16_v2, %v24_v4  ;;  %v29_v10 = vrot.slane %v16_v2, %v28_v5  ;;  %v33_v11 = vrot.slane %v16_v2, %v32_v6 }
   0x7   :  { %v45_v14 = vrot.slane %v40_v7, %v20_v3  ;;  %v49_v15 = vrot.slane %v40_v7, %v24_v4  ;;  %v53_v16 = vrot.slane %v40_v7, %v28_v5  ;;  %v57_v17 = vrot.slane %v40_v7, %v32_v6 }
   0x8   :  { %v34_v18 = vcombine.low %v21_v8, %v25_v9  ;;  %v35_v19 = vcombine.low %v29_v10, %v33_v11 }
   0x9   :  { %v58_v22 = vcombine.low %v45_v14, %v49_v15  ;;  %v59_v23 = vcombine.low %v53_v16, %v57_v17 }
   0xa   :  { %v38_v24 = vmul.f32 %v34_v18, %v14_v12  ;;  %v39_v25 = vmul.f32 %v35_v19, %v15_v13 }
   0xc   :  { %v62_v26 = vadd.f32 %v58_v22, %v38_v24  ;;  %v63_v27 = vadd.f32 %v59_v23, %v39_v25 }
   0xe   :  { %v64_v29 = vmax.f32 %v62_v26, 0.0  ;;  %v65_v30 = vmax.f32 %v63_v27, 0.0 }
  0x10   :  { %v68_v31 = vcombine.high %v64_v29, %v64_v29  ;;  %v69_v32 = vcombine.high %v65_v30, %v65_v30 }
  0x12   :  { %v103_v34 = vpack.c.bf16 %v68_v31, %v64_v29  ;;  %v104_v35 = vpack.c.bf16 %v69_v32, %v65_v30 }
  0x14   :  { %v88_v36 = vrot.slane %v103_v34, %v87_v33  ;;  %v95_v37 = vrot.slane %v104_v35, %v87_v33 }
  0x16   :  { %v96_v38 = vcombine.low %v88_v36, %v95_v37 }
  0x18   :  { %98 = vst [vmem:[%s145_s3] sm:$0xff] %v96_v38 }

// kernel: conv_decoder_forward.11
= control target key start
LH: loop header
LB: loop body
LE: loop exit
PB: predicated region body
PF: predicated region fallthrough
CT: control target
= control target key end

     0   :  { %11 = vsyncpa [#allocation3], 0  ;;  %s374_s18 = smov [#allocation2]   ;;  %s477_s0 = inlined_call_operand.vmem [shape: bf16[1,4,10], index: 0, kind: input, shape index: {}]   ;;  %s478_s1 = inlined_call_operand.vmem [shape: bf16[1,10,512], index: 1, kind: input, shape index: {}]   ;;  %s479_s2 = inlined_call_operand.hbm [shape: f32[1,512], index: 2, kind: input, shape index: {}]   ;;  %s480_s3 = inlined_call_operand.vmem [shape: f32[1,4,512], index: 3, kind: output, shape index: {0}]   ;;  %s481_s4 = inlined_call_operand.vmem [shape: f32[1,1,512], index: 4, kind: output, shape index: {1}]   ;;  %s482_s5 = inlined_call_operand.vmem [shape: f32[1,1,512], index: 5, kind: output, shape index: {2}]  }
   0x1   :  { %s22_s19 = sshll.u32 %s374_s18, 4  ;;  %s23_s19 = int_to_ptr.vmem [resolvable:$true] %s22_s19 }
   0x2   :  { %s360_s20 = scalar_lea.vmem %s23_s19, 64  ;;  %p365_p1 = scmp.lt.s32.totalorder %s23_s19, %s23_s19 }
   0x3   :  { %p361_p0 = scmp.ne.s32.totalorder %s23_s19, %s360_s20  ;;  %p366_p2 = scmp.lt.s32.totalorder %s360_s20, %s360_s20 }
   0x5   :  { %p367_p3 = por %p366_p2, %p365_p1 }
   0x7   :  { %p368_p4 = pnand %p367_p3, %p361_p0 }
   0x9   :  { %371 = shalt.err (!%p368_p4)
}
   0xa   :  { %25 = dma.hbm_to_vmem [thread:$0]  %s479_s2, 64, %s23_s19, [#allocation3]  }
   0xb   :  { %372 = dma.done.wait [#allocation3], 64  }
   0xc   :  { %373 = vsyncadd [#allocation3], 4294967232  ;;  %v375_v0 = vmov 0   ;;  %vm77_vm0 = vcmask 1044480   ;;  %v30_v7 = vld [vmem:[%s477_s0] sm:$0x3]  ;;  %v37_v8 = vlaneseq }
   0xd   :  { %122 = vmatprep.mubr.bf16.mxu0 %v375_v0  ;;  %163 = vmatprep.mubr.bf16.mxu1 %v375_v0  ;;  %v346_v1 = vld [vmem:[%s478_s1 + $0x4] ss:$16 sps:$4 sm:$0x1f]   ;;  %v348_v2 = vld [vmem:[%s478_s1 + $0xc] ss:$16 sps:$4 sm:$0x1f]  }
   0xe   :  { %338 = vmatprep.subr.msk.bf16.mxu0 %vm77_vm0, %v346_v1  ;;  %v350_v3 = vld [vmem:[%s478_s1] ss:$16 sps:$4 sm:$0x1f]   ;;  %v351_v4 = vld [vmem:[%s478_s1 + $0x8] ss:$16 sps:$4 sm:$0x1f]   ;;  %340 = vmatprep.subr.msk.bf16.mxu1 %vm77_vm0, %v348_v2 }
   0xf   :  { %v79_v5 = vsel %vm77_vm0, %v350_v3, 0  ;;  %v85_v6 = vsel %vm77_vm0, %v351_v4, 0  ;;  %vm73_vm1 = vcmask 80896   ;;  %vm426_vm2 = vcmp.lt.s32.totalorder %v37_v8, 512  ;;  %v35_v14 = vld [vmem:[#allocation2] sm:$0xf] }
  0x10   :  { %105 = vmatpush1.bf16.msra.mxu0 %v79_v5  ;;  %146 = vmatpush1.bf16.msra.mxu1 %v85_v6  ;;  %v376_v10 = vmov 0.0   ;;  %v440_v11 = vshrl.u32 %v37_v8, 7  ;;  %vm193_vm3 = vcmask 1043456   ;;  %v377_v58 = vmov 1966171168  }
  0x11   :  { %190 = vst.msk [vmem:[%s481_s4] sm:$0xf] %vm426_vm2, %v376_v10  ;;  %191 = vst.msk [vmem:[%s482_s5] sm:$0xf] %vm426_vm2, %v376_v10  ;;  %v229_v59 = vunpack.c.l.s4 %v377_v58 }
  0x12   :  { %v39_v12 = vsub.s32 0, %v440_v11  ;;  %v47_v13 = vsub.s32 2, %v440_v11  ;;  %v43_v15 = vsub.s32 1, %v440_v11  ;;  %v51_v16 = vsub.s32 3, %v440_v11 }
  0x13   :  { %339 = vmatmul.mubr.msk.bf16.vlgmr.msra.gmra.mxu0 %vm73_vm1, %v30_v7  ;;  %341 = vmatmul.mubr.msk.bf16.vlgmr.msra.gmra.mxu1 %vm73_vm1, %v30_v7  ;;  %v230_v10 = vunpack.c.0.s8 %v229_v59 }
  0x14   :  { %v40_v17 = vrot.slane %v35_v14, %v39_v12  ;;  %v48_v18 = vrot.slane %v35_v14, %v47_v13  ;;  %v44_v21 = vrot.slane %v35_v14, %v43_v15  ;;  %v52_v22 = vrot.slane %v35_v14, %v51_v16 }
  0xd3   :  { %v124_v19 = vpop.f32.mrf.mxu0  ;;  %v165_v20 = vpop.f32.mrf.mxu1 }
  0xd4   :  { %v125_v23 = vadd.f32 %v124_v19, %v40_v17  ;;  %v166_v24 = vadd.f32 %v165_v20, %v48_v18 }
  0xd5   :  { %v126_v25 = vpop.f32.mrf.mxu0  ;;  %v167_v26 = vpop.f32.mrf.mxu1 }
  0xd6   :  { %v194_v27 = vsel %vm193_vm3, %v125_v23, 0.0  ;;  %v258_v28 = vmul.f32 %v125_v23, %v125_v23  ;;  %v208_v29 = vsel %vm193_vm3, %v166_v24, 0.0  ;;  %v260_v30 = vmul.f32 %v166_v24, %v166_v24 }
  0xd7   :  { %v195_v31 = vrot.slane %v194_v27, 4  ;;  %v209_v32 = vrot.slane %v208_v29, 4  ;;  %v127_v33 = vadd.f32 %v126_v25, %v44_v21  ;;  %v168_v34 = vadd.f32 %v167_v26, %v52_v22  ;;  %v128_v35 = vpop.f32.mrf.mxu0  ;;  %v169_v36 = vpop.f32.mrf.mxu1 }
  0xd8   :  { %v262_v37 = vsel %vm193_vm3, %v258_v28, 0.0  ;;  %v276_v38 = vsel %vm193_vm3, %v260_v30, 0.0 }
  0xd9   :  { %v196_v39 = vadd.f32 %v195_v31, %v194_v27  ;;  %v263_v40 = vrot.slane %v262_v37, 4  ;;  %v210_v41 = vadd.f32 %v209_v32, %v208_v29  ;;  %v277_v42 = vrot.slane %v276_v38, 4  ;;  %v129_v43 = vpop.f32.mrf.mxu0  ;;  %v170_v44 = vpop.f32.mrf.mxu1 }
  0xda   :  { %v176_v45 = vcombine.low %v125_v23, %v127_v33  ;;  %v201_v46 = vsel %vm193_vm3, %v127_v33, 0.0  ;;  %v259_v47 = vmul.f32 %v127_v33, %v127_v33  ;;  %v177_v48 = vcombine.low %v166_v24, %v168_v34 }
  0xdb   :  { %v197_v49 = vrot.slane %v196_v39, 2  ;;  %v264_v50 = vadd.f32 %v263_v40, %v262_v37  ;;  %v211_v51 = vrot.slane %v210_v41, 2  ;;  %v278_v52 = vadd.f32 %v277_v42, %v276_v38 }
  0xdc   :  { %180 = vst [vmem:[%s480_s3] sm:$0xff] %v176_v45  ;;  %v202_v53 = vrot.slane %v201_v46, 4  ;;  %v269_v54 = vsel %vm193_vm3, %v259_v47, 0.0  ;;  %181 = vst [vmem:[%s480_s3 + $0x8] sm:$0xff] %v177_v48  ;;  %v215_v55 = vsel %vm193_vm3, %v168_v34, 0.0  ;;  %v261_v56 = vmul.f32 %v168_v34, %v168_v34  ;;  %v192_v45 = vld [vmem:[%s481_s4] sm:$0xf] }
  0xdd   :  { %v198_v57 = vadd.f32 %v197_v49, %v196_v39  ;;  %v265_v60 = vrot.slane %v264_v50, 2  ;;  %v279_v61 = vrot.slane %v278_v52, 2  ;;  %v270_v63 = vrot.slane %v269_v54, 4  ;;  %v257_v48 = vld [vmem:[%s482_s5] sm:$0xf] }
  0xde   :  { %v203_v62 = vadd.f32 %v202_v53, %v201_v46  ;;  %v216_v0 = vrot.slane %v215_v55, 4  ;;  %v283_v1 = vsel %vm193_vm3, %v261_v56, 0.0  ;;  %v212_v3 = vadd.f32 %v211_v51, %v210_v41 }
  0xdf   :  { %v266_v2 = vadd.f32 %v265_v60, %v264_v50  ;;  %v271_v5 = vadd.f32 %v270_v63, %v269_v54  ;;  %v284_v7 = vrot.slane %v283_v1, 4  ;;  %v199_v8 = vrot.slane %v198_v57, 1 }
  0xe0   :  { %v204_v4 = vrot.slane %v203_v62, 2  ;;  %v217_v6 = vadd.f32 %v216_v0, %v215_v55  ;;  %v280_v12 = vadd.f32 %v279_v61, %v278_v52  ;;  %v213_v18 = vrot.slane %v212_v3, 1 }
  0xe1   :  { %v272_v14 = vrot.slane %v271_v5, 2  ;;  %v285_v16 = vadd.f32 %v284_v7, %v283_v1  ;;  %v267_v17 = vrot.slane %v266_v2, 1  ;;  %v200_v23 = vadd.f32 %v199_v8, %v198_v57 }
  0xe2   :  { %v205_v13 = vadd.f32 %v204_v4, %v203_v62  ;;  %v218_v15 = vrot.slane %v217_v6, 2  ;;  %v233_v24 = vsub.s32 %v230_v10, %v440_v11  ;;  %v281_v25 = vrot.slane %v280_v12, 1 }
  0xe3   :  { %v273_v20 = vadd.f32 %v272_v14, %v271_v5  ;;  %v286_v22 = vrot.slane %v285_v16, 2  ;;  %v268_v30 = vadd.f32 %v267_v17, %v266_v2  ;;  %v214_v31 = vadd.f32 %v213_v18, %v212_v3 }
  0xe4   :  { %v206_v19 = vrot.slane %v205_v13, 1  ;;  %v219_v21 = vadd.f32 %v218_v15, %v217_v6  ;;  %v282_v36 = vadd.f32 %v281_v25, %v280_v12 }
  0xe5   :  { %v274_v27 = vrot.slane %v273_v20, 1  ;;  %v287_v29 = vadd.f32 %v286_v22, %v285_v16 }
  0xe6   :  { %v207_v26 = vadd.f32 %v206_v19, %v205_v13  ;;  %v220_v28 = vrot.slane %v219_v21, 1 }
  0xe7   :  { %v275_v33 = vadd.f32 %v274_v27, %v273_v20  ;;  %v288_v35 = vrot.slane %v287_v29, 1 }
  0xe8   :  { %v226_v32 = vcombine.low %v200_v23, %v207_v26  ;;  %v221_v34 = vadd.f32 %v220_v28, %v219_v21 }
  0xe9   :  { %v294_v38 = vcombine.low %v268_v30, %v275_v33  ;;  %v289_v40 = vadd.f32 %v288_v35, %v287_v29 }
  0xea   :  { %v234_v37 = vrot.slane %v226_v32, %v233_v24  ;;  %v227_v39 = vcombine.low %v214_v31, %v221_v34 }
  0xeb   :  { %v302_v41 = vrot.slane %v294_v38, %v233_v24  ;;  %v295_v43 = vcombine.low %v282_v36, %v289_v40 }
  0xec   :  { %v241_v42 = vrot.slane %v227_v39, %v233_v24 }
  0xed   :  { %v309_v44 = vrot.slane %v295_v43, %v233_v24 }
  0xee   :  { %v242_v11 = vcombine.low %v234_v37, %v241_v42 }
  0xef   :  { %v310_v47 = vcombine.low %v302_v41, %v309_v44 }
  0xf0   :  { %v249_v46 = vrot.slane %v242_v11, %v233_v24 }
  0xf1   :  { %v317_v50 = vrot.slane %v310_v47, %v233_v24 }
  0xf2   :  { %v251_v49 = vadd.f32 %v249_v46, %v192_v45 }
  0xf3   :  { %v319_v51 = vadd.f32 %v317_v50, %v257_v48 }
  0xf4   :  { %256 = vst.msk [vmem:[%s481_s4] sm:$0xf] %vm426_vm2, %v251_v49 }
  0xf5   :  { %320 = vst.msk [vmem:[%s482_s5] sm:$0xf] %vm426_vm2, %v319_v51 }
  0xf6   :  { %333 = vsyncpa [#allocation3], 1 }

// kernel: tile.62
= control target key start
LH: loop header
LB: loop body
LE: loop exit
PB: predicated region body
PF: predicated region fallthrough
CT: control target
= control target key end

     0   :  { %s22_s0 = inlined_call_operand.vmem [shape: f32[64], index: 0, kind: input, shape index: {}]   ;;  %s23_s1 = inlined_call_operand.vmem [shape: f32[2,64], index: 1, kind: output, shape index: {}]  }
   0x1   :  { %v4_v0 = vld [vmem:[%s22_s0] ss:$0 sm:$0xff] }
   0x2   :  { %5 = vst [vmem:[%s23_s1] sm:$0x3] %v4_v0 }

// kernel: tile.63
= control target key start
LH: loop header
LB: loop body
LE: loop exit
PB: predicated region body
PF: predicated region fallthrough
CT: control target
= control target key end

     0   :  { %vm8_vm0 = vcmask 523264   ;;  %vm14_vm1 = vcmask 1048064   ;;  %s42_s0 = inlined_call_operand.vmem [shape: f32[2,64], index: 0, kind: input, shape index: {}]   ;;  %s43_s1 = inlined_call_operand.vmem [shape: f32[1,128], index: 1, kind: output, shape index: {}]  }
   0x1   :  { %v5_v0 = vld [vmem:[%s42_s0] sm:$0x3]  ;;  %s25_s0 = smov 64  }
   0x2   :  { %6 = vst [vmem:[#allocation1] sm:$0x3] %v5_v0 }
   0x9   :  { %v11_v1 = vld [vmem:[#allocation1 + $0x1] sm:$0x1]   ;;  %v7_v2 = vld [vmem:[#allocation1] sm:$0x1]  }
   0xa   :  { %12 = vrot.lane.b32.xlu0 %v11_v1, %s25_s0  ;;  %9 = vst.msk [vmem:[#allocation0] sm:$0x1] %vm8_vm0, %v7_v2  }
  0x7c   :  { %v13_v3 = vpop.permute.xlu0 %12  }
  0x7d   :  { %15 = vst.msk [vmem:[#allocation0] sm:$0x1] %vm14_vm1, %v13_v3  }
  0x84   :  { %v20_v4 = vld [vmem:[#allocation0] sm:$0x1] }
  0x85   :  { %23 = vst [vmem:[%s43_s1] sm:$0x1] %v20_v4 }

// kernel: conv_decoder_forward.14
= control target key start
LH: loop header
LB: loop body
LE: loop exit
PB: predicated region body
PF: predicated region fallthrough
CT: control target
= control target key end

     0   :  { %s133_s0 = inlined_call_operand.vmem [shape: f32[32,128], index: 0, kind: input, shape index: {}]   ;;  %s134_s1 = inlined_call_operand.vmem [shape: f32[1,128], index: 1, kind: input, shape index: {}]   ;;  %s135_s2 = inlined_call_operand.vmem [shape: f32[1,128], index: 2, kind: input, shape index: {}]   ;;  %s136_s3 = inlined_call_operand.vmem [shape: bf16[32,128], index: 3, kind: output, shape index: {}]  }
   0x1   :  { %v14_v0 = vld [vmem:[%s133_s0] sm:$0xff]  ;;  %v15_v1 = vld [vmem:[%s133_s0 + $0x8] sm:$0xff]  ;;  %v16_v6 = vld [vmem:[%s133_s0 + $0x10] sm:$0xff] }
   0x2   :  { %v68_v2 = vld [vmem:[%s134_s1] ss:$0 sm:$0xff]  ;;  %v17_v7 = vld [vmem:[%s133_s0 + $0x18] sm:$0xff] }
   0x3   :  { %v25_v3 = vmul.f32 %v68_v2, %v14_v0  ;;  %v26_v4 = vmul.f32 %v68_v2, %v15_v1  ;;  %v69_v5 = vld [vmem:[%s135_s2] ss:$0 sm:$0xff]  ;;  %v27_v8 = vmul.f32 %v68_v2, %v16_v6  ;;  %v28_v9 = vmul.f32 %v68_v2, %v17_v7 }
   0x5   :  { %v36_v10 = vadd.f32 %v69_v5, %v25_v3  ;;  %v37_v11 = vadd.f32 %v69_v5, %v26_v4  ;;  %v38_v12 = vadd.f32 %v69_v5, %v27_v8  ;;  %v39_v13 = vadd.f32 %v69_v5, %v28_v9 }
   0x7   :  { %v40_v14 = vmax.f32 %v36_v10, 0.0  ;;  %v41_v15 = vmax.f32 %v37_v11, 0.0  ;;  %v42_v16 = vmax.f32 %v38_v12, 0.0  ;;  %v43_v17 = vmax.f32 %v39_v13, 0.0 }
   0x9   :  { %v81_v18 = vpack.c.bf16 %v41_v15, %v40_v14  ;;  %v86_v19 = vpack.c.bf16 %v43_v17, %v42_v16 }
   0xb   :  { %82 = vst [vmem:[%s136_s3] sm:$0xff] %v81_v18   ;;  %88 = vst [vmem:[%s136_s3 + $0x8] sm:$0xff] %v86_v19  }

// kernel: conv_decoder_forward.13
= control target key start
LH: loop header
LB: loop body
LE: loop exit
PB: predicated region body
PF: predicated region fallthrough
CT: control target
= control target key end

     0   :  { %v276_v32 = vlaneseq  ;;  %v2487_v33 = vmov 1983009808   ;;  %vm1973_vm0 = vcmask 1043456   ;;  %s3409_s1 = inlined_call_operand.vmem [shape: bf16[1,512,1024], index: 1, kind: input, shape index: {}]   ;;  %s3410_s0 = inlined_call_operand.vmem [shape: bf16[1,4,512], index: 0, kind: input, shape index: {}]   ;;  %s3411_s2 = inlined_call_operand.vmem [shape: f32[1,1024], index: 2, kind: input, shape index: {}]   ;;  %s3412_s3 = inlined_call_operand.vmem [shape: f32[1,4,1024], index: 3, kind: output, shape index: {0}]   ;;  %s3413_s4 = inlined_call_operand.vmem [shape: f32[1,1,1024], index: 4, kind: output, shape index: {1}]   ;;  %s3414_s5 = inlined_call_operand.vmem [shape: f32[1,1,1024], index: 5, kind: output, shape index: {2}]  }
   0x1   :  { %v74_v0 = vld [vmem:[%s3409_s1 + $0x1c0] sm:$0xff]  ;;  %v319_v34 = vunpack.c.l.s4 %v2487_v33 }
   0x2   :  { %v78_v1 = vld [vmem:[%s3409_s1 + $0x1e0] sm:$0xff]  ;;  %v2585_v43 = vshrl.u32 %v276_v32, 7 }
   0x3   :  { %v202_v2 = vld [vmem:[%s3409_s1 + $0x5c0] sm:$0xff]  ;;  %v2284_v3 = vcombine.high %v74_v0, %v78_v1  ;;  %v2283_v5 = vcombine.low %v74_v0, %v78_v1  ;;  %v320_v44 = vunpack.c.0.s8 %v319_v34 }
   0x4   :  { %v206_v4 = vld [vmem:[%s3409_s1 + $0x5e0] sm:$0xff] }
   0x5   :  { %v66_v6 = vld [vmem:[%s3409_s1 + $0x180] sm:$0xff]  ;;  %v2412_v8 = vcombine.high %v202_v2, %v206_v4  ;;  %v2411_v9 = vcombine.low %v202_v2, %v206_v4  ;;  %1618 = vmatprep.subr.bf16.mxu0 %v2284_v3  ;;  %v323_v53 = vsub.s32 %v320_v44, %v2585_v43 }
   0x6   :  { %v70_v7 = vld [vmem:[%s3409_s1 + $0x1a0] sm:$0xff]  ;;  %1619 = vmatpush1.bf16.msra.mxu0 %v2283_v5 }
   0x7   :  { %v2276_v10 = vcombine.high %v66_v6, %v70_v7  ;;  %v194_v11 = vld [vmem:[%s3409_s1 + $0x580] sm:$0xff]  ;;  %1659 = vmatprep.subr.bf16.mxu1 %v2412_v8  ;;  %v2275_v18 = vcombine.low %v66_v6, %v70_v7 }
   0x8   :  { %v198_v12 = vld [vmem:[%s3409_s1 + $0x5a0] sm:$0xff]  ;;  %1660 = vmatpush1.bf16.msra.mxu1 %v2411_v9 }
   0x9   :  { %v58_v13 = vld [vmem:[%s3409_s1 + $0x140] sm:$0xff]  ;;  %v2404_v14 = vcombine.high %v194_v11, %v198_v12  ;;  %1620 = vmatprep.subr.bf16.mxu0 %v2276_v10  ;;  %v2403_v19 = vcombine.low %v194_v11, %v198_v12 }
   0xa   :  { %v62_v15 = vld [vmem:[%s3409_s1 + $0x160] sm:$0xff]  ;;  %1621 = vmatpush1.bf16.msra.mxu0 %v2275_v18 }
   0xb   :  { %v186_v16 = vld [vmem:[%s3409_s1 + $0x540] sm:$0xff]  ;;  %v2268_v20 = vcombine.high %v58_v13, %v62_v15  ;;  %1661 = vmatprep.subr.bf16.mxu1 %v2404_v14  ;;  %v2267_v26 = vcombine.low %v58_v13, %v62_v15 }
   0xc   :  { %v190_v17 = vld [vmem:[%s3409_s1 + $0x560] sm:$0xff]  ;;  %1662 = vmatpush1.bf16.msra.mxu1 %v2403_v19 }
   0xd   :  { %v2396_v21 = vcombine.high %v186_v16, %v190_v17  ;;  %v50_v22 = vld [vmem:[%s3409_s1 + $0x100] sm:$0xff]  ;;  %1622 = vmatprep.subr.bf16.mxu0 %v2268_v20  ;;  %v2395_v27 = vcombine.low %v186_v16, %v190_v17 }
   0xe   :  { %v54_v23 = vld [vmem:[%s3409_s1 + $0x120] sm:$0xff]  ;;  %1623 = vmatpush1.bf16.msra.mxu0 %v2267_v26 }
   0xf   :  { %v178_v24 = vld [vmem:[%s3409_s1 + $0x500] sm:$0xff]  ;;  %v2260_v28 = vcombine.high %v50_v22, %v54_v23  ;;  %1663 = vmatprep.subr.bf16.mxu1 %v2396_v21  ;;  %v2259_v37 = vcombine.low %v50_v22, %v54_v23 }
  0x10   :  { %v182_v25 = vld [vmem:[%s3409_s1 + $0x520] sm:$0xff]  ;;  %1664 = vmatpush1.bf16.msra.mxu1 %v2395_v27 }
  0x11   :  { %v2388_v29 = vcombine.high %v178_v24, %v182_v25  ;;  %v42_v30 = vld [vmem:[%s3409_s1 + $0xc0] sm:$0xff]  ;;  %1624 = vmatprep.subr.bf16.mxu0 %v2260_v28  ;;  %v2387_v38 = vcombine.low %v178_v24, %v182_v25 }
  0x12   :  { %v46_v31 = vld [vmem:[%s3409_s1 + $0xe0] sm:$0xff]  ;;  %1625 = vmatpush1.bf16.msra.mxu0 %v2259_v37 }
  0x13   :  { %v170_v35 = vld [vmem:[%s3409_s1 + $0x4c0] sm:$0xff]  ;;  %v2252_v39 = vcombine.high %v42_v30, %v46_v31  ;;  %1665 = vmatprep.subr.bf16.mxu1 %v2388_v29  ;;  %v2251_v47 = vcombine.low %v42_v30, %v46_v31 }
  0x14   :  { %v174_v36 = vld [vmem:[%s3409_s1 + $0x4e0] sm:$0xff]  ;;  %1666 = vmatpush1.bf16.msra.mxu1 %v2387_v38 }
  0x15   :  { %v2380_v40 = vcombine.high %v170_v35, %v174_v36  ;;  %v34_v41 = vld [vmem:[%s3409_s1 + $0x80] sm:$0xff]  ;;  %1626 = vmatprep.subr.bf16.mxu0 %v2252_v39  ;;  %v2379_v48 = vcombine.low %v170_v35, %v174_v36 }
  0x16   :  { %v38_v42 = vld [vmem:[%s3409_s1 + $0xa0] sm:$0xff]  ;;  %1627 = vmatpush1.bf16.msra.mxu0 %v2251_v47 }
  0x17   :  { %v162_v45 = vld [vmem:[%s3409_s1 + $0x480] sm:$0xff]  ;;  %v2244_v49 = vcombine.high %v34_v41, %v38_v42  ;;  %1667 = vmatprep.subr.bf16.mxu1 %v2380_v40  ;;  %v2243_v56 = vcombine.low %v34_v41, %v38_v42 }
  0x18   :  { %v166_v46 = vld [vmem:[%s3409_s1 + $0x4a0] sm:$0xff]  ;;  %1668 = vmatpush1.bf16.msra.mxu1 %v2379_v48 }
  0x19   :  { %v2372_v50 = vcombine.high %v162_v45, %v166_v46  ;;  %v26_v51 = vld [vmem:[%s3409_s1 + $0x40] sm:$0xff]  ;;  %1628 = vmatprep.subr.bf16.mxu0 %v2244_v49  ;;  %v2371_v57 = vcombine.low %v162_v45, %v166_v46 }
  0x1a   :  { %v30_v52 = vld [vmem:[%s3409_s1 + $0x60] sm:$0xff]  ;;  %1629 = vmatpush1.bf16.msra.mxu0 %v2243_v56 }
  0x1b   :  { %v154_v54 = vld [vmem:[%s3409_s1 + $0x440] sm:$0xff]  ;;  %v2236_v58 = vcombine.high %v26_v51, %v30_v52  ;;  %1669 = vmatprep.subr.bf16.mxu1 %v2372_v50  ;;  %v2235_v3 = vcombine.low %v26_v51, %v30_v52 }
  0x1c   :  { %v158_v55 = vld [vmem:[%s3409_s1 + $0x460] sm:$0xff]  ;;  %1670 = vmatpush1.bf16.msra.mxu1 %v2371_v57 }
  0x1d   :  { %v17_v59 = vld [vmem:[%s3410_s0] sm:$0xff]  ;;  %v2364_v60 = vcombine.high %v154_v54, %v158_v55  ;;  %1630 = vmatprep.subr.bf16.mxu0 %v2236_v58  ;;  %v2363_v6 = vcombine.low %v154_v54, %v158_v55 }
  0x1e   :  { %v18_v61 = vld [vmem:[%s3409_s1] sm:$0xff]  ;;  %v2615_v63 = vrot.slane %v17_v59, %v323_v53  ;;  %v317_v0 = vcombine.high %v17_v59, %v17_v59  ;;  %1631 = vmatpush1.bf16.msra.mxu0 %v2235_v3 }
  0x1f   :  { %v22_v62 = vld [vmem:[%s3409_s1 + $0x20] sm:$0xff]  ;;  %1671 = vmatprep.subr.bf16.mxu1 %v2364_v60 }
  0x20   :  { %v146_v1 = vld [vmem:[%s3409_s1 + $0x400] sm:$0xff]  ;;  %v2625_v4 = vcombine.high %v2615_v63, %v2615_v63  ;;  %v2627_v5 = vrot.slane %v317_v0, %v323_v53  ;;  %v2228_v7 = vcombine.high %v18_v61, %v22_v62  ;;  %v2227_v14 = vcombine.low %v18_v61, %v22_v62  ;;  %1672 = vmatpush1.bf16.msra.mxu1 %v2363_v6 }
  0x21   :  { %v150_v2 = vld [vmem:[%s3409_s1 + $0x420] sm:$0xff] }
  0x22   :  { %v2356_v8 = vcombine.high %v146_v1, %v150_v2  ;;  %v138_v9 = vld [vmem:[%s3409_s1 + $0x3c0] sm:$0xff]  ;;  %1650 = vmatprep.mubr.bf16.mxu0 %v2625_v4  ;;  %v2638_v11 = vcombine.high %v2627_v5, %v2627_v5  ;;  %1632 = vmatprep.subr.bf16.mxu0 %v2228_v7  ;;  %v2355_v15 = vcombine.low %v146_v1, %v150_v2 }
  0x23   :  { %v142_v10 = vld [vmem:[%s3409_s1 + $0x3e0] sm:$0xff]  ;;  %1633 = vmatpush1.bf16.msra.mxu0 %v2227_v14 }
  0x24   :  { %v266_v12 = vld [vmem:[%s3409_s1 + $0x7c0] sm:$0xff]  ;;  %1691 = vmatprep.mubr.bf16.mxu1 %v2638_v11  ;;  %v2348_v16 = vcombine.high %v138_v9, %v142_v10  ;;  %1673 = vmatprep.subr.bf16.mxu1 %v2356_v8  ;;  %v2347_v22 = vcombine.low %v138_v9, %v142_v10 }
  0x25   :  { %v270_v13 = vld [vmem:[%s3409_s1 + $0x7e0] sm:$0xff]  ;;  %1674 = vmatpush1.bf16.msra.mxu1 %v2355_v15  ;;  %v75_v15 = vld [vmem:[%s3409_s1 + $0x1c8] sm:$0xff] }
  0x26   :  { %v2476_v17 = vcombine.high %v266_v12, %v270_v13  ;;  %v130_v18 = vld [vmem:[%s3409_s1 + $0x380] sm:$0xff]  ;;  %1634 = vmatprep.subr.bf16.mxu0 %v2348_v16  ;;  %v2475_v23 = vcombine.low %v266_v12, %v270_v13  ;;  %v79_v16 = vld [vmem:[%s3409_s1 + $0x1e8] sm:$0xff] }
  0x27   :  { %v134_v19 = vld [vmem:[%s3409_s1 + $0x3a0] sm:$0xff]  ;;  %1635 = vmatpush2.bf16.msra.mxu0 %v2347_v22 }
  0x28   :  { %v258_v20 = vld [vmem:[%s3409_s1 + $0x780] sm:$0xff]  ;;  %v2340_v24 = vcombine.high %v130_v18, %v134_v19  ;;  %1675 = vmatprep.subr.bf16.mxu1 %v2476_v17  ;;  %v2339_v30 = vcombine.low %v130_v18, %v134_v19  ;;  %v203_v17 = vld [vmem:[%s3409_s1 + $0x5c8] sm:$0xff] }
  0x29   :  { %v262_v21 = vld [vmem:[%s3409_s1 + $0x7a0] sm:$0xff]  ;;  %1676 = vmatpush2.bf16.msra.mxu1 %v2475_v23  ;;  %v207_v18 = vld [vmem:[%s3409_s1 + $0x5e8] sm:$0xff] }
  0x2a   :  { %v2468_v25 = vcombine.high %v258_v20, %v262_v21  ;;  %v122_v26 = vld [vmem:[%s3409_s1 + $0x340] sm:$0xff]  ;;  %1636 = vmatprep.subr.bf16.mxu0 %v2340_v24  ;;  %v2467_v31 = vcombine.low %v258_v20, %v262_v21  ;;  %v2286_v21 = vcombine.high %v75_v15, %v79_v16  ;;  %v2414_v22 = vcombine.high %v203_v17, %v207_v18  ;;  %v67_v23 = vld [vmem:[%s3409_s1 + $0x188] sm:$0xff] }
  0x2b   :  { %v126_v27 = vld [vmem:[%s3409_s1 + $0x360] sm:$0xff]  ;;  %1637 = vmatpush2.bf16.msra.mxu0 %v2339_v30  ;;  %v71_v24 = vld [vmem:[%s3409_s1 + $0x1a8] sm:$0xff] }
  0x2c   :  { %v250_v28 = vld [vmem:[%s3409_s1 + $0x740] sm:$0xff]  ;;  %v2332_v32 = vcombine.high %v122_v26, %v126_v27  ;;  %1677 = vmatprep.subr.bf16.mxu1 %v2468_v25  ;;  %v2331_v38 = vcombine.low %v122_v26, %v126_v27  ;;  %v195_v25 = vld [vmem:[%s3409_s1 + $0x588] sm:$0xff]  ;;  %v2285_v27 = vcombine.low %v75_v15, %v79_v16 }
  0x2d   :  { %v254_v29 = vld [vmem:[%s3409_s1 + $0x760] sm:$0xff]  ;;  %1678 = vmatpush2.bf16.msra.mxu1 %v2467_v31  ;;  %v199_v26 = vld [vmem:[%s3409_s1 + $0x5a8] sm:$0xff] }
  0x2e   :  { %v2460_v33 = vcombine.high %v250_v28, %v254_v29  ;;  %v114_v34 = vld [vmem:[%s3409_s1 + $0x300] sm:$0xff]  ;;  %1638 = vmatprep.subr.bf16.mxu0 %v2332_v32  ;;  %v2459_v39 = vcombine.low %v250_v28, %v254_v29  ;;  %v2413_v28 = vcombine.low %v203_v17, %v207_v18  ;;  %v2278_v29 = vcombine.high %v67_v23, %v71_v24  ;;  %v59_v31 = vld [vmem:[%s3409_s1 + $0x148] sm:$0xff] }
  0x2f   :  { %v118_v35 = vld [vmem:[%s3409_s1 + $0x320] sm:$0xff]  ;;  %1639 = vmatpush2.bf16.msra.mxu0 %v2331_v38  ;;  %v2406_v30 = vcombine.high %v195_v25, %v199_v26  ;;  %v63_v32 = vld [vmem:[%s3409_s1 + $0x168] sm:$0xff] }
  0x30   :  { %v242_v36 = vld [vmem:[%s3409_s1 + $0x700] sm:$0xff]  ;;  %v2324_v40 = vcombine.high %v114_v34, %v118_v35  ;;  %1679 = vmatprep.subr.bf16.mxu1 %v2460_v33  ;;  %v2323_v47 = vcombine.low %v114_v34, %v118_v35  ;;  %v187_v33 = vld [vmem:[%s3409_s1 + $0x548] sm:$0xff]  ;;  %v2277_v35 = vcombine.low %v67_v23, %v71_v24 }
  0x31   :  { %v246_v37 = vld [vmem:[%s3409_s1 + $0x720] sm:$0xff]  ;;  %1680 = vmatpush2.bf16.msra.mxu1 %v2459_v39  ;;  %v191_v34 = vld [vmem:[%s3409_s1 + $0x568] sm:$0xff] }
  0x32   :  { %v2452_v41 = vcombine.high %v242_v36, %v246_v37  ;;  %v106_v42 = vld [vmem:[%s3409_s1 + $0x2c0] sm:$0xff]  ;;  %1640 = vmatprep.subr.bf16.mxu0 %v2324_v40  ;;  %v2451_v48 = vcombine.low %v242_v36, %v246_v37  ;;  %v2405_v36 = vcombine.low %v195_v25, %v199_v26  ;;  %v2270_v37 = vcombine.high %v59_v31, %v63_v32  ;;  %v51_v39 = vld [vmem:[%s3409_s1 + $0x108] sm:$0xff] }
  0x33   :  { %v110_v44 = vld [vmem:[%s3409_s1 + $0x2e0] sm:$0xff]  ;;  %1641 = vmatpush2.bf16.msra.mxu0 %v2323_v47  ;;  %v2398_v38 = vcombine.high %v187_v33, %v191_v34  ;;  %v55_v40 = vld [vmem:[%s3409_s1 + $0x128] sm:$0xff] }
  0x34   :  { %v234_v45 = vld [vmem:[%s3409_s1 + $0x6c0] sm:$0xff]  ;;  %v2316_v49 = vcombine.high %v106_v42, %v110_v44  ;;  %1681 = vmatprep.subr.bf16.mxu1 %v2452_v41  ;;  %v2315_v55 = vcombine.low %v106_v42, %v110_v44  ;;  %v179_v41 = vld [vmem:[%s3409_s1 + $0x508] sm:$0xff]  ;;  %v2269_v44 = vcombine.low %v59_v31, %v63_v32 }
  0x35   :  { %v238_v46 = vld [vmem:[%s3409_s1 + $0x6e0] sm:$0xff]  ;;  %1682 = vmatpush2.bf16.msra.mxu1 %v2451_v48  ;;  %v183_v42 = vld [vmem:[%s3409_s1 + $0x528] sm:$0xff] }
  0x36   :  { %v2444_v50 = vcombine.high %v234_v45, %v238_v46  ;;  %v98_v51 = vld [vmem:[%s3409_s1 + $0x280] sm:$0xff]  ;;  %1642 = vmatprep.subr.bf16.mxu0 %v2316_v49  ;;  %v2443_v56 = vcombine.low %v234_v45, %v238_v46  ;;  %v2397_v45 = vcombine.low %v187_v33, %v191_v34  ;;  %v2262_v46 = vcombine.high %v51_v39, %v55_v40  ;;  %v43_v48 = vld [vmem:[%s3409_s1 + $0xc8] sm:$0xff] }
  0x37   :  { %v102_v52 = vld [vmem:[%s3409_s1 + $0x2a0] sm:$0xff]  ;;  %1643 = vmatpush2.bf16.msra.mxu0 %v2315_v55  ;;  %v2390_v47 = vcombine.high %v179_v41, %v183_v42  ;;  %v47_v49 = vld [vmem:[%s3409_s1 + $0xe8] sm:$0xff] }
  0x38   :  { %v226_v53 = vld [vmem:[%s3409_s1 + $0x680] sm:$0xff]  ;;  %v2308_v57 = vcombine.high %v98_v51, %v102_v52  ;;  %1683 = vmatprep.subr.bf16.mxu1 %v2444_v50  ;;  %v2307_v0 = vcombine.low %v98_v51, %v102_v52  ;;  %v171_v50 = vld [vmem:[%s3409_s1 + $0x4c8] sm:$0xff]  ;;  %v2261_v52 = vcombine.low %v51_v39, %v55_v40 }
  0x39   :  { %v230_v54 = vld [vmem:[%s3409_s1 + $0x6a0] sm:$0xff]  ;;  %1684 = vmatpush2.bf16.msra.mxu1 %v2443_v56  ;;  %v175_v51 = vld [vmem:[%s3409_s1 + $0x4e8] sm:$0xff] }
  0x3a   :  { %v2436_v58 = vcombine.high %v226_v53, %v230_v54  ;;  %v90_v59 = vld [vmem:[%s3409_s1 + $0x240] sm:$0xff]  ;;  %1644 = vmatprep.subr.bf16.mxu0 %v2308_v57  ;;  %v2435_v1 = vcombine.low %v226_v53, %v230_v54  ;;  %v2389_v53 = vcombine.low %v179_v41, %v183_v42  ;;  %v2254_v54 = vcombine.high %v43_v48, %v47_v49  ;;  %v35_v56 = vld [vmem:[%s3409_s1 + $0x88] sm:$0xff] }
  0x3b   :  { %v94_v60 = vld [vmem:[%s3409_s1 + $0x260] sm:$0xff]  ;;  %1645 = vmatpush2.bf16.msra.mxu0 %v2307_v0  ;;  %v2382_v55 = vcombine.high %v171_v50, %v175_v51  ;;  %v39_v57 = vld [vmem:[%s3409_s1 + $0xa8] sm:$0xff] }
  0x3c   :  { %v218_v61 = vld [vmem:[%s3409_s1 + $0x640] sm:$0xff]  ;;  %v2300_v2 = vcombine.high %v90_v59, %v94_v60  ;;  %1685 = vmatprep.subr.bf16.mxu1 %v2436_v58  ;;  %v2299_v10 = vcombine.low %v90_v59, %v94_v60  ;;  %v163_v58 = vld [vmem:[%s3409_s1 + $0x488] sm:$0xff]  ;;  %v2253_v60 = vcombine.low %v43_v48, %v47_v49 }
  0x3d   :  { %v222_v62 = vld [vmem:[%s3409_s1 + $0x660] sm:$0xff]  ;;  %1686 = vmatpush2.bf16.msra.mxu1 %v2435_v1  ;;  %v167_v59 = vld [vmem:[%s3409_s1 + $0x4a8] sm:$0xff] }
  0x3e   :  { %v2428_v3 = vcombine.high %v218_v61, %v222_v62  ;;  %v82_v6 = vld [vmem:[%s3409_s1 + $0x200] sm:$0xff]  ;;  %1646 = vmatprep.subr.bf16.mxu0 %v2300_v2  ;;  %v2427_v12 = vcombine.low %v218_v61, %v222_v62  ;;  %v2381_v61 = vcombine.low %v171_v50, %v175_v51  ;;  %v2246_v62 = vcombine.high %v35_v56, %v39_v57  ;;  %v27_v1 = vld [vmem:[%s3409_s1 + $0x48] sm:$0xff] }
  0x3f   :  { %v86_v7 = vld [vmem:[%s3409_s1 + $0x220] sm:$0xff]  ;;  %1647 = vmatpush2.bf16.msra.mxu0 %v2299_v10  ;;  %v2374_v0 = vcombine.high %v163_v58, %v167_v59  ;;  %v31_v2 = vld [vmem:[%s3409_s1 + $0x68] sm:$0xff] }
  0x40   :  { %v210_v8 = vld [vmem:[%s3409_s1 + $0x600] sm:$0xff]  ;;  %v2292_v13 = vcombine.high %v82_v6, %v86_v7  ;;  %1687 = vmatprep.subr.bf16.mxu1 %v2428_v3  ;;  %v2291_v19 = vcombine.low %v82_v6, %v86_v7  ;;  %v155_v3 = vld [vmem:[%s3409_s1 + $0x448] sm:$0xff]  ;;  %v2245_v7 = vcombine.low %v35_v56, %v39_v57  ;;  %v2237_v16 = vcombine.low %v27_v1, %v31_v2 }
  0x41   :  { %v214_v9 = vld [vmem:[%s3409_s1 + $0x620] sm:$0xff]  ;;  %1688 = vmatpush2.bf16.msra.mxu1 %v2427_v12  ;;  %v159_v6 = vld [vmem:[%s3409_s1 + $0x468] sm:$0xff] }
  0x42   :  { %v2420_v14 = vcombine.high %v210_v8, %v214_v9  ;;  %1648 = vmatprep.subr.bf16.mxu0 %v2292_v13  ;;  %v2419_v20 = vcombine.low %v210_v8, %v214_v9  ;;  %v2373_v8 = vcombine.low %v163_v58, %v167_v59  ;;  %v2238_v9 = vcombine.high %v27_v1, %v31_v2  ;;  %v19_v12 = vld [vmem:[%s3409_s1 + $0x8] sm:$0xff] }
  0x43   :  { %1649 = vmatpush2.bf16.msra.mxu0 %v2291_v19  ;;  %v2366_v10 = vcombine.high %v155_v3, %v159_v6  ;;  %v23_v13 = vld [vmem:[%s3409_s1 + $0x28] sm:$0xff]  ;;  %v2365_v17 = vcombine.low %v155_v3, %v159_v6 }
  0x44   :  { %1689 = vmatprep.subr.bf16.mxu1 %v2420_v14  ;;  %1700 = vmatprep.subr.bf16.mxu0 %v2286_v21  ;;  %v147_v14 = vld [vmem:[%s3409_s1 + $0x408] sm:$0xff]  ;;  %v2230_v18 = vcombine.high %v19_v12, %v23_v13  ;;  %v2229_v24 = vcombine.low %v19_v12, %v23_v13 }
  0x45   :  { %1690 = vmatpush2.bf16.msra.mxu1 %v2419_v20  ;;  %v151_v15 = vld [vmem:[%s3409_s1 + $0x428] sm:$0xff] }
  0x46   :  { %1741 = vmatprep.subr.bf16.mxu1 %v2414_v22  ;;  %1651 = vmatmul.mubr.bf16.vlgmr.msra.gmra.mxu0 %v2615_v63  ;;  %v2358_v19 = vcombine.high %v147_v14, %v151_v15  ;;  %v139_v20 = vld [vmem:[%s3409_s1 + $0x3c8] sm:$0xff]  ;;  %v2357_v25 = vcombine.low %v147_v14, %v151_v15 }
  0x47   :  { %1701 = vmatpush1.bf16.msra.mxu0 %v2285_v27  ;;  %1732 = vmatprep.mubr.bf16.mxu0 %v2625_v4  ;;  %v143_v21 = vld [vmem:[%s3409_s1 + $0x3e8] sm:$0xff] }
  0x48   :  { %1692 = vmatmul.mubr.bf16.vlgmr.msra.gmra.mxu1 %v2627_v5  ;;  %1702 = vmatprep.subr.bf16.mxu0 %v2278_v29  ;;  %v267_v22 = vld [vmem:[%s3409_s1 + $0x7c8] sm:$0xff]  ;;  %v2350_v26 = vcombine.high %v139_v20, %v143_v21  ;;  %v2349_v32 = vcombine.low %v139_v20, %v143_v21 }
  0x49   :  { %1742 = vmatpush1.bf16.msra.mxu1 %v2413_v28  ;;  %1773 = vmatprep.mubr.bf16.mxu1 %v2638_v11  ;;  %v271_v23 = vld [vmem:[%s3409_s1 + $0x7e8] sm:$0xff] }
  0x4a   :  { %1743 = vmatprep.subr.bf16.mxu1 %v2406_v30  ;;  %v2478_v27 = vcombine.high %v267_v22, %v271_v23  ;;  %v131_v28 = vld [vmem:[%s3409_s1 + $0x388] sm:$0xff]  ;;  %v2477_v33 = vcombine.low %v267_v22, %v271_v23 }
  0x4b   :  { %1703 = vmatpush1.bf16.msra.mxu0 %v2277_v35  ;;  %v135_v29 = vld [vmem:[%s3409_s1 + $0x3a8] sm:$0xff] }
  0x4c   :  { %1704 = vmatprep.subr.bf16.mxu0 %v2270_v37  ;;  %v259_v30 = vld [vmem:[%s3409_s1 + $0x788] sm:$0xff]  ;;  %v2342_v34 = vcombine.high %v131_v28, %v135_v29  ;;  %v2341_v40 = vcombine.low %v131_v28, %v135_v29  ;;  %v208_v28 = vld [vmem:[%s3409_s1 + $0x5f0] sm:$0xff] }
  0x4d   :  { %1744 = vmatpush1.bf16.msra.mxu1 %v2405_v36  ;;  %v263_v31 = vld [vmem:[%s3409_s1 + $0x7a8] sm:$0xff] }
  0x4e   :  { %1745 = vmatprep.subr.bf16.mxu1 %v2398_v38  ;;  %v2470_v35 = vcombine.high %v259_v30, %v263_v31  ;;  %v123_v36 = vld [vmem:[%s3409_s1 + $0x348] sm:$0xff]  ;;  %v2469_v41 = vcombine.low %v259_v30, %v263_v31 }
  0x4f   :  { %1705 = vmatpush1.bf16.msra.mxu0 %v2269_v44  ;;  %v127_v37 = vld [vmem:[%s3409_s1 + $0x368] sm:$0xff] }
  0x50   :  { %1706 = vmatprep.subr.bf16.mxu0 %v2262_v46  ;;  %v251_v38 = vld [vmem:[%s3409_s1 + $0x748] sm:$0xff]  ;;  %v2334_v42 = vcombine.high %v123_v36, %v127_v37  ;;  %v2333_v49 = vcombine.low %v123_v36, %v127_v37  ;;  %v200_v36 = vld [vmem:[%s3409_s1 + $0x5b0] sm:$0xff] }
  0x51   :  { %1746 = vmatpush1.bf16.msra.mxu1 %v2397_v45  ;;  %v255_v39 = vld [vmem:[%s3409_s1 + $0x768] sm:$0xff] }
  0x52   :  { %1747 = vmatprep.subr.bf16.mxu1 %v2390_v47  ;;  %v2462_v44 = vcombine.high %v251_v38, %v255_v39  ;;  %v115_v45 = vld [vmem:[%s3409_s1 + $0x308] sm:$0xff]  ;;  %v2461_v50 = vcombine.low %v251_v38, %v255_v39 }
  0x53   :  { %1707 = vmatpush1.bf16.msra.mxu0 %v2261_v52  ;;  %v119_v46 = vld [vmem:[%s3409_s1 + $0x328] sm:$0xff] }
  0x54   :  { %1708 = vmatprep.subr.bf16.mxu0 %v2254_v54  ;;  %v243_v47 = vld [vmem:[%s3409_s1 + $0x708] sm:$0xff]  ;;  %v2326_v51 = vcombine.high %v115_v45, %v119_v46  ;;  %v2325_v57 = vcombine.low %v115_v45, %v119_v46  ;;  %v192_v45 = vld [vmem:[%s3409_s1 + $0x570] sm:$0xff] }
  0x55   :  { %1748 = vmatpush1.bf16.msra.mxu1 %v2389_v53  ;;  %v247_v48 = vld [vmem:[%s3409_s1 + $0x728] sm:$0xff] }
  0x56   :  { %1749 = vmatprep.subr.bf16.mxu1 %v2382_v55  ;;  %v2454_v52 = vcombine.high %v243_v47, %v247_v48  ;;  %v107_v53 = vld [vmem:[%s3409_s1 + $0x2c8] sm:$0xff]  ;;  %v2453_v58 = vcombine.low %v243_v47, %v247_v48 }
  0x57   :  { %1709 = vmatpush1.bf16.msra.mxu0 %v2253_v60  ;;  %v111_v54 = vld [vmem:[%s3409_s1 + $0x2e8] sm:$0xff] }
  0x58   :  { %1710 = vmatprep.subr.bf16.mxu0 %v2246_v62  ;;  %v235_v55 = vld [vmem:[%s3409_s1 + $0x6c8] sm:$0xff]  ;;  %v2318_v59 = vcombine.high %v107_v53, %v111_v54  ;;  %v2317_v2 = vcombine.low %v107_v53, %v111_v54  ;;  %v184_v53 = vld [vmem:[%s3409_s1 + $0x530] sm:$0xff] }
  0x59   :  { %1750 = vmatpush1.bf16.msra.mxu1 %v2381_v61  ;;  %v239_v56 = vld [vmem:[%s3409_s1 + $0x6e8] sm:$0xff] }
  0x5a   :  { %1751 = vmatprep.subr.bf16.mxu1 %v2374_v0  ;;  %v2446_v60 = vcombine.high %v235_v55, %v239_v56  ;;  %v99_v61 = vld [vmem:[%s3409_s1 + $0x288] sm:$0xff]  ;;  %v2445_v3 = vcombine.low %v235_v55, %v239_v56 }
  0x5b   :  { %1711 = vmatpush1.bf16.msra.mxu0 %v2245_v7  ;;  %v103_v62 = vld [vmem:[%s3409_s1 + $0x2a8] sm:$0xff] }
  0x5c   :  { %1712 = vmatprep.subr.bf16.mxu0 %v2238_v9  ;;  %v227_v0 = vld [vmem:[%s3409_s1 + $0x688] sm:$0xff]  ;;  %v2310_v6 = vcombine.high %v99_v61, %v103_v62  ;;  %v2309_v13 = vcombine.low %v99_v61, %v103_v62  ;;  %v176_v61 = vld [vmem:[%s3409_s1 + $0x4f0] sm:$0xff] }
  0x5d   :  { %1752 = vmatpush1.bf16.msra.mxu1 %v2373_v8  ;;  %v231_v1 = vld [vmem:[%s3409_s1 + $0x6a8] sm:$0xff] }
  0x5e   :  { %1753 = vmatprep.subr.bf16.mxu1 %v2366_v10  ;;  %v2438_v7 = vcombine.high %v227_v0, %v231_v1  ;;  %v91_v8 = vld [vmem:[%s3409_s1 + $0x248] sm:$0xff]  ;;  %v2437_v14 = vcombine.low %v227_v0, %v231_v1 }
  0x5f   :  { %1713 = vmatpush1.bf16.msra.mxu0 %v2237_v16  ;;  %v95_v9 = vld [vmem:[%s3409_s1 + $0x268] sm:$0xff] }
  0x60   :  { %1714 = vmatprep.subr.bf16.mxu0 %v2230_v18  ;;  %v219_v10 = vld [vmem:[%s3409_s1 + $0x648] sm:$0xff]  ;;  %v2302_v15 = vcombine.high %v91_v8, %v95_v9  ;;  %v2301_v21 = vcombine.low %v91_v8, %v95_v9  ;;  %v168_v8 = vld [vmem:[%s3409_s1 + $0x4b0] sm:$0xff] }
  0x61   :  { %1754 = vmatpush1.bf16.msra.mxu1 %v2365_v17  ;;  %v223_v12 = vld [vmem:[%s3409_s1 + $0x668] sm:$0xff] }
  0x62   :  { %1755 = vmatprep.subr.bf16.mxu1 %v2358_v19  ;;  %v2430_v16 = vcombine.high %v219_v10, %v223_v12  ;;  %v83_v17 = vld [vmem:[%s3409_s1 + $0x208] sm:$0xff]  ;;  %v2429_v22 = vcombine.low %v219_v10, %v223_v12 }
  0x63   :  { %1715 = vmatpush1.bf16.msra.mxu0 %v2229_v24  ;;  %v87_v18 = vld [vmem:[%s3409_s1 + $0x228] sm:$0xff] }
  0x64   :  { %1716 = vmatprep.subr.bf16.mxu0 %v2350_v26  ;;  %v211_v19 = vld [vmem:[%s3409_s1 + $0x608] sm:$0xff]  ;;  %v2294_v23 = vcombine.high %v83_v17, %v87_v18  ;;  %v80_v26 = vld [vmem:[%s3409_s1 + $0x1f0] sm:$0xff]  ;;  %v2293_v29 = vcombine.low %v83_v17, %v87_v18 }
  0x65   :  { %1756 = vmatpush1.bf16.msra.mxu1 %v2357_v25  ;;  %v215_v20 = vld [vmem:[%s3409_s1 + $0x628] sm:$0xff]  ;;  %v76_v25 = vld [vmem:[%s3409_s1 + $0x1d0] sm:$0xff] }
  0x66   :  { %1757 = vmatprep.subr.bf16.mxu1 %v2478_v27  ;;  %v2422_v24 = vcombine.high %v211_v19, %v215_v20  ;;  %v204_v27 = vld [vmem:[%s3409_s1 + $0x5d0] sm:$0xff]  ;;  %v2421_v30 = vcombine.low %v211_v19, %v215_v20  ;;  %v2288_v31 = vcombine.high %v76_v25, %v80_v26  ;;  %v2287_v37 = vcombine.low %v76_v25, %v80_v26 }
  0x67   :  { %1717 = vmatpush2.bf16.msra.mxu0 %v2349_v32  ;;  %v2416_v32 = vcombine.high %v204_v27, %v208_v28  ;;  %v2415_v38 = vcombine.low %v204_v27, %v208_v28  ;;  %v160_v17 = vld [vmem:[%s3409_s1 + $0x470] sm:$0xff] }
  0x68   :  { %1718 = vmatprep.subr.bf16.mxu0 %v2342_v34  ;;  %v72_v34 = vld [vmem:[%s3409_s1 + $0x1b0] sm:$0xff] }
  0x69   :  { %1758 = vmatpush2.bf16.msra.mxu1 %v2477_v33  ;;  %v68_v33 = vld [vmem:[%s3409_s1 + $0x190] sm:$0xff] }
  0x6a   :  { %1759 = vmatprep.subr.bf16.mxu1 %v2470_v35  ;;  %v196_v35 = vld [vmem:[%s3409_s1 + $0x590] sm:$0xff]  ;;  %v2280_v39 = vcombine.high %v68_v33, %v72_v34  ;;  %v2279_v46 = vcombine.low %v68_v33, %v72_v34 }
  0x6b   :  { %1719 = vmatpush2.bf16.msra.mxu0 %v2341_v40  ;;  %v2408_v40 = vcombine.high %v196_v35, %v200_v36  ;;  %v2407_v47 = vcombine.low %v196_v35, %v200_v36  ;;  %v152_v25 = vld [vmem:[%s3409_s1 + $0x430] sm:$0xff] }
  0x6c   :  { %1720 = vmatprep.subr.bf16.mxu0 %v2334_v42  ;;  %v64_v42 = vld [vmem:[%s3409_s1 + $0x170] sm:$0xff] }
  0x6d   :  { %1760 = vmatpush2.bf16.msra.mxu1 %v2469_v41  ;;  %v60_v41 = vld [vmem:[%s3409_s1 + $0x150] sm:$0xff] }
  0x6e   :  { %1761 = vmatprep.subr.bf16.mxu1 %v2462_v44  ;;  %v188_v44 = vld [vmem:[%s3409_s1 + $0x550] sm:$0xff]  ;;  %v2272_v48 = vcombine.high %v60_v41, %v64_v42  ;;  %v2271_v54 = vcombine.low %v60_v41, %v64_v42 }
  0x6f   :  { %1721 = vmatpush2.bf16.msra.mxu0 %v2333_v49  ;;  %v2400_v49 = vcombine.high %v188_v44, %v192_v45  ;;  %v2399_v55 = vcombine.low %v188_v44, %v192_v45  ;;  %v272_v33 = vld [vmem:[%s3409_s1 + $0x7f0] sm:$0xff] }
  0x70   :  { %1722 = vmatprep.subr.bf16.mxu0 %v2326_v51  ;;  %v56_v51 = vld [vmem:[%s3409_s1 + $0x130] sm:$0xff] }
  0x71   :  { %1762 = vmatpush2.bf16.msra.mxu1 %v2461_v50  ;;  %v52_v50 = vld [vmem:[%s3409_s1 + $0x110] sm:$0xff] }
  0x72   :  { %1763 = vmatprep.subr.bf16.mxu1 %v2454_v52  ;;  %v180_v52 = vld [vmem:[%s3409_s1 + $0x510] sm:$0xff]  ;;  %v2264_v56 = vcombine.high %v52_v50, %v56_v51  ;;  %v2263_v62 = vcombine.low %v52_v50, %v56_v51 }
  0x73   :  { %1723 = vmatpush2.bf16.msra.mxu0 %v2325_v57  ;;  %v2392_v57 = vcombine.high %v180_v52, %v184_v53  ;;  %v2391_v0 = vcombine.low %v180_v52, %v184_v53  ;;  %v264_v41 = vld [vmem:[%s3409_s1 + $0x7b0] sm:$0xff] }
  0x74   :  { %1724 = vmatprep.subr.bf16.mxu0 %v2318_v59  ;;  %v48_v59 = vld [vmem:[%s3409_s1 + $0xf0] sm:$0xff] }
  0x75   :  { %1764 = vmatpush2.bf16.msra.mxu1 %v2453_v58  ;;  %v44_v58 = vld [vmem:[%s3409_s1 + $0xd0] sm:$0xff] }
  0x76   :  { %1765 = vmatprep.subr.bf16.mxu1 %v2446_v60  ;;  %v172_v60 = vld [vmem:[%s3409_s1 + $0x4d0] sm:$0xff]  ;;  %v2256_v1 = vcombine.high %v44_v58, %v48_v59  ;;  %v2255_v9 = vcombine.low %v44_v58, %v48_v59 }
  0x77   :  { %1725 = vmatpush2.bf16.msra.mxu0 %v2317_v2  ;;  %v2384_v2 = vcombine.high %v172_v60, %v176_v61  ;;  %v2383_v10 = vcombine.low %v172_v60, %v176_v61  ;;  %v256_v50 = vld [vmem:[%s3409_s1 + $0x770] sm:$0xff] }
  0x78   :  { %1726 = vmatprep.subr.bf16.mxu0 %v2310_v6  ;;  %v40_v6 = vld [vmem:[%s3409_s1 + $0xb0] sm:$0xff] }
  0x79   :  { %1766 = vmatpush2.bf16.msra.mxu1 %v2445_v3  ;;  %v36_v3 = vld [vmem:[%s3409_s1 + $0x90] sm:$0xff] }
  0x7a   :  { %1767 = vmatprep.subr.bf16.mxu1 %v2438_v7  ;;  %v164_v7 = vld [vmem:[%s3409_s1 + $0x490] sm:$0xff]  ;;  %v2248_v12 = vcombine.high %v36_v3, %v40_v6  ;;  %v2247_v18 = vcombine.low %v36_v3, %v40_v6 }
  0x7b   :  { %1727 = vmatpush2.bf16.msra.mxu0 %v2309_v13  ;;  %v2376_v13 = vcombine.high %v164_v7, %v168_v8  ;;  %v2375_v19 = vcombine.low %v164_v7, %v168_v8  ;;  %v248_v58 = vld [vmem:[%s3409_s1 + $0x730] sm:$0xff] }
  0x7c   :  { %1728 = vmatprep.subr.bf16.mxu0 %v2302_v15  ;;  %v32_v15 = vld [vmem:[%s3409_s1 + $0x70] sm:$0xff] }
  0x7d   :  { %1768 = vmatpush2.bf16.msra.mxu1 %v2437_v14  ;;  %v28_v14 = vld [vmem:[%s3409_s1 + $0x50] sm:$0xff] }
  0x7e   :  { %1769 = vmatprep.subr.bf16.mxu1 %v2430_v16  ;;  %v156_v16 = vld [vmem:[%s3409_s1 + $0x450] sm:$0xff]  ;;  %v2240_v20 = vcombine.high %v28_v14, %v32_v15  ;;  %v2239_v26 = vcombine.low %v28_v14, %v32_v15 }
  0x7f   :  { %1729 = vmatpush2.bf16.msra.mxu0 %v2301_v21  ;;  %v2368_v21 = vcombine.high %v156_v16, %v160_v17  ;;  %v2367_v27 = vcombine.low %v156_v16, %v160_v17  ;;  %v240_v3 = vld [vmem:[%s3409_s1 + $0x6f0] sm:$0xff] }
  0x80   :  { %1730 = vmatprep.subr.bf16.mxu0 %v2294_v23  ;;  %v24_v23 = vld [vmem:[%s3409_s1 + $0x30] sm:$0xff] }
  0x81   :  { %1770 = vmatpush2.bf16.msra.mxu1 %v2429_v22  ;;  %v20_v22 = vld [vmem:[%s3409_s1 + $0x10] sm:$0xff] }
  0x82   :  { %1771 = vmatprep.subr.bf16.mxu1 %v2422_v24  ;;  %v148_v24 = vld [vmem:[%s3409_s1 + $0x410] sm:$0xff]  ;;  %v2232_v28 = vcombine.high %v20_v22, %v24_v23  ;;  %v2231_v34 = vcombine.low %v20_v22, %v24_v23 }
  0x83   :  { %1731 = vmatpush2.bf16.msra.mxu0 %v2293_v29  ;;  %v2360_v29 = vcombine.high %v148_v24, %v152_v25  ;;  %v2359_v35 = vcombine.low %v148_v24, %v152_v25  ;;  %v232_v14 = vld [vmem:[%s3409_s1 + $0x6b0] sm:$0xff] }
  0x84   :  { %1782 = vmatprep.subr.bf16.mxu0 %v2288_v31  ;;  %v144_v31 = vld [vmem:[%s3409_s1 + $0x3f0] sm:$0xff] }
  0x85   :  { %1772 = vmatpush2.bf16.msra.mxu1 %v2421_v30  ;;  %v140_v30 = vld [vmem:[%s3409_s1 + $0x3d0] sm:$0xff] }
  0x86   :  { %1823 = vmatprep.subr.bf16.mxu1 %v2416_v32  ;;  %1733 = vmatmul.mubr.bf16.vlgmr.msra.gmra.mxu0 %v2615_v63  ;;  %v268_v32 = vld [vmem:[%s3409_s1 + $0x7d0] sm:$0xff]  ;;  %v2352_v36 = vcombine.high %v140_v30, %v144_v31  ;;  %v2351_v42 = vcombine.low %v140_v30, %v144_v31 }
  0x87   :  { %1783 = vmatpush1.bf16.msra.mxu0 %v2287_v37  ;;  %1814 = vmatprep.mubr.bf16.mxu0 %v2625_v4  ;;  %v2480_v37 = vcombine.high %v268_v32, %v272_v33  ;;  %v2479_v44 = vcombine.low %v268_v32, %v272_v33  ;;  %v224_v22 = vld [vmem:[%s3409_s1 + $0x670] sm:$0xff] }
  0x88   :  { %1774 = vmatmul.mubr.bf16.vlgmr.msra.gmra.mxu1 %v2627_v5  ;;  %1784 = vmatprep.subr.bf16.mxu0 %v2280_v39  ;;  %v136_v39 = vld [vmem:[%s3409_s1 + $0x3b0] sm:$0xff] }
  0x89   :  { %1824 = vmatpush1.bf16.msra.mxu1 %v2415_v38  ;;  %1855 = vmatprep.mubr.bf16.mxu1 %v2638_v11  ;;  %v132_v38 = vld [vmem:[%s3409_s1 + $0x390] sm:$0xff] }
  0x8a   :  { %1825 = vmatprep.subr.bf16.mxu1 %v2408_v40  ;;  %v260_v40 = vld [vmem:[%s3409_s1 + $0x790] sm:$0xff]  ;;  %v2344_v45 = vcombine.high %v132_v38, %v136_v39  ;;  %v2343_v51 = vcombine.low %v132_v38, %v136_v39  ;;  %v209_v38 = vld [vmem:[%s3409_s1 + $0x5f8] sm:$0xff] }
  0x8b   :  { %1785 = vmatpush1.bf16.msra.mxu0 %v2279_v46  ;;  %v2472_v46 = vcombine.high %v260_v40, %v264_v41  ;;  %v2471_v52 = vcombine.low %v260_v40, %v264_v41  ;;  %v216_v30 = vld [vmem:[%s3409_s1 + $0x630] sm:$0xff] }
  0x8c   :  { %1786 = vmatprep.subr.bf16.mxu0 %v2272_v48  ;;  %v128_v48 = vld [vmem:[%s3409_s1 + $0x370] sm:$0xff] }
  0x8d   :  { %1826 = vmatpush1.bf16.msra.mxu1 %v2407_v47  ;;  %v124_v47 = vld [vmem:[%s3409_s1 + $0x350] sm:$0xff] }
  0x8e   :  { %1827 = vmatprep.subr.bf16.mxu1 %v2400_v49  ;;  %v252_v49 = vld [vmem:[%s3409_s1 + $0x750] sm:$0xff]  ;;  %v2336_v53 = vcombine.high %v124_v47, %v128_v48  ;;  %v2335_v59 = vcombine.low %v124_v47, %v128_v48  ;;  %v201_v47 = vld [vmem:[%s3409_s1 + $0x5b8] sm:$0xff] }
  0x8f   :  { %1787 = vmatpush1.bf16.msra.mxu0 %v2271_v54  ;;  %v2464_v54 = vcombine.high %v252_v49, %v256_v50  ;;  %v2463_v60 = vcombine.low %v252_v49, %v256_v50 }
  0x90   :  { %1788 = vmatprep.subr.bf16.mxu0 %v2264_v56  ;;  %v120_v56 = vld [vmem:[%s3409_s1 + $0x330] sm:$0xff] }
  0x91   :  { %1828 = vmatpush1.bf16.msra.mxu1 %v2399_v55  ;;  %v116_v55 = vld [vmem:[%s3409_s1 + $0x310] sm:$0xff] }
  0x92   :  { %1829 = vmatprep.subr.bf16.mxu1 %v2392_v57  ;;  %v244_v57 = vld [vmem:[%s3409_s1 + $0x710] sm:$0xff]  ;;  %v2328_v61 = vcombine.high %v116_v55, %v120_v56  ;;  %v2327_v6 = vcombine.low %v116_v55, %v120_v56  ;;  %v193_v55 = vld [vmem:[%s3409_s1 + $0x578] sm:$0xff] }
  0x93   :  { %1789 = vmatpush1.bf16.msra.mxu0 %v2263_v62  ;;  %v2456_v62 = vcombine.high %v244_v57, %v248_v58  ;;  %v2455_v7 = vcombine.low %v244_v57, %v248_v58 }
  0x94   :  { %1790 = vmatprep.subr.bf16.mxu0 %v2256_v1  ;;  %v112_v1 = vld [vmem:[%s3409_s1 + $0x2f0] sm:$0xff] }
  0x95   :  { %1830 = vmatpush1.bf16.msra.mxu1 %v2391_v0  ;;  %v108_v0 = vld [vmem:[%s3409_s1 + $0x2d0] sm:$0xff] }
  0x96   :  { %1831 = vmatprep.subr.bf16.mxu1 %v2384_v2  ;;  %v236_v2 = vld [vmem:[%s3409_s1 + $0x6d0] sm:$0xff]  ;;  %v2320_v8 = vcombine.high %v108_v0, %v112_v1  ;;  %v2319_v15 = vcombine.low %v108_v0, %v112_v1  ;;  %v185_v0 = vld [vmem:[%s3409_s1 + $0x538] sm:$0xff] }
  0x97   :  { %1791 = vmatpush1.bf16.msra.mxu0 %v2255_v9  ;;  %v2448_v9 = vcombine.high %v236_v2, %v240_v3  ;;  %v2447_v16 = vcombine.low %v236_v2, %v240_v3 }
  0x98   :  { %1792 = vmatprep.subr.bf16.mxu0 %v2248_v12  ;;  %v104_v12 = vld [vmem:[%s3409_s1 + $0x2b0] sm:$0xff] }
  0x99   :  { %1832 = vmatpush1.bf16.msra.mxu1 %v2383_v10  ;;  %v100_v10 = vld [vmem:[%s3409_s1 + $0x290] sm:$0xff] }
  0x9a   :  { %1833 = vmatprep.subr.bf16.mxu1 %v2376_v13  ;;  %v228_v13 = vld [vmem:[%s3409_s1 + $0x690] sm:$0xff]  ;;  %v2312_v17 = vcombine.high %v100_v10, %v104_v12  ;;  %v2311_v23 = vcombine.low %v100_v10, %v104_v12 }
  0x9b   :  { %1793 = vmatpush1.bf16.msra.mxu0 %v2247_v18  ;;  %v2440_v18 = vcombine.high %v228_v13, %v232_v14  ;;  %v2439_v24 = vcombine.low %v228_v13, %v232_v14  ;;  %v37_v14 = vld [vmem:[%s3409_s1 + $0x98] sm:$0xff] }
  0x9c   :  { %1794 = vmatprep.subr.bf16.mxu0 %v2240_v20  ;;  %v96_v20 = vld [vmem:[%s3409_s1 + $0x270] sm:$0xff] }
  0x9d   :  { %1834 = vmatpush1.bf16.msra.mxu1 %v2375_v19  ;;  %v92_v19 = vld [vmem:[%s3409_s1 + $0x250] sm:$0xff] }
  0x9e   :  { %1835 = vmatprep.subr.bf16.mxu1 %v2368_v21  ;;  %v220_v21 = vld [vmem:[%s3409_s1 + $0x650] sm:$0xff]  ;;  %v2304_v25 = vcombine.high %v92_v19, %v96_v20  ;;  %v2303_v31 = vcombine.low %v92_v19, %v96_v20 }
  0x9f   :  { %1795 = vmatpush1.bf16.msra.mxu0 %v2239_v26  ;;  %v2432_v26 = vcombine.high %v220_v21, %v224_v22  ;;  %v2431_v32 = vcombine.low %v220_v21, %v224_v22  ;;  %v29_v22 = vld [vmem:[%s3409_s1 + $0x58] sm:$0xff] }
  0xa0   :  { %1796 = vmatprep.subr.bf16.mxu0 %v2232_v28  ;;  %v88_v28 = vld [vmem:[%s3409_s1 + $0x230] sm:$0xff] }
  0xa1   :  { %1836 = vmatpush1.bf16.msra.mxu1 %v2367_v27  ;;  %v84_v27 = vld [vmem:[%s3409_s1 + $0x210] sm:$0xff] }
  0xa2   :  { %1837 = vmatprep.subr.bf16.mxu1 %v2360_v29  ;;  %v212_v29 = vld [vmem:[%s3409_s1 + $0x610] sm:$0xff]  ;;  %v2296_v33 = vcombine.high %v84_v27, %v88_v28  ;;  %v2295_v39 = vcombine.low %v84_v27, %v88_v28 }
  0xa3   :  { %1797 = vmatpush1.bf16.msra.mxu0 %v2231_v34  ;;  %v2424_v34 = vcombine.high %v212_v29, %v216_v30  ;;  %v2423_v40 = vcombine.low %v212_v29, %v216_v30  ;;  %v21_v30 = vld [vmem:[%s3409_s1 + $0x18] sm:$0xff] }
  0xa4   :  { %1798 = vmatprep.subr.bf16.mxu0 %v2352_v36  ;;  %v81_v36 = vld [vmem:[%s3409_s1 + $0x1f8] sm:$0xff] }
  0xa5   :  { %1838 = vmatpush1.bf16.msra.mxu1 %v2359_v35  ;;  %v77_v35 = vld [vmem:[%s3409_s1 + $0x1d8] sm:$0xff] }
  0xa6   :  { %1839 = vmatprep.subr.bf16.mxu1 %v2480_v37  ;;  %v205_v37 = vld [vmem:[%s3409_s1 + $0x5d8] sm:$0xff]  ;;  %v2290_v41 = vcombine.high %v77_v35, %v81_v36  ;;  %v2289_v48 = vcombine.low %v77_v35, %v81_v36 }
  0xa7   :  { %1799 = vmatpush2.bf16.msra.mxu0 %v2351_v42  ;;  %v2418_v42 = vcombine.high %v205_v37, %v209_v38  ;;  %v2417_v49 = vcombine.low %v205_v37, %v209_v38  ;;  %v141_v38 = vld [vmem:[%s3409_s1 + $0x3d8] sm:$0xff] }
  0xa8   :  { %1800 = vmatprep.subr.bf16.mxu0 %v2344_v45  ;;  %v73_v45 = vld [vmem:[%s3409_s1 + $0x1b8] sm:$0xff] }
  0xa9   :  { %1840 = vmatpush2.bf16.msra.mxu1 %v2479_v44  ;;  %v69_v44 = vld [vmem:[%s3409_s1 + $0x198] sm:$0xff] }
  0xaa   :  { %1841 = vmatprep.subr.bf16.mxu1 %v2472_v46  ;;  %v197_v46 = vld [vmem:[%s3409_s1 + $0x598] sm:$0xff]  ;;  %v2282_v50 = vcombine.high %v69_v44, %v73_v45  ;;  %v2281_v56 = vcombine.low %v69_v44, %v73_v45 }
  0xab   :  { %1801 = vmatpush2.bf16.msra.mxu0 %v2343_v51  ;;  %v2410_v51 = vcombine.high %v197_v46, %v201_v47  ;;  %v2409_v57 = vcombine.low %v197_v46, %v201_v47  ;;  %v133_v47 = vld [vmem:[%s3409_s1 + $0x398] sm:$0xff] }
  0xac   :  { %1802 = vmatprep.subr.bf16.mxu0 %v2336_v53  ;;  %v65_v53 = vld [vmem:[%s3409_s1 + $0x178] sm:$0xff] }
  0xad   :  { %1842 = vmatpush2.bf16.msra.mxu1 %v2471_v52  ;;  %v61_v52 = vld [vmem:[%s3409_s1 + $0x158] sm:$0xff] }
  0xae   :  { %1843 = vmatprep.subr.bf16.mxu1 %v2464_v54  ;;  %v189_v54 = vld [vmem:[%s3409_s1 + $0x558] sm:$0xff]  ;;  %v2274_v58 = vcombine.high %v61_v52, %v65_v53  ;;  %v2273_v1 = vcombine.low %v61_v52, %v65_v53 }
  0xaf   :  { %1803 = vmatpush2.bf16.msra.mxu0 %v2335_v59  ;;  %v2402_v59 = vcombine.high %v189_v54, %v193_v55  ;;  %v2401_v2 = vcombine.low %v189_v54, %v193_v55  ;;  %v125_v55 = vld [vmem:[%s3409_s1 + $0x358] sm:$0xff] }
  0xb0   :  { %1804 = vmatprep.subr.bf16.mxu0 %v2328_v61  ;;  %v57_v61 = vld [vmem:[%s3409_s1 + $0x138] sm:$0xff] }
  0xb1   :  { %1844 = vmatpush2.bf16.msra.mxu1 %v2463_v60  ;;  %v53_v60 = vld [vmem:[%s3409_s1 + $0x118] sm:$0xff] }
  0xb2   :  { %1845 = vmatprep.subr.bf16.mxu1 %v2456_v62  ;;  %v181_v62 = vld [vmem:[%s3409_s1 + $0x518] sm:$0xff]  ;;  %v2266_v3 = vcombine.high %v53_v60, %v57_v61 }
  0xb3   :  { %1805 = vmatpush2.bf16.msra.mxu0 %v2327_v6  ;;  %v2394_v6 = vcombine.high %v181_v62, %v185_v0  ;;  %v2393_v10 = vcombine.low %v181_v62, %v185_v0  ;;  %v117_v0 = vld [vmem:[%s3409_s1 + $0x318] sm:$0xff] }
  0xb4   :  { %1806 = vmatprep.subr.bf16.mxu0 %v2320_v8  ;;  %v177_v8 = vld [vmem:[%s3409_s1 + $0x4f8] sm:$0xff] }
  0xb5   :  { %1846 = vmatpush2.bf16.msra.mxu1 %v2455_v7  ;;  %v49_v7 = vld [vmem:[%s3409_s1 + $0xf8] sm:$0xff] }
  0xb6   :  { %1847 = vmatprep.subr.bf16.mxu1 %v2448_v9  ;;  %v2265_v9 = vcombine.low %v53_v60, %v57_v61 }
  0xb7   :  { %1807 = vmatpush2.bf16.msra.mxu0 %v2319_v15  ;;  %v41_v15 = vld [vmem:[%s3409_s1 + $0xb8] sm:$0xff] }
  0xb8   :  { %1808 = vmatprep.subr.bf16.mxu0 %v2312_v17  ;;  %v169_v17 = vld [vmem:[%s3409_s1 + $0x4b8] sm:$0xff]  ;;  %v2250_v20 = vcombine.high %v37_v14, %v41_v15 }
  0xb9   :  { %1848 = vmatpush2.bf16.msra.mxu1 %v2447_v16  ;;  %v165_v16 = vld [vmem:[%s3409_s1 + $0x498] sm:$0xff] }
  0xba   :  { %1849 = vmatprep.subr.bf16.mxu1 %v2440_v18  ;;  %v2378_v21 = vcombine.high %v165_v16, %v169_v17  ;;  %v2377_v27 = vcombine.low %v165_v16, %v169_v17  ;;  %v101_v17 = vld [vmem:[%s3409_s1 + $0x298] sm:$0xff] }
  0xbb   :  { %1809 = vmatpush2.bf16.msra.mxu0 %v2311_v23  ;;  %v33_v23 = vld [vmem:[%s3409_s1 + $0x78] sm:$0xff] }
  0xbc   :  { %1810 = vmatprep.subr.bf16.mxu0 %v2304_v25  ;;  %v161_v25 = vld [vmem:[%s3409_s1 + $0x478] sm:$0xff]  ;;  %v2242_v28 = vcombine.high %v29_v22, %v33_v23 }
  0xbd   :  { %1850 = vmatpush2.bf16.msra.mxu1 %v2439_v24  ;;  %v157_v24 = vld [vmem:[%s3409_s1 + $0x458] sm:$0xff] }
  0xbe   :  { %1851 = vmatprep.subr.bf16.mxu1 %v2432_v26  ;;  %v2249_v26 = vcombine.low %v37_v14, %v41_v15  ;;  %v2370_v29 = vcombine.high %v157_v24, %v161_v25  ;;  %v2369_v35 = vcombine.low %v157_v24, %v161_v25  ;;  %v93_v25 = vld [vmem:[%s3409_s1 + $0x258] sm:$0xff] }
  0xbf   :  { %1811 = vmatpush2.bf16.msra.mxu0 %v2303_v31  ;;  %v25_v31 = vld [vmem:[%s3409_s1 + $0x38] sm:$0xff] }
  0xc0   :  { %1812 = vmatprep.subr.bf16.mxu0 %v2296_v33  ;;  %v153_v33 = vld [vmem:[%s3409_s1 + $0x438] sm:$0xff]  ;;  %v2234_v36 = vcombine.high %v21_v30, %v25_v31 }
  0xc1   :  { %1852 = vmatpush2.bf16.msra.mxu1 %v2431_v32  ;;  %v149_v32 = vld [vmem:[%s3409_s1 + $0x418] sm:$0xff] }
  0xc2   :  { %1853 = vmatprep.subr.bf16.mxu1 %v2424_v34  ;;  %v2241_v34 = vcombine.low %v29_v22, %v33_v23  ;;  %v2362_v37 = vcombine.high %v149_v32, %v153_v33  ;;  %v2361_v44 = vcombine.low %v149_v32, %v153_v33  ;;  %v85_v33 = vld [vmem:[%s3409_s1 + $0x218] sm:$0xff] }
  0xc3   :  { %1813 = vmatpush2.bf16.msra.mxu0 %v2295_v39  ;;  %v145_v39 = vld [vmem:[%s3409_s1 + $0x3f8] sm:$0xff] }
  0xc4   :  { %1864 = vmatprep.subr.bf16.mxu0 %v2290_v41  ;;  %v273_v41 = vld [vmem:[%s3409_s1 + $0x7f8] sm:$0xff]  ;;  %v2354_v45 = vcombine.high %v141_v38, %v145_v39 }
  0xc5   :  { %1854 = vmatpush2.bf16.msra.mxu1 %v2423_v40  ;;  %v269_v40 = vld [vmem:[%s3409_s1 + $0x7d8] sm:$0xff] }
  0xc6   :  { %1905 = vmatprep.subr.bf16.mxu1 %v2418_v42  ;;  %1815 = vmatmul.mubr.bf16.vlgmr.msra.gmra.mxu0 %v2615_v63  ;;  %v2233_v42 = vcombine.low %v21_v30, %v25_v31  ;;  %v2482_v46 = vcombine.high %v269_v40, %v273_v41  ;;  %v2481_v52 = vcombine.low %v269_v40, %v273_v41 }
  0xc7   :  { %1865 = vmatpush1.bf16.msra.mxu0 %v2289_v48  ;;  %1896 = vmatprep.mubr.bf16.mxu0 %v2625_v4  ;;  %v45_v4 = vld [vmem:[%s3409_s1 + $0xd8] sm:$0xff] }
  0xc8   :  { %1856 = vmatmul.mubr.bf16.vlgmr.msra.gmra.mxu1 %v2627_v5  ;;  %1866 = vmatprep.subr.bf16.mxu0 %v2282_v50  ;;  %v2258_v12 = vcombine.high %v45_v4, %v49_v7  ;;  %v2257_v18 = vcombine.low %v45_v4, %v49_v7  ;;  %v137_v48 = vld [vmem:[%s3409_s1 + $0x3b8] sm:$0xff] }
  0xc9   :  { %1906 = vmatpush1.bf16.msra.mxu1 %v2417_v49  ;;  %1937 = vmatprep.mubr.bf16.mxu1 %v2638_v11  ;;  %v173_v11 = vld [vmem:[%s3409_s1 + $0x4d8] sm:$0xff]  ;;  %v2346_v53 = vcombine.high %v133_v47, %v137_v48 }
  0xca   :  { %1907 = vmatprep.subr.bf16.mxu1 %v2410_v51  ;;  %v2386_v13 = vcombine.high %v173_v11, %v177_v8  ;;  %v2385_v19 = vcombine.low %v173_v11, %v177_v8  ;;  %v261_v49 = vld [vmem:[%s3409_s1 + $0x798] sm:$0xff]  ;;  %v2353_v51 = vcombine.low %v141_v38, %v145_v39 }
  0xcb   :  { %1867 = vmatpush1.bf16.msra.mxu0 %v2281_v56  ;;  %v265_v50 = vld [vmem:[%s3409_s1 + $0x7b8] sm:$0xff] }
  0xcc   :  { %1868 = vmatprep.subr.bf16.mxu0 %v2274_v58  ;;  %v2474_v54 = vcombine.high %v261_v49, %v265_v50  ;;  %v129_v56 = vld [vmem:[%s3409_s1 + $0x378] sm:$0xff]  ;;  %v2473_v60 = vcombine.low %v261_v49, %v265_v50 }
  0xcd   :  { %1908 = vmatpush1.bf16.msra.mxu1 %v2409_v57  ;;  %v253_v57 = vld [vmem:[%s3409_s1 + $0x758] sm:$0xff]  ;;  %v2338_v61 = vcombine.high %v125_v55, %v129_v56 }
  0xce   :  { %1909 = vmatprep.subr.bf16.mxu1 %v2402_v59  ;;  %v257_v58 = vld [vmem:[%s3409_s1 + $0x778] sm:$0xff]  ;;  %v2345_v59 = vcombine.low %v133_v47, %v137_v48 }
  0xcf   :  { %1869 = vmatpush1.bf16.msra.mxu0 %v2273_v1  ;;  %v2466_v62 = vcombine.high %v253_v57, %v257_v58  ;;  %v121_v1 = vld [vmem:[%s3409_s1 + $0x338] sm:$0xff]  ;;  %v2465_v4 = vcombine.low %v253_v57, %v257_v58 }
  0xd0   :  { %1870 = vmatprep.subr.bf16.mxu0 %v2266_v3  ;;  %v249_v3 = vld [vmem:[%s3409_s1 + $0x738] sm:$0xff]  ;;  %v2330_v7 = vcombine.high %v117_v0, %v121_v1 }
  0xd1   :  { %1910 = vmatpush1.bf16.msra.mxu1 %v2401_v2  ;;  %v245_v2 = vld [vmem:[%s3409_s1 + $0x718] sm:$0xff] }
  0xd2   :  { %1911 = vmatprep.subr.bf16.mxu1 %v2394_v6  ;;  %v2337_v6 = vcombine.low %v125_v55, %v129_v56  ;;  %v2458_v11 = vcombine.high %v245_v2, %v249_v3  ;;  %v109_v8 = vld [vmem:[%s3409_s1 + $0x2d8] sm:$0xff]  ;;  %v2457_v14 = vcombine.low %v245_v2, %v249_v3 }
  0xd3   :  { %1871 = vmatpush1.bf16.msra.mxu0 %v2265_v9  ;;  %v113_v9 = vld [vmem:[%s3409_s1 + $0x2f8] sm:$0xff] }
  0xd4   :  { %1872 = vmatprep.subr.bf16.mxu0 %v2258_v12  ;;  %v241_v12 = vld [vmem:[%s3409_s1 + $0x6f8] sm:$0xff]  ;;  %v2322_v15 = vcombine.high %v109_v8, %v113_v9 }
  0xd5   :  { %1912 = vmatpush1.bf16.msra.mxu1 %v2393_v10  ;;  %v237_v10 = vld [vmem:[%s3409_s1 + $0x6d8] sm:$0xff] }
  0xd6   :  { %1913 = vmatprep.subr.bf16.mxu1 %v2386_v13  ;;  %v2329_v13 = vcombine.low %v117_v0, %v121_v1  ;;  %v2450_v16 = vcombine.high %v237_v10, %v241_v12  ;;  %v2449_v22 = vcombine.low %v237_v10, %v241_v12 }
  0xd7   :  { %1873 = vmatpush1.bf16.msra.mxu0 %v2257_v18  ;;  %v105_v18 = vld [vmem:[%s3409_s1 + $0x2b8] sm:$0xff] }
  0xd8   :  { %1874 = vmatprep.subr.bf16.mxu0 %v2250_v20  ;;  %v233_v20 = vld [vmem:[%s3409_s1 + $0x6b8] sm:$0xff]  ;;  %v2314_v23 = vcombine.high %v101_v17, %v105_v18 }
  0xd9   :  { %1914 = vmatpush1.bf16.msra.mxu1 %v2385_v19  ;;  %v229_v19 = vld [vmem:[%s3409_s1 + $0x698] sm:$0xff] }
  0xda   :  { %1915 = vmatprep.subr.bf16.mxu1 %v2378_v21  ;;  %v2321_v21 = vcombine.low %v109_v8, %v113_v9  ;;  %v2442_v24 = vcombine.high %v229_v19, %v233_v20  ;;  %v2441_v30 = vcombine.low %v229_v19, %v233_v20 }
  0xdb   :  { %1875 = vmatpush1.bf16.msra.mxu0 %v2249_v26  ;;  %v97_v26 = vld [vmem:[%s3409_s1 + $0x278] sm:$0xff] }
  0xdc   :  { %1876 = vmatprep.subr.bf16.mxu0 %v2242_v28  ;;  %v225_v28 = vld [vmem:[%s3409_s1 + $0x678] sm:$0xff]  ;;  %v2306_v31 = vcombine.high %v93_v25, %v97_v26 }
  0xdd   :  { %1916 = vmatpush1.bf16.msra.mxu1 %v2377_v27  ;;  %v221_v27 = vld [vmem:[%s3409_s1 + $0x658] sm:$0xff] }
  0xde   :  { %1917 = vmatprep.subr.bf16.mxu1 %v2370_v29  ;;  %v2313_v29 = vcombine.low %v101_v17, %v105_v18  ;;  %v2434_v32 = vcombine.high %v221_v27, %v225_v28  ;;  %v2433_v38 = vcombine.low %v221_v27, %v225_v28 }
  0xdf   :  { %1877 = vmatpush1.bf16.msra.mxu0 %v2241_v34  ;;  %v89_v34 = vld [vmem:[%s3409_s1 + $0x238] sm:$0xff] }
  0xe0   :  { %1878 = vmatprep.subr.bf16.mxu0 %v2234_v36  ;;  %v217_v36 = vld [vmem:[%s3409_s1 + $0x638] sm:$0xff]  ;;  %v2298_v39 = vcombine.high %v85_v33, %v89_v34  ;;  %v2297_v41 = vcombine.low %v85_v33, %v89_v34 }
  0xe1   :  { %1918 = vmatpush1.bf16.msra.mxu1 %v2369_v35  ;;  %v213_v35 = vld [vmem:[%s3409_s1 + $0x618] sm:$0xff] }
  0xe2   :  { %1919 = vmatprep.subr.bf16.mxu1 %v2362_v37  ;;  %v2305_v37 = vcombine.low %v93_v25, %v97_v26  ;;  %v2426_v40 = vcombine.high %v213_v35, %v217_v36 }
  0xe3   :  { %1879 = vmatpush1.bf16.msra.mxu0 %v2233_v42  ;;  %v278_v42 = vsub.s32 0, %v2585_v43 }
  0xe4   :  { %1880 = vmatprep.subr.bf16.mxu0 %v2354_v45  ;;  %v3323_v45 = vld [vmem:[%s3411_s2] sm:$0xff] }
  0xe5   :  { %1920 = vmatpush1.bf16.msra.mxu1 %v2361_v44  ;;  %v2425_v44 = vcombine.low %v213_v35, %v217_v36  ;;  %v279_v47 = vrot.slane %v3323_v45, %v278_v42 }
  0xe6   :  { %1921 = vmatprep.subr.bf16.mxu1 %v2482_v46  ;;  %v282_v46 = vsub.s32 1, %v2585_v43 }
  0xe7   :  { %1881 = vmatpush2.bf16.msra.mxu0 %v2353_v51 }
  0xe8   :  { %1882 = vmatprep.subr.bf16.mxu0 %v2346_v53  ;;  %v283_v48 = vrot.slane %v3323_v45, %v282_v46 }
  0xe9   :  { %1922 = vmatpush2.bf16.msra.mxu1 %v2481_v52 }
  0xea   :  { %1923 = vmatprep.subr.bf16.mxu1 %v2474_v54 }
  0xeb   :  { %1883 = vmatpush2.bf16.msra.mxu0 %v2345_v59 }
  0xec   :  { %1884 = vmatprep.subr.bf16.mxu0 %v2338_v61 }
  0xed   :  { %1924 = vmatpush2.bf16.msra.mxu1 %v2473_v60 }
  0xee   :  { %1925 = vmatprep.subr.bf16.mxu1 %v2466_v62 }
  0xef   :  { %1885 = vmatpush2.bf16.msra.mxu0 %v2337_v6 }
  0xf0   :  { %1886 = vmatprep.subr.bf16.mxu0 %v2330_v7 }
  0xf1   :  { %1926 = vmatpush2.bf16.msra.mxu1 %v2465_v4 }
  0xf2   :  { %1927 = vmatprep.subr.bf16.mxu1 %v2458_v11 }
  0xf3   :  { %1887 = vmatpush2.bf16.msra.mxu0 %v2329_v13 }
  0xf4   :  { %1888 = vmatprep.subr.bf16.mxu0 %v2322_v15 }
  0xf5   :  { %1928 = vmatpush2.bf16.msra.mxu1 %v2457_v14 }
  0xf6   :  { %1929 = vmatprep.subr.bf16.mxu1 %v2450_v16 }
  0xf7   :  { %1889 = vmatpush2.bf16.msra.mxu0 %v2321_v21 }
  0xf8   :  { %1890 = vmatprep.subr.bf16.mxu0 %v2314_v23 }
  0xf9   :  { %1930 = vmatpush2.bf16.msra.mxu1 %v2449_v22 }
  0xfa   :  { %1931 = vmatprep.subr.bf16.mxu1 %v2442_v24 }
  0xfb   :  { %1891 = vmatpush2.bf16.msra.mxu0 %v2313_v29 }
  0xfc   :  { %1892 = vmatprep.subr.bf16.mxu0 %v2306_v31  ;;  %v290_v31 = vsub.s32 3, %v2585_v43 }
  0xfd   :  { %1932 = vmatpush2.bf16.msra.mxu1 %v2441_v30  ;;  %v286_v30 = vsub.s32 2, %v2585_v43 }
  0xfe   :  { %1933 = vmatprep.subr.bf16.mxu1 %v2434_v32  ;;  %v291_v33 = vrot.slane %v3323_v45, %v290_v31 }
  0xff   :  { %1893 = vmatpush2.bf16.msra.mxu0 %v2305_v37  ;;  %v287_v32 = vrot.slane %v3323_v45, %v286_v30 }
 0x100   :  { %1894 = vmatprep.subr.bf16.mxu0 %v2298_v39 }
 0x101   :  { %1934 = vmatpush2.bf16.msra.mxu1 %v2433_v38 }
 0x102   :  { %1935 = vmatprep.subr.bf16.mxu1 %v2426_v40 }
 0x103   :  { %1895 = vmatpush2.bf16.msra.mxu0 %v2297_v41 }
 0x105   :  { %1936 = vmatpush2.bf16.msra.mxu1 %v2425_v44 }
 0x106   :  { %v1652_v49 = vpop.f32.mrf.mxu0  ;;  %1897 = vmatmul.mubr.bf16.vlgmr.msra.gmra.mxu0 %v2615_v63 }
 0x107   :  { %v1653_v50 = vadd.f32 %v1652_v49, %v279_v47 }
 0x108   :  { %v1693_v51 = vpop.f32.mrf.mxu1  ;;  %1938 = vmatmul.mubr.bf16.vlgmr.msra.gmra.mxu1 %v2627_v5  ;;  %v1654_v52 = vpop.f32.mrf.mxu0 }
 0x109   :  { %v1694_v53 = vadd.f32 %v1693_v51, %v1653_v50  ;;  %v1655_v54 = vadd.f32 %v1654_v52, %v283_v48 }
 0x10a   :  { %v1695_v55 = vpop.f32.mrf.mxu1  ;;  %v1656_v56 = vpop.f32.mrf.mxu0 }
 0x10b   :  { %v1974_v57 = vsel %vm1973_vm0, %v1694_v53, 0.0  ;;  %v2091_v58 = vmul.f32 %v1694_v53, %v1694_v53  ;;  %v1696_v59 = vadd.f32 %v1695_v55, %v1655_v54 }
 0x10c   :  { %v1697_v60 = vpop.f32.mrf.mxu1  ;;  %v1975_v61 = vrot.slane %v1974_v57, 4  ;;  %v1657_v62 = vpop.f32.mrf.mxu0 }
 0x10d   :  { %v2099_v0 = vsel %vm1973_vm0, %v2091_v58, 0.0  ;;  %v1954_v63 = vcombine.low %v1694_v53, %v1696_v59  ;;  %v1981_v1 = vsel %vm1973_vm0, %v1696_v59, 0.0  ;;  %v2092_v2 = vmul.f32 %v1696_v59, %v1696_v59 }
 0x10e   :  { %v1698_v5 = vpop.f32.mrf.mxu1  ;;  %v1976_v3 = vadd.f32 %v1975_v61, %v1974_v57  ;;  %v2100_v6 = vrot.slane %v2099_v0, 4  ;;  %v1982_v4 = vrot.slane %v1981_v1, 4  ;;  %v2488_v58 = vmov 1966171168  }
 0x10f   :  { %1962 = vst [vmem:[%s3412_s3] sm:$0xff] %v1954_v63  ;;  %v2106_v7 = vsel %vm1973_vm0, %v2092_v2, 0.0  ;;  %v2043_v59 = vunpack.c.l.s4 %v2488_v58 }
 0x110   :  { %v1977_v11 = vrot.slane %v1976_v3, 2  ;;  %v2101_v8 = vadd.f32 %v2100_v6, %v2099_v0  ;;  %v1983_v9 = vadd.f32 %v1982_v4, %v1981_v1  ;;  %v2107_v10 = vrot.slane %v2106_v7, 4 }
 0x111   :  { %v2044_v6 = vunpack.c.0.s8 %v2043_v59 }
 0x112   :  { %v1978_v12 = vadd.f32 %v1977_v11, %v1976_v3  ;;  %v2102_v13 = vrot.slane %v2101_v8, 2  ;;  %v1984_v14 = vrot.slane %v1983_v9, 2  ;;  %v2108_v15 = vadd.f32 %v2107_v10, %v2106_v7 }
 0x114   :  { %v1979_v16 = vrot.slane %v1978_v12, 1  ;;  %v2103_v17 = vadd.f32 %v2102_v13, %v2101_v8  ;;  %v1985_v18 = vadd.f32 %v1984_v14, %v1983_v9  ;;  %v2109_v19 = vrot.slane %v2108_v15, 2 }
 0x115   :  { %v3349_v13 = vsub.s32 %v2044_v6, %v2585_v43 }
 0x116   :  { %v2104_v20 = vrot.slane %v2103_v17, 1  ;;  %v1986_v21 = vrot.slane %v1985_v18, 1  ;;  %v2110_v22 = vadd.f32 %v2109_v19, %v2108_v15  ;;  %v1980_v23 = vadd.f32 %v1979_v16, %v1978_v12 }
 0x118   :  { %v1987_v24 = vadd.f32 %v1986_v21, %v1985_v18  ;;  %v2111_v25 = vrot.slane %v2110_v22, 1  ;;  %v2105_v26 = vadd.f32 %v2104_v20, %v2103_v17 }
 0x11a   :  { %v2038_v27 = vcombine.low %v1980_v23, %v1987_v24  ;;  %v2112_v28 = vadd.f32 %v2111_v25, %v2110_v22 }
 0x11c   :  { %v2163_v29 = vcombine.low %v2105_v26, %v2112_v28  ;;  %v3352_v20 = vrot.slane %v2038_v27, %v3349_v13  ;;  %v294_v28 = vsub.s32 4, %v2585_v43  ;;  %v298_v27 = vsub.s32 5, %v2585_v43 }
 0x11e   :  { %v3358_v23 = vrot.slane %v2163_v29, %v3349_v13  ;;  %v295_v30 = vrot.slane %v3323_v45, %v294_v28  ;;  %v299_v31 = vrot.slane %v3323_v45, %v298_v27 }
 0x146   :  { %v1734_v34 = vpop.f32.mrf.mxu0 }
 0x147   :  { %v1735_v35 = vadd.f32 %v1734_v34, %v287_v32 }
 0x148   :  { %v1775_v36 = vpop.f32.mrf.mxu1  ;;  %v1736_v37 = vpop.f32.mrf.mxu0 }
 0x149   :  { %v1776_v38 = vadd.f32 %v1775_v36, %v1735_v35  ;;  %v1737_v39 = vadd.f32 %v1736_v37, %v291_v33 }
 0x14a   :  { %v1777_v40 = vpop.f32.mrf.mxu1  ;;  %v1738_v41 = vpop.f32.mrf.mxu0 }
 0x14b   :  { %v1988_v42 = vsel %vm1973_vm0, %v1776_v38, 0.0  ;;  %v2093_v44 = vmul.f32 %v1776_v38, %v1776_v38  ;;  %v1778_v46 = vadd.f32 %v1777_v40, %v1737_v39 }
 0x14c   :  { %v1779_v47 = vpop.f32.mrf.mxu1  ;;  %v1989_v48 = vrot.slane %v1988_v42, 4  ;;  %v1739_v49 = vpop.f32.mrf.mxu0 }
 0x14d   :  { %v2113_v50 = vsel %vm1973_vm0, %v2093_v44, 0.0  ;;  %v1955_v51 = vcombine.low %v1776_v38, %v1778_v46  ;;  %v1995_v52 = vsel %vm1973_vm0, %v1778_v46, 0.0  ;;  %v2094_v53 = vmul.f32 %v1778_v46, %v1778_v46 }
 0x14e   :  { %v1780_v54 = vpop.f32.mrf.mxu1  ;;  %v1990_v55 = vadd.f32 %v1989_v48, %v1988_v42  ;;  %v2114_v56 = vrot.slane %v2113_v50, 4  ;;  %v1996_v57 = vrot.slane %v1995_v52, 4 }
 0x14f   :  { %1963 = vst [vmem:[%s3412_s3 + $0x8] sm:$0xff] %v1955_v51  ;;  %v2120_v60 = vsel %vm1973_vm0, %v2094_v53, 0.0 }
 0x150   :  { %v1991_v61 = vrot.slane %v1990_v55, 2  ;;  %v2115_v62 = vadd.f32 %v2114_v56, %v2113_v50  ;;  %v1997_v0 = vadd.f32 %v1996_v57, %v1995_v52  ;;  %v2121_v63 = vrot.slane %v2120_v60, 4 }
 0x152   :  { %v1992_v1 = vadd.f32 %v1991_v61, %v1990_v55  ;;  %v2116_v2 = vrot.slane %v2115_v62, 2  ;;  %v1998_v5 = vrot.slane %v1997_v0, 2  ;;  %v2122_v3 = vadd.f32 %v2121_v63, %v2120_v60 }
 0x154   :  { %v1993_v4 = vrot.slane %v1992_v1, 1  ;;  %v2117_v7 = vadd.f32 %v2116_v2, %v2115_v62  ;;  %v1999_v11 = vadd.f32 %v1998_v5, %v1997_v0  ;;  %v2123_v8 = vrot.slane %v2122_v3, 2 }
 0x156   :  { %v2118_v9 = vrot.slane %v2117_v7, 1  ;;  %v2000_v10 = vrot.slane %v1999_v11, 1  ;;  %v2124_v12 = vadd.f32 %v2123_v8, %v2122_v3  ;;  %v1994_v14 = vadd.f32 %v1993_v4, %v1992_v1 }
 0x158   :  { %v2001_v15 = vadd.f32 %v2000_v10, %v1999_v11  ;;  %v2125_v16 = vrot.slane %v2124_v12, 1  ;;  %v2119_v17 = vadd.f32 %v2118_v9, %v2117_v7 }
 0x15a   :  { %v2039_v18 = vcombine.low %v1994_v14, %v2001_v15  ;;  %v2126_v19 = vadd.f32 %v2125_v16, %v2124_v12  ;;  %v302_v15 = vsub.s32 6, %v2585_v43  ;;  %v306_v16 = vsub.s32 7, %v2585_v43 }
 0x15c   :  { %v3355_v21 = vrot.slane %v2039_v18, %v3349_v13  ;;  %v2164_v22 = vcombine.low %v2119_v17, %v2126_v19  ;;  %v303_v17 = vrot.slane %v3323_v45, %v302_v15  ;;  %v307_v18 = vrot.slane %v3323_v45, %v306_v16 }
 0x15e   :  { %v2070_v24 = vcombine.low %v3352_v20, %v3355_v21  ;;  %v3363_v25 = vrot.slane %v2164_v22, %v3349_v13 }
 0x160   :  { %v2195_v26 = vcombine.low %v3358_v23, %v3363_v25 }
 0x186   :  { %v1816_v32 = vpop.f32.mrf.mxu0 }
 0x187   :  { %v1817_v29 = vadd.f32 %v1816_v32, %v295_v30 }
 0x188   :  { %v1857_v33 = vpop.f32.mrf.mxu1  ;;  %v1818_v34 = vpop.f32.mrf.mxu0 }
 0x189   :  { %v1858_v35 = vadd.f32 %v1857_v33, %v1817_v29  ;;  %v1819_v36 = vadd.f32 %v1818_v34, %v299_v31 }
 0x18a   :  { %v1859_v37 = vpop.f32.mrf.mxu1  ;;  %v1820_v38 = vpop.f32.mrf.mxu0 }
 0x18b   :  { %v2002_v39 = vsel %vm1973_vm0, %v1858_v35, 0.0  ;;  %v2095_v40 = vmul.f32 %v1858_v35, %v1858_v35  ;;  %v1860_v41 = vadd.f32 %v1859_v37, %v1819_v36 }
 0x18c   :  { %v1861_v42 = vpop.f32.mrf.mxu1  ;;  %v2003_v44 = vrot.slane %v2002_v39, 4  ;;  %v1821_v46 = vpop.f32.mrf.mxu0 }
 0x18d   :  { %v2127_v47 = vsel %vm1973_vm0, %v2095_v40, 0.0  ;;  %v1956_v48 = vcombine.low %v1858_v35, %v1860_v41  ;;  %v2009_v49 = vsel %vm1973_vm0, %v1860_v41, 0.0  ;;  %v2096_v50 = vmul.f32 %v1860_v41, %v1860_v41 }
 0x18e   :  { %v1862_v51 = vpop.f32.mrf.mxu1  ;;  %v2004_v52 = vadd.f32 %v2003_v44, %v2002_v39  ;;  %v2128_v53 = vrot.slane %v2127_v47, 4  ;;  %v2010_v54 = vrot.slane %v2009_v49, 4 }
 0x18f   :  { %1964 = vst [vmem:[%s3412_s3 + $0x10] sm:$0xff] %v1956_v48  ;;  %v2134_v55 = vsel %vm1973_vm0, %v2096_v50, 0.0 }
 0x190   :  { %v2005_v56 = vrot.slane %v2004_v52, 2  ;;  %v2129_v57 = vadd.f32 %v2128_v53, %v2127_v47  ;;  %v2011_v58 = vadd.f32 %v2010_v54, %v2009_v49  ;;  %v2135_v59 = vrot.slane %v2134_v55, 4 }
 0x192   :  { %v2006_v60 = vadd.f32 %v2005_v56, %v2004_v52  ;;  %v2130_v61 = vrot.slane %v2129_v57, 2  ;;  %v2012_v62 = vrot.slane %v2011_v58, 2  ;;  %v2136_v0 = vadd.f32 %v2135_v59, %v2134_v55 }
 0x194   :  { %v2007_v63 = vrot.slane %v2006_v60, 1  ;;  %v2131_v1 = vadd.f32 %v2130_v61, %v2129_v57  ;;  %v2013_v2 = vadd.f32 %v2012_v62, %v2011_v58  ;;  %v2137_v5 = vrot.slane %v2136_v0, 2 }
 0x196   :  { %v2132_v3 = vrot.slane %v2131_v1, 1  ;;  %v2014_v6 = vrot.slane %v2013_v2, 1  ;;  %v2138_v4 = vadd.f32 %v2137_v5, %v2136_v0  ;;  %v2008_v7 = vadd.f32 %v2007_v63, %v2006_v60 }
 0x198   :  { %v2015_v11 = vadd.f32 %v2014_v6, %v2013_v2  ;;  %v2139_v8 = vrot.slane %v2138_v4, 1  ;;  %v2133_v9 = vadd.f32 %v2132_v3, %v2131_v1 }
 0x19a   :  { %v2040_v10 = vcombine.low %v2008_v7, %v2015_v11  ;;  %v2140_v12 = vadd.f32 %v2139_v8, %v2138_v4 }
 0x19c   :  { %v2165_v14 = vcombine.low %v2133_v9, %v2140_v12  ;;  %v2062_v6 = vrot.slane %v2040_v10, %v3349_v13  ;;  %v2078_v12 = vrot.slane %v2070_v24, %v3349_v13  ;;  %v2203_v10 = vrot.slane %v2195_v26, %v3349_v13 }
 0x19e   :  { %v2187_v11 = vrot.slane %v2165_v14, %v3349_v13 }
 0x1c6   :  { %v1898_v19 = vpop.f32.mrf.mxu0 }
 0x1c7   :  { %v1899_v22 = vadd.f32 %v1898_v19, %v303_v17 }
 0x1c8   :  { %v1939_v28 = vpop.f32.mrf.mxu1  ;;  %v1900_v27 = vpop.f32.mrf.mxu0 }
 0x1c9   :  { %v1940_v30 = vadd.f32 %v1939_v28, %v1899_v22  ;;  %v1901_v31 = vadd.f32 %v1900_v27, %v307_v18 }
 0x1ca   :  { %v1941_v32 = vpop.f32.mrf.mxu1  ;;  %v1902_v29 = vpop.f32.mrf.mxu0 }
 0x1cb   :  { %v2016_v33 = vsel %vm1973_vm0, %v1940_v30, 0.0  ;;  %v2097_v34 = vmul.f32 %v1940_v30, %v1940_v30  ;;  %v1942_v35 = vadd.f32 %v1941_v32, %v1901_v31 }
 0x1cc   :  { %v1943_v36 = vpop.f32.mrf.mxu1  ;;  %v2017_v37 = vrot.slane %v2016_v33, 4  ;;  %v1903_v38 = vpop.f32.mrf.mxu0 }
 0x1cd   :  { %v2141_v43 = vsel %vm1973_vm0, %v2097_v34, 0.0  ;;  %v1957_v39 = vcombine.low %v1940_v30, %v1942_v35  ;;  %v2023_v45 = vsel %vm1973_vm0, %v1942_v35, 0.0  ;;  %v2098_v40 = vmul.f32 %v1942_v35, %v1942_v35 }
 0x1ce   :  { %v1944_v41 = vpop.f32.mrf.mxu1  ;;  %v2018_v42 = vadd.f32 %v2017_v37, %v2016_v33  ;;  %v2142_v44 = vrot.slane %v2141_v43, 4  ;;  %v2024_v46 = vrot.slane %v2023_v45, 4 }
 0x1cf   :  { %1965 = vst [vmem:[%s3412_s3 + $0x18] sm:$0xff] %v1957_v39  ;;  %v2148_v47 = vsel %vm1973_vm0, %v2098_v40, 0.0 }
 0x1d0   :  { %v2019_v48 = vrot.slane %v2018_v42, 2  ;;  %v2143_v49 = vadd.f32 %v2142_v44, %v2141_v43  ;;  %v2025_v50 = vadd.f32 %v2024_v46, %v2023_v45  ;;  %v2149_v51 = vrot.slane %v2148_v47, 4 }
 0x1d2   :  { %v2020_v52 = vadd.f32 %v2019_v48, %v2018_v42  ;;  %v2144_v53 = vrot.slane %v2143_v49, 2  ;;  %v2026_v54 = vrot.slane %v2025_v50, 2  ;;  %v2150_v55 = vadd.f32 %v2149_v51, %v2148_v47 }
 0x1d4   :  { %v2021_v56 = vrot.slane %v2020_v52, 1  ;;  %v2145_v57 = vadd.f32 %v2144_v53, %v2143_v49  ;;  %v2027_v58 = vadd.f32 %v2026_v54, %v2025_v50  ;;  %v2151_v59 = vrot.slane %v2150_v55, 2 }
 0x1d6   :  { %v2146_v60 = vrot.slane %v2145_v57, 1  ;;  %v2028_v61 = vrot.slane %v2027_v58, 1  ;;  %v2152_v62 = vadd.f32 %v2151_v59, %v2150_v55  ;;  %v2022_v0 = vadd.f32 %v2021_v56, %v2020_v52 }
 0x1d8   :  { %v2029_v63 = vadd.f32 %v2028_v61, %v2027_v58  ;;  %v2153_v1 = vrot.slane %v2152_v62, 1  ;;  %v2147_v2 = vadd.f32 %v2146_v60, %v2145_v57 }
 0x1da   :  { %v2041_v5 = vcombine.low %v2022_v0, %v2029_v63  ;;  %v2154_v3 = vadd.f32 %v2153_v1, %v2152_v62 }
 0x1dc   :  { %v2069_v4 = vrot.slane %v2041_v5, %v3349_v13  ;;  %v2166_v7 = vcombine.low %v2147_v2, %v2154_v3 }
 0x1de   :  { %v2071_v8 = vcombine.low %v2062_v6, %v2069_v4  ;;  %v2194_v9 = vrot.slane %v2166_v7, %v3349_v13 }
 0x1e0   :  { %v2085_v15 = vrot.slane %v2071_v8, %v3349_v13  ;;  %v2196_v16 = vcombine.low %v2187_v11, %v2194_v9 }
 0x1e2   :  { %v2086_v17 = vcombine.low %v2078_v12, %v2085_v15  ;;  %v2210_v18 = vrot.slane %v2196_v16, %v3349_v13 }
 0x1e4   :  { %v2211_v14 = vcombine.low %v2203_v10, %v2210_v18  ;;  %2089 = vst [vmem:[%s3413_s4] sm:$0xff] %v2086_v17 }
 0x1e6   :  { %2214 = vst [vmem:[%s3414_s5] sm:$0xff] %v2211_v14 }

// kernel: conv_decoder_forward.16
= control target key start
LH: loop header
LB: loop body
LE: loop exit
PB: predicated region body
PF: predicated region fallthrough
CT: control target
= control target key end

     0   :  { %s391_s0 = inlined_call_operand.vmem [shape: f32[128,128], index: 0, kind: input, shape index: {}]   ;;  %s392_s1 = inlined_call_operand.vmem [shape: f32[1,128], index: 1, kind: input, shape index: {}]   ;;  %s393_s2 = inlined_call_operand.vmem [shape: f32[1,128], index: 2, kind: input, shape index: {}]   ;;  %s394_s3 = inlined_call_operand.vmem [shape: bf16[128,128], index: 3, kind: output, shape index: {}]  }
   0x1   :  { %v14_v0 = vld [vmem:[%s391_s0] sm:$0xff]  ;;  %v15_v1 = vld [vmem:[%s391_s0 + $0x8] sm:$0xff]  ;;  %v16_v6 = vld [vmem:[%s391_s0 + $0x10] sm:$0xff] }
   0x2   :  { %v286_v2 = vld [vmem:[%s392_s1] ss:$0 sm:$0xff]  ;;  %v17_v7 = vld [vmem:[%s391_s0 + $0x18] sm:$0xff]  ;;  %v19_v11 = vld [vmem:[%s391_s0 + $0x28] sm:$0xff] }
   0x3   :  { %v37_v3 = vmul.f32 %v286_v2, %v14_v0  ;;  %v38_v4 = vmul.f32 %v286_v2, %v15_v1  ;;  %v293_v5 = vld [vmem:[%s393_s2] ss:$0 sm:$0xff]  ;;  %v39_v8 = vmul.f32 %v286_v2, %v16_v6  ;;  %v40_v9 = vmul.f32 %v286_v2, %v17_v7  ;;  %v20_v12 = vld [vmem:[%s391_s0 + $0x30] sm:$0xff]  ;;  %v21_v17 = vld [vmem:[%s391_s0 + $0x38] sm:$0xff] }
   0x4   :  { %v18_v10 = vld [vmem:[%s391_s0 + $0x20] sm:$0xff]  ;;  %v42_v16 = vmul.f32 %v286_v2, %v19_v11  ;;  %v43_v20 = vmul.f32 %v286_v2, %v20_v12  ;;  %v44_v21 = vmul.f32 %v286_v2, %v21_v17  ;;  %v23_v27 = vld [vmem:[%s391_s0 + $0x48] sm:$0xff]  ;;  %v24_v32 = vld [vmem:[%s391_s0 + $0x50] sm:$0xff] }
   0x5   :  { %v60_v13 = vadd.f32 %v293_v5, %v37_v3  ;;  %v61_v14 = vadd.f32 %v293_v5, %v38_v4  ;;  %v41_v15 = vmul.f32 %v286_v2, %v18_v10  ;;  %v62_v18 = vadd.f32 %v293_v5, %v39_v8  ;;  %v22_v22 = vld [vmem:[%s391_s0 + $0x40] sm:$0xff]  ;;  %v25_v33 = vld [vmem:[%s391_s0 + $0x58] sm:$0xff]  ;;  %v27_v39 = vld [vmem:[%s391_s0 + $0x68] sm:$0xff] }
   0x6   :  { %v63_v19 = vadd.f32 %v293_v5, %v40_v9  ;;  %v65_v26 = vadd.f32 %v293_v5, %v42_v16  ;;  %v66_v30 = vadd.f32 %v293_v5, %v43_v20  ;;  %v67_v31 = vadd.f32 %v293_v5, %v44_v21  ;;  %v26_v38 = vld [vmem:[%s391_s0 + $0x60] sm:$0xff]  ;;  %v28_v44 = vld [vmem:[%s391_s0 + $0x70] sm:$0xff]  ;;  %v29_v49 = vld [vmem:[%s391_s0 + $0x78] sm:$0xff] }
   0x7   :  { %v76_v23 = vmax.f32 %v60_v13, 0.0  ;;  %v77_v24 = vmax.f32 %v61_v14, 0.0  ;;  %v64_v25 = vadd.f32 %v293_v5, %v41_v15  ;;  %v78_v28 = vmax.f32 %v62_v18, 0.0 }
   0x8   :  { %v79_v29 = vmax.f32 %v63_v19, 0.0  ;;  %v81_v36 = vmax.f32 %v65_v26, 0.0  ;;  %v45_v37 = vmul.f32 %v286_v2, %v22_v22  ;;  %v82_v41 = vmax.f32 %v66_v30, 0.0 }
   0x9   :  { %v213_v34 = vpack.c.bf16 %v77_v24, %v76_v23  ;;  %v80_v35 = vmax.f32 %v64_v25, 0.0  ;;  %v83_v42 = vmax.f32 %v67_v31, 0.0  ;;  %v46_v43 = vmul.f32 %v286_v2, %v23_v27 }
   0xa   :  { %v218_v40 = vpack.c.bf16 %v79_v29, %v78_v28  ;;  %v68_v46 = vadd.f32 %v293_v5, %v45_v37  ;;  %v47_v47 = vmul.f32 %v286_v2, %v24_v32  ;;  %v48_v48 = vmul.f32 %v286_v2, %v25_v33 }
   0xb   :  { %214 = vst [vmem:[%s394_s3] sm:$0xff] %v213_v34   ;;  %v223_v45 = vpack.c.bf16 %v81_v36, %v80_v35  ;;  %v228_v50 = vpack.c.bf16 %v83_v42, %v82_v41  ;;  %v69_v51 = vadd.f32 %v293_v5, %v46_v43  ;;  %v49_v52 = vmul.f32 %v286_v2, %v26_v38 }
   0xc   :  { %250 = vst [vmem:[%s394_s3 + $0x8] sm:$0xff] %v218_v40   ;;  %v50_v53 = vmul.f32 %v286_v2, %v27_v39  ;;  %v84_v54 = vmax.f32 %v68_v46, 0.0  ;;  %v70_v55 = vadd.f32 %v293_v5, %v47_v47  ;;  %v71_v56 = vadd.f32 %v293_v5, %v48_v48 }
   0xd   :  { %251 = vst [vmem:[%s394_s3 + $0x10] sm:$0xff] %v223_v45   ;;  %v51_v57 = vmul.f32 %v286_v2, %v28_v44  ;;  %252 = vst [vmem:[%s394_s3 + $0x18] sm:$0xff] %v228_v50   ;;  %v85_v58 = vmax.f32 %v69_v51, 0.0  ;;  %v72_v59 = vadd.f32 %v293_v5, %v49_v52  ;;  %v52_v61 = vmul.f32 %v286_v2, %v29_v49 }
   0xe   :  { %v73_v60 = vadd.f32 %v293_v5, %v50_v53  ;;  %v86_v62 = vmax.f32 %v70_v55, 0.0  ;;  %v87_v63 = vmax.f32 %v71_v56, 0.0 }
   0xf   :  { %v74_v0 = vadd.f32 %v293_v5, %v51_v57  ;;  %v233_v1 = vpack.c.bf16 %v85_v58, %v84_v54  ;;  %v88_v3 = vmax.f32 %v72_v59, 0.0  ;;  %v75_v6 = vadd.f32 %v293_v5, %v52_v61 }
  0x10   :  { %v89_v4 = vmax.f32 %v73_v60, 0.0  ;;  %v238_v7 = vpack.c.bf16 %v87_v63, %v86_v62 }
  0x11   :  { %v90_v8 = vmax.f32 %v74_v0, 0.0  ;;  %253 = vst [vmem:[%s394_s3 + $0x20] sm:$0xff] %v233_v1   ;;  %v91_v10 = vmax.f32 %v75_v6, 0.0 }
  0x12   :  { %v243_v9 = vpack.c.bf16 %v89_v4, %v88_v3  ;;  %254 = vst [vmem:[%s394_s3 + $0x28] sm:$0xff] %v238_v7  }
  0x13   :  { %v248_v2 = vpack.c.bf16 %v91_v10, %v90_v8 }
  0x14   :  { %255 = vst [vmem:[%s394_s3 + $0x30] sm:$0xff] %v243_v9  }
  0x15   :  { %256 = vst [vmem:[%s394_s3 + $0x38] sm:$0xff] %v248_v2  }

// kernel: conv_decoder_forward.15
= control target key start
LH: loop header
LB: loop body
LE: loop exit
PB: predicated region body
PF: predicated region fallthrough
CT: control target
= control target key end

     0   :  { %s983_s18 = smov 0   ;;  %s985_s19 = smov 0   ;;  %s1114_s0 = inlined_call_operand.vmem [shape: bf16[4,64,256], index: 0, kind: input, shape index: {}]   ;;  %s1115_s1 = inlined_call_operand.vmem [shape: bf16[4,256,64], index: 1, kind: input, shape index: {}]   ;;  %s1116_s2 = inlined_call_operand.vmem [shape: f32[1,64], index: 2, kind: input, shape index: {}]   ;;  %s1117_s3 = inlined_call_operand.vmem [shape: f32[4,64,64], index: 3, kind: output, shape index: {0}]   ;;  %s1118_s4 = inlined_call_operand.vmem [shape: f32[4,1,64], index: 4, kind: output, shape index: {1}]   ;;  %s1119_s5 = inlined_call_operand.vmem [shape: f32[4,1,64], index: 5, kind: output, shape index: {2}]  }
   0x1   :  { %s987_s20 = smov 0  }
   0x2 LB: > { %s28_s21 = sadd.s32 1, %s946_s19  ;;  %p782_p0 = scmp.ge.s32.totalorder %s950_s20, 1  ;;  %s950_s20 = sphi %s987_s20, %s16_s20   ;;  %s946_s19 = sphi %s985_s19, %s1121_s19   ;;  %s942_s18 = sphi %s983_s18, %s1120_s18  }
   0x3   : > { %p30_p1 = scmp.ge.s32.totalorder %s28_s21, 4  ;;  %p224_p2 = scmp.lt.s32.totalorder %s950_s20, 5 }
   0x5   : > { %s1123_s21 = smov (%p30_p1, %s28_s21), 0  ;;  %p225_p3 = pnand %p782_p0, %p224_p2 }
   0x6   : > { %p273_p4 = scmp.lt.s32.totalorder (!%p225_p3), %s942_s18, 3 }
   0x7   : > { %228 = sbr.rel (%p225_p3) target bundleno = 287 (0x11f), region = 32 }
   0xc   : > { %s1125_s18 = smov (!%p273_p4, %s942_s18), 3  ;;  %vm566_vm0 = vcmask 516096   ;;  %v952_v24 = vmov 0.0   ;;  %v789_v27 = vld [vmem:[%s1116_s2] ss:$0 sm:$0xff]  ;;  %vm553_vm1 = vcmask 523264  }
   0xd   : > { %s817_s22 = sshll.u32 %s1125_s18, 7  ;;  %s816_s26 = sshll.u32 %s1125_s18, 6 }
   0xe   : > { %s1007_s25 = scalar_lea.vmem %s1115_s1, %s817_s22  ;;  %s1024_s29 = scalar_lea.vmem %s1114_s0, %s816_s26 }
   0xf   : > { %v900_v0 = vld [vmem:[%s1007_s25 + $0x78] sm:$0xff]   ;;  %v902_v2 = vld [vmem:[%s1007_s25 + $0x70] sm:$0xff]   ;;  %v904_v4 = vld [vmem:[%s1007_s25 + $0x68] sm:$0xff]   ;;  %s1045_s7 = scalar_lea.vmem %s1118_s4, %s1125_s18  ;;  %s1051_s10 = scalar_lea.vmem %s1119_s5, %s1125_s18 }
  0x10   : > { %v901_v1 = vld [vmem:[%s1007_s25 + $0x38] sm:$0xff]   ;;  %819 = vmatprep.subr.bf16.mxu0 %v900_v0  ;;  %859 = vmatprep.subr.bf16.mxu1 %v900_v0  ;;  %v903_v3 = vld [vmem:[%s1007_s25 + $0x30] sm:$0xff]   ;;  %v905_v5 = vld [vmem:[%s1007_s25 + $0x28] sm:$0xff]   ;;  %567 = vst.msk [vmem:[%s1045_s7] sm:$0x1] %vm566_vm0, %v952_v24  ;;  %s1065_s15 = scalar_lea.vmem %s1117_s3, %s816_s26 }
  0x11   : > { %820 = vmatpush3.bf16.msra.mxu0 %v901_v1  ;;  %867 = vmatpush3.bf16.msra.mxu1 %v901_v1  ;;  %v906_v6 = vld [vmem:[%s1007_s25 + $0x60] sm:$0xff]   ;;  %v908_v8 = vld [vmem:[%s1007_s25 + $0x58] sm:$0xff]   ;;  %v910_v10 = vld [vmem:[%s1007_s25 + $0x50] sm:$0xff]   ;;  %568 = vst.msk [vmem:[%s1051_s10] sm:$0x1] %vm566_vm0, %v952_v24 }
  0x12   : > { %821 = vmatprep.subr.bf16.mxu0 %v902_v2  ;;  %860 = vmatprep.subr.bf16.mxu1 %v902_v2  ;;  %v907_v7 = vld [vmem:[%s1007_s25 + $0x20] sm:$0xff]   ;;  %v909_v9 = vld [vmem:[%s1007_s25 + $0x18] sm:$0xff]   ;;  %v911_v13 = vld [vmem:[%s1007_s25 + $0x10] sm:$0xff]  }
  0x13   : > { %v918_v11 = vld [vmem:[%s1024_s29 + $0x4] ss:$8 sps:$4 sm:$0xff]   ;;  %v916_v18 = vld [vmem:[%s1024_s29] ss:$8 sps:$4 sm:$0xff]   ;;  %v922_v20 = vld [vmem:[%s1024_s29 + $0x14] ss:$8 sps:$4 sm:$0xff]  }
  0x14   : > { %v921_v12 = vld [vmem:[%s1024_s29 + $0x24] ss:$8 sps:$4 sm:$0xff]   ;;  %520 = vmatprep.mubr.bf16.mxu0 %v918_v11  ;;  %v919_v19 = vld [vmem:[%s1024_s29 + $0x20] ss:$8 sps:$4 sm:$0xff]   ;;  %v925_v21 = vld [vmem:[%s1024_s29 + $0x34] ss:$8 sps:$4 sm:$0xff]  }
  0x15   : > { %822 = vmatpush3.bf16.msra.mxu0 %v903_v3  ;;  %868 = vmatpush3.bf16.msra.mxu1 %v903_v3  ;;  %v912_v14 = vld [vmem:[%s1007_s25 + $0x48] sm:$0xff]   ;;  %v914_v16 = vld [vmem:[%s1007_s25 + $0x40] sm:$0xff]   ;;  %v924_v22 = vld [vmem:[%s1024_s29 + $0x10] ss:$8 sps:$4 sm:$0xff]  }
  0x16   : > { %823 = vmatprep.subr.bf16.mxu0 %v904_v4  ;;  %861 = vmatprep.subr.bf16.mxu1 %v904_v4  ;;  %v913_v15 = vld [vmem:[%s1007_s25 + $0x8] sm:$0xff]   ;;  %v915_v17 = vld [vmem:[%s1007_s25] sm:$0xff]   ;;  %v927_v23 = vld [vmem:[%s1024_s29 + $0x30] ss:$8 sps:$4 sm:$0xff]  }
  0x17   : > { %536 = vmatprep.mubr.bf16.mxu1 %v921_v12 }
  0x19   : > { %824 = vmatpush3.bf16.msra.mxu0 %v905_v5  ;;  %869 = vmatpush3.bf16.msra.mxu1 %v905_v5 }
  0x1a   : > { %825 = vmatprep.subr.bf16.mxu0 %v906_v6  ;;  %862 = vmatprep.subr.bf16.mxu1 %v906_v6 }
  0x1d   : > { %826 = vmatpush3.bf16.msra.mxu0 %v907_v7  ;;  %870 = vmatpush3.bf16.msra.mxu1 %v907_v7 }
  0x1e   : > { %827 = vmatprep.subr.bf16.mxu0 %v908_v8  ;;  %863 = vmatprep.subr.bf16.mxu1 %v908_v8 }
  0x21   : > { %828 = vmatpush3.bf16.msra.mxu0 %v909_v9  ;;  %871 = vmatpush3.bf16.msra.mxu1 %v909_v9 }
  0x22   : > { %829 = vmatprep.subr.bf16.mxu0 %v910_v10  ;;  %864 = vmatprep.subr.bf16.mxu1 %v910_v10 }
  0x25   : > { %830 = vmatpush3.bf16.msra.mxu0 %v911_v13  ;;  %872 = vmatpush3.bf16.msra.mxu1 %v911_v13 }
  0x26   : > { %831 = vmatprep.subr.bf16.mxu0 %v912_v14  ;;  %865 = vmatprep.subr.bf16.mxu1 %v912_v14 }
  0x29   : > { %832 = vmatpush3.bf16.msra.mxu0 %v913_v15  ;;  %873 = vmatpush3.bf16.msra.mxu1 %v913_v15 }
  0x2a   : > { %833 = vmatprep.subr.bf16.mxu0 %v914_v16  ;;  %866 = vmatprep.subr.bf16.mxu1 %v914_v16 }
  0x2d   : > { %834 = vmatpush3.bf16.msra.mxu0 %v915_v17  ;;  %874 = vmatpush3.bf16.msra.mxu1 %v915_v17 }
  0x30   : > { %521 = vmatmul.mubr.bf16.vlgmr.msra.gmra.mxu0 %v916_v18  ;;  %537 = vmatmul.mubr.bf16.vlgmr.msra.gmra.mxu1 %v919_v19 }
  0x31   : > { %528 = vmatprep.mubr.bf16.mxu0 %v922_v20  ;;  %544 = vmatprep.mubr.bf16.mxu1 %v925_v21 }
  0x38   : > { %529 = vmatmul.mubr.bf16.gmra.mxu0 %v924_v22  ;;  %545 = vmatmul.mubr.bf16.gmra.mxu1 %v927_v23 }
  0xf0   : > { %v835_v25 = vpop.f32.mrf.mxu0  ;;  %v847_v26 = vpop.f32.mrf.mxu1 }
  0xf2   : > { %v836_v28 = vpop.f32.mrf.mxu0  ;;  %v848_v29 = vpop.f32.mrf.mxu1 }
  0xf3   : > { %v837_v30 = vadd.f32 %v836_v28, %v835_v25  ;;  %v849_v31 = vadd.f32 %v848_v29, %v847_v26 }
  0xf4   : > { %v838_v32 = vpop.f32.mrf.mxu0  ;;  %v850_v33 = vpop.f32.mrf.mxu1 }
  0xf5   : > { %v523_v34 = vadd.f32 %v837_v30, %v789_v27  ;;  %v539_v35 = vadd.f32 %v849_v31, %v789_v27 }
  0xf6   : > { %v839_v36 = vpop.f32.mrf.mxu0  ;;  %v851_v37 = vpop.f32.mrf.mxu1 }
  0xf7   : > { %554 = vst.msk [vmem:[%s1065_s15] sm:$0xff] %vm553_vm1, %v523_v34  ;;  %558 = vst.msk [vmem:[%s1065_s15 + $0x20] sm:$0xff] %vm553_vm1, %v539_v35  ;;  %v840_v38 = vadd.f32 %v839_v36, %v838_v32  ;;  %v852_v40 = vadd.f32 %v851_v37, %v850_v33  ;;  %v595_v53 = vmul.f32 %v523_v34, %v523_v34  ;;  %v570_v57 = vsel %vm553_vm1, %v523_v34, 0.0 }
  0xf8   : > { %v841_v39 = vpop.f32.mrf.mxu0  ;;  %v853_v41 = vpop.f32.mrf.mxu1  ;;  %v599_v6 = vmul.f32 %v539_v35, %v539_v35  ;;  %v577_v11 = vsel %vm553_vm1, %v539_v35, 0.0 }
  0xf9   : > { %v526_v42 = vadd.f32 %v840_v38, %v789_v27  ;;  %v542_v43 = vadd.f32 %v852_v40, %v789_v27  ;;  %v603_v0 = vsel %vm553_vm1, %v595_v53, 0.0 }
  0xfa   : > { %v842_v44 = vpop.f32.mrf.mxu0  ;;  %v854_v45 = vpop.f32.mrf.mxu1  ;;  %v610_v16 = vsel %vm553_vm1, %v599_v6, 0.0 }
  0xfb   : > { %v843_v46 = vadd.f32 %v842_v44, %v841_v39  ;;  %v855_v47 = vadd.f32 %v854_v45, %v853_v41  ;;  %555 = vst.msk [vmem:[%s1065_s15 + $0x8] sm:$0xff] %vm553_vm1, %v526_v42  ;;  %v596_v48 = vmul.f32 %v526_v42, %v526_v42  ;;  %559 = vst.msk [vmem:[%s1065_s15 + $0x28] sm:$0xff] %vm553_vm1, %v542_v43  ;;  %v571_v54 = vsel %vm553_vm1, %v526_v42, 0.0  ;;  %v569_v41 = vld [vmem:[%s1045_s7] sm:$0x1] }
  0xfc   : > { %v844_v49 = vpop.f32.mrf.mxu0  ;;  %v856_v50 = vpop.f32.mrf.mxu1  ;;  %v572_v63 = vadd.f32 %v571_v54, %v570_v57  ;;  %v600_v12 = vmul.f32 %v542_v43, %v542_v43  ;;  %v579_v17 = vsel %vm553_vm1, %v542_v43, 0.0  ;;  %v594_v44 = vld [vmem:[%s1051_s10] sm:$0x1] }
  0xfd   : > { %v531_v51 = vadd.f32 %v843_v46, %v789_v27  ;;  %v547_v52 = vadd.f32 %v855_v47, %v789_v27  ;;  %v604_v59 = vsel %vm553_vm1, %v596_v48, 0.0 }
  0xfe   : > { %v845_v55 = vpop.f32.mrf.mxu0  ;;  %v857_v56 = vpop.f32.mrf.mxu1  ;;  %v605_v4 = vadd.f32 %v604_v59, %v603_v0  ;;  %v612_v21 = vsel %vm553_vm1, %v600_v12, 0.0 }
  0xff   : > { %556 = vst.msk [vmem:[%s1065_s15 + $0x10] sm:$0xff] %vm553_vm1, %v531_v51  ;;  %v597_v58 = vmul.f32 %v531_v51, %v531_v51  ;;  %560 = vst.msk [vmem:[%s1065_s15 + $0x30] sm:$0xff] %vm553_vm1, %v547_v52  ;;  %v573_v60 = vsel %vm553_vm1, %v531_v51, 0.0  ;;  %v846_v61 = vadd.f32 %v845_v55, %v844_v49  ;;  %v858_v62 = vadd.f32 %v857_v56, %v856_v50 }
 0x100   : > { %v574_v5 = vadd.f32 %v573_v60, %v572_v63  ;;  %v601_v18 = vmul.f32 %v547_v52, %v547_v52  ;;  %v581_v22 = vsel %vm553_vm1, %v547_v52, 0.0 }
 0x101   : > { %v606_v1 = vsel %vm553_vm1, %v597_v58, 0.0  ;;  %v534_v2 = vadd.f32 %v846_v61, %v789_v27  ;;  %v550_v3 = vadd.f32 %v858_v62, %v789_v27 }
 0x102   : > { %v607_v9 = vadd.f32 %v606_v1, %v605_v4  ;;  %v614_v26 = vsel %vm553_vm1, %v601_v18, 0.0 }
 0x103   : > { %557 = vst.msk [vmem:[%s1065_s15 + $0x18] sm:$0xff] %vm553_vm1, %v534_v2  ;;  %v575_v7 = vsel %vm553_vm1, %v534_v2, 0.0  ;;  %v598_v8 = vmul.f32 %v534_v2, %v534_v2  ;;  %561 = vst.msk [vmem:[%s1065_s15 + $0x38] sm:$0xff] %vm553_vm1, %v550_v3  ;;  %v602_v23 = vmul.f32 %v550_v3, %v550_v3  ;;  %v583_v27 = vsel %vm553_vm1, %v550_v3, 0.0 }
 0x104   : > { %v576_v10 = vadd.f32 %v575_v7, %v574_v5 }
 0x105   : > { %v608_v13 = vsel %vm553_vm1, %v598_v8, 0.0  ;;  %v616_v30 = vsel %vm553_vm1, %v602_v23, 0.0 }
 0x106   : > { %v578_v14 = vadd.f32 %v577_v11, %v576_v10  ;;  %v609_v15 = vadd.f32 %v608_v13, %v607_v9 }
 0x108   : > { %v611_v19 = vadd.f32 %v610_v16, %v609_v15  ;;  %v580_v20 = vadd.f32 %v579_v17, %v578_v14 }
 0x10a   : > { %v582_v24 = vadd.f32 %v581_v22, %v580_v20  ;;  %v613_v25 = vadd.f32 %v612_v21, %v611_v19 }
 0x10c   : > { %v584_v28 = vadd.f32 %v583_v27, %v582_v24  ;;  %v615_v29 = vadd.f32 %v614_v26, %v613_v25 }
 0x10e   : > { %v585_v31 = vrot.slane %v584_v28, 4  ;;  %v617_v32 = vadd.f32 %v616_v30, %v615_v29 }
 0x110   : > { %v586_v33 = vadd.f32 %v585_v31, %v584_v28  ;;  %v618_v34 = vrot.slane %v617_v32, 4 }
 0x112   : > { %v587_v35 = vrot.slane %v586_v33, 2  ;;  %v619_v36 = vadd.f32 %v618_v34, %v617_v32 }
 0x114   : > { %v588_v37 = vadd.f32 %v587_v35, %v586_v33  ;;  %v620_v38 = vrot.slane %v619_v36, 2 }
 0x116   : > { %v589_v39 = vrot.slane %v588_v37, 1  ;;  %v621_v40 = vadd.f32 %v620_v38, %v619_v36 }
 0x118   : > { %v590_v42 = vadd.f32 %v589_v39, %v588_v37  ;;  %v622_v43 = vrot.slane %v621_v40, 1 }
 0x11a   : > { %v591_v45 = vadd.f32 %v590_v42, %v569_v41  ;;  %v623_v46 = vadd.f32 %v622_v43, %v621_v40 }
 0x11c   : > { %593 = vst.msk [vmem:[%s1045_s7] sm:$0x1] %vm566_vm0, %v591_v45  ;;  %v624_v47 = vadd.f32 %v623_v46, %v594_v44 }
 0x11e   : > { %625 = vst.msk [vmem:[%s1051_s10] sm:$0x1] %vm566_vm0, %v624_v47 }
 0x11f PF: > { %s16_s20 = sadd.s32 1, %s950_s20   ;;  %s1120_s18 = smov %s946_s19 }
 0x120   : > { %p13_p5 = scmp.ge.s32.totalorder %s16_s20, 6   ;;  %s1121_s19 = smov %s1123_s21 }
 0x122   :  { %15 = sbr.rel (!%p13_p5) target bundleno = 2 (0x2), region = 93 }

// kernel: tile.82
= control target key start
LH: loop header
LB: loop body
LE: loop exit
PB: predicated region body
PF: predicated region fallthrough
CT: control target
= control target key end

     0   :  { %s22_s0 = inlined_call_operand.vmem [shape: f32[32], index: 0, kind: input, shape index: {}]   ;;  %s23_s1 = inlined_call_operand.vmem [shape: f32[4,32], index: 1, kind: output, shape index: {}]  }
   0x1   :  { %v4_v0 = vld [vmem:[%s22_s0] ss:$0 sm:$0xff] }
   0x2   :  { %5 = vst [vmem:[%s23_s1] sm:$0xf] %v4_v0 }

// kernel: tile.83
= control target key start
LH: loop header
LB: loop body
LE: loop exit
PB: predicated region body
PF: predicated region fallthrough
CT: control target
= control target key end

     0   :  { %vm8_vm0 = vcmask 261120   ;;  %s40_s8 = smov 32   ;;  %s41_s9 = smov 64   ;;  %vm14_vm1 = vcmask 1048320   ;;  %vm20_vm2 = vcmask 785920   ;;  %vm26_vm3 = vcmask 523520   ;;  %s58_s0 = inlined_call_operand.vmem [shape: f32[4,32], index: 0, kind: input, shape index: {}]   ;;  %s59_s1 = inlined_call_operand.vmem [shape: f32[1,128], index: 1, kind: output, shape index: {}]  }
   0x1   :  { %v5_v0 = vld [vmem:[%s58_s0] sm:$0xf]  ;;  %s39_s0 = smov 96  }
   0x2   :  { %6 = vst [vmem:[#allocation1] sm:$0xf] %v5_v0 }
   0x9   :  { %v11_v1 = vld [vmem:[#allocation1 + $0x3] sm:$0x1]   ;;  %v23_v2 = vld [vmem:[#allocation1 + $0x1] sm:$0x1]   ;;  %v7_v3 = vld [vmem:[#allocation1] sm:$0x1]  }
   0xa   :  { %12 = vrot.lane.b32.xlu0 %v11_v1, %s39_s0  ;;  %24 = vrot.lane.b32.xlu1 %v23_v2, %s40_s8  ;;  %v17_v4 = vld [vmem:[#allocation1 + $0x2] sm:$0x1]   ;;  %9 = vst.msk [vmem:[#allocation0] sm:$0x1] %vm8_vm0, %v7_v3  }
   0xe   :  { %18 = vrot.lane.b32.xlu0 %v17_v4, %s41_s9 }
  0x7c   :  { %v13_v5 = vpop.permute.xlu0 %12   ;;  %v25_v6 = vpop.permute.xlu1 %24  }
  0x7d   :  { %15 = vst.msk [vmem:[#allocation0] sm:$0x1] %vm14_vm1, %v13_v5  }
  0x80   :  { %v19_v7 = vpop.permute.xlu0 %18  }
  0x81   :  { %21 = vst.msk [vmem:[#allocation0] sm:$0x1] %vm20_vm2, %v19_v7  }
  0x82   :  { %27 = vst.msk [vmem:[#allocation0] sm:$0x1] %vm26_vm3, %v25_v6  }
  0x89   :  { %v32_v8 = vld [vmem:[#allocation0] sm:$0x1] }
  0x8a   :  { %35 = vst [vmem:[%s59_s1] sm:$0x1] %v32_v8 }

// kernel: conv_decoder_forward.17
= control target key start
LH: loop header
LB: loop body
LE: loop exit
PB: predicated region body
PF: predicated region fallthrough
CT: control target
= control target key end

     0   :  { %s1499_s18 = smov 0   ;;  %s1501_s19 = smov 0   ;;  %s1934_s0 = inlined_call_operand.vmem [shape: bf16[4,256,256], index: 0, kind: input, shape index: {}]   ;;  %s1935_s1 = inlined_call_operand.vmem [shape: bf16[4,256,32], index: 1, kind: input, shape index: {}]   ;;  %s1936_s2 = inlined_call_operand.vmem [shape: f32[1,32], index: 2, kind: input, shape index: {}]   ;;  %s1937_s3 = inlined_call_operand.vmem [shape: f32[4,256,32], index: 3, kind: output, shape index: {0}]   ;;  %s1938_s4 = inlined_call_operand.vmem [shape: f32[4,1,32], index: 4, kind: output, shape index: {1}]   ;;  %s1939_s5 = inlined_call_operand.vmem [shape: f32[4,1,32], index: 5, kind: output, shape index: {2}]  }
   0x1   :  { %s1503_s20 = smov 0  }
   0x2 LB: > { %s28_s21 = sadd.s32 1, %s1462_s19  ;;  %p1166_p0 = scmp.ge.s32.totalorder %s1466_s20, 1  ;;  %s1466_s20 = sphi %s1503_s20, %s16_s20   ;;  %s1462_s19 = sphi %s1501_s19, %s1941_s19   ;;  %s1458_s18 = sphi %s1499_s18, %s1940_s18  }
   0x3   : > { %p30_p1 = scmp.ge.s32.totalorder %s28_s21, 4  ;;  %p224_p2 = scmp.lt.s32.totalorder %s1466_s20, 5 }
   0x5   : > { %s1943_s21 = smov (%p30_p1, %s28_s21), 0  ;;  %p225_p3 = pnand %p1166_p0, %p224_p2 }
   0x6   : > { %p273_p4 = scmp.lt.s32.totalorder (!%p225_p3), %s1458_s18, 3 }
   0x7   : > { %228 = sbr.rel (%p225_p3) target bundleno = 359 (0x167), region = 32 }
   0xc   : > { %s1945_s18 = smov (!%p273_p4, %s1458_s18), 3  ;;  %vm830_vm0 = vcmask 253952   ;;  %v1468_v48 = vmov 0.0   ;;  %v1600_v51 = vld [vmem:[%s1936_s2] ss:$0 sm:$0xff]  ;;  %vm793_vm1 = vcmask 261120  }
   0xd   : > { %s1225_s22 = sshll.u32 %s1945_s18, 7  ;;  %s1224_s26 = sshll.u32 %s1945_s18, 8 }
   0xe   : > { %s1523_s25 = scalar_lea.vmem %s1935_s1, %s1225_s22  ;;  %s1540_s29 = scalar_lea.vmem %s1934_s0, %s1224_s26 }
   0xf   : > { %v1380_v0 = vld [vmem:[%s1523_s25 + $0x78] sm:$0xff]   ;;  %v1382_v2 = vld [vmem:[%s1523_s25 + $0x70] sm:$0xff]   ;;  %v1384_v4 = vld [vmem:[%s1523_s25 + $0x68] sm:$0xff]   ;;  %s1585_s7 = scalar_lea.vmem %s1938_s4, %s1945_s18  ;;  %s1591_s10 = scalar_lea.vmem %s1939_s5, %s1945_s18 }
  0x10   : > { %v1381_v1 = vld [vmem:[%s1523_s25 + $0x38] sm:$0xff]   ;;  %1227 = vmatprep.subr.bf16.mxu0 %v1380_v0  ;;  %1339 = vmatprep.subr.bf16.mxu1 %v1380_v0  ;;  %v1383_v3 = vld [vmem:[%s1523_s25 + $0x30] sm:$0xff]   ;;  %v1385_v5 = vld [vmem:[%s1523_s25 + $0x28] sm:$0xff]   ;;  %831 = vst.msk [vmem:[%s1585_s7] sm:$0x1] %vm830_vm0, %v1468_v48  ;;  %s1607_s15 = scalar_lea.vmem %s1937_s3, %s1224_s26 }
  0x11   : > { %1228 = vmatpush3.bf16.msra.mxu0 %v1381_v1  ;;  %1347 = vmatpush3.bf16.msra.mxu1 %v1381_v1  ;;  %v1386_v6 = vld [vmem:[%s1523_s25 + $0x60] sm:$0xff]   ;;  %v1388_v8 = vld [vmem:[%s1523_s25 + $0x58] sm:$0xff]   ;;  %v1390_v10 = vld [vmem:[%s1523_s25 + $0x50] sm:$0xff]   ;;  %832 = vst.msk [vmem:[%s1591_s10] sm:$0x1] %vm830_vm0, %v1468_v48 }
  0x12   : > { %1229 = vmatprep.subr.bf16.mxu0 %v1382_v2  ;;  %1340 = vmatprep.subr.bf16.mxu1 %v1382_v2  ;;  %v1387_v7 = vld [vmem:[%s1523_s25 + $0x20] sm:$0xff]   ;;  %v1389_v9 = vld [vmem:[%s1523_s25 + $0x18] sm:$0xff]   ;;  %v1391_v12 = vld [vmem:[%s1523_s25 + $0x10] sm:$0xff]  }
  0x13   : > { %v1398_v11 = vld [vmem:[%s1540_s29 + $0x4] ss:$8 sps:$4 sm:$0xff]   ;;  %v1396_v18 = vld [vmem:[%s1540_s29] ss:$8 sps:$4 sm:$0xff]   ;;  %v1399_v19 = vld [vmem:[%s1540_s29 + $0x14] ss:$8 sps:$4 sm:$0xff]  }
  0x14   : > { %664 = vmatprep.mubr.bf16.mxu0 %v1398_v11  ;;  %v1392_v13 = vld [vmem:[%s1523_s25 + $0x48] sm:$0xff]   ;;  %v1394_v16 = vld [vmem:[%s1523_s25 + $0x40] sm:$0xff]   ;;  %v1414_v21 = vld [vmem:[%s1540_s29 + $0x94] ss:$8 sps:$4 sm:$0xff]  }
  0x15   : > { %1230 = vmatpush3.bf16.msra.mxu0 %v1383_v3  ;;  %1348 = vmatpush3.bf16.msra.mxu1 %v1383_v3  ;;  %v1410_v14 = vld [vmem:[%s1540_s29 + $0x84] ss:$8 sps:$4 sm:$0xff]   ;;  %v1408_v20 = vld [vmem:[%s1540_s29 + $0x80] ss:$8 sps:$4 sm:$0xff]   ;;  %v1401_v22 = vld [vmem:[%s1540_s29 + $0x10] ss:$8 sps:$4 sm:$0xff]  }
  0x16   : > { %1231 = vmatprep.subr.bf16.mxu0 %v1384_v4  ;;  %1341 = vmatprep.subr.bf16.mxu1 %v1384_v4  ;;  %v1393_v15 = vld [vmem:[%s1523_s25 + $0x8] sm:$0xff]   ;;  %v1395_v17 = vld [vmem:[%s1523_s25] sm:$0xff]   ;;  %v1416_v24 = vld [vmem:[%s1540_s29 + $0x90] ss:$8 sps:$4 sm:$0xff]  }
  0x17   : > { %728 = vmatprep.mubr.bf16.mxu1 %v1410_v14  ;;  %v1402_v23 = vld [vmem:[%s1540_s29 + $0x24] ss:$8 sps:$4 sm:$0xff]   ;;  %v1404_v26 = vld [vmem:[%s1540_s29 + $0x20] ss:$8 sps:$4 sm:$0xff]   ;;  %v1405_v27 = vld [vmem:[%s1540_s29 + $0x34] ss:$8 sps:$4 sm:$0xff]  }
  0x18   : > { %v1420_v25 = vld [vmem:[%s1540_s29 + $0xa4] ss:$8 sps:$4 sm:$0xff]   ;;  %v1422_v28 = vld [vmem:[%s1540_s29 + $0xa0] ss:$8 sps:$4 sm:$0xff]   ;;  %v1426_v29 = vld [vmem:[%s1540_s29 + $0xb4] ss:$8 sps:$4 sm:$0xff]  }
  0x19   : > { %1232 = vmatpush3.bf16.msra.mxu0 %v1385_v5  ;;  %1349 = vmatpush3.bf16.msra.mxu1 %v1385_v5  ;;  %v1407_v30 = vld [vmem:[%s1540_s29 + $0x30] ss:$8 sps:$4 sm:$0xff]   ;;  %v1411_v31 = vld [vmem:[%s1540_s29 + $0x44] ss:$8 sps:$4 sm:$0xff]   ;;  %v1413_v34 = vld [vmem:[%s1540_s29 + $0x40] ss:$8 sps:$4 sm:$0xff]  }
  0x1a   : > { %1233 = vmatprep.subr.bf16.mxu0 %v1386_v6  ;;  %1342 = vmatprep.subr.bf16.mxu1 %v1386_v6  ;;  %v1428_v32 = vld [vmem:[%s1540_s29 + $0xb0] ss:$8 sps:$4 sm:$0xff]   ;;  %v1432_v33 = vld [vmem:[%s1540_s29 + $0xc4] ss:$8 sps:$4 sm:$0xff]   ;;  %v1417_v35 = vld [vmem:[%s1540_s29 + $0x54] ss:$8 sps:$4 sm:$0xff]  }
  0x1b   : > { %v1434_v36 = vld [vmem:[%s1540_s29 + $0xc0] ss:$8 sps:$4 sm:$0xff]   ;;  %v1435_v37 = vld [vmem:[%s1540_s29 + $0xd4] ss:$8 sps:$4 sm:$0xff]   ;;  %v1419_v38 = vld [vmem:[%s1540_s29 + $0x50] ss:$8 sps:$4 sm:$0xff]  }
  0x1c   : > { %v1423_v39 = vld [vmem:[%s1540_s29 + $0x64] ss:$8 sps:$4 sm:$0xff]   ;;  %v1437_v40 = vld [vmem:[%s1540_s29 + $0xd0] ss:$8 sps:$4 sm:$0xff]   ;;  %v1425_v42 = vld [vmem:[%s1540_s29 + $0x60] ss:$8 sps:$4 sm:$0xff]  }
  0x1d   : > { %1234 = vmatpush3.bf16.msra.mxu0 %v1387_v7  ;;  %1350 = vmatpush3.bf16.msra.mxu1 %v1387_v7  ;;  %v1438_v41 = vld [vmem:[%s1540_s29 + $0xe4] ss:$8 sps:$4 sm:$0xff]   ;;  %v1429_v43 = vld [vmem:[%s1540_s29 + $0x74] ss:$8 sps:$4 sm:$0xff]   ;;  %v1440_v44 = vld [vmem:[%s1540_s29 + $0xe0] ss:$8 sps:$4 sm:$0xff]  }
  0x1e   : > { %1235 = vmatprep.subr.bf16.mxu0 %v1388_v8  ;;  %1343 = vmatprep.subr.bf16.mxu1 %v1388_v8  ;;  %v1441_v45 = vld [vmem:[%s1540_s29 + $0xf4] ss:$8 sps:$4 sm:$0xff]   ;;  %v1431_v46 = vld [vmem:[%s1540_s29 + $0x70] ss:$8 sps:$4 sm:$0xff]  }
  0x1f   : > { %v1443_v47 = vld [vmem:[%s1540_s29 + $0xf0] ss:$8 sps:$4 sm:$0xff]  }
  0x21   : > { %1236 = vmatpush3.bf16.msra.mxu0 %v1389_v9  ;;  %1351 = vmatpush3.bf16.msra.mxu1 %v1389_v9 }
  0x22   : > { %1237 = vmatprep.subr.bf16.mxu0 %v1390_v10  ;;  %1344 = vmatprep.subr.bf16.mxu1 %v1390_v10 }
  0x25   : > { %1238 = vmatpush3.bf16.msra.mxu0 %v1391_v12  ;;  %1352 = vmatpush3.bf16.msra.mxu1 %v1391_v12 }
  0x26   : > { %1239 = vmatprep.subr.bf16.mxu0 %v1392_v13  ;;  %1345 = vmatprep.subr.bf16.mxu1 %v1392_v13 }
  0x29   : > { %1240 = vmatpush3.bf16.msra.mxu0 %v1393_v15  ;;  %1353 = vmatpush3.bf16.msra.mxu1 %v1393_v15 }
  0x2a   : > { %1241 = vmatprep.subr.bf16.mxu0 %v1394_v16  ;;  %1346 = vmatprep.subr.bf16.mxu1 %v1394_v16 }
  0x2d   : > { %1242 = vmatpush3.bf16.msra.mxu0 %v1395_v17  ;;  %1354 = vmatpush3.bf16.msra.mxu1 %v1395_v17 }
  0x30   : > { %665 = vmatmul.mubr.bf16.vlgmr.msra.gmra.mxu0 %v1396_v18  ;;  %729 = vmatmul.mubr.bf16.vlgmr.msra.gmra.mxu1 %v1408_v20 }
  0x31   : > { %672 = vmatprep.mubr.bf16.mxu0 %v1399_v19  ;;  %736 = vmatprep.mubr.bf16.mxu1 %v1414_v21 }
  0x38   : > { %673 = vmatmul.mubr.bf16.gmra.mxu0 %v1401_v22  ;;  %737 = vmatmul.mubr.bf16.gmra.mxu1 %v1416_v24 }
  0x39   : > { %680 = vmatprep.mubr.bf16.mxu0 %v1402_v23  ;;  %744 = vmatprep.mubr.bf16.mxu1 %v1420_v25 }
  0x40   : > { %681 = vmatmul.mubr.bf16.gmra.mxu0 %v1404_v26  ;;  %745 = vmatmul.mubr.bf16.gmra.mxu1 %v1422_v28 }
  0x41   : > { %688 = vmatprep.mubr.bf16.mxu0 %v1405_v27  ;;  %752 = vmatprep.mubr.bf16.mxu1 %v1426_v29 }
  0x48   : > { %689 = vmatmul.mubr.bf16.gmra.mxu0 %v1407_v30  ;;  %753 = vmatmul.mubr.bf16.gmra.mxu1 %v1428_v32 }
  0x49   : > { %696 = vmatprep.mubr.bf16.mxu0 %v1411_v31  ;;  %760 = vmatprep.mubr.bf16.mxu1 %v1432_v33 }
  0x50   : > { %697 = vmatmul.mubr.bf16.gmra.mxu0 %v1413_v34  ;;  %761 = vmatmul.mubr.bf16.gmra.mxu1 %v1434_v36 }
  0x51   : > { %704 = vmatprep.mubr.bf16.mxu0 %v1417_v35  ;;  %768 = vmatprep.mubr.bf16.mxu1 %v1435_v37 }
  0x58   : > { %705 = vmatmul.mubr.bf16.gmra.mxu0 %v1419_v38  ;;  %769 = vmatmul.mubr.bf16.gmra.mxu1 %v1437_v40 }
  0x59   : > { %712 = vmatprep.mubr.bf16.mxu0 %v1423_v39  ;;  %776 = vmatprep.mubr.bf16.mxu1 %v1438_v41 }
  0x60   : > { %713 = vmatmul.mubr.bf16.gmra.mxu0 %v1425_v42  ;;  %777 = vmatmul.mubr.bf16.gmra.mxu1 %v1440_v44 }
  0x61   : > { %720 = vmatprep.mubr.bf16.mxu0 %v1429_v43  ;;  %784 = vmatprep.mubr.bf16.mxu1 %v1441_v45 }
  0x68   : > { %721 = vmatmul.mubr.bf16.gmra.mxu0 %v1431_v46  ;;  %785 = vmatmul.mubr.bf16.gmra.mxu1 %v1443_v47 }
  0xf0   : > { %v1243_v49 = vpop.f32.mrf.mxu0  ;;  %v1291_v50 = vpop.f32.mrf.mxu1 }
  0xf2   : > { %v1244_v52 = vpop.f32.mrf.mxu0  ;;  %v1292_v54 = vpop.f32.mrf.mxu1 }
  0xf3   : > { %v1245_v53 = vadd.f32 %v1244_v52, %v1243_v49  ;;  %v1293_v56 = vadd.f32 %v1292_v54, %v1291_v50 }
  0xf4   : > { %v1246_v55 = vpop.f32.mrf.mxu0  ;;  %v1294_v58 = vpop.f32.mrf.mxu1 }
  0xf5   : > { %v1610_v57 = vadd.f32 %v1245_v53, %v1600_v51  ;;  %v1613_v60 = vadd.f32 %v1293_v56, %v1600_v51 }
  0xf6   : > { %v1247_v59 = vpop.f32.mrf.mxu0  ;;  %v1295_v62 = vpop.f32.mrf.mxu1 }
  0xf7   : > { %794 = vst.msk [vmem:[%s1607_s15] sm:$0xff] %vm793_vm1, %v1610_v57  ;;  %v1248_v61 = vadd.f32 %v1247_v59, %v1246_v55  ;;  %810 = vst.msk [vmem:[%s1607_s15 + $0x80] sm:$0xff] %vm793_vm1, %v1613_v60  ;;  %v1296_v0 = vadd.f32 %v1295_v62, %v1294_v58  ;;  %v907_v58 = vmul.f32 %v1610_v57, %v1610_v57 }
  0xf8   : > { %v1249_v63 = vpop.f32.mrf.mxu0  ;;  %v1297_v2 = vpop.f32.mrf.mxu1 }
  0xf9   : > { %v1622_v1 = vadd.f32 %v1248_v61, %v1600_v51  ;;  %v1625_v4 = vadd.f32 %v1296_v0, %v1600_v51 }
  0xfa   : > { %v1250_v3 = vpop.f32.mrf.mxu0  ;;  %v1298_v6 = vpop.f32.mrf.mxu1 }
  0xfb   : > { %795 = vst.msk [vmem:[%s1607_s15 + $0x8] sm:$0xff] %vm793_vm1, %v1622_v1  ;;  %v1251_v5 = vadd.f32 %v1250_v3, %v1249_v63  ;;  %811 = vst.msk [vmem:[%s1607_s15 + $0x88] sm:$0xff] %vm793_vm1, %v1625_v4  ;;  %v1299_v8 = vadd.f32 %v1298_v6, %v1297_v2  ;;  %v908_v54 = vmul.f32 %v1622_v1, %v1622_v1  ;;  %v835_v62 = vsel %vm793_vm1, %v1622_v1, 0.0 }
  0xfc   : > { %v1252_v7 = vpop.f32.mrf.mxu0  ;;  %v1300_v10 = vpop.f32.mrf.mxu1  ;;  %v834_v3 = vsel %vm793_vm1, %v1610_v57, 0.0 }
  0xfd   : > { %v1634_v9 = vadd.f32 %v1251_v5, %v1600_v51  ;;  %v1637_v12 = vadd.f32 %v1299_v8, %v1600_v51  ;;  %v836_v57 = vadd.f32 %v835_v62, %v834_v3 }
  0xfe   : > { %v1253_v11 = vpop.f32.mrf.mxu0  ;;  %v1301_v14 = vpop.f32.mrf.mxu1 }
  0xff   : > { %796 = vst.msk [vmem:[%s1607_s15 + $0x10] sm:$0xff] %vm793_vm1, %v1634_v9  ;;  %v1254_v13 = vadd.f32 %v1253_v11, %v1252_v7  ;;  %812 = vst.msk [vmem:[%s1607_s15 + $0x90] sm:$0xff] %vm793_vm1, %v1637_v12  ;;  %v1302_v16 = vadd.f32 %v1301_v14, %v1300_v10  ;;  %v909_v63 = vmul.f32 %v1634_v9, %v1634_v9  ;;  %v940_v7 = vsel %vm793_vm1, %v908_v54, 0.0 }
 0x100   : > { %v1255_v15 = vpop.f32.mrf.mxu0  ;;  %v1303_v18 = vpop.f32.mrf.mxu1  ;;  %v837_v1 = vsel %vm793_vm1, %v1634_v9, 0.0 }
 0x101   : > { %v1646_v17 = vadd.f32 %v1254_v13, %v1600_v51  ;;  %v1649_v20 = vadd.f32 %v1302_v16, %v1600_v51  ;;  %v939_v13 = vsel %vm793_vm1, %v907_v58, 0.0  ;;  %v942_v16 = vsel %vm793_vm1, %v909_v63, 0.0 }
 0x102   : > { %v1256_v19 = vpop.f32.mrf.mxu0  ;;  %v1304_v22 = vpop.f32.mrf.mxu1 }
 0x103   : > { %797 = vst.msk [vmem:[%s1607_s15 + $0x18] sm:$0xff] %vm793_vm1, %v1646_v17  ;;  %v1257_v21 = vadd.f32 %v1256_v19, %v1255_v15  ;;  %813 = vst.msk [vmem:[%s1607_s15 + $0x98] sm:$0xff] %vm793_vm1, %v1649_v20  ;;  %v1305_v24 = vadd.f32 %v1304_v22, %v1303_v18  ;;  %v910_v8 = vmul.f32 %v1646_v17, %v1646_v17  ;;  %v839_v9 = vsel %vm793_vm1, %v1646_v17, 0.0 }
 0x104   : > { %v1258_v23 = vpop.f32.mrf.mxu0  ;;  %v1306_v26 = vpop.f32.mrf.mxu1  ;;  %v941_v22 = vadd.f32 %v940_v7, %v939_v13 }
 0x105   : > { %v1658_v25 = vadd.f32 %v1257_v21, %v1600_v51  ;;  %v1661_v28 = vadd.f32 %v1305_v24, %v1600_v51 }
 0x106   : > { %v1259_v27 = vpop.f32.mrf.mxu0  ;;  %v1307_v30 = vpop.f32.mrf.mxu1 }
 0x107   : > { %798 = vst.msk [vmem:[%s1607_s15 + $0x20] sm:$0xff] %vm793_vm1, %v1658_v25  ;;  %v1260_v29 = vadd.f32 %v1259_v27, %v1258_v23  ;;  %814 = vst.msk [vmem:[%s1607_s15 + $0xa0] sm:$0xff] %vm793_vm1, %v1661_v28  ;;  %v1308_v32 = vadd.f32 %v1307_v30, %v1306_v26  ;;  %v911_v18 = vmul.f32 %v1658_v25, %v1658_v25  ;;  %v944_v27 = vsel %vm793_vm1, %v910_v8, 0.0 }
 0x108   : > { %v1261_v31 = vpop.f32.mrf.mxu0  ;;  %v1309_v34 = vpop.f32.mrf.mxu1  ;;  %v838_v23 = vadd.f32 %v837_v1, %v836_v57 }
 0x109   : > { %v1670_v33 = vadd.f32 %v1260_v29, %v1600_v51  ;;  %v1673_v36 = vadd.f32 %v1308_v32, %v1600_v51  ;;  %v841_v29 = vsel %vm793_vm1, %v1658_v25, 0.0  ;;  %v943_v32 = vadd.f32 %v942_v16, %v941_v22 }
 0x10a   : > { %v1262_v35 = vpop.f32.mrf.mxu0  ;;  %v1310_v38 = vpop.f32.mrf.mxu1 }
 0x10b   : > { %799 = vst.msk [vmem:[%s1607_s15 + $0x28] sm:$0xff] %vm793_vm1, %v1670_v33  ;;  %v1263_v37 = vadd.f32 %v1262_v35, %v1261_v31  ;;  %815 = vst.msk [vmem:[%s1607_s15 + $0xa8] sm:$0xff] %vm793_vm1, %v1673_v36  ;;  %v1311_v40 = vadd.f32 %v1310_v38, %v1309_v34  ;;  %v912_v17 = vmul.f32 %v1670_v33, %v1670_v33  ;;  %v946_v38 = vsel %vm793_vm1, %v911_v18, 0.0 }
 0x10c   : > { %v1264_v39 = vpop.f32.mrf.mxu0  ;;  %v1312_v42 = vpop.f32.mrf.mxu1  ;;  %v840_v34 = vadd.f32 %v839_v9, %v838_v23  ;;  %v843_v25 = vsel %vm793_vm1, %v1670_v33, 0.0 }
 0x10d   : > { %v1682_v41 = vadd.f32 %v1263_v37, %v1600_v51  ;;  %v1685_v44 = vadd.f32 %v1311_v40, %v1600_v51 }
 0x10e   : > { %v1265_v43 = vpop.f32.mrf.mxu0  ;;  %v1313_v46 = vpop.f32.mrf.mxu1 }
 0x10f   : > { %800 = vst.msk [vmem:[%s1607_s15 + $0x30] sm:$0xff] %vm793_vm1, %v1682_v41  ;;  %v1266_v45 = vadd.f32 %v1265_v43, %v1264_v39  ;;  %816 = vst.msk [vmem:[%s1607_s15 + $0xb0] sm:$0xff] %vm793_vm1, %v1685_v44  ;;  %v1314_v48 = vadd.f32 %v1313_v46, %v1312_v42  ;;  %v913_v39 = vmul.f32 %v1682_v41, %v1682_v41 }
 0x110   : > { %v1267_v47 = vpop.f32.mrf.mxu0  ;;  %v1315_v50 = vpop.f32.mrf.mxu1  ;;  %v945_v43 = vadd.f32 %v944_v27, %v943_v32 }
 0x111   : > { %v1694_v49 = vadd.f32 %v1266_v45, %v1600_v51  ;;  %v1697_v53 = vadd.f32 %v1314_v48, %v1600_v51  ;;  %v842_v45 = vadd.f32 %v841_v29, %v840_v34  ;;  %v948_v48 = vsel %vm793_vm1, %v912_v17, 0.0 }
 0x112   : > { %v1268_v52 = vpop.f32.mrf.mxu0  ;;  %v1316_v56 = vpop.f32.mrf.mxu1 }
 0x113   : > { %801 = vst.msk [vmem:[%s1607_s15 + $0x38] sm:$0xff] %vm793_vm1, %v1694_v49  ;;  %v1269_v55 = vadd.f32 %v1268_v52, %v1267_v47  ;;  %817 = vst.msk [vmem:[%s1607_s15 + $0xb8] sm:$0xff] %vm793_vm1, %v1697_v53  ;;  %v1317_v61 = vadd.f32 %v1316_v56, %v1315_v50  ;;  %v845_v50 = vsel %vm793_vm1, %v1682_v41, 0.0  ;;  %v914_v33 = vmul.f32 %v1694_v49, %v1694_v49 }
 0x114   : > { %v1270_v59 = vpop.f32.mrf.mxu0  ;;  %v1318_v2 = vpop.f32.mrf.mxu1  ;;  %v844_v56 = vadd.f32 %v843_v25, %v842_v45  ;;  %v847_v41 = vsel %vm793_vm1, %v1694_v49, 0.0 }
 0x115   : > { %v1714_v0 = vadd.f32 %v1269_v55, %v1600_v51  ;;  %v1719_v6 = vadd.f32 %v1317_v61, %v1600_v51  ;;  %v947_v55 = vadd.f32 %v946_v38, %v945_v43  ;;  %v950_v61 = vsel %vm793_vm1, %v913_v39, 0.0 }
 0x116   : > { %v1271_v5 = vpop.f32.mrf.mxu0  ;;  %v1319_v11 = vpop.f32.mrf.mxu1  ;;  %v952_v8 = vsel %vm793_vm1, %v914_v33, 0.0 }
 0x117   : > { %802 = vst.msk [vmem:[%s1607_s15 + $0x40] sm:$0xff] %vm793_vm1, %v1714_v0  ;;  %v1272_v10 = vadd.f32 %v1271_v5, %v1270_v59  ;;  %818 = vst.msk [vmem:[%s1607_s15 + $0xc0] sm:$0xff] %vm793_vm1, %v1719_v6  ;;  %v1320_v15 = vadd.f32 %v1319_v11, %v1318_v2  ;;  %v915_v62 = vmul.f32 %v1714_v0, %v1714_v0 }
 0x118   : > { %v1273_v14 = vpop.f32.mrf.mxu0  ;;  %v1321_v21 = vpop.f32.mrf.mxu1  ;;  %v949_v3 = vadd.f32 %v948_v48, %v947_v55  ;;  %v846_v5 = vadd.f32 %v845_v50, %v844_v56 }
 0x119   : > { %v702_v19 = vadd.f32 %v1272_v10, %v1600_v51  ;;  %v1740_v26 = vadd.f32 %v1320_v15, %v1600_v51  ;;  %v849_v10 = vsel %vm793_vm1, %v1714_v0, 0.0  ;;  %v954_v9 = vsel %vm793_vm1, %v915_v62, 0.0 }
 0x11a   : > { %v1274_v24 = vpop.f32.mrf.mxu0  ;;  %v1322_v31 = vpop.f32.mrf.mxu1  ;;  %v951_v57 = vadd.f32 %v950_v61, %v949_v3 }
 0x11b   : > { %803 = vst.msk [vmem:[%s1607_s15 + $0x48] sm:$0xff] %vm793_vm1, %v702_v19  ;;  %v1275_v30 = vadd.f32 %v1274_v24, %v1273_v14  ;;  %819 = vst.msk [vmem:[%s1607_s15 + $0xc8] sm:$0xff] %vm793_vm1, %v1740_v26  ;;  %v1323_v37 = vadd.f32 %v1322_v31, %v1321_v21  ;;  %v916_v11 = vmul.f32 %v702_v19, %v702_v19  ;;  %v851_v18 = vsel %vm793_vm1, %v702_v19, 0.0 }
 0x11c   : > { %v1276_v35 = vpop.f32.mrf.mxu0  ;;  %v1324_v42 = vpop.f32.mrf.mxu1  ;;  %v848_v14 = vadd.f32 %v847_v41, %v846_v5  ;;  %v953_v23 = vadd.f32 %v952_v8, %v951_v57 }
 0x11d   : > { %v707_v40 = vadd.f32 %v1275_v30, %v1600_v51  ;;  %v1759_v47 = vadd.f32 %v1323_v37, %v1600_v51  ;;  %v956_v17 = vsel %vm793_vm1, %v916_v11, 0.0 }
 0x11e   : > { %v1277_v46 = vpop.f32.mrf.mxu0  ;;  %v1325_v54 = vpop.f32.mrf.mxu1  ;;  %v850_v24 = vadd.f32 %v849_v10, %v848_v14  ;;  %v955_v34 = vadd.f32 %v954_v9, %v953_v23 }
 0x11f   : > { %804 = vst.msk [vmem:[%s1607_s15 + $0x50] sm:$0xff] %vm793_vm1, %v707_v40  ;;  %v1278_v52 = vadd.f32 %v1277_v46, %v1276_v35  ;;  %820 = vst.msk [vmem:[%s1607_s15 + $0xd0] sm:$0xff] %vm793_vm1, %v1759_v47  ;;  %v1326_v59 = vadd.f32 %v1325_v54, %v1324_v42  ;;  %v917_v21 = vmul.f32 %v707_v40, %v707_v40  ;;  %v853_v30 = vsel %vm793_vm1, %v707_v40, 0.0 }
 0x120   : > { %v1279_v58 = vpop.f32.mrf.mxu0  ;;  %v1327_v2 = vpop.f32.mrf.mxu1  ;;  %v852_v35 = vadd.f32 %v851_v18, %v850_v24  ;;  %v957_v45 = vadd.f32 %v956_v17, %v955_v34  ;;  %v923_v24 = vmul.f32 %v1613_v60, %v1613_v60 }
 0x121   : > { %v710_v63 = vadd.f32 %v1278_v52, %v1600_v51  ;;  %v1778_v1 = vadd.f32 %v1326_v59, %v1600_v51  ;;  %v958_v25 = vsel %vm793_vm1, %v917_v21, 0.0 }
 0x122   : > { %v1280_v7 = vpop.f32.mrf.mxu0  ;;  %v1328_v13 = vpop.f32.mrf.mxu1  ;;  %v854_v46 = vadd.f32 %v853_v30, %v852_v35 }
 0x123   : > { %805 = vst.msk [vmem:[%s1607_s15 + $0x58] sm:$0xff] %vm793_vm1, %v710_v63  ;;  %v1281_v49 = vadd.f32 %v1280_v7, %v1279_v58  ;;  %821 = vst.msk [vmem:[%s1607_s15 + $0xd8] sm:$0xff] %vm793_vm1, %v1778_v1  ;;  %v1329_v16 = vadd.f32 %v1328_v13, %v1327_v2  ;;  %v918_v31 = vmul.f32 %v710_v63, %v710_v63  ;;  %v855_v39 = vsel %vm793_vm1, %v710_v63, 0.0 }
 0x124   : > { %v1282_v15 = vpop.f32.mrf.mxu0  ;;  %v1330_v22 = vpop.f32.mrf.mxu1  ;;  %v959_v58 = vadd.f32 %v958_v25, %v957_v45  ;;  %v856_v59 = vadd.f32 %v855_v39, %v854_v46  ;;  %v925_v25 = vmul.f32 %v1637_v12, %v1637_v12 }
 0x125   : > { %v715_v0 = vadd.f32 %v1281_v49, %v1600_v51  ;;  %v1792_v29 = vadd.f32 %v1329_v16, %v1600_v51  ;;  %v960_v33 = vsel %vm793_vm1, %v918_v31, 0.0 }
 0x126   : > { %v1283_v27 = vpop.f32.mrf.mxu0  ;;  %v1331_v19 = vpop.f32.mrf.mxu1  ;;  %v961_v5 = vadd.f32 %v960_v33, %v959_v58  ;;  %v927_v33 = vmul.f32 %v1661_v28, %v1661_v28 }
 0x127   : > { %806 = vst.msk [vmem:[%s1607_s15 + $0x60] sm:$0xff] %vm793_vm1, %v715_v0  ;;  %v1284_v32 = vadd.f32 %v1283_v27, %v1282_v15  ;;  %822 = vst.msk [vmem:[%s1607_s15 + $0xe0] sm:$0xff] %vm793_vm1, %v1792_v29  ;;  %v1332_v38 = vadd.f32 %v1331_v19, %v1330_v22  ;;  %v919_v42 = vmul.f32 %v715_v0, %v715_v0  ;;  %v857_v52 = vsel %vm793_vm1, %v715_v0, 0.0 }
 0x128   : > { %v1285_v37 = vpop.f32.mrf.mxu0  ;;  %v1333_v43 = vpop.f32.mrf.mxu1  ;;  %v858_v7 = vadd.f32 %v857_v52, %v856_v59 }
 0x129   : > { %v718_v40 = vadd.f32 %v1284_v32, %v1600_v51  ;;  %v1805_v50 = vadd.f32 %v1332_v38, %v1600_v51  ;;  %v962_v62 = vsel %vm793_vm1, %v919_v42, 0.0  ;;  %v865_v32 = vsel %vm793_vm1, %v1613_v60, 0.0 }
 0x12a   : > { %v1286_v48 = vpop.f32.mrf.mxu0  ;;  %v1334_v56 = vpop.f32.mrf.mxu1  ;;  %v963_v15 = vadd.f32 %v962_v62, %v961_v5  ;;  %v867_v38 = vsel %vm793_vm1, %v1625_v4, 0.0  ;;  %v869_v60 = vsel %vm793_vm1, %v1637_v12, 0.0  ;;  %v873_v12 = vsel %vm793_vm1, %v1661_v28, 0.0 }
 0x12b   : > { %807 = vst.msk [vmem:[%s1607_s15 + $0x68] sm:$0xff] %vm793_vm1, %v718_v40  ;;  %v920_v54 = vmul.f32 %v718_v40, %v718_v40  ;;  %v1287_v55 = vadd.f32 %v1286_v48, %v1285_v37  ;;  %823 = vst.msk [vmem:[%s1607_s15 + $0xe8] sm:$0xff] %vm793_vm1, %v1805_v50  ;;  %v1335_v41 = vadd.f32 %v1334_v56, %v1333_v43  ;;  %v859_v63 = vsel %vm793_vm1, %v718_v40, 0.0 }
 0x12c   : > { %v1288_v61 = vpop.f32.mrf.mxu0  ;;  %v1336_v3 = vpop.f32.mrf.mxu1  ;;  %v860_v16 = vadd.f32 %v859_v63, %v858_v7  ;;  %v970_v37 = vsel %vm793_vm1, %v923_v24, 0.0  ;;  %v926_v43 = vmul.f32 %v1649_v20, %v1649_v20  ;;  %v974_v48 = vsel %vm793_vm1, %v925_v25, 0.0 }
 0x12d   : > { %v723_v2 = vadd.f32 %v1287_v55, %v1600_v51  ;;  %v1818_v10 = vadd.f32 %v1335_v41, %v1600_v51  ;;  %v964_v11 = vsel %vm793_vm1, %v920_v54, 0.0  ;;  %v928_v56 = vmul.f32 %v1673_v36, %v1673_v36 }
 0x12e   : > { %v1289_v8 = vpop.f32.mrf.mxu0  ;;  %v1337_v14 = vpop.f32.mrf.mxu1  ;;  %v965_v0 = vadd.f32 %v964_v11, %v963_v15  ;;  %v976_v55 = vsel %vm793_vm1, %v926_v43, 0.0  ;;  %v929_v41 = vmul.f32 %v1685_v44, %v1685_v44  ;;  %v877_v28 = vsel %vm793_vm1, %v1685_v44, 0.0 }
 0x12f   : > { %808 = vst.msk [vmem:[%s1607_s15 + $0x70] sm:$0xff] %vm793_vm1, %v723_v2  ;;  %v861_v49 = vsel %vm793_vm1, %v723_v2, 0.0  ;;  %v921_v13 = vmul.f32 %v723_v2, %v723_v2  ;;  %v1290_v57 = vadd.f32 %v1289_v8, %v1288_v61  ;;  %824 = vst.msk [vmem:[%s1607_s15 + $0xf0] sm:$0xff] %vm793_vm1, %v1818_v10  ;;  %v1338_v9 = vadd.f32 %v1337_v14, %v1336_v3 }
 0x130   : > { %v862_v22 = vadd.f32 %v861_v49, %v860_v16  ;;  %v978_v61 = vsel %vm793_vm1, %v927_v33, 0.0  ;;  %v980_v2 = vsel %vm793_vm1, %v928_v56, 0.0  ;;  %v930_v3 = vmul.f32 %v1697_v53, %v1697_v53 }
 0x131   : > { %v966_v18 = vsel %vm793_vm1, %v921_v13, 0.0  ;;  %v726_v21 = vadd.f32 %v1290_v57, %v1600_v51  ;;  %v1830_v23 = vadd.f32 %v1338_v9, %v1600_v51  ;;  %v924_v51 = vmul.f32 %v1625_v4, %v1625_v4 }
 0x132   : > { %v967_v30 = vadd.f32 %v966_v18, %v965_v0  ;;  %v871_v4 = vsel %vm793_vm1, %v1649_v20, 0.0  ;;  %v875_v20 = vsel %vm793_vm1, %v1673_v36, 0.0  ;;  %v982_v8 = vsel %vm793_vm1, %v929_v41, 0.0  ;;  %v833_v41 = vld [vmem:[%s1585_s7] sm:$0x1] }
 0x133   : > { %809 = vst.msk [vmem:[%s1607_s15 + $0x78] sm:$0xff] %vm793_vm1, %v726_v21  ;;  %v863_v27 = vsel %vm793_vm1, %v726_v21, 0.0  ;;  %v922_v17 = vmul.f32 %v726_v21, %v726_v21  ;;  %825 = vst.msk [vmem:[%s1607_s15 + $0xf8] sm:$0xff] %vm793_vm1, %v1830_v23  ;;  %v972_v40 = vsel %vm793_vm1, %v924_v51, 0.0  ;;  %v879_v36 = vsel %vm793_vm1, %v1697_v53, 0.0 }
 0x134   : > { %v864_v31 = vadd.f32 %v863_v27, %v862_v22  ;;  %v931_v11 = vmul.f32 %v1719_v6, %v1719_v6  ;;  %v984_v57 = vsel %vm793_vm1, %v930_v3, 0.0  ;;  %v881_v44 = vsel %vm793_vm1, %v1719_v6, 0.0 }
 0x135   : > { %v968_v19 = vsel %vm793_vm1, %v922_v17, 0.0  ;;  %v932_v14 = vmul.f32 %v1740_v26, %v1740_v26  ;;  %v883_v53 = vsel %vm793_vm1, %v1740_v26, 0.0  ;;  %v933_v18 = vmul.f32 %v1759_v47, %v1759_v47 }
 0x136   : > { %v866_v34 = vadd.f32 %v865_v32, %v864_v31  ;;  %v969_v35 = vadd.f32 %v968_v19, %v967_v30  ;;  %v986_v9 = vsel %vm793_vm1, %v931_v11, 0.0  ;;  %v885_v6 = vsel %vm793_vm1, %v1759_v47, 0.0 }
 0x137   : > { %v988_v22 = vsel %vm793_vm1, %v932_v14, 0.0  ;;  %v934_v24 = vmul.f32 %v1778_v1, %v1778_v1  ;;  %v990_v30 = vsel %vm793_vm1, %v933_v18, 0.0  ;;  %v887_v26 = vsel %vm793_vm1, %v1778_v1, 0.0 }
 0x138   : > { %v868_v39 = vadd.f32 %v867_v38, %v866_v34  ;;  %v971_v42 = vadd.f32 %v970_v37, %v969_v35  ;;  %v935_v31 = vmul.f32 %v1792_v29, %v1792_v29  ;;  %v889_v47 = vsel %vm793_vm1, %v1792_v29, 0.0 }
 0x139   : > { %v992_v19 = vsel %vm793_vm1, %v934_v24, 0.0  ;;  %v936_v34 = vmul.f32 %v1805_v50, %v1805_v50  ;;  %v891_v1 = vsel %vm793_vm1, %v1805_v50, 0.0  ;;  %v937_v25 = vmul.f32 %v1818_v10, %v1818_v10 }
 0x13a   : > { %v870_v45 = vadd.f32 %v869_v60, %v868_v39  ;;  %v973_v46 = vadd.f32 %v972_v40, %v971_v42  ;;  %v994_v38 = vsel %vm793_vm1, %v935_v31, 0.0  ;;  %v893_v29 = vsel %vm793_vm1, %v1818_v10, 0.0 }
 0x13b   : > { %v996_v40 = vsel %vm793_vm1, %v936_v34, 0.0  ;;  %v938_v60 = vmul.f32 %v1830_v23, %v1830_v23  ;;  %v895_v50 = vsel %vm793_vm1, %v1830_v23, 0.0 }
 0x13c   : > { %v872_v52 = vadd.f32 %v871_v4, %v870_v45  ;;  %v975_v54 = vadd.f32 %v974_v48, %v973_v46  ;;  %v998_v46 = vsel %vm793_vm1, %v937_v25, 0.0 }
 0x13d   : > { %v1000_v33 = vsel %vm793_vm1, %v938_v60, 0.0 }
 0x13e   : > { %v977_v58 = vadd.f32 %v976_v55, %v975_v54  ;;  %v874_v59 = vadd.f32 %v873_v12, %v872_v52 }
 0x140   : > { %v876_v62 = vadd.f32 %v875_v20, %v874_v59  ;;  %v979_v63 = vadd.f32 %v978_v61, %v977_v58 }
 0x142   : > { %v878_v5 = vadd.f32 %v877_v28, %v876_v62  ;;  %v981_v7 = vadd.f32 %v980_v2, %v979_v63  ;;  %v906_v63 = vld [vmem:[%s1591_s10] sm:$0x1] }
 0x144   : > { %v880_v49 = vadd.f32 %v879_v36, %v878_v5  ;;  %v983_v13 = vadd.f32 %v982_v8, %v981_v7 }
 0x146   : > { %v882_v15 = vadd.f32 %v881_v44, %v880_v49  ;;  %v985_v16 = vadd.f32 %v984_v57, %v983_v13 }
 0x148   : > { %v884_v21 = vadd.f32 %v883_v53, %v882_v15  ;;  %v987_v0 = vadd.f32 %v986_v9, %v985_v16 }
 0x14a   : > { %v989_v27 = vadd.f32 %v988_v22, %v987_v0  ;;  %v886_v17 = vadd.f32 %v885_v6, %v884_v21 }
 0x14c   : > { %v991_v32 = vadd.f32 %v990_v30, %v989_v27  ;;  %v888_v51 = vadd.f32 %v887_v26, %v886_v17 }
 0x14e   : > { %v993_v35 = vadd.f32 %v992_v19, %v991_v32  ;;  %v890_v37 = vadd.f32 %v889_v47, %v888_v51 }
 0x150   : > { %v995_v39 = vadd.f32 %v994_v38, %v993_v35  ;;  %v892_v42 = vadd.f32 %v891_v1, %v890_v37 }
 0x152   : > { %v997_v43 = vadd.f32 %v996_v40, %v995_v39  ;;  %v894_v45 = vadd.f32 %v893_v29, %v892_v42 }
 0x154   : > { %v999_v48 = vadd.f32 %v998_v46, %v997_v43  ;;  %v896_v4 = vadd.f32 %v895_v50, %v894_v45 }
 0x156   : > { %v897_v52 = vrot.slane %v896_v4, 4  ;;  %v1001_v54 = vadd.f32 %v1000_v33, %v999_v48 }
 0x158   : > { %v898_v10 = vadd.f32 %v897_v52, %v896_v4  ;;  %v1002_v55 = vrot.slane %v1001_v54, 4 }
 0x15a   : > { %v899_v12 = vrot.slane %v898_v10, 2  ;;  %v1003_v56 = vadd.f32 %v1002_v55, %v1001_v54 }
 0x15c   : > { %v900_v58 = vadd.f32 %v899_v12, %v898_v10  ;;  %v1004_v59 = vrot.slane %v1003_v56, 2 }
 0x15e   : > { %v901_v61 = vrot.slane %v900_v58, 1  ;;  %v1005_v20 = vadd.f32 %v1004_v59, %v1003_v56 }
 0x160   : > { %v902_v62 = vadd.f32 %v901_v61, %v900_v58  ;;  %v1006_v23 = vrot.slane %v1005_v20, 1 }
 0x162   : > { %v903_v2 = vadd.f32 %v902_v62, %v833_v41  ;;  %v1007_v28 = vadd.f32 %v1006_v23, %v1005_v20 }
 0x164   : > { %905 = vst.msk [vmem:[%s1585_s7] sm:$0x1] %vm830_vm0, %v903_v2  ;;  %v1008_v3 = vadd.f32 %v1007_v28, %v906_v63 }
 0x166   : > { %1009 = vst.msk [vmem:[%s1591_s10] sm:$0x1] %vm830_vm0, %v1008_v3 }
 0x167 PF: > { %s16_s20 = sadd.s32 1, %s1466_s20   ;;  %s1940_s18 = smov %s1462_s19 }
 0x168   : > { %p13_p5 = scmp.ge.s32.totalorder %s16_s20, 6   ;;  %s1941_s19 = smov %s1943_s21 }
 0x16a   :  { %15 = sbr.rel (!%p13_p5) target bundleno = 2 (0x2), region = 93 }

// kernel: conv_decoder_forward.18
= control target key start
LH: loop header
LB: loop body
LE: loop exit
PB: predicated region body
PF: predicated region fallthrough
CT: control target
= control target key end

     0   :  { %s719_s0 = inlined_call_operand.vmem [shape: f32[256,128], index: 0, kind: input, shape index: {}]   ;;  %s720_s1 = inlined_call_operand.vmem [shape: f32[1,128], index: 1, kind: input, shape index: {}]   ;;  %s721_s2 = inlined_call_operand.vmem [shape: f32[1,128], index: 2, kind: input, shape index: {}]   ;;  %s722_s3 = inlined_call_operand.vmem [shape: bf16[256,128], index: 3, kind: output, shape index: {}]  }
   0x1   :  { %v14_v0 = vld [vmem:[%s719_s0] sm:$0xff]  ;;  %v15_v1 = vld [vmem:[%s719_s0 + $0x8] sm:$0xff]  ;;  %v16_v6 = vld [vmem:[%s719_s0 + $0x10] sm:$0xff] }
   0x2   :  { %v510_v2 = vld [vmem:[%s720_s1] ss:$0 sm:$0xff]  ;;  %v17_v7 = vld [vmem:[%s719_s0 + $0x18] sm:$0xff]  ;;  %v19_v11 = vld [vmem:[%s719_s0 + $0x28] sm:$0xff] }
   0x3   :  { %v53_v3 = vmul.f32 %v510_v2, %v14_v0  ;;  %v54_v4 = vmul.f32 %v510_v2, %v15_v1  ;;  %v517_v5 = vld [vmem:[%s721_s2] ss:$0 sm:$0xff]  ;;  %v55_v8 = vmul.f32 %v510_v2, %v16_v6  ;;  %v56_v9 = vmul.f32 %v510_v2, %v17_v7  ;;  %v20_v12 = vld [vmem:[%s719_s0 + $0x30] sm:$0xff]  ;;  %v21_v17 = vld [vmem:[%s719_s0 + $0x38] sm:$0xff] }
   0x4   :  { %v18_v10 = vld [vmem:[%s719_s0 + $0x20] sm:$0xff]  ;;  %v58_v16 = vmul.f32 %v510_v2, %v19_v11  ;;  %v59_v20 = vmul.f32 %v510_v2, %v20_v12  ;;  %v60_v21 = vmul.f32 %v510_v2, %v21_v17  ;;  %v23_v27 = vld [vmem:[%s719_s0 + $0x48] sm:$0xff]  ;;  %v24_v32 = vld [vmem:[%s719_s0 + $0x50] sm:$0xff] }
   0x5   :  { %v92_v13 = vadd.f32 %v517_v5, %v53_v3  ;;  %v93_v14 = vadd.f32 %v517_v5, %v54_v4  ;;  %v57_v15 = vmul.f32 %v510_v2, %v18_v10  ;;  %v94_v18 = vadd.f32 %v517_v5, %v55_v8  ;;  %v22_v22 = vld [vmem:[%s719_s0 + $0x40] sm:$0xff]  ;;  %v25_v33 = vld [vmem:[%s719_s0 + $0x58] sm:$0xff]  ;;  %v27_v39 = vld [vmem:[%s719_s0 + $0x68] sm:$0xff] }
   0x6   :  { %v95_v19 = vadd.f32 %v517_v5, %v56_v9  ;;  %v97_v26 = vadd.f32 %v517_v5, %v58_v16  ;;  %v98_v30 = vadd.f32 %v517_v5, %v59_v20  ;;  %v99_v31 = vadd.f32 %v517_v5, %v60_v21  ;;  %v26_v38 = vld [vmem:[%s719_s0 + $0x60] sm:$0xff]  ;;  %v28_v44 = vld [vmem:[%s719_s0 + $0x70] sm:$0xff]  ;;  %v29_v49 = vld [vmem:[%s719_s0 + $0x78] sm:$0xff] }
   0x7   :  { %v124_v23 = vmax.f32 %v92_v13, 0.0  ;;  %v125_v24 = vmax.f32 %v93_v14, 0.0  ;;  %v96_v25 = vadd.f32 %v517_v5, %v57_v15  ;;  %v126_v28 = vmax.f32 %v94_v18, 0.0  ;;  %v30_v54 = vld [vmem:[%s719_s0 + $0x80] sm:$0xff]  ;;  %v31_v63 = vld [vmem:[%s719_s0 + $0x88] sm:$0xff]  ;;  %v32_v6 = vld [vmem:[%s719_s0 + $0x90] sm:$0xff] }
   0x8   :  { %v127_v29 = vmax.f32 %v95_v19, 0.0  ;;  %v129_v36 = vmax.f32 %v97_v26, 0.0  ;;  %v61_v37 = vmul.f32 %v510_v2, %v22_v22  ;;  %v130_v41 = vmax.f32 %v98_v30, 0.0  ;;  %v33_v7 = vld [vmem:[%s719_s0 + $0x98] sm:$0xff]  ;;  %v34_v12 = vld [vmem:[%s719_s0 + $0xa0] sm:$0xff]  ;;  %v35_v13 = vld [vmem:[%s719_s0 + $0xa8] sm:$0xff] }
   0x9   :  { %v389_v34 = vpack.c.bf16 %v125_v24, %v124_v23  ;;  %v128_v35 = vmax.f32 %v96_v25, 0.0  ;;  %v131_v42 = vmax.f32 %v99_v31, 0.0  ;;  %v62_v43 = vmul.f32 %v510_v2, %v23_v27  ;;  %v36_v18 = vld [vmem:[%s719_s0 + $0xb0] sm:$0xff]  ;;  %v37_v23 = vld [vmem:[%s719_s0 + $0xb8] sm:$0xff] }
   0xa   :  { %v394_v40 = vpack.c.bf16 %v127_v29, %v126_v28  ;;  %v100_v46 = vadd.f32 %v517_v5, %v61_v37  ;;  %v63_v47 = vmul.f32 %v510_v2, %v24_v32  ;;  %v64_v48 = vmul.f32 %v510_v2, %v25_v33  ;;  %v38_v28 = vld [vmem:[%s719_s0 + $0xc0] sm:$0xff]  ;;  %v39_v37 = vld [vmem:[%s719_s0 + $0xc8] sm:$0xff] }
   0xb   :  { %390 = vst [vmem:[%s722_s3] sm:$0xff] %v389_v34   ;;  %v399_v45 = vpack.c.bf16 %v129_v36, %v128_v35  ;;  %v404_v50 = vpack.c.bf16 %v131_v42, %v130_v41  ;;  %v101_v51 = vadd.f32 %v517_v5, %v62_v43  ;;  %v65_v52 = vmul.f32 %v510_v2, %v26_v38  ;;  %v40_v42 = vld [vmem:[%s719_s0 + $0xd0] sm:$0xff]  ;;  %v41_v43 = vld [vmem:[%s719_s0 + $0xd8] sm:$0xff] }
   0xc   :  { %466 = vst [vmem:[%s722_s3 + $0x8] sm:$0xff] %v394_v40   ;;  %v66_v53 = vmul.f32 %v510_v2, %v27_v39  ;;  %v132_v55 = vmax.f32 %v100_v46, 0.0  ;;  %v102_v56 = vadd.f32 %v517_v5, %v63_v47  ;;  %v103_v57 = vadd.f32 %v517_v5, %v64_v48  ;;  %v42_v48 = vld [vmem:[%s719_s0 + $0xe0] sm:$0xff] }
   0xd   :  { %467 = vst [vmem:[%s722_s3 + $0x10] sm:$0xff] %v399_v45   ;;  %v67_v58 = vmul.f32 %v510_v2, %v28_v44  ;;  %468 = vst [vmem:[%s722_s3 + $0x18] sm:$0xff] %v404_v50   ;;  %v133_v59 = vmax.f32 %v101_v51, 0.0  ;;  %v104_v60 = vadd.f32 %v517_v5, %v65_v52  ;;  %v68_v62 = vmul.f32 %v510_v2, %v29_v49  ;;  %v43_v49 = vld [vmem:[%s719_s0 + $0xe8] sm:$0xff] }
   0xe   :  { %v105_v61 = vadd.f32 %v517_v5, %v66_v53  ;;  %v134_v0 = vmax.f32 %v102_v56, 0.0  ;;  %v135_v1 = vmax.f32 %v103_v57, 0.0  ;;  %v69_v4 = vmul.f32 %v510_v2, %v30_v54  ;;  %v44_v54 = vld [vmem:[%s719_s0 + $0xf0] sm:$0xff] }
   0xf   :  { %v106_v3 = vadd.f32 %v517_v5, %v67_v58  ;;  %v409_v8 = vpack.c.bf16 %v133_v59, %v132_v55  ;;  %v136_v9 = vmax.f32 %v104_v60, 0.0  ;;  %v107_v11 = vadd.f32 %v517_v5, %v68_v62  ;;  %v45_v59 = vld [vmem:[%s719_s0 + $0xf8] sm:$0xff] }
  0x10   :  { %v137_v10 = vmax.f32 %v105_v61, 0.0  ;;  %v414_v14 = vpack.c.bf16 %v135_v1, %v134_v0  ;;  %v70_v16 = vmul.f32 %v510_v2, %v31_v63  ;;  %v108_v17 = vadd.f32 %v517_v5, %v69_v4 }
  0x11   :  { %v138_v15 = vmax.f32 %v106_v3, 0.0  ;;  %469 = vst [vmem:[%s722_s3 + $0x20] sm:$0xff] %v409_v8   ;;  %v139_v20 = vmax.f32 %v107_v11, 0.0  ;;  %v71_v21 = vmul.f32 %v510_v2, %v32_v6  ;;  %v72_v22 = vmul.f32 %v510_v2, %v33_v7 }
  0x12   :  { %v419_v19 = vpack.c.bf16 %v137_v10, %v136_v9  ;;  %470 = vst [vmem:[%s722_s3 + $0x28] sm:$0xff] %v414_v14   ;;  %v109_v24 = vadd.f32 %v517_v5, %v70_v16  ;;  %v140_v25 = vmax.f32 %v108_v17, 0.0  ;;  %v73_v26 = vmul.f32 %v510_v2, %v34_v12 }
  0x13   :  { %v74_v27 = vmul.f32 %v510_v2, %v35_v13  ;;  %v424_v29 = vpack.c.bf16 %v139_v20, %v138_v15  ;;  %v110_v30 = vadd.f32 %v517_v5, %v71_v21  ;;  %v111_v31 = vadd.f32 %v517_v5, %v72_v22 }
  0x14   :  { %471 = vst [vmem:[%s722_s3 + $0x30] sm:$0xff] %v419_v19   ;;  %v75_v32 = vmul.f32 %v510_v2, %v36_v18  ;;  %v141_v33 = vmax.f32 %v109_v24, 0.0  ;;  %v112_v34 = vadd.f32 %v517_v5, %v73_v26  ;;  %v76_v36 = vmul.f32 %v510_v2, %v37_v23 }
  0x15   :  { %v113_v35 = vadd.f32 %v517_v5, %v74_v27  ;;  %472 = vst [vmem:[%s722_s3 + $0x38] sm:$0xff] %v424_v29   ;;  %v142_v38 = vmax.f32 %v110_v30, 0.0  ;;  %v143_v39 = vmax.f32 %v111_v31, 0.0  ;;  %v77_v41 = vmul.f32 %v510_v2, %v38_v28 }
  0x16   :  { %v114_v40 = vadd.f32 %v517_v5, %v75_v32  ;;  %v429_v44 = vpack.c.bf16 %v141_v33, %v140_v25  ;;  %v144_v45 = vmax.f32 %v112_v34, 0.0  ;;  %v115_v47 = vadd.f32 %v517_v5, %v76_v36 }
  0x17   :  { %v145_v46 = vmax.f32 %v113_v35, 0.0  ;;  %v434_v50 = vpack.c.bf16 %v143_v39, %v142_v38  ;;  %v78_v52 = vmul.f32 %v510_v2, %v39_v37  ;;  %v116_v53 = vadd.f32 %v517_v5, %v77_v41 }
  0x18   :  { %v146_v51 = vmax.f32 %v114_v40, 0.0  ;;  %473 = vst [vmem:[%s722_s3 + $0x40] sm:$0xff] %v429_v44   ;;  %v147_v56 = vmax.f32 %v115_v47, 0.0  ;;  %v79_v57 = vmul.f32 %v510_v2, %v40_v42  ;;  %v80_v58 = vmul.f32 %v510_v2, %v41_v43 }
  0x19   :  { %v439_v55 = vpack.c.bf16 %v145_v46, %v144_v45  ;;  %474 = vst [vmem:[%s722_s3 + $0x48] sm:$0xff] %v434_v50   ;;  %v117_v60 = vadd.f32 %v517_v5, %v78_v52  ;;  %v148_v61 = vmax.f32 %v116_v53, 0.0  ;;  %v81_v62 = vmul.f32 %v510_v2, %v42_v48 }
  0x1a   :  { %v82_v63 = vmul.f32 %v510_v2, %v43_v49  ;;  %v444_v0 = vpack.c.bf16 %v147_v56, %v146_v51  ;;  %v118_v1 = vadd.f32 %v517_v5, %v79_v57  ;;  %v119_v3 = vadd.f32 %v517_v5, %v80_v58 }
  0x1b   :  { %475 = vst [vmem:[%s722_s3 + $0x50] sm:$0xff] %v439_v55   ;;  %v83_v4 = vmul.f32 %v510_v2, %v44_v54  ;;  %v149_v6 = vmax.f32 %v117_v60, 0.0  ;;  %v120_v7 = vadd.f32 %v517_v5, %v81_v62  ;;  %v84_v9 = vmul.f32 %v510_v2, %v45_v59 }
  0x1c   :  { %v121_v8 = vadd.f32 %v517_v5, %v82_v63  ;;  %476 = vst [vmem:[%s722_s3 + $0x58] sm:$0xff] %v444_v0   ;;  %v150_v10 = vmax.f32 %v118_v1, 0.0  ;;  %v151_v11 = vmax.f32 %v119_v3, 0.0 }
  0x1d   :  { %v122_v12 = vadd.f32 %v517_v5, %v83_v4  ;;  %v449_v13 = vpack.c.bf16 %v149_v6, %v148_v61  ;;  %v152_v14 = vmax.f32 %v120_v7, 0.0  ;;  %v123_v16 = vadd.f32 %v517_v5, %v84_v9 }
  0x1e   :  { %v153_v15 = vmax.f32 %v121_v8, 0.0  ;;  %v454_v17 = vpack.c.bf16 %v151_v11, %v150_v10 }
  0x1f   :  { %v154_v18 = vmax.f32 %v122_v12, 0.0  ;;  %477 = vst [vmem:[%s722_s3 + $0x60] sm:$0xff] %v449_v13   ;;  %v155_v19 = vmax.f32 %v123_v16, 0.0 }
  0x20   :  { %v459_v2 = vpack.c.bf16 %v153_v15, %v152_v14  ;;  %478 = vst [vmem:[%s722_s3 + $0x68] sm:$0xff] %v454_v17  }
  0x21   :  { %v464_v20 = vpack.c.bf16 %v155_v19, %v154_v18 }
  0x22   :  { %479 = vst [vmem:[%s722_s3 + $0x70] sm:$0xff] %v459_v2  }
  0x23   :  { %480 = vst [vmem:[%s722_s3 + $0x78] sm:$0xff] %v464_v20  }

// kernel: conv_decoder_forward.19
= control target key start
LH: loop header
LB: loop body
LE: loop exit
PB: predicated region body
PF: predicated region fallthrough
CT: control target
= control target key end

     0   :  { %s2846_s18 = smov 0   ;;  %s2848_s19 = smov 0   ;;  %s4180_s0 = inlined_call_operand.vmem [shape: bf16[4,1024,128], index: 0, kind: input, shape index: {}]   ;;  %s4181_s1 = inlined_call_operand.vmem [shape: bf16[4,128,32], index: 1, kind: input, shape index: {}]   ;;  %s4182_s2 = inlined_call_operand.vmem [shape: f32[1,32], index: 2, kind: input, shape index: {}]   ;;  %s4183_s3 = inlined_call_operand.vmem [shape: f32[4,1024,32], index: 3, kind: output, shape index: {0}]   ;;  %s4184_s4 = inlined_call_operand.vmem [shape: f32[4,1,32], index: 4, kind: output, shape index: {1}]   ;;  %s4185_s5 = inlined_call_operand.vmem [shape: f32[4,1,32], index: 5, kind: output, shape index: {2}]  }
   0x1   :  { %s2850_s20 = smov 0  }
   0x2 LB: > { %s28_s21 = sadd.s32 1, %s2809_s19  ;;  %p2376_p0 = scmp.ge.s32.totalorder %s2813_s20, 1  ;;  %s2813_s20 = sphi %s2850_s20, %s16_s20   ;;  %s2809_s19 = sphi %s2848_s19, %s4219_s19   ;;  %s2805_s18 = sphi %s2846_s18, %s4218_s18  }
   0x3   : > { %p30_p1 = scmp.ge.s32.totalorder %s28_s21, 4  ;;  %p223_p2 = scmp.lt.s32.totalorder %s2813_s20, 5 }
   0x5   : > { %s4221_s21 = smov (%p30_p1, %s28_s21), 0  ;;  %p224_p3 = pnand %p2376_p0, %p223_p2 }
   0x7   : > { %227 = sbr.rel (%p224_p3) target bundleno = 523 (0x20b), region = 32 }
   0xc   : > { %p271_p4 = scmp.lt.s32.totalorder %s2805_s18, 3  ;;  %vm1430_vm0 = vcmask 261120   ;;  %vm1563_vm1 = vcmask 253952  }
   0xe   : > { %s4223_s18 = smov (!%p271_p4, %s2805_s18), 3 }
   0xf   : > { %s2459_s22 = sshll.u32 %s4223_s18, 6  ;;  %s2458_s26 = sshll.u32 %s4223_s18, 9 }
  0x10   : > { %s2870_s25 = scalar_lea.vmem %s4181_s1, %s2459_s22  ;;  %s2879_s29 = scalar_lea.vmem %s4180_s0, %s2458_s26 }
  0x11   : > { %v2718_v0 = vld [vmem:[%s2870_s25 + $0x38] sm:$0xff]   ;;  %v2719_v1 = vld [vmem:[%s2870_s25 + $0x30] sm:$0xff]   ;;  %v2720_v2 = vld [vmem:[%s2870_s25 + $0x28] sm:$0xff]   ;;  %s2460_s30 = sshll.u32 %s4223_s18, 10  ;;  %s3928_s15 = scalar_lea.vmem %s4184_s4, %s4223_s18 }
  0x12   : > { %2533 = vmatprep.subr.bf16.mxu0 %v2718_v0  ;;  %2677 = vmatprep.subr.bf16.mxu1 %v2718_v0  ;;  %v2721_v3 = vld [vmem:[%s2870_s25 + $0x20] sm:$0xff]   ;;  %v2722_v5 = vld [vmem:[%s2870_s25 + $0x18] sm:$0xff]   ;;  %v2723_v6 = vld [vmem:[%s2870_s25 + $0x10] sm:$0xff]   ;;  %s2959_s10 = scalar_lea.vmem %s4183_s3, %s2460_s30  ;;  %s3934_s22 = scalar_lea.vmem %s4185_s5, %s4223_s18 }
  0x13   : > { %2534 = vmatpush3.bf16.msra.mxu0 %v2718_v0  ;;  %2685 = vmatpush3.bf16.msra.mxu1 %v2718_v0  ;;  %v2726_v4 = vld [vmem:[%s2879_s29] sm:$0xff]   ;;  %v2724_v7 = vld [vmem:[%s2870_s25 + $0x8] sm:$0xff]   ;;  %v2728_v10 = vld [vmem:[%s2879_s29 + $0x10] sm:$0xff]  }
  0x14   : > { %2535 = vmatprep.subr.bf16.mxu0 %v2719_v1  ;;  %2678 = vmatprep.subr.bf16.mxu1 %v2719_v1  ;;  %v2725_v8 = vld [vmem:[%s2870_s25] sm:$0xff]   ;;  %v2727_v9 = vld [vmem:[%s2879_s29 + $0x8] sm:$0xff]   ;;  %v2729_v11 = vld [vmem:[%s2879_s29 + $0x18] sm:$0xff]  }
  0x15   : > { %2549 = vmatprep.mubr.bf16.mxu0 %v2726_v4  ;;  %v2730_v12 = vld [vmem:[%s2879_s29 + $0x20] sm:$0xff]   ;;  %v2759_v14 = vld [vmem:[%s2879_s29 + $0x108] sm:$0xff]   ;;  %v2760_v15 = vld [vmem:[%s2879_s29 + $0x110] sm:$0xff]  }
  0x16   : > { %v2758_v13 = vld [vmem:[%s2879_s29 + $0x100] sm:$0xff]   ;;  %v2731_v16 = vld [vmem:[%s2879_s29 + $0x28] sm:$0xff]   ;;  %v2732_v17 = vld [vmem:[%s2879_s29 + $0x30] sm:$0xff]  }
  0x17   : > { %2536 = vmatpush3.bf16.msra.mxu0 %v2719_v1  ;;  %2686 = vmatpush3.bf16.msra.mxu1 %v2719_v1  ;;  %v2761_v18 = vld [vmem:[%s2879_s29 + $0x118] sm:$0xff]   ;;  %v2762_v19 = vld [vmem:[%s2879_s29 + $0x120] sm:$0xff]   ;;  %v2763_v22 = vld [vmem:[%s2879_s29 + $0x128] sm:$0xff]  }
  0x18   : > { %2537 = vmatprep.subr.bf16.mxu0 %v2720_v2  ;;  %2679 = vmatprep.subr.bf16.mxu1 %v2720_v2  ;;  %v2733_v20 = vld [vmem:[%s2879_s29 + $0x38] sm:$0xff]   ;;  %v2734_v21 = vld [vmem:[%s2879_s29 + $0x40] sm:$0xff]   ;;  %v2764_v23 = vld [vmem:[%s2879_s29 + $0x130] sm:$0xff]  }
  0x19   : > { %2613 = vmatprep.mubr.bf16.mxu1 %v2758_v13  ;;  %v2735_v24 = vld [vmem:[%s2879_s29 + $0x48] sm:$0xff]   ;;  %v2736_v25 = vld [vmem:[%s2879_s29 + $0x50] sm:$0xff]   ;;  %v2765_v26 = vld [vmem:[%s2879_s29 + $0x138] sm:$0xff]  }
  0x1a   : > { %v2766_v27 = vld [vmem:[%s2879_s29 + $0x140] sm:$0xff]   ;;  %v2737_v28 = vld [vmem:[%s2879_s29 + $0x58] sm:$0xff]   ;;  %v2767_v30 = vld [vmem:[%s2879_s29 + $0x148] sm:$0xff]  }
  0x1b   : > { %2538 = vmatpush3.bf16.msra.mxu0 %v2720_v2  ;;  %2687 = vmatpush3.bf16.msra.mxu1 %v2720_v2  ;;  %v2738_v29 = vld [vmem:[%s2879_s29 + $0x60] sm:$0xff]   ;;  %v2768_v31 = vld [vmem:[%s2879_s29 + $0x150] sm:$0xff]   ;;  %v2739_v32 = vld [vmem:[%s2879_s29 + $0x68] sm:$0xff]  }
  0x1c   : > { %2539 = vmatprep.subr.bf16.mxu0 %v2721_v3  ;;  %2680 = vmatprep.subr.bf16.mxu1 %v2721_v3  ;;  %v2740_v33 = vld [vmem:[%s2879_s29 + $0x70] sm:$0xff]   ;;  %v2769_v34 = vld [vmem:[%s2879_s29 + $0x158] sm:$0xff]   ;;  %v2770_v35 = vld [vmem:[%s2879_s29 + $0x160] sm:$0xff]  }
  0x1d   : > { %v2741_v36 = vld [vmem:[%s2879_s29 + $0x78] sm:$0xff]   ;;  %v2742_v37 = vld [vmem:[%s2879_s29 + $0x80] sm:$0xff]   ;;  %v2771_v38 = vld [vmem:[%s2879_s29 + $0x168] sm:$0xff]  }
  0x1e   : > { %v2772_v39 = vld [vmem:[%s2879_s29 + $0x170] sm:$0xff]   ;;  %v2743_v40 = vld [vmem:[%s2879_s29 + $0x88] sm:$0xff]   ;;  %v2773_v42 = vld [vmem:[%s2879_s29 + $0x178] sm:$0xff]  }
  0x1f   : > { %2540 = vmatpush3.bf16.msra.mxu0 %v2721_v3  ;;  %2688 = vmatpush3.bf16.msra.mxu1 %v2721_v3  ;;  %v2744_v41 = vld [vmem:[%s2879_s29 + $0x90] sm:$0xff]   ;;  %v2774_v43 = vld [vmem:[%s2879_s29 + $0x180] sm:$0xff]   ;;  %v2745_v44 = vld [vmem:[%s2879_s29 + $0x98] sm:$0xff]  }
  0x20   : > { %2541 = vmatprep.subr.bf16.mxu0 %v2722_v5  ;;  %2681 = vmatprep.subr.bf16.mxu1 %v2722_v5  ;;  %v2746_v45 = vld [vmem:[%s2879_s29 + $0xa0] sm:$0xff]   ;;  %v2775_v46 = vld [vmem:[%s2879_s29 + $0x188] sm:$0xff]   ;;  %v2776_v47 = vld [vmem:[%s2879_s29 + $0x190] sm:$0xff]  }
  0x21   : > { %v2747_v48 = vld [vmem:[%s2879_s29 + $0xa8] sm:$0xff]   ;;  %v2748_v49 = vld [vmem:[%s2879_s29 + $0xb0] sm:$0xff]   ;;  %v2777_v50 = vld [vmem:[%s2879_s29 + $0x198] sm:$0xff]  }
  0x22   : > { %v2778_v51 = vld [vmem:[%s2879_s29 + $0x1a0] sm:$0xff]   ;;  %v2749_v52 = vld [vmem:[%s2879_s29 + $0xb8] sm:$0xff]   ;;  %v2779_v54 = vld [vmem:[%s2879_s29 + $0x1a8] sm:$0xff]  }
  0x23   : > { %2542 = vmatpush3.bf16.msra.mxu0 %v2722_v5  ;;  %2689 = vmatpush3.bf16.msra.mxu1 %v2722_v5  ;;  %v2750_v53 = vld [vmem:[%s2879_s29 + $0xc0] sm:$0xff]   ;;  %v2780_v55 = vld [vmem:[%s2879_s29 + $0x1b0] sm:$0xff]   ;;  %v2751_v56 = vld [vmem:[%s2879_s29 + $0xc8] sm:$0xff]  }
  0x24   : > { %2543 = vmatprep.subr.bf16.mxu0 %v2723_v6  ;;  %2682 = vmatprep.subr.bf16.mxu1 %v2723_v6  ;;  %v2752_v57 = vld [vmem:[%s2879_s29 + $0xd0] sm:$0xff]   ;;  %v2781_v58 = vld [vmem:[%s2879_s29 + $0x1b8] sm:$0xff]   ;;  %v2782_v59 = vld [vmem:[%s2879_s29 + $0x1c0] sm:$0xff]  }
  0x25   : > { %v2753_v60 = vld [vmem:[%s2879_s29 + $0xd8] sm:$0xff]   ;;  %v2754_v61 = vld [vmem:[%s2879_s29 + $0xe0] sm:$0xff]   ;;  %v2783_v62 = vld [vmem:[%s2879_s29 + $0x1c8] sm:$0xff]  }
  0x26   : > { %v2784_v63 = vld [vmem:[%s2879_s29 + $0x1d0] sm:$0xff]   ;;  %v2755_v0 = vld [vmem:[%s2879_s29 + $0xe8] sm:$0xff]   ;;  %v2785_v2 = vld [vmem:[%s2879_s29 + $0x1d8] sm:$0xff]  }
  0x27   : > { %2544 = vmatpush3.bf16.msra.mxu0 %v2723_v6  ;;  %2690 = vmatpush3.bf16.msra.mxu1 %v2723_v6  ;;  %v2756_v1 = vld [vmem:[%s2879_s29 + $0xf0] sm:$0xff]   ;;  %v2786_v3 = vld [vmem:[%s2879_s29 + $0x1e0] sm:$0xff]   ;;  %v2757_v4 = vld [vmem:[%s2879_s29 + $0xf8] sm:$0xff]  }
  0x28   : > { %2545 = vmatprep.subr.bf16.mxu0 %v2724_v7  ;;  %2683 = vmatprep.subr.bf16.mxu1 %v2724_v7  ;;  %v2787_v5 = vld [vmem:[%s2879_s29 + $0x1e8] sm:$0xff]   ;;  %v2788_v6 = vld [vmem:[%s2879_s29 + $0x1f0] sm:$0xff]  }
  0x2b   : > { %2546 = vmatpush3.bf16.msra.mxu0 %v2724_v7  ;;  %2691 = vmatpush3.bf16.msra.mxu1 %v2724_v7  ;;  %v2789_v7 = vld [vmem:[%s2879_s29 + $0x1f8] sm:$0xff]  }
  0x2c   : > { %2547 = vmatprep.subr.bf16.mxu0 %v2725_v8  ;;  %2684 = vmatprep.subr.bf16.mxu1 %v2725_v8 }
  0x2f   : > { %2548 = vmatpush3.bf16.msra.mxu0 %v2725_v8  ;;  %2692 = vmatpush3.bf16.msra.mxu1 %v2725_v8  ;;  %v2954_v8 = vld [vmem:[%s4182_s2] ss:$0 sm:$0xff] }
  0x32   : > { %2550 = vmatmul.mubr.bf16.vlgmr.msra.gmra.mxu0 %v2727_v9  ;;  %2614 = vmatmul.mubr.bf16.vlgmr.msra.gmra.mxu1 %v2759_v14 }
  0x33   : > { %2553 = vmatprep.mubr.bf16.mxu0 %v2728_v10  ;;  %2617 = vmatprep.mubr.bf16.mxu1 %v2760_v15 }
  0x3a   : > { %2554 = vmatmul.mubr.bf16.gmra.mxu0 %v2729_v11  ;;  %2618 = vmatmul.mubr.bf16.gmra.mxu1 %v2761_v18 }
  0x3b   : > { %2557 = vmatprep.mubr.bf16.mxu0 %v2730_v12  ;;  %2621 = vmatprep.mubr.bf16.mxu1 %v2762_v19 }
  0x42   : > { %2558 = vmatmul.mubr.bf16.gmra.mxu0 %v2731_v16  ;;  %2622 = vmatmul.mubr.bf16.gmra.mxu1 %v2763_v22 }
  0x43   : > { %2561 = vmatprep.mubr.bf16.mxu0 %v2732_v17  ;;  %2625 = vmatprep.mubr.bf16.mxu1 %v2764_v23 }
  0x4a   : > { %2562 = vmatmul.mubr.bf16.gmra.mxu0 %v2733_v20  ;;  %2626 = vmatmul.mubr.bf16.gmra.mxu1 %v2765_v26 }
  0x4b   : > { %2565 = vmatprep.mubr.bf16.mxu0 %v2734_v21  ;;  %2629 = vmatprep.mubr.bf16.mxu1 %v2766_v27 }
  0x52   : > { %2566 = vmatmul.mubr.bf16.gmra.mxu0 %v2735_v24  ;;  %2630 = vmatmul.mubr.bf16.gmra.mxu1 %v2767_v30 }
  0x53   : > { %2569 = vmatprep.mubr.bf16.mxu0 %v2736_v25  ;;  %2633 = vmatprep.mubr.bf16.mxu1 %v2768_v31 }
  0x5a   : > { %2570 = vmatmul.mubr.bf16.gmra.mxu0 %v2737_v28  ;;  %2634 = vmatmul.mubr.bf16.gmra.mxu1 %v2769_v34 }
  0x5b   : > { %2573 = vmatprep.mubr.bf16.mxu0 %v2738_v29  ;;  %2637 = vmatprep.mubr.bf16.mxu1 %v2770_v35 }
  0x62   : > { %2574 = vmatmul.mubr.bf16.gmra.mxu0 %v2739_v32  ;;  %2638 = vmatmul.mubr.bf16.gmra.mxu1 %v2771_v38 }
  0x63   : > { %2577 = vmatprep.mubr.bf16.mxu0 %v2740_v33  ;;  %2641 = vmatprep.mubr.bf16.mxu1 %v2772_v39 }
  0x6a   : > { %2578 = vmatmul.mubr.bf16.gmra.mxu0 %v2741_v36  ;;  %2642 = vmatmul.mubr.bf16.gmra.mxu1 %v2773_v42 }
  0x6b   : > { %2581 = vmatprep.mubr.bf16.mxu0 %v2742_v37  ;;  %2645 = vmatprep.mubr.bf16.mxu1 %v2774_v43 }
  0x72   : > { %2582 = vmatmul.mubr.bf16.gmra.mxu0 %v2743_v40  ;;  %2646 = vmatmul.mubr.bf16.gmra.mxu1 %v2775_v46 }
  0x73   : > { %2585 = vmatprep.mubr.bf16.mxu0 %v2744_v41  ;;  %2649 = vmatprep.mubr.bf16.mxu1 %v2776_v47 }
  0x7a   : > { %2586 = vmatmul.mubr.bf16.gmra.mxu0 %v2745_v44  ;;  %2650 = vmatmul.mubr.bf16.gmra.mxu1 %v2777_v50 }
  0x7b   : > { %2589 = vmatprep.mubr.bf16.mxu0 %v2746_v45  ;;  %2653 = vmatprep.mubr.bf16.mxu1 %v2778_v51 }
  0x82   : > { %2590 = vmatmul.mubr.bf16.gmra.mxu0 %v2747_v48  ;;  %2654 = vmatmul.mubr.bf16.gmra.mxu1 %v2779_v54 }
  0x83   : > { %2593 = vmatprep.mubr.bf16.mxu0 %v2748_v49  ;;  %2657 = vmatprep.mubr.bf16.mxu1 %v2780_v55 }
  0x8a   : > { %2594 = vmatmul.mubr.bf16.gmra.mxu0 %v2749_v52  ;;  %2658 = vmatmul.mubr.bf16.gmra.mxu1 %v2781_v58 }
  0x8b   : > { %2597 = vmatprep.mubr.bf16.mxu0 %v2750_v53  ;;  %2661 = vmatprep.mubr.bf16.mxu1 %v2782_v59 }
  0x92   : > { %2598 = vmatmul.mubr.bf16.gmra.mxu0 %v2751_v56  ;;  %2662 = vmatmul.mubr.bf16.gmra.mxu1 %v2783_v62 }
  0x93   : > { %2601 = vmatprep.mubr.bf16.mxu0 %v2752_v57  ;;  %2665 = vmatprep.mubr.bf16.mxu1 %v2784_v63 }
  0x9a   : > { %2602 = vmatmul.mubr.bf16.gmra.mxu0 %v2753_v60  ;;  %2666 = vmatmul.mubr.bf16.gmra.mxu1 %v2785_v2 }
  0x9b   : > { %2605 = vmatprep.mubr.bf16.mxu0 %v2754_v61  ;;  %2669 = vmatprep.mubr.bf16.mxu1 %v2786_v3 }
  0xa2   : > { %2606 = vmatmul.mubr.bf16.gmra.mxu0 %v2755_v0  ;;  %2670 = vmatmul.mubr.bf16.gmra.mxu1 %v2787_v5 }
  0xa3   : > { %2609 = vmatprep.mubr.bf16.mxu0 %v2756_v1  ;;  %2673 = vmatprep.mubr.bf16.mxu1 %v2788_v6 }
  0xaa   : > { %2610 = vmatmul.mubr.bf16.gmra.mxu0 %v2757_v4  ;;  %2674 = vmatmul.mubr.bf16.gmra.mxu1 %v2789_v7 }
  0xf2   : > { %v2551_v9 = vpop.f32.mrf.mxu0  ;;  %v2615_v24 = vpop.f32.mrf.mxu1 }
  0xf3   : > { %v928_v10 = vadd.f32 %v2551_v9, %v2954_v8  ;;  %v2978_v28 = vadd.f32 %v2615_v24, %v2954_v8 }
  0xf4   : > { %v919_v11 = vpop.f32.mrf.mxu0  ;;  %v1175_v33 = vpop.f32.mrf.mxu1 }
  0xf5   : > { %1433 = vst.msk [vmem:[%s2959_s10 + $0x10] sm:$0xff] %vm1430_vm0, %v928_v10  ;;  %v920_v12 = vadd.f32 %v2954_v8, %v919_v11  ;;  %v1834_v18 = vmul.f32 %v928_v10, %v928_v10  ;;  %v1570_v25 = vsel %vm1430_vm0, %v928_v10, 0.0  ;;  %1497 = vst.msk [vmem:[%s2959_s10 + $0x210] sm:$0xff] %vm1430_vm0, %v2978_v28  ;;  %v2994_v45 = vadd.f32 %v2954_v8, %v1175_v33 }
  0xf6   : > { %v2552_v13 = vpop.f32.mrf.mxu0  ;;  %v2616_v41 = vpop.f32.mrf.mxu1 }
  0xf7   : > { %1431 = vst.msk [vmem:[%s2959_s10] sm:$0xff] %vm1430_vm0, %v920_v12  ;;  %v931_v14 = vadd.f32 %v2552_v13, %v2954_v8  ;;  %v1832_v16 = vmul.f32 %v920_v12, %v920_v12  ;;  %v1567_v20 = vsel %vm1430_vm0, %v920_v12, 0.0  ;;  %v1963_v37 = vsel %vm1430_vm0, %v1834_v18, 0.0  ;;  %1495 = vst.msk [vmem:[%s2959_s10 + $0x200] sm:$0xff] %vm1430_vm0, %v2994_v45 }
  0xf8   : > { %v922_v15 = vpop.f32.mrf.mxu0  ;;  %v1178_v49 = vpop.f32.mrf.mxu1  ;;  %v3010_v62 = vadd.f32 %v2616_v41, %v2954_v8 }
  0xf9   : > { %1434 = vst.msk [vmem:[%s2959_s10 + $0x18] sm:$0xff] %vm1430_vm0, %v931_v14  ;;  %v923_v17 = vadd.f32 %v2954_v8, %v922_v15  ;;  %v1960_v29 = vsel %vm1430_vm0, %v1832_v16, 0.0  ;;  %v1835_v30 = vmul.f32 %v931_v14, %v931_v14  ;;  %v1572_v38 = vsel %vm1430_vm0, %v931_v14, 0.0 }
  0xfa   : > { %v2555_v19 = vpop.f32.mrf.mxu0  ;;  %v2619_v58 = vpop.f32.mrf.mxu1  ;;  %1498 = vst.msk [vmem:[%s2959_s10 + $0x218] sm:$0xff] %vm1430_vm0, %v3010_v62  ;;  %v3028_v16 = vadd.f32 %v2954_v8, %v1178_v49 }
  0xfb   : > { %1432 = vst.msk [vmem:[%s2959_s10 + $0x8] sm:$0xff] %vm1430_vm0, %v923_v17  ;;  %v1568_v21 = vsel %vm1430_vm0, %v923_v17, 0.0  ;;  %v1833_v22 = vmul.f32 %v923_v17, %v923_v17  ;;  %v944_v23 = vadd.f32 %v2555_v19, %v2954_v8  ;;  %v1965_v46 = vsel %vm1430_vm0, %v1835_v30, 0.0 }
  0xfc   : > { %v1569_v26 = vadd.f32 %v1568_v21, %v1567_v20  ;;  %v935_v27 = vpop.f32.mrf.mxu0  ;;  %v1191_v3 = vpop.f32.mrf.mxu1  ;;  %1496 = vst.msk [vmem:[%s2959_s10 + $0x208] sm:$0xff] %vm1430_vm0, %v3028_v16 }
  0xfd   : > { %v1961_v31 = vsel %vm1430_vm0, %v1833_v22, 0.0  ;;  %1437 = vst.msk [vmem:[%s2959_s10 + $0x30] sm:$0xff] %vm1430_vm0, %v944_v23  ;;  %v936_v32 = vadd.f32 %v2954_v8, %v935_v27  ;;  %v1838_v51 = vmul.f32 %v944_v23, %v944_v23  ;;  %v1578_v63 = vsel %vm1430_vm0, %v944_v23, 0.0 }
  0xfe   : > { %v1571_v34 = vadd.f32 %v1570_v25, %v1569_v26  ;;  %v1962_v35 = vadd.f32 %v1961_v31, %v1960_v29  ;;  %v2556_v36 = vpop.f32.mrf.mxu0  ;;  %v3025_v12 = vpop.f32.mrf.mxu1 }
  0xff   : > { %1435 = vst.msk [vmem:[%s2959_s10 + $0x20] sm:$0xff] %vm1430_vm0, %v936_v32  ;;  %v1836_v39 = vmul.f32 %v936_v32, %v936_v32  ;;  %v947_v40 = vadd.f32 %v2556_v36, %v2954_v8  ;;  %v1574_v47 = vsel %vm1430_vm0, %v936_v32, 0.0  ;;  %v1971_v7 = vsel %vm1430_vm0, %v1838_v51, 0.0 }
 0x100   : > { %v1573_v42 = vadd.f32 %v1572_v38, %v1571_v34  ;;  %v1964_v43 = vadd.f32 %v1963_v37, %v1962_v35  ;;  %v938_v44 = vpop.f32.mrf.mxu0  ;;  %v3035_v20 = vpop.f32.mrf.mxu1  ;;  %v3048_v34 = vadd.f32 %v2619_v58, %v2954_v8 }
 0x101   : > { %1438 = vst.msk [vmem:[%s2959_s10 + $0x38] sm:$0xff] %vm1430_vm0, %v947_v40  ;;  %v939_v48 = vadd.f32 %v2954_v8, %v938_v44  ;;  %v1967_v54 = vsel %vm1430_vm0, %v1836_v39, 0.0  ;;  %v1839_v0 = vmul.f32 %v947_v40, %v947_v40  ;;  %v1580_v9 = vsel %vm1430_vm0, %v947_v40, 0.0 }
 0x102   : > { %v1966_v50 = vadd.f32 %v1965_v46, %v1964_v43  ;;  %v1575_v52 = vadd.f32 %v1574_v47, %v1573_v42  ;;  %v2559_v53 = vpop.f32.mrf.mxu0  ;;  %v3045_v30 = vpop.f32.mrf.mxu1  ;;  %1501 = vst.msk [vmem:[%s2959_s10 + $0x230] sm:$0xff] %vm1430_vm0, %v3048_v34 }
 0x103   : > { %1436 = vst.msk [vmem:[%s2959_s10 + $0x28] sm:$0xff] %vm1430_vm0, %v939_v48  ;;  %v1576_v55 = vsel %vm1430_vm0, %v939_v48, 0.0  ;;  %v1837_v56 = vmul.f32 %v939_v48, %v939_v48  ;;  %v960_v57 = vadd.f32 %v2559_v53, %v2954_v8  ;;  %v1973_v17 = vsel %vm1430_vm0, %v1839_v0, 0.0 }
 0x104   : > { %v1968_v59 = vadd.f32 %v1967_v54, %v1966_v50  ;;  %v1577_v60 = vadd.f32 %v1576_v55, %v1575_v52  ;;  %v951_v61 = vpop.f32.mrf.mxu0  ;;  %v3055_v39 = vpop.f32.mrf.mxu1  ;;  %v3068_v52 = vadd.f32 %v2954_v8, %v1191_v3 }
 0x105   : > { %v1969_v1 = vsel %vm1430_vm0, %v1837_v56, 0.0  ;;  %1441 = vst.msk [vmem:[%s2959_s10 + $0x50] sm:$0xff] %vm1430_vm0, %v960_v57  ;;  %v952_v2 = vadd.f32 %v2954_v8, %v951_v61  ;;  %v1842_v22 = vmul.f32 %v960_v57, %v960_v57  ;;  %v1586_v35 = vsel %vm1430_vm0, %v960_v57, 0.0 }
 0x106   : > { %v1579_v4 = vadd.f32 %v1578_v63, %v1577_v60  ;;  %v1970_v5 = vadd.f32 %v1969_v1, %v1968_v59  ;;  %v2560_v6 = vpop.f32.mrf.mxu0  ;;  %v3065_v48 = vpop.f32.mrf.mxu1  ;;  %1499 = vst.msk [vmem:[%s2959_s10 + $0x220] sm:$0xff] %vm1430_vm0, %v3068_v52 }
 0x107   : > { %1439 = vst.msk [vmem:[%s2959_s10 + $0x40] sm:$0xff] %vm1430_vm0, %v952_v2  ;;  %v1840_v10 = vmul.f32 %v952_v2, %v952_v2  ;;  %v963_v11 = vadd.f32 %v2560_v6, %v2954_v8  ;;  %v1582_v18 = vsel %vm1430_vm0, %v952_v2, 0.0  ;;  %v1979_v43 = vsel %vm1430_vm0, %v1842_v22, 0.0 }
 0x108   : > { %v1581_v13 = vadd.f32 %v1580_v9, %v1579_v4  ;;  %v1972_v14 = vadd.f32 %v1971_v7, %v1970_v5  ;;  %v954_v15 = vpop.f32.mrf.mxu0  ;;  %v3075_v56 = vpop.f32.mrf.mxu1  ;;  %v3089_v6 = vadd.f32 %v3025_v12, %v2954_v8 }
 0x109   : > { %1442 = vst.msk [vmem:[%s2959_s10 + $0x58] sm:$0xff] %vm1430_vm0, %v963_v11  ;;  %v955_v19 = vadd.f32 %v2954_v8, %v954_v15  ;;  %v1975_v25 = vsel %vm1430_vm0, %v1840_v10, 0.0  ;;  %v1843_v36 = vmul.f32 %v963_v11, %v963_v11  ;;  %v1588_v44 = vsel %vm1430_vm0, %v963_v11, 0.0 }
 0x10a   : > { %v1974_v21 = vadd.f32 %v1973_v17, %v1972_v14  ;;  %v1583_v23 = vadd.f32 %v1582_v18, %v1581_v13  ;;  %v2563_v24 = vpop.f32.mrf.mxu0  ;;  %v3085_v2 = vpop.f32.mrf.mxu1  ;;  %1502 = vst.msk [vmem:[%s2959_s10 + $0x238] sm:$0xff] %vm1430_vm0, %v3089_v6 }
 0x10b   : > { %1440 = vst.msk [vmem:[%s2959_s10 + $0x48] sm:$0xff] %vm1430_vm0, %v955_v19  ;;  %v1584_v26 = vsel %vm1430_vm0, %v955_v19, 0.0  ;;  %v1841_v27 = vmul.f32 %v955_v19, %v955_v19  ;;  %v976_v29 = vadd.f32 %v2563_v24, %v2954_v8  ;;  %v1981_v53 = vsel %vm1430_vm0, %v1843_v36, 0.0 }
 0x10c   : > { %v1976_v31 = vadd.f32 %v1975_v25, %v1974_v21  ;;  %v1585_v32 = vadd.f32 %v1584_v26, %v1583_v23  ;;  %v967_v33 = vpop.f32.mrf.mxu0  ;;  %v3096_v13 = vpop.f32.mrf.mxu1  ;;  %v3110_v26 = vadd.f32 %v2954_v8, %v3035_v20 }
 0x10d   : > { %v1977_v37 = vsel %vm1430_vm0, %v1841_v27, 0.0  ;;  %1445 = vst.msk [vmem:[%s2959_s10 + $0x70] sm:$0xff] %vm1430_vm0, %v976_v29  ;;  %v968_v38 = vadd.f32 %v2954_v8, %v967_v33  ;;  %v1846_v58 = vmul.f32 %v976_v29, %v976_v29  ;;  %v1594_v7 = vsel %vm1430_vm0, %v976_v29, 0.0 }
 0x10e   : > { %v1587_v40 = vadd.f32 %v1586_v35, %v1585_v32  ;;  %v1978_v41 = vadd.f32 %v1977_v37, %v1976_v31  ;;  %v2564_v42 = vpop.f32.mrf.mxu0  ;;  %v3106_v22 = vpop.f32.mrf.mxu1  ;;  %1500 = vst.msk [vmem:[%s2959_s10 + $0x228] sm:$0xff] %vm1430_vm0, %v3110_v26 }
 0x10f   : > { %1443 = vst.msk [vmem:[%s2959_s10 + $0x60] sm:$0xff] %vm1430_vm0, %v968_v38  ;;  %v1844_v46 = vmul.f32 %v968_v38, %v968_v38  ;;  %v979_v47 = vadd.f32 %v2564_v42, %v2954_v8  ;;  %v1590_v54 = vsel %vm1430_vm0, %v968_v38, 0.0  ;;  %v1987_v12 = vsel %vm1430_vm0, %v1846_v58, 0.0 }
 0x110   : > { %v1589_v49 = vadd.f32 %v1588_v44, %v1587_v40  ;;  %v1980_v50 = vadd.f32 %v1979_v43, %v1978_v41  ;;  %v970_v51 = vpop.f32.mrf.mxu0  ;;  %v3117_v32 = vpop.f32.mrf.mxu1 }
 0x111   : > { %1446 = vst.msk [vmem:[%s2959_s10 + $0x78] sm:$0xff] %vm1430_vm0, %v979_v47  ;;  %v971_v55 = vadd.f32 %v2954_v8, %v970_v51  ;;  %v1983_v61 = vsel %vm1430_vm0, %v1844_v46, 0.0  ;;  %v1847_v9 = vmul.f32 %v979_v47, %v979_v47  ;;  %v1596_v18 = vsel %vm1430_vm0, %v979_v47, 0.0 }
 0x112   : > { %v1982_v57 = vadd.f32 %v1981_v53, %v1980_v50  ;;  %v1591_v59 = vadd.f32 %v1590_v54, %v1589_v49  ;;  %v2567_v60 = vpop.f32.mrf.mxu0  ;;  %v3127_v42 = vpop.f32.mrf.mxu1  ;;  %v3131_v47 = vadd.f32 %v3045_v30, %v2954_v8 }
 0x113   : > { %1444 = vst.msk [vmem:[%s2959_s10 + $0x68] sm:$0xff] %vm1430_vm0, %v971_v55  ;;  %v1592_v63 = vsel %vm1430_vm0, %v971_v55, 0.0  ;;  %v1845_v0 = vmul.f32 %v971_v55, %v971_v55  ;;  %v992_v1 = vadd.f32 %v2567_v60, %v2954_v8  ;;  %v1989_v27 = vsel %vm1430_vm0, %v1847_v9, 0.0 }
 0x114   : > { %v1984_v3 = vadd.f32 %v1983_v61, %v1982_v57  ;;  %v1593_v4 = vadd.f32 %v1592_v63, %v1591_v59  ;;  %v983_v5 = vpop.f32.mrf.mxu0  ;;  %v3138_v54 = vpop.f32.mrf.mxu1  ;;  %1505 = vst.msk [vmem:[%s2959_s10 + $0x250] sm:$0xff] %vm1430_vm0, %v3131_v47 }
 0x115   : > { %v1985_v10 = vsel %vm1430_vm0, %v1845_v0, 0.0  ;;  %1449 = vst.msk [vmem:[%s2959_s10 + $0x90] sm:$0xff] %vm1430_vm0, %v992_v1  ;;  %v984_v11 = vadd.f32 %v2954_v8, %v983_v5  ;;  %v1850_v35 = vmul.f32 %v992_v1, %v992_v1  ;;  %v1602_v49 = vsel %vm1430_vm0, %v992_v1, 0.0 }
 0x116   : > { %v1595_v14 = vadd.f32 %v1594_v7, %v1593_v4  ;;  %v1986_v15 = vadd.f32 %v1985_v10, %v1984_v3  ;;  %v2568_v17 = vpop.f32.mrf.mxu0  ;;  %v3148_v63 = vpop.f32.mrf.mxu1  ;;  %v3152_v4 = vadd.f32 %v2954_v8, %v3055_v39 }
 0x117   : > { %1447 = vst.msk [vmem:[%s2959_s10 + $0x80] sm:$0xff] %vm1430_vm0, %v984_v11  ;;  %v1848_v19 = vmul.f32 %v984_v11, %v984_v11  ;;  %v995_v21 = vadd.f32 %v2568_v17, %v2954_v8  ;;  %v1598_v29 = vsel %vm1430_vm0, %v984_v11, 0.0  ;;  %v1995_v30 = vsel %vm1430_vm0, %v1850_v35, 0.0 }
 0x118   : > { %v1597_v23 = vadd.f32 %v1596_v18, %v1595_v14  ;;  %v1988_v24 = vadd.f32 %v1987_v12, %v1986_v15  ;;  %v986_v25 = vpop.f32.mrf.mxu0  ;;  %v3159_v10 = vpop.f32.mrf.mxu1  ;;  %1503 = vst.msk [vmem:[%s2959_s10 + $0x240] sm:$0xff] %vm1430_vm0, %v3152_v4 }
 0x119   : > { %1450 = vst.msk [vmem:[%s2959_s10 + $0x98] sm:$0xff] %vm1430_vm0, %v995_v21  ;;  %v987_v31 = vadd.f32 %v2954_v8, %v986_v25  ;;  %v1991_v20 = vsel %vm1430_vm0, %v1848_v19, 0.0  ;;  %v1851_v50 = vmul.f32 %v995_v21, %v995_v21  ;;  %v1604_v59 = vsel %vm1430_vm0, %v995_v21, 0.0 }
 0x11a   : > { %v1990_v33 = vadd.f32 %v1989_v27, %v1988_v24  ;;  %v1599_v36 = vadd.f32 %v1598_v29, %v1597_v23  ;;  %v2571_v37 = vpop.f32.mrf.mxu0  ;;  %v3169_v21 = vpop.f32.mrf.mxu1  ;;  %v3173_v27 = vadd.f32 %v3065_v48, %v2954_v8 }
 0x11b   : > { %1448 = vst.msk [vmem:[%s2959_s10 + $0x88] sm:$0xff] %vm1430_vm0, %v987_v31  ;;  %v1600_v38 = vsel %vm1430_vm0, %v987_v31, 0.0  ;;  %v1849_v40 = vmul.f32 %v987_v31, %v987_v31  ;;  %v1008_v41 = vadd.f32 %v2571_v37, %v2954_v8  ;;  %v1997_v5 = vsel %vm1430_vm0, %v1851_v50, 0.0 }
 0x11c   : > { %v1992_v43 = vadd.f32 %v1991_v20, %v1990_v33  ;;  %v1601_v44 = vadd.f32 %v1600_v38, %v1599_v36  ;;  %v999_v46 = vpop.f32.mrf.mxu0  ;;  %v3180_v36 = vpop.f32.mrf.mxu1  ;;  %1506 = vst.msk [vmem:[%s2959_s10 + $0x258] sm:$0xff] %vm1430_vm0, %v3173_v27 }
 0x11d   : > { %v1993_v51 = vsel %vm1430_vm0, %v1849_v40, 0.0  ;;  %1453 = vst.msk [vmem:[%s2959_s10 + $0xb0] sm:$0xff] %vm1430_vm0, %v1008_v41  ;;  %v1000_v53 = vadd.f32 %v2954_v8, %v999_v46  ;;  %v1854_v14 = vmul.f32 %v1008_v41, %v1008_v41  ;;  %v1610_v29 = vsel %vm1430_vm0, %v1008_v41, 0.0 }
 0x11e   : > { %v1603_v55 = vadd.f32 %v1602_v49, %v1601_v44  ;;  %v1994_v57 = vadd.f32 %v1993_v51, %v1992_v43  ;;  %v2572_v58 = vpop.f32.mrf.mxu0  ;;  %v3190_v44 = vpop.f32.mrf.mxu1  ;;  %v3194_v51 = vadd.f32 %v2954_v8, %v3075_v56 }
 0x11f   : > { %1451 = vst.msk [vmem:[%s2959_s10 + $0xa0] sm:$0xff] %vm1430_vm0, %v1000_v53  ;;  %v1852_v60 = vmul.f32 %v1000_v53, %v1000_v53  ;;  %v1011_v61 = vadd.f32 %v2572_v58, %v2954_v8  ;;  %v1606_v7 = vsel %vm1430_vm0, %v1000_v53, 0.0  ;;  %v2003_v48 = vsel %vm1430_vm0, %v1854_v14, 0.0 }
 0x120   : > { %v1605_v0 = vadd.f32 %v1604_v59, %v1603_v55  ;;  %v1996_v1 = vadd.f32 %v1995_v30, %v1994_v57  ;;  %v1002_v3 = vpop.f32.mrf.mxu0  ;;  %v3201_v58 = vpop.f32.mrf.mxu1  ;;  %1504 = vst.msk [vmem:[%s2959_s10 + $0x248] sm:$0xff] %vm1430_vm0, %v3194_v51  ;;  %v3215_v14 = vadd.f32 %v3085_v2, %v2954_v8 }
 0x121   : > { %1454 = vst.msk [vmem:[%s2959_s10 + $0xb8] sm:$0xff] %vm1430_vm0, %v1011_v61  ;;  %v1003_v9 = vadd.f32 %v2954_v8, %v1002_v3  ;;  %v1999_v39 = vsel %vm1430_vm0, %v1852_v60, 0.0  ;;  %v1855_v31 = vmul.f32 %v1011_v61, %v1011_v61  ;;  %v1612_v40 = vsel %vm1430_vm0, %v1011_v61, 0.0 }
 0x122   : > { %v1998_v11 = vadd.f32 %v1997_v5, %v1996_v1  ;;  %v1607_v15 = vadd.f32 %v1606_v7, %v1605_v0  ;;  %v2575_v17 = vpop.f32.mrf.mxu0  ;;  %v3211_v5 = vpop.f32.mrf.mxu1  ;;  %1509 = vst.msk [vmem:[%s2959_s10 + $0x270] sm:$0xff] %vm1430_vm0, %v3215_v14 }
 0x123   : > { %1452 = vst.msk [vmem:[%s2959_s10 + $0xa8] sm:$0xff] %vm1430_vm0, %v1003_v9  ;;  %v1608_v12 = vsel %vm1430_vm0, %v1003_v9, 0.0  ;;  %v1853_v18 = vmul.f32 %v1003_v9, %v1003_v9  ;;  %v1024_v19 = vadd.f32 %v2575_v17, %v2954_v8  ;;  %v2005_v53 = vsel %vm1430_vm0, %v1855_v31, 0.0 }
 0x124   : > { %v2000_v23 = vadd.f32 %v1999_v39, %v1998_v11  ;;  %v1609_v24 = vadd.f32 %v1608_v12, %v1607_v15  ;;  %v1015_v25 = vpop.f32.mrf.mxu0 }
 0x125   : > { %v2001_v33 = vsel %vm1430_vm0, %v1853_v18, 0.0  ;;  %1457 = vst.msk [vmem:[%s2959_s10 + $0xd0] sm:$0xff] %vm1430_vm0, %v1024_v19  ;;  %v1016_v35 = vadd.f32 %v2954_v8, %v1015_v25  ;;  %v1858_v59 = vmul.f32 %v1024_v19, %v1024_v19  ;;  %v1618_v15 = vsel %vm1430_vm0, %v1024_v19, 0.0  ;;  %v3222_v18 = vpop.f32.mrf.mxu1 }
 0x126   : > { %v1611_v37 = vadd.f32 %v1610_v29, %v1609_v24  ;;  %v2002_v20 = vadd.f32 %v2001_v33, %v2000_v23  ;;  %v2576_v38 = vpop.f32.mrf.mxu0 }
 0x127   : > { %1455 = vst.msk [vmem:[%s2959_s10 + $0xc0] sm:$0xff] %vm1430_vm0, %v1016_v35  ;;  %v1856_v41 = vmul.f32 %v1016_v35, %v1016_v35  ;;  %v1027_v43 = vadd.f32 %v2576_v38, %v2954_v8  ;;  %v1614_v55 = vsel %vm1430_vm0, %v1016_v35, 0.0  ;;  %v2011_v2 = vsel %vm1430_vm0, %v1858_v59, 0.0  ;;  %v3232_v33 = vpop.f32.mrf.mxu1 }
 0x128   : > { %v1613_v46 = vadd.f32 %v1612_v40, %v1611_v37  ;;  %v2004_v49 = vadd.f32 %v2003_v48, %v2002_v20  ;;  %v1018_v50 = vpop.f32.mrf.mxu0  ;;  %v3236_v38 = vadd.f32 %v2954_v8, %v3096_v13 }
 0x129   : > { %1458 = vst.msk [vmem:[%s2959_s10 + $0xd8] sm:$0xff] %vm1430_vm0, %v1027_v43  ;;  %v1019_v57 = vadd.f32 %v2954_v8, %v1018_v50  ;;  %v2007_v56 = vsel %vm1430_vm0, %v1856_v41, 0.0  ;;  %v1859_v17 = vmul.f32 %v1027_v43, %v1027_v43  ;;  %v1620_v19 = vsel %vm1430_vm0, %v1027_v43, 0.0  ;;  %v3243_v43 = vpop.f32.mrf.mxu1 }
 0x12a   : > { %v2006_v30 = vadd.f32 %v2005_v53, %v2004_v49  ;;  %v1615_v60 = vadd.f32 %v1614_v55, %v1613_v46  ;;  %v2579_v61 = vpop.f32.mrf.mxu0  ;;  %1507 = vst.msk [vmem:[%s2959_s10 + $0x260] sm:$0xff] %vm1430_vm0, %v3236_v38 }
 0x12b   : > { %1456 = vst.msk [vmem:[%s2959_s10 + $0xc8] sm:$0xff] %vm1430_vm0, %v1019_v57  ;;  %v1616_v0 = vsel %vm1430_vm0, %v1019_v57, 0.0  ;;  %v1857_v1 = vmul.f32 %v1019_v57, %v1019_v57  ;;  %v1040_v3 = vadd.f32 %v2579_v61, %v2954_v8  ;;  %v2013_v48 = vsel %vm1430_vm0, %v1859_v17, 0.0  ;;  %v3253_v59 = vpop.f32.mrf.mxu1 }
 0x12c   : > { %v2008_v7 = vadd.f32 %v2007_v56, %v2006_v30  ;;  %v1617_v9 = vadd.f32 %v1616_v0, %v1615_v60  ;;  %v1031_v11 = vpop.f32.mrf.mxu0  ;;  %v3257_v0 = vadd.f32 %v3106_v22, %v2954_v8 }
 0x12d   : > { %v2009_v39 = vsel %vm1430_vm0, %v1857_v1, 0.0  ;;  %1461 = vst.msk [vmem:[%s2959_s10 + $0xf0] sm:$0xff] %vm1430_vm0, %v1040_v3  ;;  %v1032_v12 = vadd.f32 %v2954_v8, %v1031_v11  ;;  %v1862_v49 = vmul.f32 %v1040_v3, %v1040_v3  ;;  %v1626_v1 = vsel %vm1430_vm0, %v1040_v3, 0.0 }
 0x12e   : > { %v1619_v23 = vadd.f32 %v1618_v15, %v1617_v9  ;;  %v2010_v24 = vadd.f32 %v2009_v39, %v2008_v7  ;;  %v2580_v25 = vpop.f32.mrf.mxu0  ;;  %v3264_v15 = vpop.f32.mrf.mxu1  ;;  %1510 = vst.msk [vmem:[%s2959_s10 + $0x278] sm:$0xff] %vm1430_vm0, %v3257_v0 }
 0x12f   : > { %1459 = vst.msk [vmem:[%s2959_s10 + $0xe0] sm:$0xff] %vm1430_vm0, %v1032_v12  ;;  %v1860_v29 = vmul.f32 %v1032_v12, %v1032_v12  ;;  %v1043_v31 = vadd.f32 %v2580_v25, %v2954_v8  ;;  %v1622_v40 = vsel %vm1430_vm0, %v1032_v12, 0.0  ;;  %v2019_v22 = vsel %vm1430_vm0, %v1862_v49, 0.0 }
 0x130   : > { %v1621_v35 = vadd.f32 %v1620_v19, %v1619_v23  ;;  %v2012_v37 = vadd.f32 %v2011_v2, %v2010_v24  ;;  %v1034_v20 = vpop.f32.mrf.mxu0  ;;  %v3274_v25 = vpop.f32.mrf.mxu1 }
 0x131   : > { %1462 = vst.msk [vmem:[%s2959_s10 + $0xf8] sm:$0xff] %vm1430_vm0, %v1043_v31  ;;  %v1035_v41 = vadd.f32 %v2954_v8, %v1034_v20  ;;  %v2015_v13 = vsel %vm1430_vm0, %v1860_v29, 0.0  ;;  %v1863_v7 = vmul.f32 %v1043_v31, %v1043_v31  ;;  %v1628_v3 = vsel %vm1430_vm0, %v1043_v31, 0.0 }
 0x132   : > { %v2014_v46 = vadd.f32 %v2013_v48, %v2012_v37  ;;  %v1623_v50 = vadd.f32 %v1622_v40, %v1621_v35  ;;  %v2583_v53 = vpop.f32.mrf.mxu0  ;;  %v3278_v35 = vadd.f32 %v2954_v8, %v3117_v32  ;;  %v3285_v48 = vpop.f32.mrf.mxu1 }
 0x133   : > { %1460 = vst.msk [vmem:[%s2959_s10 + $0xe8] sm:$0xff] %vm1430_vm0, %v1035_v41  ;;  %v1624_v55 = vsel %vm1430_vm0, %v1035_v41, 0.0  ;;  %v1861_v57 = vmul.f32 %v1035_v41, %v1035_v41  ;;  %v1056_v30 = vadd.f32 %v2583_v53, %v2954_v8  ;;  %v2021_v37 = vsel %vm1430_vm0, %v1863_v7, 0.0 }
 0x134   : > { %v2016_v60 = vadd.f32 %v2015_v13, %v2014_v46  ;;  %v1625_v61 = vadd.f32 %v1624_v55, %v1623_v50  ;;  %v1047_v56 = vpop.f32.mrf.mxu0  ;;  %1508 = vst.msk [vmem:[%s2959_s10 + $0x268] sm:$0xff] %vm1430_vm0, %v3278_v35  ;;  %v3295_v55 = vpop.f32.mrf.mxu1 }
 0x135   : > { %v2017_v9 = vsel %vm1430_vm0, %v1861_v57, 0.0  ;;  %1465 = vst.msk [vmem:[%s2959_s10 + $0x110] sm:$0xff] %vm1430_vm0, %v1056_v30  ;;  %v1048_v11 = vadd.f32 %v2954_v8, %v1047_v56  ;;  %v1866_v41 = vmul.f32 %v1056_v30, %v1056_v30  ;;  %v3299_v56 = vadd.f32 %v3127_v42, %v2954_v8 }
 0x136   : > { %v1627_v17 = vadd.f32 %v1626_v1, %v1625_v61  ;;  %v2018_v39 = vadd.f32 %v2017_v9, %v2016_v60  ;;  %v2584_v12 = vpop.f32.mrf.mxu0  ;;  %v1634_v1 = vsel %vm1430_vm0, %v1056_v30, 0.0 }
 0x137   : > { %1463 = vst.msk [vmem:[%s2959_s10 + $0x100] sm:$0xff] %vm1430_vm0, %v1048_v11  ;;  %v1864_v23 = vmul.f32 %v1048_v11, %v1048_v11  ;;  %v1059_v24 = vadd.f32 %v2584_v12, %v2954_v8  ;;  %v1630_v31 = vsel %vm1430_vm0, %v1048_v11, 0.0  ;;  %1513 = vst.msk [vmem:[%s2959_s10 + $0x290] sm:$0xff] %vm1430_vm0, %v3299_v56  ;;  %v2027_v42 = vsel %vm1430_vm0, %v1866_v41, 0.0 }
 0x138   : > { %v1629_v2 = vadd.f32 %v1628_v3, %v1627_v17  ;;  %v2020_v19 = vadd.f32 %v2019_v22, %v2018_v39  ;;  %v1050_v29 = vpop.f32.mrf.mxu0  ;;  %v3306_v17 = vpop.f32.mrf.mxu1 }
 0x139   : > { %1466 = vst.msk [vmem:[%s2959_s10 + $0x118] sm:$0xff] %vm1430_vm0, %v1059_v24  ;;  %v1051_v20 = vadd.f32 %v2954_v8, %v1050_v29  ;;  %v2023_v32 = vsel %vm1430_vm0, %v1864_v23, 0.0  ;;  %v1867_v7 = vmul.f32 %v1059_v24, %v1059_v24  ;;  %v1636_v30 = vsel %vm1430_vm0, %v1059_v24, 0.0 }
 0x13a   : > { %v2022_v40 = vadd.f32 %v2021_v37, %v2020_v19  ;;  %v1631_v46 = vadd.f32 %v1630_v31, %v1629_v2  ;;  %v2587_v49 = vpop.f32.mrf.mxu0  ;;  %v3316_v2 = vpop.f32.mrf.mxu1  ;;  %v3320_v31 = vadd.f32 %v2954_v8, %v3138_v54 }
 0x13b   : > { %1464 = vst.msk [vmem:[%s2959_s10 + $0x108] sm:$0xff] %vm1430_vm0, %v1051_v20  ;;  %v1632_v50 = vsel %vm1430_vm0, %v1051_v20, 0.0  ;;  %v1865_v53 = vmul.f32 %v1051_v20, %v1051_v20  ;;  %v1072_v13 = vadd.f32 %v2587_v49, %v2954_v8  ;;  %v2029_v20 = vsel %vm1430_vm0, %v1867_v7, 0.0 }
 0x13c   : > { %v2024_v57 = vadd.f32 %v2023_v32, %v2022_v40  ;;  %v1633_v60 = vadd.f32 %v1632_v50, %v1631_v46  ;;  %v1063_v61 = vpop.f32.mrf.mxu0  ;;  %v3327_v41 = vpop.f32.mrf.mxu1  ;;  %1511 = vst.msk [vmem:[%s2959_s10 + $0x280] sm:$0xff] %vm1430_vm0, %v3320_v31 }
 0x13d   : > { %v2025_v9 = vsel %vm1430_vm0, %v1865_v53, 0.0  ;;  %1469 = vst.msk [vmem:[%s2959_s10 + $0x130] sm:$0xff] %vm1430_vm0, %v1072_v13  ;;  %v1064_v11 = vadd.f32 %v2954_v8, %v1063_v61  ;;  %v1870_v49 = vmul.f32 %v1072_v13, %v1072_v13 }
 0x13e   : > { %v1635_v39 = vadd.f32 %v1634_v1, %v1633_v60  ;;  %v2026_v12 = vadd.f32 %v2025_v9, %v2024_v57  ;;  %v2588_v22 = vpop.f32.mrf.mxu0  ;;  %v3337_v61 = vpop.f32.mrf.mxu1 }
 0x13f   : > { %1467 = vst.msk [vmem:[%s2959_s10 + $0x120] sm:$0xff] %vm1430_vm0, %v1064_v11  ;;  %v1868_v3 = vmul.f32 %v1064_v11, %v1064_v11  ;;  %v1075_v23 = vadd.f32 %v2588_v22, %v2954_v8  ;;  %v1638_v24 = vsel %vm1430_vm0, %v1064_v11, 0.0  ;;  %v3341_v11 = vadd.f32 %v3148_v63, %v2954_v8 }
 0x140   : > { %v1637_v19 = vadd.f32 %v1636_v30, %v1635_v39  ;;  %v2028_v29 = vadd.f32 %v2027_v42, %v2026_v12  ;;  %v1066_v37 = vpop.f32.mrf.mxu0  ;;  %v1642_v39 = vsel %vm1430_vm0, %v1072_v13, 0.0  ;;  %v3348_v30 = vpop.f32.mrf.mxu1  ;;  %v2035_v63 = vsel %vm1430_vm0, %v1870_v49, 0.0 }
 0x141   : > { %1470 = vst.msk [vmem:[%s2959_s10 + $0x138] sm:$0xff] %vm1430_vm0, %v1075_v23  ;;  %v1067_v40 = vadd.f32 %v2954_v8, %v1066_v37  ;;  %v2031_v54 = vsel %vm1430_vm0, %v1868_v3, 0.0  ;;  %v1871_v12 = vmul.f32 %v1075_v23, %v1075_v23  ;;  %1514 = vst.msk [vmem:[%s2959_s10 + $0x298] sm:$0xff] %vm1430_vm0, %v3341_v11  ;;  %v1644_v13 = vsel %vm1430_vm0, %v1075_v23, 0.0 }
 0x142   : > { %v2030_v46 = vadd.f32 %v2029_v20, %v2028_v29  ;;  %v1639_v32 = vadd.f32 %v1638_v24, %v1637_v19  ;;  %v2591_v50 = vpop.f32.mrf.mxu0  ;;  %v3358_v24 = vpop.f32.mrf.mxu1 }
 0x143   : > { %1468 = vst.msk [vmem:[%s2959_s10 + $0x128] sm:$0xff] %vm1430_vm0, %v1067_v40  ;;  %v1640_v53 = vsel %vm1430_vm0, %v1067_v40, 0.0  ;;  %v1869_v57 = vmul.f32 %v1067_v40, %v1067_v40  ;;  %v1088_v60 = vadd.f32 %v2591_v50, %v2954_v8  ;;  %v3362_v50 = vadd.f32 %v2954_v8, %v3159_v10 }
 0x144   : > { %v2032_v1 = vadd.f32 %v2031_v54, %v2030_v46  ;;  %v1641_v7 = vadd.f32 %v1640_v53, %v1639_v32  ;;  %v1079_v9 = vpop.f32.mrf.mxu0  ;;  %v2037_v49 = vsel %vm1430_vm0, %v1871_v12, 0.0  ;;  %v3369_v53 = vpop.f32.mrf.mxu1 }
 0x145   : > { %v2033_v22 = vsel %vm1430_vm0, %v1869_v57, 0.0  ;;  %1473 = vst.msk [vmem:[%s2959_s10 + $0x150] sm:$0xff] %vm1430_vm0, %v1088_v60  ;;  %v1080_v42 = vadd.f32 %v2954_v8, %v1079_v9  ;;  %1512 = vst.msk [vmem:[%s2959_s10 + $0x288] sm:$0xff] %vm1430_vm0, %v3362_v50 }
 0x146   : > { %v1643_v3 = vadd.f32 %v1642_v39, %v1641_v7  ;;  %v2034_v19 = vadd.f32 %v2033_v22, %v2032_v1  ;;  %v2592_v29 = vpop.f32.mrf.mxu0  ;;  %v1874_v1 = vmul.f32 %v1088_v60, %v1088_v60 }
 0x147   : > { %1471 = vst.msk [vmem:[%s2959_s10 + $0x140] sm:$0xff] %vm1430_vm0, %v1080_v42  ;;  %v1872_v37 = vmul.f32 %v1080_v42, %v1080_v42  ;;  %v1091_v20 = vadd.f32 %v2592_v29, %v2954_v8  ;;  %v1646_v23 = vsel %vm1430_vm0, %v1080_v42, 0.0  ;;  %v3379_v42 = vpop.f32.mrf.mxu1 }
 0x148   : > { %v1645_v40 = vadd.f32 %v1644_v13, %v1643_v3  ;;  %v2036_v46 = vadd.f32 %v2035_v63, %v2034_v19  ;;  %v1082_v32 = vpop.f32.mrf.mxu0  ;;  %v3383_v63 = vadd.f32 %v3169_v21, %v2954_v8  ;;  %v1650_v13 = vsel %vm1430_vm0, %v1088_v60, 0.0 }
 0x149   : > { %1474 = vst.msk [vmem:[%s2959_s10 + $0x158] sm:$0xff] %vm1430_vm0, %v1091_v20  ;;  %v1083_v54 = vadd.f32 %v2954_v8, %v1082_v32  ;;  %v2039_v10 = vsel %vm1430_vm0, %v1872_v37, 0.0  ;;  %v1875_v37 = vmul.f32 %v1091_v20, %v1091_v20  ;;  %v3390_v32 = vpop.f32.mrf.mxu1  ;;  %v2043_v21 = vsel %vm1430_vm0, %v1874_v1, 0.0 }
 0x14a   : > { %v2038_v57 = vadd.f32 %v2037_v49, %v2036_v46  ;;  %v1647_v7 = vadd.f32 %v1646_v23, %v1645_v40  ;;  %v2595_v9 = vpop.f32.mrf.mxu0  ;;  %4202 = vst [vmem:[#allocation2_spill] sm:$0xff] %v3383_v63  ;;  %1517 = vst.msk [vmem:[%s2959_s10 + $0x2b0] sm:$0xff] %vm1430_vm0, %v3383_v63  ;;  %v1652_v60 = vsel %vm1430_vm0, %v1091_v20, 0.0 }
 0x14b   : > { %1472 = vst.msk [vmem:[%s2959_s10 + $0x148] sm:$0xff] %vm1430_vm0, %v1083_v54  ;;  %v1648_v39 = vsel %vm1430_vm0, %v1083_v54, 0.0  ;;  %v1873_v12 = vmul.f32 %v1083_v54, %v1083_v54  ;;  %v1104_v22 = vadd.f32 %v2595_v9, %v2954_v8  ;;  %v3400_v9 = vpop.f32.mrf.mxu1  ;;  %v2045_v1 = vsel %vm1430_vm0, %v1875_v37, 0.0 }
 0x14c   : > { %v2040_v3 = vadd.f32 %v2039_v10, %v2038_v57  ;;  %v1649_v19 = vadd.f32 %v1648_v39, %v1647_v7  ;;  %v1095_v29 = vpop.f32.mrf.mxu0 }
 0x14d   : > { %v2041_v40 = vsel %vm1430_vm0, %v1873_v12, 0.0  ;;  %1477 = vst.msk [vmem:[%s2959_s10 + $0x170] sm:$0xff] %vm1430_vm0, %v1104_v22  ;;  %v1096_v46 = vadd.f32 %v2954_v8, %v1095_v29  ;;  %v3411_v29 = vpop.f32.mrf.mxu1 }
 0x14e   : > { %v1651_v49 = vadd.f32 %v1650_v13, %v1649_v19  ;;  %v2042_v23 = vadd.f32 %v2041_v40, %v2040_v3  ;;  %v2596_v54 = vpop.f32.mrf.mxu0  ;;  %v3404_v3 = vadd.f32 %v2954_v8, %v3180_v36  ;;  %v1878_v40 = vmul.f32 %v1104_v22, %v1104_v22 }
 0x14f   : > { %1475 = vst.msk [vmem:[%s2959_s10 + $0x160] sm:$0xff] %vm1430_vm0, %v1096_v46  ;;  %v1876_v57 = vmul.f32 %v1096_v46, %v1096_v46  ;;  %v1107_v7 = vadd.f32 %v2596_v54, %v2954_v8  ;;  %v1654_v20 = vsel %vm1430_vm0, %v1096_v46, 0.0 }
 0x150   : > { %v1653_v10 = vadd.f32 %v1652_v60, %v1651_v49  ;;  %v2044_v39 = vadd.f32 %v2043_v21, %v2042_v23  ;;  %v1098_v12 = vpop.f32.mrf.mxu0  ;;  %4203 = vst [vmem:[#allocation3_spill] sm:$0xff] %v3404_v3  ;;  %1515 = vst.msk [vmem:[%s2959_s10 + $0x2a0] sm:$0xff] %vm1430_vm0, %v3404_v3  ;;  %v3421_v21 = vpop.f32.mrf.mxu1 }
 0x151   : > { %1478 = vst.msk [vmem:[%s2959_s10 + $0x178] sm:$0xff] %vm1430_vm0, %v1107_v7  ;;  %v1099_v19 = vadd.f32 %v2954_v8, %v1098_v12  ;;  %v2047_v36 = vsel %vm1430_vm0, %v1876_v57, 0.0  ;;  %v3425_v12 = vadd.f32 %v3190_v44, %v2954_v8  ;;  %v1658_v57 = vsel %vm1430_vm0, %v1104_v22, 0.0 }
 0x152   : > { %v2046_v13 = vadd.f32 %v2045_v1, %v2044_v39  ;;  %v1655_v54 = vadd.f32 %v1654_v20, %v1653_v10  ;;  %v2599_v49 = vpop.f32.mrf.mxu0  ;;  %v1879_v1 = vmul.f32 %v1107_v7, %v1107_v7  ;;  %v2051_v44 = vsel %vm1430_vm0, %v1878_v40, 0.0 }
 0x153   : > { %1476 = vst.msk [vmem:[%s2959_s10 + $0x168] sm:$0xff] %vm1430_vm0, %v1099_v19  ;;  %v1656_v37 = vsel %vm1430_vm0, %v1099_v19, 0.0  ;;  %v1877_v46 = vmul.f32 %v1099_v19, %v1099_v19  ;;  %v1120_v23 = vadd.f32 %v2599_v49, %v2954_v8  ;;  %4204 = vst [vmem:[#allocation4_spill] sm:$0xff] %v3425_v12  ;;  %v3432_v49 = vpop.f32.mrf.mxu1  ;;  %v1660_v22 = vsel %vm1430_vm0, %v1107_v7, 0.0 }
 0x154   : > { %v2048_v60 = vadd.f32 %v2047_v36, %v2046_v13  ;;  %v1657_v10 = vadd.f32 %v1656_v37, %v1655_v54  ;;  %v1111_v39 = vpop.f32.mrf.mxu0  ;;  %1518 = vst.msk [vmem:[%s2959_s10 + $0x2b8] sm:$0xff] %vm1430_vm0, %v3425_v12  ;;  %v2053_v40 = vsel %vm1430_vm0, %v1879_v1, 0.0 }
 0x155   : > { %v2049_v20 = vsel %vm1430_vm0, %v1877_v46, 0.0  ;;  %1481 = vst.msk [vmem:[%s2959_s10 + $0x190] sm:$0xff] %vm1430_vm0, %v1120_v23  ;;  %v1112_v19 = vadd.f32 %v2954_v8, %v1111_v39 }
 0x156   : > { %v1659_v63 = vadd.f32 %v1658_v57, %v1657_v10  ;;  %v2050_v13 = vadd.f32 %v2049_v20, %v2048_v60  ;;  %v2600_v54 = vpop.f32.mrf.mxu0  ;;  %v3444_v60 = vadd.f32 %v2954_v8, %v3201_v58  ;;  %v3446_v57 = vpop.f32.mrf.mxu1 }
 0x157   : > { %1479 = vst.msk [vmem:[%s2959_s10 + $0x180] sm:$0xff] %vm1430_vm0, %v1112_v19  ;;  %v1880_v36 = vmul.f32 %v1112_v19, %v1112_v19  ;;  %v1123_v37 = vadd.f32 %v2600_v54, %v2954_v8  ;;  %v1662_v7 = vsel %vm1430_vm0, %v1112_v19, 0.0  ;;  %v1882_v54 = vmul.f32 %v1120_v23, %v1120_v23 }
 0x158   : > { %v1661_v46 = vadd.f32 %v1660_v22, %v1659_v63  ;;  %v2052_v39 = vadd.f32 %v2051_v44, %v2050_v13  ;;  %v1114_v10 = vpop.f32.mrf.mxu0  ;;  %4205 = vst [vmem:[#allocation5_spill] sm:$0xff] %v3444_v60  ;;  %1516 = vst.msk [vmem:[%s2959_s10 + $0x2a8] sm:$0xff] %vm1430_vm0, %v3444_v60 }
 0x159   : > { %1482 = vst.msk [vmem:[%s2959_s10 + $0x198] sm:$0xff] %vm1430_vm0, %v1123_v37  ;;  %v1115_v20 = vadd.f32 %v2954_v8, %v1114_v10  ;;  %v2055_v58 = vsel %vm1430_vm0, %v1880_v36, 0.0  ;;  %v3465_v10 = vpop.f32.mrf.mxu1  ;;  %v1666_v36 = vsel %vm1430_vm0, %v1120_v23, 0.0 }
 0x15a   : > { %v2054_v12 = vadd.f32 %v2053_v40, %v2052_v39  ;;  %v1663_v3 = vadd.f32 %v1662_v7, %v1661_v46  ;;  %v2603_v63 = vpop.f32.mrf.mxu0  ;;  %v3463_v46 = vadd.f32 %v3211_v5, %v2954_v8  ;;  %v1883_v40 = vmul.f32 %v1123_v37, %v1123_v37 }
 0x15b   : > { %1480 = vst.msk [vmem:[%s2959_s10 + $0x188] sm:$0xff] %vm1430_vm0, %v1115_v20  ;;  %v1664_v1 = vsel %vm1430_vm0, %v1115_v20, 0.0  ;;  %v1881_v19 = vmul.f32 %v1115_v20, %v1115_v20  ;;  %v1136_v13 = vadd.f32 %v2603_v63, %v2954_v8  ;;  %v2059_v5 = vsel %vm1430_vm0, %v1882_v54, 0.0 }
 0x15c   : > { %v2056_v44 = vadd.f32 %v2055_v58, %v2054_v12  ;;  %v1665_v22 = vadd.f32 %v1664_v1, %v1663_v3  ;;  %v1127_v39 = vpop.f32.mrf.mxu0  ;;  %4206 = vst [vmem:[#allocation6_spill] sm:$0xff] %v3463_v46  ;;  %1521 = vst.msk [vmem:[%s2959_s10 + $0x2d0] sm:$0xff] %vm1430_vm0, %v3463_v46  ;;  %v1668_v58 = vsel %vm1430_vm0, %v1123_v37, 0.0  ;;  %v3482_v1 = vld [vmem:[%s4182_s2] ss:$0 sm:$0xff]  ;;  %v3489_v37 = vpop.f32.mrf.mxu1 }
 0x15d   : > { %v2057_v7 = vsel %vm1430_vm0, %v1881_v19, 0.0  ;;  %1485 = vst.msk [vmem:[%s2959_s10 + $0x1b0] sm:$0xff] %vm1430_vm0, %v1136_v13  ;;  %v1128_v20 = vadd.f32 %v2954_v8, %v1127_v39  ;;  %v3487_v54 = vadd.f32 %v3482_v1, %v3222_v18  ;;  %v2061_v39 = vsel %vm1430_vm0, %v1883_v40, 0.0 }
 0x15e   : > { %v1667_v63 = vadd.f32 %v1666_v36, %v1665_v22  ;;  %v2058_v12 = vadd.f32 %v2057_v7, %v2056_v44  ;;  %v2604_v3 = vpop.f32.mrf.mxu0 }
 0x15f   : > { %1483 = vst.msk [vmem:[%s2959_s10 + $0x1a0] sm:$0xff] %vm1430_vm0, %v1128_v20  ;;  %v1884_v23 = vmul.f32 %v1128_v20, %v1128_v20  ;;  %v1139_v8 = vadd.f32 %v3482_v1, %v2604_v3  ;;  %4207 = vst [vmem:[#allocation7_spill] sm:$0xff] %v3487_v54  ;;  %v1670_v36 = vsel %vm1430_vm0, %v1128_v20, 0.0  ;;  %v1886_v3 = vmul.f32 %v1136_v13, %v1136_v13 }
 0x160   : > { %v1669_v19 = vadd.f32 %v1668_v58, %v1667_v63  ;;  %v2060_v44 = vadd.f32 %v2059_v5, %v2058_v12  ;;  %v1130_v22 = vpop.f32.mrf.mxu0  ;;  %1519 = vst.msk [vmem:[%s2959_s10 + $0x2c0] sm:$0xff] %vm1430_vm0, %v3487_v54 }
 0x161   : > { %1486 = vst.msk [vmem:[%s2959_s10 + $0x1b8] sm:$0xff] %vm1430_vm0, %v1139_v8  ;;  %v1131_v7 = vadd.f32 %v3482_v1, %v1130_v22  ;;  %v2063_v18 = vsel %vm1430_vm0, %v1884_v23, 0.0  ;;  %v3508_v22 = vpop.f32.mrf.mxu1  ;;  %v1674_v23 = vsel %vm1430_vm0, %v1136_v13, 0.0 }
 0x162   : > { %v2062_v46 = vadd.f32 %v2061_v39, %v2060_v44  ;;  %v1671_v60 = vadd.f32 %v1670_v36, %v1669_v19  ;;  %v2607_v63 = vpop.f32.mrf.mxu0  ;;  %v3506_v19 = vadd.f32 %v3482_v1, %v3232_v33  ;;  %v1887_v39 = vmul.f32 %v1139_v8, %v1139_v8 }
 0x163   : > { %1484 = vst.msk [vmem:[%s2959_s10 + $0x1a8] sm:$0xff] %vm1430_vm0, %v1131_v7  ;;  %v1672_v40 = vsel %vm1430_vm0, %v1131_v7, 0.0  ;;  %v1885_v20 = vmul.f32 %v1131_v7, %v1131_v7  ;;  %v1152_v12 = vadd.f32 %v3482_v1, %v2607_v63  ;;  %v2067_v33 = vsel %vm1430_vm0, %v1886_v3, 0.0 }
 0x164   : > { %v2064_v5 = vadd.f32 %v2063_v18, %v2062_v46  ;;  %v1673_v58 = vadd.f32 %v1672_v40, %v1671_v60  ;;  %v1143_v44 = vpop.f32.mrf.mxu0  ;;  %4208 = vst [vmem:[#allocation8_spill] sm:$0xff] %v3506_v19  ;;  %1522 = vst.msk [vmem:[%s2959_s10 + $0x2d8] sm:$0xff] %vm1430_vm0, %v3506_v19  ;;  %v1676_v18 = vsel %vm1430_vm0, %v1139_v8, 0.0  ;;  %v2069_v3 = vsel %vm1430_vm0, %v1887_v39, 0.0 }
 0x165   : > { %v2065_v36 = vsel %vm1430_vm0, %v1885_v20, 0.0  ;;  %1489 = vst.msk [vmem:[%s2959_s10 + $0x1d0] sm:$0xff] %vm1430_vm0, %v1152_v12  ;;  %v1144_v7 = vadd.f32 %v3482_v1, %v1143_v44 }
 0x166   : > { %v1675_v63 = vadd.f32 %v1674_v23, %v1673_v58  ;;  %v2066_v46 = vadd.f32 %v2065_v36, %v2064_v5  ;;  %v2608_v60 = vpop.f32.mrf.mxu0  ;;  %v3525_v5 = vadd.f32 %v3482_v1, %v3243_v43  ;;  %v3527_v23 = vpop.f32.mrf.mxu1 }
 0x167   : > { %1487 = vst.msk [vmem:[%s2959_s10 + $0x1c0] sm:$0xff] %vm1430_vm0, %v1144_v7  ;;  %v1888_v13 = vmul.f32 %v1144_v7, %v1144_v7  ;;  %v1155_v40 = vadd.f32 %v3482_v1, %v2608_v60  ;;  %v1678_v8 = vsel %vm1430_vm0, %v1144_v7, 0.0  ;;  %v1890_v60 = vmul.f32 %v1152_v12, %v1152_v12 }
 0x168   : > { %v1677_v20 = vadd.f32 %v1676_v18, %v1675_v63  ;;  %v2068_v44 = vadd.f32 %v2067_v33, %v2066_v46  ;;  %v1146_v58 = vpop.f32.mrf.mxu0  ;;  %1520 = vst.msk [vmem:[%s2959_s10 + $0x2c8] sm:$0xff] %vm1430_vm0, %v3525_v5 }
 0x169   : > { %1490 = vst.msk [vmem:[%s2959_s10 + $0x1d8] sm:$0xff] %vm1430_vm0, %v1155_v40  ;;  %v1147_v36 = vadd.f32 %v3482_v1, %v1146_v58  ;;  %v2071_v43 = vsel %vm1430_vm0, %v1888_v13, 0.0  ;;  %v3546_v58 = vpop.f32.mrf.mxu1  ;;  %v1682_v13 = vsel %vm1430_vm0, %v1152_v12, 0.0 }
 0x16a   : > { %v2070_v19 = vadd.f32 %v2069_v3, %v2068_v44  ;;  %v1679_v54 = vadd.f32 %v1678_v8, %v1677_v20  ;;  %v2611_v63 = vpop.f32.mrf.mxu0  ;;  %v3544_v20 = vadd.f32 %v3482_v1, %v3253_v59  ;;  %v1891_v3 = vmul.f32 %v1155_v40, %v1155_v40 }
 0x16b   : > { %1488 = vst.msk [vmem:[%s2959_s10 + $0x1c8] sm:$0xff] %vm1430_vm0, %v1147_v36  ;;  %v1680_v39 = vsel %vm1430_vm0, %v1147_v36, 0.0  ;;  %v1889_v7 = vmul.f32 %v1147_v36, %v1147_v36  ;;  %v1168_v46 = vadd.f32 %v3482_v1, %v2611_v63  ;;  %v2075_v59 = vsel %vm1430_vm0, %v1890_v60, 0.0 }
 0x16c   : > { %v2072_v33 = vadd.f32 %v2071_v43, %v2070_v19  ;;  %v1681_v18 = vadd.f32 %v1680_v39, %v1679_v54  ;;  %v1159_v44 = vpop.f32.mrf.mxu0  ;;  %4209 = vst [vmem:[#allocation9_spill] sm:$0xff] %v3544_v20  ;;  %1525 = vst.msk [vmem:[%s2959_s10 + $0x2f0] sm:$0xff] %vm1430_vm0, %v3544_v20  ;;  %v1684_v43 = vsel %vm1430_vm0, %v1155_v40, 0.0  ;;  %v2077_v60 = vsel %vm1430_vm0, %v1891_v3, 0.0 }
 0x16d   : > { %v2073_v8 = vsel %vm1430_vm0, %v1889_v7, 0.0  ;;  %1493 = vst.msk [vmem:[%s2959_s10 + $0x1f0] sm:$0xff] %vm1430_vm0, %v1168_v46  ;;  %v1160_v36 = vadd.f32 %v3482_v1, %v1159_v44 }
 0x16e   : > { %v1683_v63 = vadd.f32 %v1682_v13, %v1681_v18  ;;  %v2074_v19 = vadd.f32 %v2073_v8, %v2072_v33  ;;  %v2612_v54 = vpop.f32.mrf.mxu0  ;;  %v3563_v33 = vadd.f32 %v3482_v1, %v3264_v15  ;;  %v3565_v13 = vpop.f32.mrf.mxu1 }
 0x16f   : > { %1491 = vst.msk [vmem:[%s2959_s10 + $0x1e0] sm:$0xff] %vm1430_vm0, %v1160_v36  ;;  %v1892_v12 = vmul.f32 %v1160_v36, %v1160_v36  ;;  %v1171_v39 = vadd.f32 %v3482_v1, %v2612_v54  ;;  %v1686_v40 = vsel %vm1430_vm0, %v1160_v36, 0.0  ;;  %v1894_v54 = vmul.f32 %v1168_v46, %v1168_v46 }
 0x170   : > { %v1685_v7 = vadd.f32 %v1684_v43, %v1683_v63  ;;  %v2076_v44 = vadd.f32 %v2075_v59, %v2074_v19  ;;  %v1162_v18 = vpop.f32.mrf.mxu0  ;;  %1523 = vst.msk [vmem:[%s2959_s10 + $0x2e0] sm:$0xff] %vm1430_vm0, %v3563_v33  ;;  %v3581_v36 = vadd.f32 %v3482_v1, %v3274_v25  ;;  %v3596_v25 = vadd.f32 %v3482_v1, %v3295_v55 }
 0x171   : > { %1494 = vst.msk [vmem:[%s2959_s10 + $0x1f8] sm:$0xff] %vm1430_vm0, %v1171_v39  ;;  %v1163_v8 = vadd.f32 %v3482_v1, %v1162_v18  ;;  %v2079_v15 = vsel %vm1430_vm0, %v1892_v12, 0.0  ;;  %v1690_v12 = vsel %vm1430_vm0, %v1168_v46, 0.0  ;;  %v1895_v18 = vmul.f32 %v1171_v39, %v1171_v39 }
 0x172   : > { %v2078_v20 = vadd.f32 %v2077_v60, %v2076_v44  ;;  %v1687_v63 = vadd.f32 %v1686_v40, %v1685_v7  ;;  %v3585_v7 = vadd.f32 %v3482_v1, %v3285_v48  ;;  %v3587_v44 = vpop.f32.mrf.mxu1  ;;  %1526 = vst.msk [vmem:[%s2959_s10 + $0x2f8] sm:$0xff] %vm1430_vm0, %v3581_v36  ;;  %v2083_v48 = vsel %vm1430_vm0, %v1894_v54, 0.0  ;;  %1529 = vst.msk [vmem:[%s2959_s10 + $0x310] sm:$0xff] %vm1430_vm0, %v3596_v25 }
 0x173   : > { %1492 = vst.msk [vmem:[%s2959_s10 + $0x1e8] sm:$0xff] %vm1430_vm0, %v1163_v8  ;;  %v1688_v3 = vsel %vm1430_vm0, %v1163_v8, 0.0  ;;  %v1893_v19 = vmul.f32 %v1163_v8, %v1163_v8  ;;  %v1692_v46 = vsel %vm1430_vm0, %v1171_v39, 0.0  ;;  %v1896_v8 = vmul.f32 %v2994_v45, %v2994_v45 }
 0x174   : > { %v2080_v59 = vadd.f32 %v2079_v15, %v2078_v20  ;;  %v1689_v43 = vadd.f32 %v1688_v3, %v1687_v63  ;;  %1524 = vst.msk [vmem:[%s2959_s10 + $0x2e8] sm:$0xff] %vm1430_vm0, %v3585_v7  ;;  %v3610_v55 = vadd.f32 %v3482_v1, %v3306_v17  ;;  %v3614_v3 = vadd.f32 %v3482_v1, %v3316_v2  ;;  %v3616_v54 = vpop.f32.mrf.mxu1 }
 0x175   : > { %v2081_v60 = vsel %vm1430_vm0, %v1893_v19, 0.0  ;;  %v2085_v39 = vsel %vm1430_vm0, %v1895_v18, 0.0  ;;  %v1694_v19 = vsel %vm1430_vm0, %v2994_v45, 0.0  ;;  %v3628_v17 = vadd.f32 %v3482_v1, %v3327_v41 }
 0x176   : > { %v1691_v20 = vadd.f32 %v1690_v12, %v1689_v43  ;;  %v2082_v40 = vadd.f32 %v2081_v60, %v2080_v59  ;;  %v1897_v59 = vmul.f32 %v3028_v16, %v3028_v16  ;;  %1527 = vst.msk [vmem:[%s2959_s10 + $0x300] sm:$0xff] %vm1430_vm0, %v3610_v55  ;;  %1530 = vst.msk [vmem:[%s2959_s10 + $0x318] sm:$0xff] %vm1430_vm0, %v3614_v3  ;;  %v2087_v45 = vsel %vm1430_vm0, %v1896_v8, 0.0 }
 0x177   : > { %v1898_v12 = vmul.f32 %v2978_v28, %v2978_v28  ;;  %v1696_v18 = vsel %vm1430_vm0, %v3028_v16, 0.0  ;;  %1528 = vst.msk [vmem:[%s2959_s10 + $0x308] sm:$0xff] %vm1430_vm0, %v3628_v17  ;;  %v3643_v41 = vadd.f32 %v3482_v1, %v3337_v61  ;;  %v1899_v16 = vmul.f32 %v3010_v62, %v3010_v62 }
 0x178   : > { %v1693_v63 = vadd.f32 %v1692_v46, %v1691_v20  ;;  %v2084_v15 = vadd.f32 %v2083_v48, %v2082_v40  ;;  %v3647_v40 = vadd.f32 %v3482_v1, %v3348_v30  ;;  %v3649_v48 = vpop.f32.mrf.mxu1  ;;  %v1698_v46 = vsel %vm1430_vm0, %v2978_v28, 0.0 }
 0x179   : > { %v2089_v8 = vsel %vm1430_vm0, %v1897_v59, 0.0  ;;  %1533 = vst.msk [vmem:[%s2959_s10 + $0x330] sm:$0xff] %vm1430_vm0, %v3643_v41  ;;  %v3661_v61 = vadd.f32 %v3482_v1, %v3358_v24  ;;  %v2091_v28 = vsel %vm1430_vm0, %v1898_v12, 0.0  ;;  %v3676_v24 = vadd.f32 %v3482_v1, %v3369_v53 }
 0x17a   : > { %v1695_v2 = vadd.f32 %v1694_v19, %v1693_v63  ;;  %v2086_v43 = vadd.f32 %v2085_v39, %v2084_v15  ;;  %1531 = vst.msk [vmem:[%s2959_s10 + $0x320] sm:$0xff] %vm1430_vm0, %v3647_v40  ;;  %v1700_v15 = vsel %vm1430_vm0, %v3010_v62, 0.0  ;;  %v1900_v39 = vmul.f32 %v3068_v52, %v3068_v52 }
 0x17b   : > { %1534 = vst.msk [vmem:[%s2959_s10 + $0x338] sm:$0xff] %vm1430_vm0, %v3661_v61  ;;  %v2093_v62 = vsel %vm1430_vm0, %v1899_v16, 0.0  ;;  %v1702_v12 = vsel %vm1430_vm0, %v3068_v52, 0.0  ;;  %1532 = vst.msk [vmem:[%s2959_s10 + $0x328] sm:$0xff] %vm1430_vm0, %v3676_v24  ;;  %v3694_v53 = vadd.f32 %v3482_v1, %v3390_v32  ;;  %v3709_v32 = vadd.f32 %v3482_v1, %v3400_v9 }
 0x17c   : > { %v2088_v60 = vadd.f32 %v2087_v45, %v2086_v43  ;;  %v1697_v20 = vadd.f32 %v1696_v18, %v1695_v2  ;;  %v3680_v2 = vadd.f32 %v3482_v1, %v3379_v42  ;;  %v3682_v43 = vpop.f32.mrf.mxu1  ;;  %v1901_v45 = vmul.f32 %v3110_v26, %v3110_v26 }
 0x17d   : > { %v2095_v52 = vsel %vm1430_vm0, %v1900_v39, 0.0  ;;  %1535 = vst.msk [vmem:[%s2959_s10 + $0x340] sm:$0xff] %vm1430_vm0, %v3694_v53  ;;  %1538 = vst.msk [vmem:[%s2959_s10 + $0x358] sm:$0xff] %vm1430_vm0, %v3709_v32  ;;  %v3727_v9 = vadd.f32 %v3482_v1, %v3421_v21  ;;  %v1708_v39 = vsel %vm1430_vm0, %v3089_v6, 0.0  ;;  %v3742_v21 = vadd.f32 %v3482_v1, %v3432_v49 }
 0x17e   : > { %v1699_v30 = vadd.f32 %v1698_v46, %v1697_v20  ;;  %v2090_v63 = vadd.f32 %v2089_v8, %v2088_v60  ;;  %1537 = vst.msk [vmem:[%s2959_s10 + $0x350] sm:$0xff] %vm1430_vm0, %v3680_v2  ;;  %v1902_v60 = vmul.f32 %v3048_v34, %v3048_v34  ;;  %v1704_v20 = vsel %vm1430_vm0, %v3110_v26, 0.0 }
 0x17f   : > { %v3713_v8 = vadd.f32 %v3482_v1, %v3411_v29  ;;  %v1903_v26 = vmul.f32 %v3089_v6, %v3089_v6  ;;  %1541 = vst.msk [vmem:[%s2959_s10 + $0x370] sm:$0xff] %vm1430_vm0, %v3727_v9  ;;  %1539 = vst.msk [vmem:[%s2959_s10 + $0x360] sm:$0xff] %vm1430_vm0, %v3742_v21  ;;  %v3760_v49 = vadd.f32 %v3482_v1, %v3465_v10 }
 0x180   : > { %v2092_v19 = vadd.f32 %v2091_v28, %v2090_v63  ;;  %v1701_v59 = vadd.f32 %v1700_v15, %v1699_v30  ;;  %v3715_v30 = vpop.f32.mrf.mxu1  ;;  %v1706_v63 = vsel %vm1430_vm0, %v3048_v34, 0.0  ;;  %v2097_v28 = vsel %vm1430_vm0, %v1901_v45, 0.0 }
 0x181   : > { %1536 = vst.msk [vmem:[%s2959_s10 + $0x348] sm:$0xff] %vm1430_vm0, %v3713_v8  ;;  %v2099_v34 = vsel %vm1430_vm0, %v1902_v60, 0.0  ;;  %v2101_v6 = vsel %vm1430_vm0, %v1903_v26, 0.0  ;;  %1540 = vst.msk [vmem:[%s2959_s10 + $0x368] sm:$0xff] %vm1430_vm0, %v3760_v49  ;;  %v3775_v10 = vadd.f32 %v3482_v1, %v3489_v37  ;;  %v3791_v37 = vadd.f32 %v3482_v1, %v3527_v23 }
 0x182   : > { %v1703_v42 = vadd.f32 %v1702_v12, %v1701_v59  ;;  %v2094_v18 = vadd.f32 %v2093_v62, %v2092_v19  ;;  %v1904_v19 = vmul.f32 %v3152_v4, %v3152_v4  ;;  %v3746_v12 = vadd.f32 %v3482_v1, %v3446_v57  ;;  %v3748_v45 = vpop.f32.mrf.mxu1 }
 0x183   : > { %1545 = vst.msk [vmem:[%s2959_s10 + $0x390] sm:$0xff] %vm1430_vm0, %v3775_v10  ;;  %1546 = vst.msk [vmem:[%s2959_s10 + $0x398] sm:$0xff] %vm1430_vm0, %v3791_v37  ;;  %v3806_v23 = vadd.f32 %v3482_v1, %v3546_v58  ;;  %v3822_v58 = vadd.f32 %v3482_v1, %v3587_v44  ;;  %v3837_v44 = vadd.f32 %v3482_v1, %v3616_v54 }
 0x184   : > { %v2096_v46 = vadd.f32 %v2095_v52, %v2094_v18  ;;  %v1705_v16 = vadd.f32 %v1704_v20, %v1703_v42  ;;  %v1710_v42 = vsel %vm1430_vm0, %v3152_v4, 0.0  ;;  %v1905_v18 = vmul.f32 %v3194_v51, %v3194_v51  ;;  %1542 = vst.msk [vmem:[%s2959_s10 + $0x378] sm:$0xff] %vm1430_vm0, %v3746_v12  ;;  %v1402_v26 = vpop.f32.mrf.mxu1 }
 0x185   : > { %v1906_v52 = vmul.f32 %v3131_v47, %v3131_v47  ;;  %v2103_v4 = vsel %vm1430_vm0, %v1904_v19, 0.0  ;;  %v1712_v20 = vsel %vm1430_vm0, %v3194_v51, 0.0  ;;  %v1907_v51 = vmul.f32 %v3173_v27, %v3173_v27  ;;  %1544 = vst.msk [vmem:[%s2959_s10 + $0x388] sm:$0xff] %vm1430_vm0, %v3806_v23  ;;  %1547 = vst.msk [vmem:[%s2959_s10 + $0x3a0] sm:$0xff] %vm1430_vm0, %v3822_v58 }
 0x186   : > { %v1707_v29 = vadd.f32 %v1706_v63, %v1705_v16  ;;  %v2098_v15 = vadd.f32 %v2097_v28, %v2096_v46  ;;  %v3779_v63 = vadd.f32 %v3482_v1, %v3508_v22  ;;  %v1714_v28 = vsel %vm1430_vm0, %v3131_v47, 0.0  ;;  %1550 = vst.msk [vmem:[%s2959_s10 + $0x3b8] sm:$0xff] %vm1430_vm0, %v3837_v44 }
 0x187   : > { %v2107_v47 = vsel %vm1430_vm0, %v1906_v52, 0.0  ;;  %v1720_v52 = vsel %vm1430_vm0, %v3278_v35, 0.0  ;;  %v3853_v54 = vadd.f32 %v3482_v1, %v3682_v43  ;;  %v3868_v43 = vadd.f32 %v3482_v1, %v3715_v30 }
 0x188   : > { %v2100_v59 = vadd.f32 %v2099_v34, %v2098_v15  ;;  %v1709_v62 = vadd.f32 %v1708_v39, %v1707_v29  ;;  %v2105_v29 = vsel %vm1430_vm0, %v1905_v18, 0.0  ;;  %1543 = vst.msk [vmem:[%s2959_s10 + $0x380] sm:$0xff] %vm1430_vm0, %v3779_v63  ;;  %v1716_v34 = vsel %vm1430_vm0, %v3173_v27, 0.0 }
 0x189   : > { %v1908_v39 = vmul.f32 %v3236_v38, %v3236_v38  ;;  %v2109_v27 = vsel %vm1430_vm0, %v1907_v51, 0.0  ;;  %v1909_v18 = vmul.f32 %v3278_v35, %v3278_v35  ;;  %v1911_v35 = vmul.f32 %v3257_v0, %v3257_v0  ;;  %1553 = vst.msk [vmem:[%s2959_s10 + $0x3d0] sm:$0xff] %vm1430_vm0, %v3853_v54  ;;  %1551 = vst.msk [vmem:[%s2959_s10 + $0x3c0] sm:$0xff] %vm1430_vm0, %v3868_v43 }
 0x18a   : > { %v1711_v57 = vadd.f32 %v1710_v42, %v1709_v62  ;;  %v2102_v60 = vadd.f32 %v2101_v6, %v2100_v59  ;;  %v3810_v62 = vadd.f32 %v3482_v1, %v3565_v13  ;;  %v2675_v6 = vpop.f32.mrf.mxu1  ;;  %v1718_v42 = vsel %vm1430_vm0, %v3236_v38, 0.0 }
 0x18b   : > { %v2111_v38 = vsel %vm1430_vm0, %v1908_v39, 0.0  ;;  %v2113_v51 = vsel %vm1430_vm0, %v1909_v18, 0.0  ;;  %v3872_v39 = vadd.f32 %v3482_v1, %v3748_v45  ;;  %v3883_v30 = vadd.f32 %v3482_v1, %v1402_v26 }
 0x18c   : > { %v2104_v46 = vadd.f32 %v2103_v4, %v2102_v60  ;;  %v1713_v16 = vadd.f32 %v1712_v20, %v1711_v57  ;;  %1549 = vst.msk [vmem:[%s2959_s10 + $0x3b0] sm:$0xff] %vm1430_vm0, %v3810_v62  ;;  %v1910_v60 = vmul.f32 %v3215_v14, %v3215_v14  ;;  %v1914_v45 = vmul.f32 %v3299_v56, %v3299_v56 }
 0x18d   : > { %1554 = vst.msk [vmem:[%s2959_s10 + $0x3d8] sm:$0xff] %vm1430_vm0, %v3872_v39  ;;  %1552 = vst.msk [vmem:[%s2959_s10 + $0x3c8] sm:$0xff] %vm1430_vm0, %v3883_v30  ;;  %v3897_v26 = vadd.f32 %v3482_v1, %v2675_v6 }
 0x18e   : > { %v1715_v15 = vadd.f32 %v1714_v28, %v1713_v16  ;;  %v2106_v22 = vadd.f32 %v2105_v29, %v2104_v46  ;;  %v3841_v46 = vadd.f32 %v3482_v1, %v3649_v48  ;;  %v1415_v16 = vpop.f32.mrf.mxu1  ;;  %v1722_v28 = vsel %vm1430_vm0, %v3215_v14, 0.0 }
 0x18f   : > { %v2115_v14 = vsel %vm1430_vm0, %v1910_v60, 0.0  ;;  %1557 = vst.msk [vmem:[%s2959_s10 + $0x3f0] sm:$0xff] %vm1430_vm0, %v3897_v26 }
 0x190   : > { %v2108_v19 = vadd.f32 %v2107_v47, %v2106_v22  ;;  %v1717_v59 = vadd.f32 %v1716_v34, %v1715_v15  ;;  %1548 = vst.msk [vmem:[%s2959_s10 + $0x3a8] sm:$0xff] %vm1430_vm0, %v3841_v46  ;;  %v1724_v15 = vsel %vm1430_vm0, %v3257_v0, 0.0  ;;  %v1912_v22 = vmul.f32 %v3320_v31, %v3320_v31 }
 0x191   : > { %v2117_v0 = vsel %vm1430_vm0, %v1911_v35, 0.0 }
 0x192   : > { %v1719_v57 = vadd.f32 %v1718_v42, %v1717_v59  ;;  %v2110_v13 = vadd.f32 %v2109_v27, %v2108_v19  ;;  %v2676_v19 = vpop.f32.mrf.mxu1  ;;  %v1726_v59 = vsel %vm1430_vm0, %v3320_v31, 0.0  ;;  %v1913_v27 = vmul.f32 %v3362_v50, %v3362_v50 }
 0x193   : > { %v2119_v31 = vsel %vm1430_vm0, %v1912_v22, 0.0  ;;  %v3911_v6 = vadd.f32 %v3482_v1, %v2676_v19 }
 0x194   : > { %v2112_v4 = vadd.f32 %v2111_v38, %v2110_v13  ;;  %v1721_v20 = vadd.f32 %v1720_v52, %v1719_v57  ;;  %v1728_v57 = vsel %vm1430_vm0, %v3362_v50, 0.0  ;;  %v3900_v38 = vadd.f32 %v3482_v1, %v1415_v16  ;;  %v1418_v52 = vpop.f32.mrf.mxu1 }
 0x195   : > { %v1915_v50 = vmul.f32 %v3341_v11, %v3341_v11  ;;  %v2123_v16 = vsel %vm1430_vm0, %v1914_v45, 0.0  ;;  %1558 = vst.msk [vmem:[%s2959_s10 + $0x3f8] sm:$0xff] %vm1430_vm0, %v3911_v6 }
 0x196   : > { %v1723_v29 = vadd.f32 %v1722_v28, %v1721_v20  ;;  %v2114_v48 = vadd.f32 %v2113_v51, %v2112_v4  ;;  %v1730_v4 = vsel %vm1430_vm0, %v3299_v56, 0.0  ;;  %v2121_v20 = vsel %vm1430_vm0, %v1913_v27, 0.0  ;;  %1555 = vst.msk [vmem:[%s2959_s10 + $0x3e0] sm:$0xff] %vm1430_vm0, %v3900_v38  ;;  %v4210_v51 = vld [vmem:[#allocation3_spill] sm:$0xff] }
 0x197   : > { %v1732_v56 = vsel %vm1430_vm0, %v3341_v11, 0.0  ;;  %v3937_v11 = vadd.f32 %v3482_v1, %v1418_v52  ;;  %v1734_v22 = vsel %vm1430_vm0, %v4210_v51, 0.0  ;;  %v4212_v1 = vld [vmem:[#allocation2_spill] sm:$0xff] }
 0x198   : > { %v2116_v47 = vadd.f32 %v2115_v14, %v2114_v48  ;;  %v1725_v34 = vadd.f32 %v1724_v15, %v1723_v29  ;;  %v1916_v29 = vmul.f32 %v4210_v51, %v4210_v51  ;;  %v2125_v15 = vsel %vm1430_vm0, %v1915_v50, 0.0 }
 0x199   : > { %1556 = vst.msk [vmem:[%s2959_s10 + $0x3e8] sm:$0xff] %vm1430_vm0, %v3937_v11  ;;  %v1918_v27 = vmul.f32 %v4212_v1, %v4212_v1 }
 0x19a   : > { %v1727_v42 = vadd.f32 %v1726_v59, %v1725_v34  ;;  %v2118_v18 = vadd.f32 %v2117_v0, %v2116_v47  ;;  %v4211_v47 = vld [vmem:[#allocation5_spill] sm:$0xff]  ;;  %v2815_v59 = vmov 0.0  }
 0x19b   : > { %v1917_v34 = vmul.f32 %v4211_v47, %v4211_v47  ;;  %1564 = vst.msk [vmem:[%s3928_s15] sm:$0x1] %vm1563_vm1, %v2815_v59  ;;  %1565 = vst.msk [vmem:[%s3934_s22] sm:$0x1] %vm1563_vm1, %v2815_v59 }
 0x19c   : > { %v2120_v13 = vadd.f32 %v2119_v31, %v2118_v18  ;;  %v1729_v60 = vadd.f32 %v1728_v57, %v1727_v42  ;;  %v2127_v42 = vsel %vm1430_vm0, %v1916_v29, 0.0  ;;  %v1736_v18 = vsel %vm1430_vm0, %v4211_v47, 0.0  ;;  %v4215_v47 = vld [vmem:[#allocation6_spill] sm:$0xff] }
 0x19d   : > { %v1738_v57 = vsel %vm1430_vm0, %v4212_v1, 0.0  ;;  %v2129_v52 = vsel %vm1430_vm0, %v1917_v34, 0.0  ;;  %v1922_v34 = vmul.f32 %v4215_v47, %v4215_v47 }
 0x19e   : > { %v1731_v28 = vadd.f32 %v1730_v4, %v1729_v60  ;;  %v2122_v35 = vadd.f32 %v2121_v20, %v2120_v13  ;;  %v4213_v13 = vld [vmem:[#allocation4_spill] sm:$0xff]  ;;  %v2131_v20 = vsel %vm1430_vm0, %v1918_v27, 0.0  ;;  %v1746_v27 = vsel %vm1430_vm0, %v4215_v47, 0.0 }
 0x19f   : > { %v1919_v60 = vmul.f32 %v4213_v13, %v4213_v13 }
 0x1a0   : > { %v2124_v48 = vadd.f32 %v2123_v16, %v2122_v35  ;;  %v1733_v14 = vadd.f32 %v1732_v56, %v1731_v28  ;;  %v1740_v28 = vsel %vm1430_vm0, %v4213_v13, 0.0  ;;  %v4214_v35 = vld [vmem:[#allocation7_spill] sm:$0xff]  ;;  %v2139_v13 = vsel %vm1430_vm0, %v1922_v34, 0.0 }
 0x1a1   : > { %v1920_v16 = vmul.f32 %v4214_v35, %v4214_v35  ;;  %v2133_v29 = vsel %vm1430_vm0, %v1919_v60, 0.0 }
 0x1a2   : > { %v1735_v19 = vadd.f32 %v1734_v22, %v1733_v14  ;;  %v2126_v0 = vadd.f32 %v2125_v15, %v2124_v48  ;;  %v1742_v48 = vsel %vm1430_vm0, %v4214_v35, 0.0  ;;  %v1921_v14 = vmul.f32 %v3525_v5, %v3525_v5 }
 0x1a4   : > { %v2128_v45 = vadd.f32 %v2127_v42, %v2126_v0  ;;  %v1737_v31 = vadd.f32 %v1736_v18, %v1735_v19  ;;  %v2135_v19 = vsel %vm1430_vm0, %v1920_v16, 0.0  ;;  %v1744_v0 = vsel %vm1430_vm0, %v3525_v5, 0.0  ;;  %v4216_v42 = vld [vmem:[#allocation8_spill] sm:$0xff] }
 0x1a5   : > { %v1923_v18 = vmul.f32 %v4216_v42, %v4216_v42  ;;  %v1748_v60 = vsel %vm1430_vm0, %v4216_v42, 0.0  ;;  %v1924_v5 = vmul.f32 %v3563_v33, %v3563_v33 }
 0x1a6   : > { %v1739_v4 = vadd.f32 %v1738_v57, %v1737_v31  ;;  %v2130_v50 = vadd.f32 %v2129_v52, %v2128_v45  ;;  %v2137_v45 = vsel %vm1430_vm0, %v1921_v14, 0.0 }
 0x1a8   : > { %v2132_v56 = vadd.f32 %v2131_v20, %v2130_v50  ;;  %v1741_v51 = vadd.f32 %v1740_v28, %v1739_v4  ;;  %v2141_v50 = vsel %vm1430_vm0, %v1923_v18, 0.0  ;;  %v1750_v20 = vsel %vm1430_vm0, %v3563_v33, 0.0 }
 0x1a9   : > { %v1925_v28 = vmul.f32 %v3585_v7, %v3585_v7  ;;  %v1927_v33 = vmul.f32 %v3581_v36, %v3581_v36  ;;  %v1758_v18 = vsel %vm1430_vm0, %v3610_v55, 0.0 }
 0x1aa   : > { %v1743_v15 = vadd.f32 %v1742_v48, %v1741_v51  ;;  %v2134_v22 = vadd.f32 %v2133_v29, %v2132_v56  ;;  %v4217_v56 = vld [vmem:[#allocation9_spill] sm:$0xff]  ;;  %v2143_v29 = vsel %vm1430_vm0, %v1924_v5, 0.0  ;;  %v1752_v48 = vsel %vm1430_vm0, %v3585_v7, 0.0 }
 0x1ab   : > { %v1926_v51 = vmul.f32 %v4217_v56, %v4217_v56  ;;  %v2145_v47 = vsel %vm1430_vm0, %v1925_v28, 0.0  ;;  %v1928_v7 = vmul.f32 %v3610_v55, %v3610_v55  ;;  %v2149_v42 = vsel %vm1430_vm0, %v1927_v33, 0.0 }
 0x1ac   : > { %v2136_v59 = vadd.f32 %v2135_v19, %v2134_v22  ;;  %v1745_v1 = vadd.f32 %v1744_v0, %v1743_v15  ;;  %v1754_v22 = vsel %vm1430_vm0, %v4217_v56, 0.0  ;;  %v1931_v55 = vmul.f32 %v3614_v3, %v3614_v3 }
 0x1ad   : > { %v2147_v0 = vsel %vm1430_vm0, %v1926_v51, 0.0  ;;  %v1768_v33 = vsel %vm1430_vm0, %v3676_v24, 0.0 }
 0x1ae   : > { %v1747_v31 = vadd.f32 %v1746_v27, %v1745_v1  ;;  %v2138_v57 = vadd.f32 %v2137_v45, %v2136_v59  ;;  %v1756_v59 = vsel %vm1430_vm0, %v3581_v36, 0.0  ;;  %v1929_v45 = vmul.f32 %v3628_v17, %v3628_v17 }
 0x1af   : > { %v2151_v36 = vsel %vm1430_vm0, %v1928_v7, 0.0 }
 0x1b0   : > { %v2140_v52 = vadd.f32 %v2139_v13, %v2138_v57  ;;  %v1749_v4 = vadd.f32 %v1748_v60, %v1747_v31  ;;  %v1930_v13 = vmul.f32 %v3596_v25, %v3596_v25  ;;  %v1760_v60 = vsel %vm1430_vm0, %v3628_v17, 0.0 }
 0x1b1   : > { %v1932_v17 = vmul.f32 %v3647_v40, %v3647_v40 }
 0x1b2   : > { %v1751_v35 = vadd.f32 %v1750_v20, %v1749_v4  ;;  %v2142_v16 = vadd.f32 %v2141_v50, %v2140_v52  ;;  %v1762_v4 = vsel %vm1430_vm0, %v3596_v25, 0.0  ;;  %v2153_v50 = vsel %vm1430_vm0, %v1929_v45, 0.0 }
 0x1b3   : > { %v1766_v25 = vsel %vm1430_vm0, %v3647_v40, 0.0  ;;  %v1935_v40 = vmul.f32 %v3661_v61, %v3661_v61 }
 0x1b4   : > { %v2144_v14 = vadd.f32 %v2143_v29, %v2142_v16  ;;  %v1753_v15 = vadd.f32 %v1752_v48, %v1751_v35  ;;  %v2155_v35 = vsel %vm1430_vm0, %v1930_v13, 0.0  ;;  %v1764_v16 = vsel %vm1430_vm0, %v3614_v3, 0.0 }
 0x1b5   : > { %v2157_v29 = vsel %vm1430_vm0, %v1931_v55, 0.0  ;;  %v1933_v48 = vmul.f32 %v3676_v24, %v3676_v24  ;;  %v2159_v3 = vsel %vm1430_vm0, %v1932_v17, 0.0  ;;  %v1936_v24 = vmul.f32 %v3694_v53, %v3694_v53 }
 0x1b6   : > { %v1755_v34 = vadd.f32 %v1754_v22, %v1753_v15  ;;  %v2146_v19 = vadd.f32 %v2145_v47, %v2144_v14  ;;  %v1934_v22 = vmul.f32 %v3643_v41, %v3643_v41  ;;  %v2165_v45 = vsel %vm1430_vm0, %v1935_v40, 0.0 }
 0x1b7   : > { %v1788_v40 = vsel %vm1430_vm0, %v3746_v12, 0.0 }
 0x1b8   : > { %v2148_v1 = vadd.f32 %v2147_v0, %v2146_v19  ;;  %v1757_v27 = vadd.f32 %v1756_v59, %v1755_v34  ;;  %v1770_v19 = vsel %vm1430_vm0, %v3643_v41, 0.0  ;;  %v2161_v0 = vsel %vm1430_vm0, %v1933_v48, 0.0 }
 0x1b9   : > { %v1774_v41 = vsel %vm1430_vm0, %v3694_v53, 0.0  ;;  %v1939_v53 = vmul.f32 %v3709_v32, %v3709_v32  ;;  %v1942_v48 = vmul.f32 %v3727_v9, %v3727_v9 }
 0x1ba   : > { %v1759_v31 = vadd.f32 %v1758_v18, %v1757_v27  ;;  %v2150_v57 = vadd.f32 %v2149_v42, %v2148_v1  ;;  %v2163_v1 = vsel %vm1430_vm0, %v1934_v22, 0.0  ;;  %v1772_v27 = vsel %vm1430_vm0, %v3661_v61, 0.0 }
 0x1bb   : > { %v2167_v61 = vsel %vm1430_vm0, %v1936_v24, 0.0 }
 0x1bc   : > { %v2152_v5 = vadd.f32 %v2151_v36, %v2150_v57  ;;  %v1761_v52 = vadd.f32 %v1760_v60, %v1759_v31  ;;  %v1937_v31 = vmul.f32 %v3713_v8, %v3713_v8  ;;  %v1938_v36 = vmul.f32 %v3680_v2, %v3680_v2 }
 0x1bd   : > { %v1776_v60 = vsel %vm1430_vm0, %v3713_v8, 0.0  ;;  %v1940_v8 = vmul.f32 %v3742_v21, %v3742_v21 }
 0x1be   : > { %v1763_v20 = vadd.f32 %v1762_v4, %v1761_v52  ;;  %v2154_v28 = vadd.f32 %v2153_v50, %v2152_v5  ;;  %v1778_v4 = vsel %vm1430_vm0, %v3680_v2, 0.0  ;;  %v2169_v55 = vsel %vm1430_vm0, %v1937_v31, 0.0 }
 0x1bf   : > { %v1782_v2 = vsel %vm1430_vm0, %v3742_v21, 0.0  ;;  %v1943_v21 = vmul.f32 %v3746_v12, %v3746_v12  ;;  %v1794_v31 = vsel %vm1430_vm0, %v3775_v10, 0.0 }
 0x1c0   : > { %v2156_v56 = vadd.f32 %v2155_v35, %v2154_v28  ;;  %v1765_v51 = vadd.f32 %v1764_v16, %v1763_v20  ;;  %v2171_v28 = vsel %vm1430_vm0, %v1938_v36, 0.0  ;;  %v1780_v35 = vsel %vm1430_vm0, %v3709_v32, 0.0 }
 0x1c1   : > { %v2175_v32 = vsel %vm1430_vm0, %v1940_v8, 0.0 }
 0x1c2   : > { %v1767_v14 = vadd.f32 %v1766_v25, %v1765_v51  ;;  %v2158_v15 = vadd.f32 %v2157_v29, %v2156_v56  ;;  %v2173_v56 = vsel %vm1430_vm0, %v1939_v53, 0.0  ;;  %v1941_v51 = vmul.f32 %v3760_v49, %v3760_v49 }
 0x1c3   : > { %v1949_v53 = vmul.f32 %v3841_v46, %v3841_v46 }
 0x1c4   : > { %v2160_v47 = vadd.f32 %v2159_v3, %v2158_v15  ;;  %v1769_v34 = vadd.f32 %v1768_v33, %v1767_v14  ;;  %v1784_v14 = vsel %vm1430_vm0, %v3760_v49, 0.0  ;;  %v1786_v3 = vsel %vm1430_vm0, %v3727_v9, 0.0 }
 0x1c5   : > { %v2177_v33 = vsel %vm1430_vm0, %v1941_v51, 0.0  ;;  %v1944_v49 = vmul.f32 %v3779_v63, %v3779_v63  ;;  %v1790_v9 = vsel %vm1430_vm0, %v3779_v63, 0.0  ;;  %v1947_v63 = vmul.f32 %v3791_v37, %v3791_v37 }
 0x1c6   : > { %v1771_v59 = vadd.f32 %v1770_v19, %v1769_v34  ;;  %v2162_v7 = vadd.f32 %v2161_v0, %v2160_v47  ;;  %v2179_v19 = vsel %vm1430_vm0, %v1942_v48, 0.0 }
 0x1c7   : > { %v2183_v12 = vsel %vm1430_vm0, %v1944_v49, 0.0 }
 0x1c8   : > { %v2164_v42 = vadd.f32 %v2163_v1, %v2162_v7  ;;  %v1773_v18 = vadd.f32 %v1772_v27, %v1771_v59  ;;  %v2181_v7 = vsel %vm1430_vm0, %v1943_v21, 0.0  ;;  %v1945_v1 = vmul.f32 %v3806_v23, %v3806_v23 }
 0x1c9   : > { %v1808_v21 = vsel %vm1430_vm0, %v3883_v30, 0.0 }
 0x1ca   : > { %v1775_v57 = vadd.f32 %v1774_v41, %v1773_v18  ;;  %v2166_v13 = vadd.f32 %v2165_v45, %v2164_v42  ;;  %v1946_v42 = vmul.f32 %v3775_v10, %v3775_v10  ;;  %v1792_v18 = vsel %vm1430_vm0, %v3806_v23, 0.0 }
 0x1cb   : > { %v1948_v23 = vmul.f32 %v3822_v58, %v3822_v58  ;;  %v1798_v10 = vsel %vm1430_vm0, %v3822_v58, 0.0  ;;  %v1951_v58 = vmul.f32 %v3837_v44, %v3837_v44 }
 0x1cc   : > { %v2168_v5 = vadd.f32 %v2167_v61, %v2166_v13  ;;  %v1777_v52 = vadd.f32 %v1776_v60, %v1775_v57  ;;  %v2185_v57 = vsel %vm1430_vm0, %v1945_v1, 0.0  ;;  %v2187_v61 = vsel %vm1430_vm0, %v1946_v42, 0.0 }
 0x1cd   : > { %v1796_v60 = vsel %vm1430_vm0, %v3791_v37, 0.0  ;;  %v2191_v37 = vsel %vm1430_vm0, %v1948_v23, 0.0 }
 0x1ce   : > { %v1779_v50 = vadd.f32 %v1778_v4, %v1777_v52  ;;  %v2170_v20 = vadd.f32 %v2169_v55, %v2168_v5  ;;  %v2189_v4 = vsel %vm1430_vm0, %v1947_v63, 0.0 }
 0x1d0   : > { %v2172_v16 = vadd.f32 %v2171_v28, %v2170_v20  ;;  %v1781_v17 = vadd.f32 %v1780_v35, %v1779_v50  ;;  %v1950_v20 = vmul.f32 %v3810_v62, %v3810_v62  ;;  %v1800_v28 = vsel %vm1430_vm0, %v3841_v46, 0.0 }
 0x1d1   : > { %v1952_v46 = vmul.f32 %v3868_v43, %v3868_v43 }
 0x1d2   : > { %v1783_v29 = vadd.f32 %v1782_v2, %v1781_v17  ;;  %v2174_v25 = vadd.f32 %v2173_v56, %v2172_v16  ;;  %v1802_v16 = vsel %vm1430_vm0, %v3810_v62, 0.0  ;;  %v2193_v17 = vsel %vm1430_vm0, %v1949_v53, 0.0 }
 0x1d3   : > { %v2195_v51 = vsel %vm1430_vm0, %v1950_v20, 0.0  ;;  %v1806_v62 = vsel %vm1430_vm0, %v3868_v43, 0.0  ;;  %v1955_v43 = vmul.f32 %v3872_v39, %v3872_v39 }
 0x1d4   : > { %v2176_v15 = vadd.f32 %v2175_v32, %v2174_v25  ;;  %v1785_v22 = vadd.f32 %v1784_v14, %v1783_v29  ;;  %v1804_v29 = vsel %vm1430_vm0, %v3837_v44, 0.0  ;;  %v2197_v32 = vsel %vm1430_vm0, %v1951_v58, 0.0 }
 0x1d5   : > { %v1953_v14 = vmul.f32 %v3883_v30, %v3883_v30  ;;  %v2199_v44 = vsel %vm1430_vm0, %v1952_v46, 0.0  ;;  %v1956_v30 = vmul.f32 %v3900_v38, %v3900_v38  ;;  %v2205_v1 = vsel %vm1430_vm0, %v1955_v43, 0.0 }
 0x1d6   : > { %v1787_v47 = vadd.f32 %v1786_v3, %v1785_v22  ;;  %v2178_v34 = vadd.f32 %v2177_v33, %v2176_v15  ;;  %v1954_v3 = vmul.f32 %v3853_v54, %v3853_v54 }
 0x1d8   : > { %v2180_v0 = vadd.f32 %v2179_v19, %v2178_v34  ;;  %v1789_v59 = vadd.f32 %v1788_v40, %v1787_v47  ;;  %v1810_v34 = vsel %vm1430_vm0, %v3853_v54, 0.0  ;;  %v2201_v19 = vsel %vm1430_vm0, %v1953_v14, 0.0 }
 0x1d9   : > { %v1814_v54 = vsel %vm1430_vm0, %v3900_v38, 0.0  ;;  %v1959_v38 = vmul.f32 %v3911_v6, %v3911_v6 }
 0x1da   : > { %v1791_v27 = vadd.f32 %v1790_v9, %v1789_v59  ;;  %v2182_v24 = vadd.f32 %v2181_v7, %v2180_v0  ;;  %v2203_v0 = vsel %vm1430_vm0, %v1954_v3, 0.0  ;;  %v1812_v59 = vsel %vm1430_vm0, %v3872_v39, 0.0 }
 0x1db   : > { %v2207_v39 = vsel %vm1430_vm0, %v1956_v30, 0.0  ;;  %v2213_v23 = vsel %vm1430_vm0, %v1959_v38, 0.0 }
 0x1dc   : > { %v2184_v45 = vadd.f32 %v2183_v12, %v2182_v24  ;;  %v1793_v41 = vadd.f32 %v1792_v18, %v1791_v27  ;;  %v1957_v27 = vmul.f32 %v3937_v11, %v3937_v11  ;;  %v1958_v12 = vmul.f32 %v3897_v26, %v3897_v26 }
 0x1dd   : > { %v1816_v18 = vsel %vm1430_vm0, %v3937_v11, 0.0 }
 0x1de   : > { %v1795_v13 = vadd.f32 %v1794_v31, %v1793_v41  ;;  %v2186_v36 = vadd.f32 %v2185_v57, %v2184_v45  ;;  %v1818_v31 = vsel %vm1430_vm0, %v3897_v26, 0.0  ;;  %v2209_v63 = vsel %vm1430_vm0, %v1957_v27, 0.0 }
 0x1e0   : > { %v2188_v5 = vadd.f32 %v2187_v61, %v2186_v36  ;;  %v1797_v52 = vadd.f32 %v1796_v60, %v1795_v13  ;;  %v2211_v36 = vsel %vm1430_vm0, %v1958_v12, 0.0  ;;  %v1820_v61 = vsel %vm1430_vm0, %v3911_v6, 0.0 }
 0x1e2   : > { %v1799_v55 = vadd.f32 %v1798_v10, %v1797_v52  ;;  %v2190_v50 = vadd.f32 %v2189_v4, %v2188_v5 }
 0x1e4   : > { %v2192_v35 = vadd.f32 %v2191_v37, %v2190_v50  ;;  %v1801_v8 = vadd.f32 %v1800_v28, %v1799_v55  ;;  %v1566_v28 = vld [vmem:[%s3928_s15] sm:$0x1] }
 0x1e6   : > { %v1803_v56 = vadd.f32 %v1802_v16, %v1801_v8  ;;  %v2194_v2 = vadd.f32 %v2193_v17, %v2192_v35  ;;  %v1831_v8 = vld [vmem:[%s3934_s22] sm:$0x1] }
 0x1e8   : > { %v2196_v25 = vadd.f32 %v2195_v51, %v2194_v2  ;;  %v1805_v48 = vadd.f32 %v1804_v29, %v1803_v56 }
 0x1ea   : > { %v1807_v15 = vadd.f32 %v1806_v62, %v1805_v48  ;;  %v2198_v22 = vadd.f32 %v2197_v32, %v2196_v25 }
 0x1ec   : > { %v2200_v33 = vadd.f32 %v2199_v44, %v2198_v22  ;;  %v1809_v47 = vadd.f32 %v1808_v21, %v1807_v15 }
 0x1ee   : > { %v1811_v40 = vadd.f32 %v1810_v34, %v1809_v47  ;;  %v2202_v49 = vadd.f32 %v2201_v19, %v2200_v33 }
 0x1f0   : > { %v2204_v7 = vadd.f32 %v2203_v0, %v2202_v49  ;;  %v1813_v9 = vadd.f32 %v1812_v59, %v1811_v40 }
 0x1f2   : > { %v1815_v24 = vadd.f32 %v1814_v54, %v1813_v9  ;;  %v2206_v42 = vadd.f32 %v2205_v1, %v2204_v7 }
 0x1f4   : > { %v2208_v45 = vadd.f32 %v2207_v39, %v2206_v42  ;;  %v1817_v41 = vadd.f32 %v1816_v18, %v1815_v24 }
 0x1f6   : > { %v1819_v57 = vadd.f32 %v1818_v31, %v1817_v41  ;;  %v2210_v13 = vadd.f32 %v2209_v63, %v2208_v45 }
 0x1f8   : > { %v1821_v60 = vadd.f32 %v1820_v61, %v1819_v57  ;;  %v2212_v11 = vadd.f32 %v2211_v36, %v2210_v13 }
 0x1fa   : > { %v1822_v5 = vrot.slane %v1821_v60, 4  ;;  %v2214_v26 = vadd.f32 %v2213_v23, %v2212_v11 }
 0x1fc   : > { %v1823_v52 = vadd.f32 %v1822_v5, %v1821_v60  ;;  %v2215_v4 = vrot.slane %v2214_v26, 4 }
 0x1fe   : > { %v1824_v10 = vrot.slane %v1823_v52, 2  ;;  %v2216_v53 = vadd.f32 %v2215_v4, %v2214_v26 }
 0x200   : > { %v1825_v55 = vadd.f32 %v1824_v10, %v1823_v52  ;;  %v2217_v50 = vrot.slane %v2216_v53, 2 }
 0x202   : > { %v1826_v20 = vrot.slane %v1825_v55, 1  ;;  %v2218_v37 = vadd.f32 %v2217_v50, %v2216_v53 }
 0x204   : > { %v1827_v35 = vadd.f32 %v1826_v20, %v1825_v55  ;;  %v2219_v6 = vrot.slane %v2218_v37, 1 }
 0x206   : > { %v1828_v16 = vadd.f32 %v1827_v35, %v1566_v28  ;;  %v2220_v58 = vadd.f32 %v2219_v6, %v2218_v37 }
 0x208   : > { %1830 = vst.msk [vmem:[%s3928_s15] sm:$0x1] %vm1563_vm1, %v1828_v16  ;;  %v2221_v17 = vadd.f32 %v2220_v58, %v1831_v8 }
 0x20a   : > { %2222 = vst.msk [vmem:[%s3934_s22] sm:$0x1] %vm1563_vm1, %v2221_v17 }
 0x20b PF: > { %s16_s20 = sadd.s32 1, %s2813_s20   ;;  %s4218_s18 = smov %s2809_s19 }
 0x20c   : > { %p13_p5 = scmp.ge.s32.totalorder %s16_s20, 6   ;;  %s4219_s19 = smov %s4221_s21 }
 0x20e   :  { %15 = sbr.rel (!%p13_p5) target bundleno = 2 (0x2), region = 93 }

// kernel: conv_decoder_forward.20
= control target key start
LH: loop header
LB: loop body
LE: loop exit
PB: predicated region body
PF: predicated region fallthrough
CT: control target
= control target key end

     0   :  { %s2699_s0 = inlined_call_operand.vmem [shape: f32[1024,128], index: 0, kind: input, shape index: {}]   ;;  %s2700_s1 = inlined_call_operand.vmem [shape: f32[1,128], index: 1, kind: input, shape index: {}]   ;;  %s2701_s2 = inlined_call_operand.vmem [shape: f32[1,128], index: 2, kind: input, shape index: {}]   ;;  %s2702_s3 = inlined_call_operand.vmem [shape: bf16[1024,128], index: 3, kind: output, shape index: {}]  }
   0x1   :  { %v14_v0 = vld [vmem:[%s2699_s0] sm:$0xff]  ;;  %v15_v1 = vld [vmem:[%s2699_s0 + $0x8] sm:$0xff]  ;;  %v16_v6 = vld [vmem:[%s2699_s0 + $0x10] sm:$0xff] }
   0x2   :  { %v1856_v2 = vld [vmem:[%s2700_s1] ss:$0 sm:$0xff]  ;;  %v17_v7 = vld [vmem:[%s2699_s0 + $0x18] sm:$0xff]  ;;  %v19_v11 = vld [vmem:[%s2699_s0 + $0x28] sm:$0xff] }
   0x3   :  { %v149_v3 = vmul.f32 %v1856_v2, %v14_v0  ;;  %v150_v4 = vmul.f32 %v1856_v2, %v15_v1  ;;  %v1863_v5 = vld [vmem:[%s2701_s2] ss:$0 sm:$0xff]  ;;  %v151_v8 = vmul.f32 %v1856_v2, %v16_v6  ;;  %v152_v9 = vmul.f32 %v1856_v2, %v17_v7  ;;  %v20_v12 = vld [vmem:[%s2699_s0 + $0x30] sm:$0xff]  ;;  %v21_v17 = vld [vmem:[%s2699_s0 + $0x38] sm:$0xff] }
   0x4   :  { %v18_v10 = vld [vmem:[%s2699_s0 + $0x20] sm:$0xff]  ;;  %v154_v16 = vmul.f32 %v1856_v2, %v19_v11  ;;  %v155_v20 = vmul.f32 %v1856_v2, %v20_v12  ;;  %v156_v21 = vmul.f32 %v1856_v2, %v21_v17  ;;  %v23_v27 = vld [vmem:[%s2699_s0 + $0x48] sm:$0xff]  ;;  %v24_v32 = vld [vmem:[%s2699_s0 + $0x50] sm:$0xff] }
   0x5   :  { %v284_v13 = vadd.f32 %v1863_v5, %v149_v3  ;;  %v285_v14 = vadd.f32 %v1863_v5, %v150_v4  ;;  %v153_v15 = vmul.f32 %v1856_v2, %v18_v10  ;;  %v286_v18 = vadd.f32 %v1863_v5, %v151_v8  ;;  %v22_v22 = vld [vmem:[%s2699_s0 + $0x40] sm:$0xff]  ;;  %v25_v33 = vld [vmem:[%s2699_s0 + $0x58] sm:$0xff]  ;;  %v27_v39 = vld [vmem:[%s2699_s0 + $0x68] sm:$0xff] }
   0x6   :  { %v287_v19 = vadd.f32 %v1863_v5, %v152_v9  ;;  %v289_v26 = vadd.f32 %v1863_v5, %v154_v16  ;;  %v290_v30 = vadd.f32 %v1863_v5, %v155_v20  ;;  %v291_v31 = vadd.f32 %v1863_v5, %v156_v21  ;;  %v26_v38 = vld [vmem:[%s2699_s0 + $0x60] sm:$0xff]  ;;  %v28_v44 = vld [vmem:[%s2699_s0 + $0x70] sm:$0xff]  ;;  %v29_v49 = vld [vmem:[%s2699_s0 + $0x78] sm:$0xff] }
   0x7   :  { %v412_v23 = vmax.f32 %v284_v13, 0.0  ;;  %v413_v24 = vmax.f32 %v285_v14, 0.0  ;;  %v288_v25 = vadd.f32 %v1863_v5, %v153_v15  ;;  %v414_v28 = vmax.f32 %v286_v18, 0.0  ;;  %v30_v54 = vld [vmem:[%s2699_s0 + $0x80] sm:$0xff]  ;;  %v31_v63 = vld [vmem:[%s2699_s0 + $0x88] sm:$0xff]  ;;  %v32_v6 = vld [vmem:[%s2699_s0 + $0x90] sm:$0xff] }
   0x8   :  { %v415_v29 = vmax.f32 %v287_v19, 0.0  ;;  %v417_v36 = vmax.f32 %v289_v26, 0.0  ;;  %v157_v37 = vmul.f32 %v1856_v2, %v22_v22  ;;  %v418_v41 = vmax.f32 %v290_v30, 0.0  ;;  %v33_v7 = vld [vmem:[%s2699_s0 + $0x98] sm:$0xff]  ;;  %v34_v12 = vld [vmem:[%s2699_s0 + $0xa0] sm:$0xff]  ;;  %v35_v13 = vld [vmem:[%s2699_s0 + $0xa8] sm:$0xff] }
   0x9   :  { %v1445_v34 = vpack.c.bf16 %v413_v24, %v412_v23  ;;  %v416_v35 = vmax.f32 %v288_v25, 0.0  ;;  %v419_v42 = vmax.f32 %v291_v31, 0.0  ;;  %v158_v43 = vmul.f32 %v1856_v2, %v23_v27  ;;  %v36_v18 = vld [vmem:[%s2699_s0 + $0xb0] sm:$0xff]  ;;  %v37_v23 = vld [vmem:[%s2699_s0 + $0xb8] sm:$0xff] }
   0xa   :  { %v1450_v40 = vpack.c.bf16 %v415_v29, %v414_v28  ;;  %v292_v46 = vadd.f32 %v1863_v5, %v157_v37  ;;  %v159_v47 = vmul.f32 %v1856_v2, %v24_v32  ;;  %v160_v48 = vmul.f32 %v1856_v2, %v25_v33  ;;  %v38_v28 = vld [vmem:[%s2699_s0 + $0xc0] sm:$0xff]  ;;  %v39_v37 = vld [vmem:[%s2699_s0 + $0xc8] sm:$0xff] }
   0xb   :  { %1446 = vst [vmem:[%s2702_s3] sm:$0xff] %v1445_v34   ;;  %v1455_v45 = vpack.c.bf16 %v417_v36, %v416_v35  ;;  %v1460_v50 = vpack.c.bf16 %v419_v42, %v418_v41  ;;  %v293_v51 = vadd.f32 %v1863_v5, %v158_v43  ;;  %v161_v52 = vmul.f32 %v1856_v2, %v26_v38  ;;  %v40_v42 = vld [vmem:[%s2699_s0 + $0xd0] sm:$0xff]  ;;  %v41_v43 = vld [vmem:[%s2699_s0 + $0xd8] sm:$0xff] }
   0xc   :  { %1762 = vst [vmem:[%s2702_s3 + $0x8] sm:$0xff] %v1450_v40   ;;  %v162_v53 = vmul.f32 %v1856_v2, %v27_v39  ;;  %v420_v55 = vmax.f32 %v292_v46, 0.0  ;;  %v294_v56 = vadd.f32 %v1863_v5, %v159_v47  ;;  %v295_v57 = vadd.f32 %v1863_v5, %v160_v48  ;;  %v42_v48 = vld [vmem:[%s2699_s0 + $0xe0] sm:$0xff] }
   0xd   :  { %1763 = vst [vmem:[%s2702_s3 + $0x10] sm:$0xff] %v1455_v45   ;;  %v163_v58 = vmul.f32 %v1856_v2, %v28_v44  ;;  %1764 = vst [vmem:[%s2702_s3 + $0x18] sm:$0xff] %v1460_v50   ;;  %v421_v59 = vmax.f32 %v293_v51, 0.0  ;;  %v296_v60 = vadd.f32 %v1863_v5, %v161_v52  ;;  %v164_v62 = vmul.f32 %v1856_v2, %v29_v49  ;;  %v43_v49 = vld [vmem:[%s2699_s0 + $0xe8] sm:$0xff] }
   0xe   :  { %v297_v61 = vadd.f32 %v1863_v5, %v162_v53  ;;  %v422_v0 = vmax.f32 %v294_v56, 0.0  ;;  %v423_v1 = vmax.f32 %v295_v57, 0.0  ;;  %v165_v4 = vmul.f32 %v1856_v2, %v30_v54  ;;  %v44_v54 = vld [vmem:[%s2699_s0 + $0xf0] sm:$0xff] }
   0xf   :  { %v298_v3 = vadd.f32 %v1863_v5, %v163_v58  ;;  %v1465_v8 = vpack.c.bf16 %v421_v59, %v420_v55  ;;  %v424_v9 = vmax.f32 %v296_v60, 0.0  ;;  %v299_v11 = vadd.f32 %v1863_v5, %v164_v62  ;;  %v45_v59 = vld [vmem:[%s2699_s0 + $0xf8] sm:$0xff] }
  0x10   :  { %v425_v10 = vmax.f32 %v297_v61, 0.0  ;;  %v1470_v14 = vpack.c.bf16 %v423_v1, %v422_v0  ;;  %v166_v16 = vmul.f32 %v1856_v2, %v31_v63  ;;  %v300_v17 = vadd.f32 %v1863_v5, %v165_v4  ;;  %v46_v0 = vld [vmem:[%s2699_s0 + $0x100] sm:$0xff] }
  0x11   :  { %v426_v15 = vmax.f32 %v298_v3, 0.0  ;;  %1765 = vst [vmem:[%s2702_s3 + $0x20] sm:$0xff] %v1465_v8   ;;  %v427_v20 = vmax.f32 %v299_v11, 0.0  ;;  %v167_v21 = vmul.f32 %v1856_v2, %v32_v6  ;;  %v168_v22 = vmul.f32 %v1856_v2, %v33_v7  ;;  %v47_v11 = vld [vmem:[%s2699_s0 + $0x108] sm:$0xff] }
  0x12   :  { %v1475_v19 = vpack.c.bf16 %v425_v10, %v424_v9  ;;  %1766 = vst [vmem:[%s2702_s3 + $0x28] sm:$0xff] %v1470_v14   ;;  %v301_v24 = vadd.f32 %v1863_v5, %v166_v16  ;;  %v428_v25 = vmax.f32 %v300_v17, 0.0  ;;  %v169_v26 = vmul.f32 %v1856_v2, %v34_v12  ;;  %v48_v16 = vld [vmem:[%s2699_s0 + $0x110] sm:$0xff]  ;;  %v49_v17 = vld [vmem:[%s2699_s0 + $0x118] sm:$0xff] }
  0x13   :  { %v170_v27 = vmul.f32 %v1856_v2, %v35_v13  ;;  %v1480_v29 = vpack.c.bf16 %v427_v20, %v426_v15  ;;  %v302_v30 = vadd.f32 %v1863_v5, %v167_v21  ;;  %v303_v31 = vadd.f32 %v1863_v5, %v168_v22  ;;  %v50_v22 = vld [vmem:[%s2699_s0 + $0x120] sm:$0xff] }
  0x14   :  { %1767 = vst [vmem:[%s2702_s3 + $0x30] sm:$0xff] %v1475_v19   ;;  %v171_v32 = vmul.f32 %v1856_v2, %v36_v18  ;;  %v429_v33 = vmax.f32 %v301_v24, 0.0  ;;  %v304_v34 = vadd.f32 %v1863_v5, %v169_v26  ;;  %v172_v36 = vmul.f32 %v1856_v2, %v37_v23  ;;  %v51_v23 = vld [vmem:[%s2699_s0 + $0x128] sm:$0xff] }
  0x15   :  { %v305_v35 = vadd.f32 %v1863_v5, %v170_v27  ;;  %1768 = vst [vmem:[%s2702_s3 + $0x38] sm:$0xff] %v1480_v29   ;;  %v430_v38 = vmax.f32 %v302_v30, 0.0  ;;  %v431_v39 = vmax.f32 %v303_v31, 0.0  ;;  %v173_v41 = vmul.f32 %v1856_v2, %v38_v28  ;;  %v52_v28 = vld [vmem:[%s2699_s0 + $0x130] sm:$0xff] }
  0x16   :  { %v306_v40 = vadd.f32 %v1863_v5, %v171_v32  ;;  %v1485_v44 = vpack.c.bf16 %v429_v33, %v428_v25  ;;  %v432_v45 = vmax.f32 %v304_v34, 0.0  ;;  %v307_v47 = vadd.f32 %v1863_v5, %v172_v36  ;;  %v53_v33 = vld [vmem:[%s2699_s0 + $0x138] sm:$0xff] }
  0x17   :  { %v433_v46 = vmax.f32 %v305_v35, 0.0  ;;  %v1490_v50 = vpack.c.bf16 %v431_v39, %v430_v38  ;;  %v174_v52 = vmul.f32 %v1856_v2, %v39_v37  ;;  %v308_v53 = vadd.f32 %v1863_v5, %v173_v41  ;;  %v54_v38 = vld [vmem:[%s2699_s0 + $0x140] sm:$0xff] }
  0x18   :  { %v434_v51 = vmax.f32 %v306_v40, 0.0  ;;  %1769 = vst [vmem:[%s2702_s3 + $0x40] sm:$0xff] %v1485_v44   ;;  %v435_v56 = vmax.f32 %v307_v47, 0.0  ;;  %v175_v57 = vmul.f32 %v1856_v2, %v40_v42  ;;  %v176_v58 = vmul.f32 %v1856_v2, %v41_v43  ;;  %v55_v47 = vld [vmem:[%s2699_s0 + $0x148] sm:$0xff] }
  0x19   :  { %v1495_v55 = vpack.c.bf16 %v433_v46, %v432_v45  ;;  %1770 = vst [vmem:[%s2702_s3 + $0x48] sm:$0xff] %v1490_v50   ;;  %v309_v60 = vadd.f32 %v1863_v5, %v174_v52  ;;  %v436_v61 = vmax.f32 %v308_v53, 0.0  ;;  %v177_v62 = vmul.f32 %v1856_v2, %v42_v48  ;;  %v56_v52 = vld [vmem:[%s2699_s0 + $0x150] sm:$0xff]  ;;  %v57_v53 = vld [vmem:[%s2699_s0 + $0x158] sm:$0xff] }
  0x1a   :  { %v178_v63 = vmul.f32 %v1856_v2, %v43_v49  ;;  %v1500_v1 = vpack.c.bf16 %v435_v56, %v434_v51  ;;  %v310_v3 = vadd.f32 %v1863_v5, %v175_v57  ;;  %v311_v4 = vadd.f32 %v1863_v5, %v176_v58  ;;  %v58_v58 = vld [vmem:[%s2699_s0 + $0x160] sm:$0xff] }
  0x1b   :  { %1771 = vst [vmem:[%s2702_s3 + $0x50] sm:$0xff] %v1495_v55   ;;  %v179_v6 = vmul.f32 %v1856_v2, %v44_v54  ;;  %v437_v7 = vmax.f32 %v309_v60, 0.0  ;;  %v312_v8 = vadd.f32 %v1863_v5, %v177_v62  ;;  %v180_v10 = vmul.f32 %v1856_v2, %v45_v59  ;;  %v59_v59 = vld [vmem:[%s2699_s0 + $0x168] sm:$0xff] }
  0x1c   :  { %v313_v9 = vadd.f32 %v1863_v5, %v178_v63  ;;  %1772 = vst [vmem:[%s2702_s3 + $0x58] sm:$0xff] %v1500_v1   ;;  %v438_v12 = vmax.f32 %v310_v3, 0.0  ;;  %v439_v13 = vmax.f32 %v311_v4, 0.0  ;;  %v181_v15 = vmul.f32 %v1856_v2, %v46_v0  ;;  %v60_v0 = vld [vmem:[%s2699_s0 + $0x170] sm:$0xff] }
  0x1d   :  { %v314_v14 = vadd.f32 %v1863_v5, %v179_v6  ;;  %v1505_v18 = vpack.c.bf16 %v437_v7, %v436_v61  ;;  %v440_v19 = vmax.f32 %v312_v8, 0.0  ;;  %v315_v21 = vadd.f32 %v1863_v5, %v180_v10  ;;  %v61_v7 = vld [vmem:[%s2699_s0 + $0x178] sm:$0xff] }
  0x1e   :  { %v441_v20 = vmax.f32 %v313_v9, 0.0  ;;  %v1510_v24 = vpack.c.bf16 %v439_v13, %v438_v12  ;;  %v182_v26 = vmul.f32 %v1856_v2, %v47_v11  ;;  %v316_v27 = vadd.f32 %v1863_v5, %v181_v15  ;;  %v62_v12 = vld [vmem:[%s2699_s0 + $0x180] sm:$0xff] }
  0x1f   :  { %v442_v25 = vmax.f32 %v314_v14, 0.0  ;;  %1773 = vst [vmem:[%s2702_s3 + $0x60] sm:$0xff] %v1505_v18   ;;  %v443_v30 = vmax.f32 %v315_v21, 0.0  ;;  %v183_v31 = vmul.f32 %v1856_v2, %v48_v16  ;;  %v184_v32 = vmul.f32 %v1856_v2, %v49_v17  ;;  %v63_v21 = vld [vmem:[%s2699_s0 + $0x188] sm:$0xff] }
  0x20   :  { %v1515_v29 = vpack.c.bf16 %v441_v20, %v440_v19  ;;  %1774 = vst [vmem:[%s2702_s3 + $0x68] sm:$0xff] %v1510_v24   ;;  %v317_v34 = vadd.f32 %v1863_v5, %v182_v26  ;;  %v444_v35 = vmax.f32 %v316_v27, 0.0  ;;  %v185_v36 = vmul.f32 %v1856_v2, %v50_v22  ;;  %v64_v26 = vld [vmem:[%s2699_s0 + $0x190] sm:$0xff]  ;;  %v65_v27 = vld [vmem:[%s2699_s0 + $0x198] sm:$0xff] }
  0x21   :  { %v186_v37 = vmul.f32 %v1856_v2, %v51_v23  ;;  %v1520_v39 = vpack.c.bf16 %v443_v30, %v442_v25  ;;  %v318_v40 = vadd.f32 %v1863_v5, %v183_v31  ;;  %v319_v41 = vadd.f32 %v1863_v5, %v184_v32  ;;  %v66_v32 = vld [vmem:[%s2699_s0 + $0x1a0] sm:$0xff] }
  0x22   :  { %1775 = vst [vmem:[%s2702_s3 + $0x70] sm:$0xff] %v1515_v29   ;;  %v187_v42 = vmul.f32 %v1856_v2, %v52_v28  ;;  %v445_v43 = vmax.f32 %v317_v34, 0.0  ;;  %v320_v44 = vadd.f32 %v1863_v5, %v185_v36  ;;  %v188_v46 = vmul.f32 %v1856_v2, %v53_v33  ;;  %v67_v33 = vld [vmem:[%s2699_s0 + $0x1a8] sm:$0xff] }
  0x23   :  { %v321_v45 = vadd.f32 %v1863_v5, %v186_v37  ;;  %1776 = vst [vmem:[%s2702_s3 + $0x78] sm:$0xff] %v1520_v39   ;;  %v446_v48 = vmax.f32 %v318_v40, 0.0  ;;  %v447_v49 = vmax.f32 %v319_v41, 0.0  ;;  %v189_v51 = vmul.f32 %v1856_v2, %v54_v38  ;;  %v68_v38 = vld [vmem:[%s2699_s0 + $0x1b0] sm:$0xff] }
  0x24   :  { %v322_v50 = vadd.f32 %v1863_v5, %v187_v42  ;;  %v1525_v54 = vpack.c.bf16 %v445_v43, %v444_v35  ;;  %v448_v55 = vmax.f32 %v320_v44, 0.0  ;;  %v323_v57 = vadd.f32 %v1863_v5, %v188_v46  ;;  %v69_v43 = vld [vmem:[%s2699_s0 + $0x1b8] sm:$0xff] }
  0x25   :  { %v449_v56 = vmax.f32 %v321_v45, 0.0  ;;  %v1530_v60 = vpack.c.bf16 %v447_v49, %v446_v48  ;;  %v190_v62 = vmul.f32 %v1856_v2, %v55_v47  ;;  %v324_v63 = vadd.f32 %v1863_v5, %v189_v51  ;;  %v70_v48 = vld [vmem:[%s2699_s0 + $0x1c0] sm:$0xff] }
  0x26   :  { %v450_v61 = vmax.f32 %v322_v50, 0.0  ;;  %1777 = vst [vmem:[%s2702_s3 + $0x80] sm:$0xff] %v1525_v54   ;;  %v451_v3 = vmax.f32 %v323_v57, 0.0  ;;  %v191_v4 = vmul.f32 %v1856_v2, %v56_v52  ;;  %v192_v6 = vmul.f32 %v1856_v2, %v57_v53  ;;  %v71_v57 = vld [vmem:[%s2699_s0 + $0x1c8] sm:$0xff] }
  0x27   :  { %v1535_v1 = vpack.c.bf16 %v449_v56, %v448_v55  ;;  %1778 = vst [vmem:[%s2702_s3 + $0x88] sm:$0xff] %v1530_v60   ;;  %v325_v8 = vadd.f32 %v1863_v5, %v190_v62  ;;  %v452_v9 = vmax.f32 %v324_v63, 0.0  ;;  %v193_v10 = vmul.f32 %v1856_v2, %v58_v58  ;;  %v72_v62 = vld [vmem:[%s2699_s0 + $0x1d0] sm:$0xff]  ;;  %v73_v63 = vld [vmem:[%s2699_s0 + $0x1d8] sm:$0xff] }
  0x28   :  { %v194_v11 = vmul.f32 %v1856_v2, %v59_v59  ;;  %v1540_v13 = vpack.c.bf16 %v451_v3, %v450_v61  ;;  %v326_v14 = vadd.f32 %v1863_v5, %v191_v4  ;;  %v327_v15 = vadd.f32 %v1863_v5, %v192_v6  ;;  %v74_v6 = vld [vmem:[%s2699_s0 + $0x1e0] sm:$0xff] }
  0x29   :  { %1779 = vst [vmem:[%s2702_s3 + $0x90] sm:$0xff] %v1535_v1   ;;  %v195_v16 = vmul.f32 %v1856_v2, %v60_v0  ;;  %v453_v17 = vmax.f32 %v325_v8, 0.0  ;;  %v328_v18 = vadd.f32 %v1863_v5, %v193_v10  ;;  %v196_v20 = vmul.f32 %v1856_v2, %v61_v7  ;;  %v75_v7 = vld [vmem:[%s2699_s0 + $0x1e8] sm:$0xff] }
  0x2a   :  { %v329_v19 = vadd.f32 %v1863_v5, %v194_v11  ;;  %1780 = vst [vmem:[%s2702_s3 + $0x98] sm:$0xff] %v1540_v13   ;;  %v454_v22 = vmax.f32 %v326_v14, 0.0  ;;  %v455_v23 = vmax.f32 %v327_v15, 0.0  ;;  %v197_v25 = vmul.f32 %v1856_v2, %v62_v12  ;;  %v76_v12 = vld [vmem:[%s2699_s0 + $0x1f0] sm:$0xff] }
  0x2b   :  { %v330_v24 = vadd.f32 %v1863_v5, %v195_v16  ;;  %v1545_v28 = vpack.c.bf16 %v453_v17, %v452_v9  ;;  %v456_v29 = vmax.f32 %v328_v18, 0.0  ;;  %v331_v31 = vadd.f32 %v1863_v5, %v196_v20  ;;  %v77_v17 = vld [vmem:[%s2699_s0 + $0x1f8] sm:$0xff] }
  0x2c   :  { %v457_v30 = vmax.f32 %v329_v19, 0.0  ;;  %v1550_v34 = vpack.c.bf16 %v455_v23, %v454_v22  ;;  %v198_v36 = vmul.f32 %v1856_v2, %v63_v21  ;;  %v332_v37 = vadd.f32 %v1863_v5, %v197_v25  ;;  %v78_v22 = vld [vmem:[%s2699_s0 + $0x200] sm:$0xff] }
  0x2d   :  { %v458_v35 = vmax.f32 %v330_v24, 0.0  ;;  %1781 = vst [vmem:[%s2702_s3 + $0xa0] sm:$0xff] %v1545_v28   ;;  %v459_v40 = vmax.f32 %v331_v31, 0.0  ;;  %v199_v41 = vmul.f32 %v1856_v2, %v64_v26  ;;  %v200_v42 = vmul.f32 %v1856_v2, %v65_v27  ;;  %v79_v31 = vld [vmem:[%s2699_s0 + $0x208] sm:$0xff] }
  0x2e   :  { %v1555_v39 = vpack.c.bf16 %v457_v30, %v456_v29  ;;  %1782 = vst [vmem:[%s2702_s3 + $0xa8] sm:$0xff] %v1550_v34   ;;  %v333_v44 = vadd.f32 %v1863_v5, %v198_v36  ;;  %v460_v45 = vmax.f32 %v332_v37, 0.0  ;;  %v201_v46 = vmul.f32 %v1856_v2, %v66_v32  ;;  %v80_v36 = vld [vmem:[%s2699_s0 + $0x210] sm:$0xff]  ;;  %v81_v37 = vld [vmem:[%s2699_s0 + $0x218] sm:$0xff] }
  0x2f   :  { %v202_v47 = vmul.f32 %v1856_v2, %v67_v33  ;;  %v1560_v49 = vpack.c.bf16 %v459_v40, %v458_v35  ;;  %v334_v50 = vadd.f32 %v1863_v5, %v199_v41  ;;  %v335_v51 = vadd.f32 %v1863_v5, %v200_v42  ;;  %v82_v42 = vld [vmem:[%s2699_s0 + $0x220] sm:$0xff] }
  0x30   :  { %1783 = vst [vmem:[%s2702_s3 + $0xb0] sm:$0xff] %v1555_v39   ;;  %v203_v52 = vmul.f32 %v1856_v2, %v68_v38  ;;  %v461_v53 = vmax.f32 %v333_v44, 0.0  ;;  %v336_v54 = vadd.f32 %v1863_v5, %v201_v46  ;;  %v204_v56 = vmul.f32 %v1856_v2, %v69_v43  ;;  %v83_v43 = vld [vmem:[%s2699_s0 + $0x228] sm:$0xff] }
  0x31   :  { %v337_v55 = vadd.f32 %v1863_v5, %v202_v47  ;;  %1784 = vst [vmem:[%s2702_s3 + $0xb8] sm:$0xff] %v1560_v49   ;;  %v462_v58 = vmax.f32 %v334_v50, 0.0  ;;  %v463_v59 = vmax.f32 %v335_v51, 0.0  ;;  %v205_v61 = vmul.f32 %v1856_v2, %v70_v48  ;;  %v84_v48 = vld [vmem:[%s2699_s0 + $0x230] sm:$0xff] }
  0x32   :  { %v338_v60 = vadd.f32 %v1863_v5, %v203_v52  ;;  %v1565_v0 = vpack.c.bf16 %v461_v53, %v460_v45  ;;  %v464_v1 = vmax.f32 %v336_v54, 0.0  ;;  %v339_v4 = vadd.f32 %v1863_v5, %v204_v56  ;;  %v85_v53 = vld [vmem:[%s2699_s0 + $0x238] sm:$0xff] }
  0x33   :  { %v465_v3 = vmax.f32 %v337_v55, 0.0  ;;  %v1570_v8 = vpack.c.bf16 %v463_v59, %v462_v58  ;;  %v206_v10 = vmul.f32 %v1856_v2, %v71_v57  ;;  %v340_v11 = vadd.f32 %v1863_v5, %v205_v61  ;;  %v86_v58 = vld [vmem:[%s2699_s0 + $0x240] sm:$0xff] }
  0x34   :  { %v466_v9 = vmax.f32 %v338_v60, 0.0  ;;  %1785 = vst [vmem:[%s2702_s3 + $0xc0] sm:$0xff] %v1565_v0   ;;  %v467_v14 = vmax.f32 %v339_v4, 0.0  ;;  %v207_v15 = vmul.f32 %v1856_v2, %v72_v62  ;;  %v208_v16 = vmul.f32 %v1856_v2, %v73_v63  ;;  %v87_v4 = vld [vmem:[%s2699_s0 + $0x248] sm:$0xff] }
  0x35   :  { %v1575_v13 = vpack.c.bf16 %v465_v3, %v464_v1  ;;  %1786 = vst [vmem:[%s2702_s3 + $0xc8] sm:$0xff] %v1570_v8   ;;  %v341_v18 = vadd.f32 %v1863_v5, %v206_v10  ;;  %v468_v19 = vmax.f32 %v340_v11, 0.0  ;;  %v209_v20 = vmul.f32 %v1856_v2, %v74_v6  ;;  %v88_v10 = vld [vmem:[%s2699_s0 + $0x250] sm:$0xff]  ;;  %v89_v11 = vld [vmem:[%s2699_s0 + $0x258] sm:$0xff] }
  0x36   :  { %v210_v21 = vmul.f32 %v1856_v2, %v75_v7  ;;  %v1580_v23 = vpack.c.bf16 %v467_v14, %v466_v9  ;;  %v342_v24 = vadd.f32 %v1863_v5, %v207_v15  ;;  %v343_v25 = vadd.f32 %v1863_v5, %v208_v16  ;;  %v90_v16 = vld [vmem:[%s2699_s0 + $0x260] sm:$0xff] }
  0x37   :  { %1787 = vst [vmem:[%s2702_s3 + $0xd0] sm:$0xff] %v1575_v13   ;;  %v211_v26 = vmul.f32 %v1856_v2, %v76_v12  ;;  %v469_v27 = vmax.f32 %v341_v18, 0.0  ;;  %v344_v28 = vadd.f32 %v1863_v5, %v209_v20  ;;  %v212_v30 = vmul.f32 %v1856_v2, %v77_v17  ;;  %v91_v17 = vld [vmem:[%s2699_s0 + $0x268] sm:$0xff] }
  0x38   :  { %v345_v29 = vadd.f32 %v1863_v5, %v210_v21  ;;  %1788 = vst [vmem:[%s2702_s3 + $0xd8] sm:$0xff] %v1580_v23   ;;  %v470_v32 = vmax.f32 %v342_v24, 0.0  ;;  %v471_v33 = vmax.f32 %v343_v25, 0.0  ;;  %v213_v35 = vmul.f32 %v1856_v2, %v78_v22  ;;  %v92_v22 = vld [vmem:[%s2699_s0 + $0x270] sm:$0xff] }
  0x39   :  { %v346_v34 = vadd.f32 %v1863_v5, %v211_v26  ;;  %v1585_v38 = vpack.c.bf16 %v469_v27, %v468_v19  ;;  %v472_v39 = vmax.f32 %v344_v28, 0.0  ;;  %v347_v41 = vadd.f32 %v1863_v5, %v212_v30  ;;  %v93_v27 = vld [vmem:[%s2699_s0 + $0x278] sm:$0xff] }
  0x3a   :  { %v473_v40 = vmax.f32 %v345_v29, 0.0  ;;  %v1590_v44 = vpack.c.bf16 %v471_v33, %v470_v32  ;;  %v214_v46 = vmul.f32 %v1856_v2, %v79_v31  ;;  %v348_v47 = vadd.f32 %v1863_v5, %v213_v35  ;;  %v94_v32 = vld [vmem:[%s2699_s0 + $0x280] sm:$0xff] }
  0x3b   :  { %v474_v45 = vmax.f32 %v346_v34, 0.0  ;;  %1789 = vst [vmem:[%s2702_s3 + $0xe0] sm:$0xff] %v1585_v38   ;;  %v475_v50 = vmax.f32 %v347_v41, 0.0  ;;  %v215_v51 = vmul.f32 %v1856_v2, %v80_v36  ;;  %v216_v52 = vmul.f32 %v1856_v2, %v81_v37  ;;  %v95_v41 = vld [vmem:[%s2699_s0 + $0x288] sm:$0xff] }
  0x3c   :  { %v1595_v49 = vpack.c.bf16 %v473_v40, %v472_v39  ;;  %1790 = vst [vmem:[%s2702_s3 + $0xe8] sm:$0xff] %v1590_v44   ;;  %v349_v54 = vadd.f32 %v1863_v5, %v214_v46  ;;  %v476_v55 = vmax.f32 %v348_v47, 0.0  ;;  %v217_v56 = vmul.f32 %v1856_v2, %v82_v42  ;;  %v96_v46 = vld [vmem:[%s2699_s0 + $0x290] sm:$0xff]  ;;  %v97_v47 = vld [vmem:[%s2699_s0 + $0x298] sm:$0xff] }
  0x3d   :  { %v218_v57 = vmul.f32 %v1856_v2, %v83_v43  ;;  %v1600_v59 = vpack.c.bf16 %v475_v50, %v474_v45  ;;  %v350_v60 = vadd.f32 %v1863_v5, %v215_v51  ;;  %v351_v61 = vadd.f32 %v1863_v5, %v216_v52  ;;  %v98_v52 = vld [vmem:[%s2699_s0 + $0x2a0] sm:$0xff] }
  0x3e   :  { %1791 = vst [vmem:[%s2702_s3 + $0xf0] sm:$0xff] %v1595_v49   ;;  %v219_v62 = vmul.f32 %v1856_v2, %v84_v48  ;;  %v477_v63 = vmax.f32 %v349_v54, 0.0  ;;  %v352_v0 = vadd.f32 %v1863_v5, %v217_v56  ;;  %v220_v3 = vmul.f32 %v1856_v2, %v85_v53  ;;  %v99_v53 = vld [vmem:[%s2699_s0 + $0x2a8] sm:$0xff] }
  0x3f   :  { %v353_v1 = vadd.f32 %v1863_v5, %v218_v57  ;;  %1792 = vst [vmem:[%s2702_s3 + $0xf8] sm:$0xff] %v1600_v59   ;;  %v478_v6 = vmax.f32 %v350_v60, 0.0  ;;  %v479_v7 = vmax.f32 %v351_v61, 0.0  ;;  %v221_v9 = vmul.f32 %v1856_v2, %v86_v58  ;;  %v100_v58 = vld [vmem:[%s2699_s0 + $0x2b0] sm:$0xff] }
  0x40   :  { %v354_v8 = vadd.f32 %v1863_v5, %v219_v62  ;;  %v1605_v12 = vpack.c.bf16 %v477_v63, %v476_v55  ;;  %v480_v13 = vmax.f32 %v352_v0, 0.0  ;;  %v355_v15 = vadd.f32 %v1863_v5, %v220_v3  ;;  %v101_v63 = vld [vmem:[%s2699_s0 + $0x2b8] sm:$0xff] }
  0x41   :  { %v481_v14 = vmax.f32 %v353_v1, 0.0  ;;  %v1610_v18 = vpack.c.bf16 %v479_v7, %v478_v6  ;;  %v222_v20 = vmul.f32 %v1856_v2, %v87_v4  ;;  %v356_v21 = vadd.f32 %v1863_v5, %v221_v9  ;;  %v102_v6 = vld [vmem:[%s2699_s0 + $0x2c0] sm:$0xff] }
  0x42   :  { %v482_v19 = vmax.f32 %v354_v8, 0.0  ;;  %1793 = vst [vmem:[%s2702_s3 + $0x100] sm:$0xff] %v1605_v12   ;;  %v483_v24 = vmax.f32 %v355_v15, 0.0  ;;  %v223_v25 = vmul.f32 %v1856_v2, %v88_v10  ;;  %v224_v26 = vmul.f32 %v1856_v2, %v89_v11  ;;  %v103_v15 = vld [vmem:[%s2699_s0 + $0x2c8] sm:$0xff] }
  0x43   :  { %v1615_v23 = vpack.c.bf16 %v481_v14, %v480_v13  ;;  %1794 = vst [vmem:[%s2702_s3 + $0x108] sm:$0xff] %v1610_v18   ;;  %v357_v28 = vadd.f32 %v1863_v5, %v222_v20  ;;  %v484_v29 = vmax.f32 %v356_v21, 0.0  ;;  %v225_v30 = vmul.f32 %v1856_v2, %v90_v16  ;;  %v104_v20 = vld [vmem:[%s2699_s0 + $0x2d0] sm:$0xff]  ;;  %v105_v21 = vld [vmem:[%s2699_s0 + $0x2d8] sm:$0xff] }
  0x44   :  { %v226_v31 = vmul.f32 %v1856_v2, %v91_v17  ;;  %v1620_v33 = vpack.c.bf16 %v483_v24, %v482_v19  ;;  %v358_v34 = vadd.f32 %v1863_v5, %v223_v25  ;;  %v359_v35 = vadd.f32 %v1863_v5, %v224_v26  ;;  %v106_v26 = vld [vmem:[%s2699_s0 + $0x2e0] sm:$0xff] }
  0x45   :  { %1795 = vst [vmem:[%s2702_s3 + $0x110] sm:$0xff] %v1615_v23   ;;  %v227_v36 = vmul.f32 %v1856_v2, %v92_v22  ;;  %v485_v37 = vmax.f32 %v357_v28, 0.0  ;;  %v360_v38 = vadd.f32 %v1863_v5, %v225_v30  ;;  %v228_v40 = vmul.f32 %v1856_v2, %v93_v27  ;;  %v107_v27 = vld [vmem:[%s2699_s0 + $0x2e8] sm:$0xff] }
  0x46   :  { %v361_v39 = vadd.f32 %v1863_v5, %v226_v31  ;;  %1796 = vst [vmem:[%s2702_s3 + $0x118] sm:$0xff] %v1620_v33   ;;  %v486_v42 = vmax.f32 %v358_v34, 0.0  ;;  %v487_v43 = vmax.f32 %v359_v35, 0.0  ;;  %v229_v45 = vmul.f32 %v1856_v2, %v94_v32  ;;  %v108_v32 = vld [vmem:[%s2699_s0 + $0x2f0] sm:$0xff] }
  0x47   :  { %v362_v44 = vadd.f32 %v1863_v5, %v227_v36  ;;  %v1625_v48 = vpack.c.bf16 %v485_v37, %v484_v29  ;;  %v488_v49 = vmax.f32 %v360_v38, 0.0  ;;  %v363_v51 = vadd.f32 %v1863_v5, %v228_v40  ;;  %v109_v37 = vld [vmem:[%s2699_s0 + $0x2f8] sm:$0xff] }
  0x48   :  { %v489_v50 = vmax.f32 %v361_v39, 0.0  ;;  %v1630_v54 = vpack.c.bf16 %v487_v43, %v486_v42  ;;  %v230_v56 = vmul.f32 %v1856_v2, %v95_v41  ;;  %v364_v57 = vadd.f32 %v1863_v5, %v229_v45  ;;  %v110_v42 = vld [vmem:[%s2699_s0 + $0x300] sm:$0xff] }
  0x49   :  { %v490_v55 = vmax.f32 %v362_v44, 0.0  ;;  %1797 = vst [vmem:[%s2702_s3 + $0x120] sm:$0xff] %v1625_v48   ;;  %v491_v60 = vmax.f32 %v363_v51, 0.0  ;;  %v231_v61 = vmul.f32 %v1856_v2, %v96_v46  ;;  %v232_v62 = vmul.f32 %v1856_v2, %v97_v47  ;;  %v111_v51 = vld [vmem:[%s2699_s0 + $0x308] sm:$0xff] }
  0x4a   :  { %v1635_v59 = vpack.c.bf16 %v489_v50, %v488_v49  ;;  %1798 = vst [vmem:[%s2702_s3 + $0x128] sm:$0xff] %v1630_v54   ;;  %v365_v0 = vadd.f32 %v1863_v5, %v230_v56  ;;  %v492_v1 = vmax.f32 %v364_v57, 0.0  ;;  %v233_v3 = vmul.f32 %v1856_v2, %v98_v52  ;;  %v112_v56 = vld [vmem:[%s2699_s0 + $0x310] sm:$0xff]  ;;  %v113_v57 = vld [vmem:[%s2699_s0 + $0x318] sm:$0xff] }
  0x4b   :  { %v234_v4 = vmul.f32 %v1856_v2, %v99_v53  ;;  %v1640_v7 = vpack.c.bf16 %v491_v60, %v490_v55  ;;  %v366_v8 = vadd.f32 %v1863_v5, %v231_v61  ;;  %v367_v9 = vadd.f32 %v1863_v5, %v232_v62  ;;  %v114_v62 = vld [vmem:[%s2699_s0 + $0x320] sm:$0xff] }
  0x4c   :  { %1799 = vst [vmem:[%s2702_s3 + $0x130] sm:$0xff] %v1635_v59   ;;  %v235_v10 = vmul.f32 %v1856_v2, %v100_v58  ;;  %v493_v11 = vmax.f32 %v365_v0, 0.0  ;;  %v368_v12 = vadd.f32 %v1863_v5, %v233_v3  ;;  %v236_v14 = vmul.f32 %v1856_v2, %v101_v63  ;;  %v115_v63 = vld [vmem:[%s2699_s0 + $0x328] sm:$0xff] }
  0x4d   :  { %v369_v13 = vadd.f32 %v1863_v5, %v234_v4  ;;  %1800 = vst [vmem:[%s2702_s3 + $0x138] sm:$0xff] %v1640_v7   ;;  %v494_v16 = vmax.f32 %v366_v8, 0.0  ;;  %v495_v17 = vmax.f32 %v367_v9, 0.0  ;;  %v237_v19 = vmul.f32 %v1856_v2, %v102_v6  ;;  %v116_v6 = vld [vmem:[%s2699_s0 + $0x330] sm:$0xff] }
  0x4e   :  { %v370_v18 = vadd.f32 %v1863_v5, %v235_v10  ;;  %v1645_v22 = vpack.c.bf16 %v493_v11, %v492_v1  ;;  %v496_v23 = vmax.f32 %v368_v12, 0.0  ;;  %v371_v25 = vadd.f32 %v1863_v5, %v236_v14  ;;  %v117_v11 = vld [vmem:[%s2699_s0 + $0x338] sm:$0xff] }
  0x4f   :  { %v497_v24 = vmax.f32 %v369_v13, 0.0  ;;  %v1650_v28 = vpack.c.bf16 %v495_v17, %v494_v16  ;;  %v238_v30 = vmul.f32 %v1856_v2, %v103_v15  ;;  %v372_v31 = vadd.f32 %v1863_v5, %v237_v19  ;;  %v118_v16 = vld [vmem:[%s2699_s0 + $0x340] sm:$0xff] }
  0x50   :  { %v498_v29 = vmax.f32 %v370_v18, 0.0  ;;  %1801 = vst [vmem:[%s2702_s3 + $0x140] sm:$0xff] %v1645_v22   ;;  %v499_v34 = vmax.f32 %v371_v25, 0.0  ;;  %v239_v35 = vmul.f32 %v1856_v2, %v104_v20  ;;  %v240_v36 = vmul.f32 %v1856_v2, %v105_v21  ;;  %v119_v25 = vld [vmem:[%s2699_s0 + $0x348] sm:$0xff] }
  0x51   :  { %v1655_v33 = vpack.c.bf16 %v497_v24, %v496_v23  ;;  %1802 = vst [vmem:[%s2702_s3 + $0x148] sm:$0xff] %v1650_v28   ;;  %v373_v38 = vadd.f32 %v1863_v5, %v238_v30  ;;  %v500_v39 = vmax.f32 %v372_v31, 0.0  ;;  %v241_v40 = vmul.f32 %v1856_v2, %v106_v26  ;;  %v120_v30 = vld [vmem:[%s2699_s0 + $0x350] sm:$0xff]  ;;  %v121_v31 = vld [vmem:[%s2699_s0 + $0x358] sm:$0xff] }
  0x52   :  { %v242_v41 = vmul.f32 %v1856_v2, %v107_v27  ;;  %v1660_v43 = vpack.c.bf16 %v499_v34, %v498_v29  ;;  %v374_v44 = vadd.f32 %v1863_v5, %v239_v35  ;;  %v375_v45 = vadd.f32 %v1863_v5, %v240_v36  ;;  %v2536_v35 = vld [vmem:[%s2701_s2] ss:$0 sm:$0xff]  ;;  %v123_v36 = vld [vmem:[%s2699_s0 + $0x368] sm:$0xff] }
  0x53   :  { %1803 = vst [vmem:[%s2702_s3 + $0x150] sm:$0xff] %v1655_v33   ;;  %v243_v46 = vmul.f32 %v1856_v2, %v108_v32  ;;  %v501_v47 = vmax.f32 %v373_v38, 0.0  ;;  %v376_v48 = vadd.f32 %v1863_v5, %v241_v40  ;;  %v244_v50 = vmul.f32 %v1856_v2, %v109_v37 }
  0x54   :  { %v377_v49 = vadd.f32 %v1863_v5, %v242_v41  ;;  %1804 = vst [vmem:[%s2702_s3 + $0x158] sm:$0xff] %v1660_v43   ;;  %v502_v52 = vmax.f32 %v374_v44, 0.0  ;;  %v503_v53 = vmax.f32 %v375_v45, 0.0  ;;  %v245_v55 = vmul.f32 %v1856_v2, %v110_v42  ;;  %v124_v42 = vld [vmem:[%s2699_s0 + $0x370] sm:$0xff] }
  0x55   :  { %v378_v54 = vadd.f32 %v1863_v5, %v243_v46  ;;  %v1665_v58 = vpack.c.bf16 %v501_v47, %v500_v39  ;;  %v504_v59 = vmax.f32 %v376_v48, 0.0  ;;  %v379_v61 = vadd.f32 %v1863_v5, %v244_v50  ;;  %v2548_v39 = vld [vmem:[%s2700_s1] ss:$0 sm:$0xff]  ;;  %v125_v47 = vld [vmem:[%s2699_s0 + $0x378] sm:$0xff] }
  0x56   :  { %v505_v60 = vmax.f32 %v377_v49, 0.0  ;;  %v1670_v0 = vpack.c.bf16 %v503_v53, %v502_v52  ;;  %v246_v3 = vmul.f32 %v1856_v2, %v111_v51  ;;  %v380_v4 = vadd.f32 %v1863_v5, %v245_v55  ;;  %v126_v52 = vld [vmem:[%s2699_s0 + $0x380] sm:$0xff] }
  0x57   :  { %v506_v1 = vmax.f32 %v378_v54, 0.0  ;;  %1805 = vst [vmem:[%s2702_s3 + $0x160] sm:$0xff] %v1665_v58   ;;  %v507_v8 = vmax.f32 %v379_v61, 0.0  ;;  %v247_v9 = vmul.f32 %v1856_v2, %v112_v56  ;;  %v248_v10 = vmul.f32 %v1856_v2, %v113_v57  ;;  %v127_v61 = vld [vmem:[%s2699_s0 + $0x388] sm:$0xff] }
  0x58   :  { %v1675_v7 = vpack.c.bf16 %v505_v60, %v504_v59  ;;  %1806 = vst [vmem:[%s2702_s3 + $0x168] sm:$0xff] %v1670_v0   ;;  %v381_v12 = vadd.f32 %v1863_v5, %v246_v3  ;;  %v508_v13 = vmax.f32 %v380_v4, 0.0  ;;  %v249_v14 = vmul.f32 %v1856_v2, %v114_v62  ;;  %v128_v3 = vld [vmem:[%s2699_s0 + $0x390] sm:$0xff]  ;;  %v129_v4 = vld [vmem:[%s2699_s0 + $0x398] sm:$0xff] }
  0x59   :  { %v250_v15 = vmul.f32 %v1856_v2, %v115_v63  ;;  %v1680_v17 = vpack.c.bf16 %v507_v8, %v506_v1  ;;  %v382_v18 = vadd.f32 %v1863_v5, %v247_v9  ;;  %v383_v19 = vadd.f32 %v1863_v5, %v248_v10  ;;  %v130_v10 = vld [vmem:[%s2699_s0 + $0x3a0] sm:$0xff] }
  0x5a   :  { %1807 = vst [vmem:[%s2702_s3 + $0x170] sm:$0xff] %v1675_v7   ;;  %v251_v20 = vmul.f32 %v1856_v2, %v116_v6  ;;  %v509_v21 = vmax.f32 %v381_v12, 0.0  ;;  %v384_v22 = vadd.f32 %v1863_v5, %v249_v14  ;;  %v252_v24 = vmul.f32 %v1856_v2, %v117_v11  ;;  %v131_v11 = vld [vmem:[%s2699_s0 + $0x3a8] sm:$0xff] }
  0x5b   :  { %v385_v23 = vadd.f32 %v1863_v5, %v250_v15  ;;  %1808 = vst [vmem:[%s2702_s3 + $0x178] sm:$0xff] %v1680_v17   ;;  %v510_v26 = vmax.f32 %v382_v18, 0.0  ;;  %v511_v27 = vmax.f32 %v383_v19, 0.0  ;;  %v253_v29 = vmul.f32 %v1856_v2, %v118_v16  ;;  %v122_v2 = vld [vmem:[%s2699_s0 + $0x360] sm:$0xff]  ;;  %v132_v16 = vld [vmem:[%s2699_s0 + $0x3b0] sm:$0xff] }
  0x5c   :  { %v386_v28 = vadd.f32 %v1863_v5, %v251_v20  ;;  %v1685_v32 = vpack.c.bf16 %v509_v21, %v508_v13  ;;  %v512_v33 = vmax.f32 %v384_v22, 0.0  ;;  %v387_v5 = vadd.f32 %v2536_v35, %v252_v24  ;;  %v133_v21 = vld [vmem:[%s2699_s0 + $0x3b8] sm:$0xff] }
  0x5d   :  { %v513_v34 = vmax.f32 %v385_v23, 0.0  ;;  %v1690_v37 = vpack.c.bf16 %v511_v27, %v510_v26  ;;  %v254_v40 = vmul.f32 %v2548_v39, %v119_v25  ;;  %v388_v41 = vadd.f32 %v2536_v35, %v253_v29  ;;  %v134_v26 = vld [vmem:[%s2699_s0 + $0x3c0] sm:$0xff] }
  0x5e   :  { %v514_v38 = vmax.f32 %v386_v28, 0.0  ;;  %1809 = vst [vmem:[%s2702_s3 + $0x180] sm:$0xff] %v1685_v32   ;;  %v515_v44 = vmax.f32 %v387_v5, 0.0  ;;  %v255_v45 = vmul.f32 %v2548_v39, %v120_v30  ;;  %v256_v46 = vmul.f32 %v2548_v39, %v121_v31  ;;  %v135_v5 = vld [vmem:[%s2699_s0 + $0x3c8] sm:$0xff] }
  0x5f   :  { %v1695_v43 = vpack.c.bf16 %v513_v34, %v512_v33  ;;  %1810 = vst [vmem:[%s2702_s3 + $0x188] sm:$0xff] %v1690_v37   ;;  %v389_v48 = vadd.f32 %v2536_v35, %v254_v40  ;;  %v516_v49 = vmax.f32 %v388_v41, 0.0  ;;  %v257_v50 = vmul.f32 %v2548_v39, %v122_v2  ;;  %v136_v40 = vld [vmem:[%s2699_s0 + $0x3d0] sm:$0xff]  ;;  %v137_v41 = vld [vmem:[%s2699_s0 + $0x3d8] sm:$0xff] }
  0x60   :  { %v258_v51 = vmul.f32 %v2548_v39, %v123_v36  ;;  %v1700_v53 = vpack.c.bf16 %v515_v44, %v514_v38  ;;  %v390_v54 = vadd.f32 %v2536_v35, %v255_v45  ;;  %v391_v55 = vadd.f32 %v2536_v35, %v256_v46  ;;  %v138_v46 = vld [vmem:[%s2699_s0 + $0x3e0] sm:$0xff] }
  0x61   :  { %1811 = vst [vmem:[%s2702_s3 + $0x190] sm:$0xff] %v1695_v43   ;;  %v259_v56 = vmul.f32 %v2548_v39, %v124_v42  ;;  %v517_v57 = vmax.f32 %v389_v48, 0.0  ;;  %v392_v58 = vadd.f32 %v2536_v35, %v257_v50  ;;  %v260_v60 = vmul.f32 %v2548_v39, %v125_v47  ;;  %v139_v47 = vld [vmem:[%s2699_s0 + $0x3e8] sm:$0xff] }
  0x62   :  { %v393_v59 = vadd.f32 %v2536_v35, %v258_v51  ;;  %1812 = vst [vmem:[%s2702_s3 + $0x198] sm:$0xff] %v1700_v53   ;;  %v518_v62 = vmax.f32 %v390_v54, 0.0  ;;  %v519_v63 = vmax.f32 %v391_v55, 0.0  ;;  %v261_v1 = vmul.f32 %v2548_v39, %v126_v52  ;;  %v140_v52 = vld [vmem:[%s2699_s0 + $0x3f0] sm:$0xff] }
  0x63   :  { %v394_v0 = vadd.f32 %v2536_v35, %v259_v56  ;;  %v1705_v6 = vpack.c.bf16 %v517_v57, %v516_v49  ;;  %v520_v7 = vmax.f32 %v392_v58, 0.0  ;;  %v395_v9 = vadd.f32 %v2536_v35, %v260_v60  ;;  %v141_v57 = vld [vmem:[%s2699_s0 + $0x3f8] sm:$0xff] }
  0x64   :  { %v521_v8 = vmax.f32 %v393_v59, 0.0  ;;  %v1710_v12 = vpack.c.bf16 %v519_v63, %v518_v62  ;;  %v262_v14 = vmul.f32 %v2548_v39, %v127_v61  ;;  %v396_v15 = vadd.f32 %v2536_v35, %v261_v1 }
  0x65   :  { %v522_v13 = vmax.f32 %v394_v0, 0.0  ;;  %1813 = vst [vmem:[%s2702_s3 + $0x1a0] sm:$0xff] %v1705_v6   ;;  %v523_v18 = vmax.f32 %v395_v9, 0.0  ;;  %v263_v19 = vmul.f32 %v2548_v39, %v128_v3  ;;  %v264_v20 = vmul.f32 %v2548_v39, %v129_v4 }
  0x66   :  { %v1715_v17 = vpack.c.bf16 %v521_v8, %v520_v7  ;;  %1814 = vst [vmem:[%s2702_s3 + $0x1a8] sm:$0xff] %v1710_v12   ;;  %v397_v22 = vadd.f32 %v2536_v35, %v262_v14  ;;  %v524_v23 = vmax.f32 %v396_v15, 0.0  ;;  %v265_v24 = vmul.f32 %v2548_v39, %v130_v10 }
  0x67   :  { %v266_v25 = vmul.f32 %v2548_v39, %v131_v11  ;;  %v1720_v27 = vpack.c.bf16 %v523_v18, %v522_v13  ;;  %v398_v28 = vadd.f32 %v2536_v35, %v263_v19  ;;  %v399_v29 = vadd.f32 %v2536_v35, %v264_v20 }
  0x68   :  { %1815 = vst [vmem:[%s2702_s3 + $0x1b0] sm:$0xff] %v1715_v17   ;;  %v267_v30 = vmul.f32 %v2548_v39, %v132_v16  ;;  %v525_v31 = vmax.f32 %v397_v22, 0.0  ;;  %v400_v32 = vadd.f32 %v2536_v35, %v265_v24  ;;  %v268_v34 = vmul.f32 %v2548_v39, %v133_v21 }
  0x69   :  { %v401_v33 = vadd.f32 %v2536_v35, %v266_v25  ;;  %1816 = vst [vmem:[%s2702_s3 + $0x1b8] sm:$0xff] %v1720_v27   ;;  %v526_v2 = vmax.f32 %v398_v28, 0.0  ;;  %v527_v36 = vmax.f32 %v399_v29, 0.0  ;;  %v269_v38 = vmul.f32 %v2548_v39, %v134_v26 }
  0x6a   :  { %v402_v37 = vadd.f32 %v2536_v35, %v267_v30  ;;  %v1725_v42 = vpack.c.bf16 %v525_v31, %v524_v23  ;;  %v528_v43 = vmax.f32 %v400_v32, 0.0  ;;  %v403_v45 = vadd.f32 %v2536_v35, %v268_v34 }
  0x6b   :  { %v529_v44 = vmax.f32 %v401_v33, 0.0  ;;  %v1730_v48 = vpack.c.bf16 %v527_v36, %v526_v2  ;;  %v270_v50 = vmul.f32 %v2548_v39, %v135_v5  ;;  %v404_v51 = vadd.f32 %v2536_v35, %v269_v38 }
  0x6c   :  { %v530_v49 = vmax.f32 %v402_v37, 0.0  ;;  %1817 = vst [vmem:[%s2702_s3 + $0x1c0] sm:$0xff] %v1725_v42   ;;  %v531_v54 = vmax.f32 %v403_v45, 0.0  ;;  %v271_v55 = vmul.f32 %v2548_v39, %v136_v40  ;;  %v272_v56 = vmul.f32 %v2548_v39, %v137_v41 }
  0x6d   :  { %v1735_v53 = vpack.c.bf16 %v529_v44, %v528_v43  ;;  %1818 = vst [vmem:[%s2702_s3 + $0x1c8] sm:$0xff] %v1730_v48   ;;  %v405_v58 = vadd.f32 %v2536_v35, %v270_v50  ;;  %v532_v59 = vmax.f32 %v404_v51, 0.0  ;;  %v273_v60 = vmul.f32 %v2548_v39, %v138_v46 }
  0x6e   :  { %v274_v61 = vmul.f32 %v2548_v39, %v139_v47  ;;  %v1740_v62 = vpack.c.bf16 %v531_v54, %v530_v49  ;;  %v406_v63 = vadd.f32 %v2536_v35, %v271_v55  ;;  %v407_v0 = vadd.f32 %v2536_v35, %v272_v56 }
  0x6f   :  { %1819 = vst [vmem:[%s2702_s3 + $0x1d0] sm:$0xff] %v1735_v53   ;;  %v275_v1 = vmul.f32 %v2548_v39, %v140_v52  ;;  %v533_v3 = vmax.f32 %v405_v58, 0.0  ;;  %v408_v4 = vadd.f32 %v2536_v35, %v273_v60  ;;  %v276_v7 = vmul.f32 %v2548_v39, %v141_v57 }
  0x70   :  { %v409_v6 = vadd.f32 %v2536_v35, %v274_v61  ;;  %1820 = vst [vmem:[%s2702_s3 + $0x1d8] sm:$0xff] %v1740_v62   ;;  %v534_v8 = vmax.f32 %v406_v63, 0.0  ;;  %v535_v9 = vmax.f32 %v407_v0, 0.0 }
  0x71   :  { %v410_v10 = vadd.f32 %v2536_v35, %v275_v1  ;;  %v1745_v11 = vpack.c.bf16 %v533_v3, %v532_v59  ;;  %v536_v12 = vmax.f32 %v408_v4, 0.0  ;;  %v411_v14 = vadd.f32 %v2536_v35, %v276_v7 }
  0x72   :  { %v537_v13 = vmax.f32 %v409_v6, 0.0  ;;  %v1750_v15 = vpack.c.bf16 %v535_v9, %v534_v8 }
  0x73   :  { %v538_v16 = vmax.f32 %v410_v10, 0.0  ;;  %1821 = vst [vmem:[%s2702_s3 + $0x1e0] sm:$0xff] %v1745_v11   ;;  %v539_v17 = vmax.f32 %v411_v14, 0.0 }
  0x74   :  { %v1755_v39 = vpack.c.bf16 %v537_v13, %v536_v12  ;;  %1822 = vst [vmem:[%s2702_s3 + $0x1e8] sm:$0xff] %v1750_v15  }
  0x75   :  { %v1760_v18 = vpack.c.bf16 %v539_v17, %v538_v16 }
  0x76   :  { %1823 = vst [vmem:[%s2702_s3 + $0x1f0] sm:$0xff] %v1755_v39  }
  0x77   :  { %1824 = vst [vmem:[%s2702_s3 + $0x1f8] sm:$0xff] %v1760_v18  }

// kernel: conv_decoder_forward.21
= control target key start
LH: loop header
LB: loop body
LE: loop exit
PB: predicated region body
PF: predicated region fallthrough
CT: control target
= control target key end

     0   :  { %s2082_s12 = smov 0   ;;  %s2084_s13 = smov 0   ;;  %s2479_s0 = inlined_call_operand.vmem [shape: bf16[4,4096,128], index: 0, kind: input, shape index: {}]   ;;  %s2480_s1 = inlined_call_operand.vmem [shape: bf16[4,128,128], index: 1, kind: input, shape index: {}]   ;;  %s2481_s2 = inlined_call_operand.vmem [shape: f32[1,128], index: 2, kind: input, shape index: {}]   ;;  %s2482_s3 = inlined_call_operand.vmem [shape: f32[4,4096,128], index: 3, kind: output, shape index: {}]  }
   0x1   :  { %s2086_s14 = smov 0   ;;  %s2088_s15 = smov 0  }
   0x2   :  { %s2090_s16 = smov 0  }
   0x3 LB: > { %s22_s17 = sadd.s32 1, %s2052_s14  ;;  %s25_s18 = sadd.s32 1, %s2056_s15  ;;  %s2060_s16 = sphi %s2090_s16, %s13_s16   ;;  %s2056_s15 = sphi %s2088_s15, %s2486_s15   ;;  %s2052_s14 = sphi %s2086_s14, %s2485_s14   ;;  %s2048_s13 = sphi %s2084_s13, %s2484_s13   ;;  %s2044_s12 = sphi %s2082_s12, %s2483_s12  }
   0x4   : > { %p23_p0 = scmp.ge.s32.totalorder %s22_s17, 4  ;;  %p1593_p1 = scmp.ge.s32.totalorder %s2060_s16, 1 }
   0x5   : > { %p168_p2 = scmp.lt.s32.totalorder %s2060_s16, 17 }
   0x6   : > { %s2488_s17 = smov (%p23_p0, %s22_s17), 0  ;;  %s2490_s18 = smov (!%p23_p0, %s25_s18), %s2056_s15 }
   0x7   : > { %p169_p3 = pnand %p1593_p1, %p168_p2  ;;  %p27_p4 = scmp.ge.s32.totalorder %s2490_s18, 4 }
   0x8   : > { %s1594_s19 = sshll.u32 (!%p169_p3), %s2044_s12, 7  ;;  %p206_p5 = scmp.lt.s32.totalorder (!%p169_p3), %s2048_s13, 3 }
   0x9   : > { %s2492_s18 = smov (%p27_p4, %s2490_s18), 0  ;;  %172 = sbr.rel (%p169_p3) target bundleno = 372 (0x174), region = 32 }
   0xa   : > { %p208_p6 = scmp.lt.s32.totalorder (!%p169_p3), %s1594_s19, 511 }
   0xe   : > { %s2494_s13 = smov (!%p206_p5, %s2048_s13), 3  ;;  %s2496_s19 = smov (!%p208_p6, %s1594_s19), 511 }
   0xf   : > { %s1595_s20 = sshll.u32 %s2494_s13, 9  ;;  %s1677_s21 = sshll.u32 %s2494_s13, 6 }
  0x10   : > { %s2115_s24 = scalar_lea.vmem %s2480_s1, %s1677_s21  ;;  %s2117_s25 = sadd.s32 %s1595_s20, %s2496_s19 }
  0x11   : > { %v1950_v0 = vld [vmem:[%s2115_s24 + $0x38] sm:$0xff]   ;;  %v1951_v1 = vld [vmem:[%s2115_s24 + $0x30] sm:$0xff]   ;;  %s1596_s26 = sshll.u32 %s2117_s25, 2  ;;  %v1952_v2 = vld [vmem:[%s2115_s24 + $0x28] sm:$0xff]   ;;  %s1601_s30 = sshll.u32 %s2117_s25, 3 }
  0x12   : > { %1750 = vmatprep.subr.bf16.mxu0 %v1950_v0  ;;  %1894 = vmatprep.subr.bf16.mxu1 %v1950_v0  ;;  %s2126_s29 = scalar_lea.vmem %s2479_s0, %s1596_s26  ;;  %v1953_v3 = vld [vmem:[%s2115_s24 + $0x20] sm:$0xff]   ;;  %v1954_v6 = vld [vmem:[%s2115_s24 + $0x18] sm:$0xff]   ;;  %v1955_v7 = vld [vmem:[%s2115_s24 + $0x10] sm:$0xff]   ;;  %s2206_s8 = scalar_lea.vmem %s2482_s3, %s1601_s30 }
  0x13   : > { %1751 = vmatpush3.bf16.msra.mxu0 %v1950_v0  ;;  %1902 = vmatpush3.bf16.msra.mxu1 %v1950_v0  ;;  %v1958_v4 = vld [vmem:[%s2126_s29] sm:$0xff]   ;;  %v1956_v8 = vld [vmem:[%s2115_s24 + $0x8] sm:$0xff]   ;;  %v1962_v12 = vld [vmem:[%s2126_s29 + $0x10] sm:$0xff]  }
  0x14   : > { %1752 = vmatprep.subr.bf16.mxu0 %v1951_v1  ;;  %1895 = vmatprep.subr.bf16.mxu1 %v1951_v1  ;;  %v1959_v5 = vld [vmem:[%s2126_s29 + $0x100] sm:$0xff]   ;;  %v1960_v10 = vld [vmem:[%s2126_s29 + $0x8] sm:$0xff]   ;;  %v1963_v13 = vld [vmem:[%s2126_s29 + $0x110] sm:$0xff]  }
  0x15   : > { %1766 = vmatprep.mubr.bf16.mxu0 %v1958_v4  ;;  %1830 = vmatprep.mubr.bf16.mxu1 %v1959_v5  ;;  %v1957_v9 = vld [vmem:[%s2115_s24] sm:$0xff]   ;;  %v1961_v11 = vld [vmem:[%s2126_s29 + $0x108] sm:$0xff]   ;;  %v1964_v14 = vld [vmem:[%s2126_s29 + $0x18] sm:$0xff]  }
  0x16   : > { %v1965_v15 = vld [vmem:[%s2126_s29 + $0x118] sm:$0xff]   ;;  %v1966_v16 = vld [vmem:[%s2126_s29 + $0x20] sm:$0xff]   ;;  %v1968_v18 = vld [vmem:[%s2126_s29 + $0x28] sm:$0xff]  }
  0x17   : > { %1753 = vmatpush3.bf16.msra.mxu0 %v1951_v1  ;;  %1903 = vmatpush3.bf16.msra.mxu1 %v1951_v1  ;;  %v1967_v17 = vld [vmem:[%s2126_s29 + $0x120] sm:$0xff]   ;;  %v1969_v19 = vld [vmem:[%s2126_s29 + $0x128] sm:$0xff]   ;;  %v1970_v20 = vld [vmem:[%s2126_s29 + $0x30] sm:$0xff]  }
  0x18   : > { %1754 = vmatprep.subr.bf16.mxu0 %v1952_v2  ;;  %1896 = vmatprep.subr.bf16.mxu1 %v1952_v2  ;;  %v1971_v21 = vld [vmem:[%s2126_s29 + $0x130] sm:$0xff]   ;;  %v1972_v22 = vld [vmem:[%s2126_s29 + $0x38] sm:$0xff]   ;;  %v1974_v24 = vld [vmem:[%s2126_s29 + $0x40] sm:$0xff]  }
  0x19   : > { %v1973_v23 = vld [vmem:[%s2126_s29 + $0x138] sm:$0xff]   ;;  %v1975_v25 = vld [vmem:[%s2126_s29 + $0x140] sm:$0xff]   ;;  %v1976_v26 = vld [vmem:[%s2126_s29 + $0x48] sm:$0xff]  }
  0x1a   : > { %v1977_v27 = vld [vmem:[%s2126_s29 + $0x148] sm:$0xff]   ;;  %v1978_v28 = vld [vmem:[%s2126_s29 + $0x50] sm:$0xff]   ;;  %v1980_v30 = vld [vmem:[%s2126_s29 + $0x58] sm:$0xff]  }
  0x1b   : > { %1755 = vmatpush3.bf16.msra.mxu0 %v1952_v2  ;;  %1904 = vmatpush3.bf16.msra.mxu1 %v1952_v2  ;;  %v1979_v29 = vld [vmem:[%s2126_s29 + $0x150] sm:$0xff]   ;;  %v1981_v31 = vld [vmem:[%s2126_s29 + $0x158] sm:$0xff]   ;;  %v1982_v32 = vld [vmem:[%s2126_s29 + $0x60] sm:$0xff]  }
  0x1c   : > { %1756 = vmatprep.subr.bf16.mxu0 %v1953_v3  ;;  %1897 = vmatprep.subr.bf16.mxu1 %v1953_v3  ;;  %v1983_v33 = vld [vmem:[%s2126_s29 + $0x160] sm:$0xff]   ;;  %v1984_v34 = vld [vmem:[%s2126_s29 + $0x68] sm:$0xff]   ;;  %v1986_v36 = vld [vmem:[%s2126_s29 + $0x70] sm:$0xff]  }
  0x1d   : > { %v1985_v35 = vld [vmem:[%s2126_s29 + $0x168] sm:$0xff]   ;;  %v1987_v37 = vld [vmem:[%s2126_s29 + $0x170] sm:$0xff]   ;;  %v1988_v38 = vld [vmem:[%s2126_s29 + $0x78] sm:$0xff]  }
  0x1e   : > { %v1989_v39 = vld [vmem:[%s2126_s29 + $0x178] sm:$0xff]   ;;  %v1990_v40 = vld [vmem:[%s2126_s29 + $0x80] sm:$0xff]   ;;  %v1992_v42 = vld [vmem:[%s2126_s29 + $0x88] sm:$0xff]  }
  0x1f   : > { %1757 = vmatpush3.bf16.msra.mxu0 %v1953_v3  ;;  %1905 = vmatpush3.bf16.msra.mxu1 %v1953_v3  ;;  %v1991_v41 = vld [vmem:[%s2126_s29 + $0x180] sm:$0xff]   ;;  %v1993_v43 = vld [vmem:[%s2126_s29 + $0x188] sm:$0xff]   ;;  %v1994_v44 = vld [vmem:[%s2126_s29 + $0x90] sm:$0xff]  }
  0x20   : > { %1758 = vmatprep.subr.bf16.mxu0 %v1954_v6  ;;  %1898 = vmatprep.subr.bf16.mxu1 %v1954_v6  ;;  %v1995_v45 = vld [vmem:[%s2126_s29 + $0x190] sm:$0xff]   ;;  %v1996_v46 = vld [vmem:[%s2126_s29 + $0x98] sm:$0xff]   ;;  %v1998_v48 = vld [vmem:[%s2126_s29 + $0xa0] sm:$0xff]  }
  0x21   : > { %v1997_v47 = vld [vmem:[%s2126_s29 + $0x198] sm:$0xff]   ;;  %v1999_v49 = vld [vmem:[%s2126_s29 + $0x1a0] sm:$0xff]   ;;  %v2000_v50 = vld [vmem:[%s2126_s29 + $0xa8] sm:$0xff]  }
  0x22   : > { %v2001_v51 = vld [vmem:[%s2126_s29 + $0x1a8] sm:$0xff]   ;;  %v2002_v52 = vld [vmem:[%s2126_s29 + $0xb0] sm:$0xff]   ;;  %v2004_v54 = vld [vmem:[%s2126_s29 + $0xb8] sm:$0xff]  }
  0x23   : > { %1759 = vmatpush3.bf16.msra.mxu0 %v1954_v6  ;;  %1906 = vmatpush3.bf16.msra.mxu1 %v1954_v6  ;;  %v2003_v53 = vld [vmem:[%s2126_s29 + $0x1b0] sm:$0xff]   ;;  %v2005_v55 = vld [vmem:[%s2126_s29 + $0x1b8] sm:$0xff]   ;;  %v2006_v56 = vld [vmem:[%s2126_s29 + $0xc0] sm:$0xff]  }
  0x24   : > { %1760 = vmatprep.subr.bf16.mxu0 %v1955_v7  ;;  %1899 = vmatprep.subr.bf16.mxu1 %v1955_v7  ;;  %v2007_v57 = vld [vmem:[%s2126_s29 + $0x1c0] sm:$0xff]   ;;  %v2008_v58 = vld [vmem:[%s2126_s29 + $0xc8] sm:$0xff]   ;;  %v2010_v60 = vld [vmem:[%s2126_s29 + $0xd0] sm:$0xff]  }
  0x25   : > { %v2009_v59 = vld [vmem:[%s2126_s29 + $0x1c8] sm:$0xff]   ;;  %v2011_v61 = vld [vmem:[%s2126_s29 + $0x1d0] sm:$0xff]   ;;  %v2012_v62 = vld [vmem:[%s2126_s29 + $0xd8] sm:$0xff]  }
  0x26   : > { %v2013_v63 = vld [vmem:[%s2126_s29 + $0x1d8] sm:$0xff]   ;;  %v2014_v0 = vld [vmem:[%s2126_s29 + $0xe0] sm:$0xff]   ;;  %v2016_v2 = vld [vmem:[%s2126_s29 + $0xe8] sm:$0xff]  }
  0x27   : > { %1761 = vmatpush3.bf16.msra.mxu0 %v1955_v7  ;;  %1907 = vmatpush3.bf16.msra.mxu1 %v1955_v7  ;;  %v2015_v1 = vld [vmem:[%s2126_s29 + $0x1e0] sm:$0xff]   ;;  %v2017_v3 = vld [vmem:[%s2126_s29 + $0x1e8] sm:$0xff]   ;;  %v2018_v4 = vld [vmem:[%s2126_s29 + $0xf0] sm:$0xff]  }
  0x28   : > { %1762 = vmatprep.subr.bf16.mxu0 %v1956_v8  ;;  %1900 = vmatprep.subr.bf16.mxu1 %v1956_v8  ;;  %v2019_v5 = vld [vmem:[%s2126_s29 + $0x1f0] sm:$0xff]   ;;  %v2020_v6 = vld [vmem:[%s2126_s29 + $0xf8] sm:$0xff]  }
  0x29   : > { %v2021_v7 = vld [vmem:[%s2126_s29 + $0x1f8] sm:$0xff]  }
  0x2b   : > { %1763 = vmatpush3.bf16.msra.mxu0 %v1956_v8  ;;  %1908 = vmatpush3.bf16.msra.mxu1 %v1956_v8  ;;  %v2201_v8 = vld [vmem:[%s2481_s2] ss:$0 sm:$0xff] }
  0x2c   : > { %1764 = vmatprep.subr.bf16.mxu0 %v1957_v9  ;;  %1901 = vmatprep.subr.bf16.mxu1 %v1957_v9 }
  0x2f   : > { %1765 = vmatpush3.bf16.msra.mxu0 %v1957_v9  ;;  %1909 = vmatpush3.bf16.msra.mxu1 %v1957_v9 }
  0x32   : > { %1767 = vmatmul.mubr.bf16.vlgmr.msra.gmra.mxu0 %v1960_v10  ;;  %1831 = vmatmul.mubr.bf16.vlgmr.msra.gmra.mxu1 %v1961_v11 }
  0x33   : > { %1770 = vmatprep.mubr.bf16.mxu0 %v1962_v12  ;;  %1834 = vmatprep.mubr.bf16.mxu1 %v1963_v13 }
  0x3a   : > { %1771 = vmatmul.mubr.bf16.gmra.mxu0 %v1964_v14  ;;  %1835 = vmatmul.mubr.bf16.gmra.mxu1 %v1965_v15 }
  0x3b   : > { %1774 = vmatprep.mubr.bf16.mxu0 %v1966_v16  ;;  %1838 = vmatprep.mubr.bf16.mxu1 %v1967_v17 }
  0x42   : > { %1775 = vmatmul.mubr.bf16.gmra.mxu0 %v1968_v18  ;;  %1839 = vmatmul.mubr.bf16.gmra.mxu1 %v1969_v19 }
  0x43   : > { %1778 = vmatprep.mubr.bf16.mxu0 %v1970_v20  ;;  %1842 = vmatprep.mubr.bf16.mxu1 %v1971_v21 }
  0x4a   : > { %1779 = vmatmul.mubr.bf16.gmra.mxu0 %v1972_v22  ;;  %1843 = vmatmul.mubr.bf16.gmra.mxu1 %v1973_v23 }
  0x4b   : > { %1782 = vmatprep.mubr.bf16.mxu0 %v1974_v24  ;;  %1846 = vmatprep.mubr.bf16.mxu1 %v1975_v25 }
  0x52   : > { %1783 = vmatmul.mubr.bf16.gmra.mxu0 %v1976_v26  ;;  %1847 = vmatmul.mubr.bf16.gmra.mxu1 %v1977_v27 }
  0x53   : > { %1786 = vmatprep.mubr.bf16.mxu0 %v1978_v28  ;;  %1850 = vmatprep.mubr.bf16.mxu1 %v1979_v29 }
  0x5a   : > { %1787 = vmatmul.mubr.bf16.gmra.mxu0 %v1980_v30  ;;  %1851 = vmatmul.mubr.bf16.gmra.mxu1 %v1981_v31 }
  0x5b   : > { %1790 = vmatprep.mubr.bf16.mxu0 %v1982_v32  ;;  %1854 = vmatprep.mubr.bf16.mxu1 %v1983_v33 }
  0x62   : > { %1791 = vmatmul.mubr.bf16.gmra.mxu0 %v1984_v34  ;;  %1855 = vmatmul.mubr.bf16.gmra.mxu1 %v1985_v35 }
  0x63   : > { %1794 = vmatprep.mubr.bf16.mxu0 %v1986_v36  ;;  %1858 = vmatprep.mubr.bf16.mxu1 %v1987_v37 }
  0x6a   : > { %1795 = vmatmul.mubr.bf16.gmra.mxu0 %v1988_v38  ;;  %1859 = vmatmul.mubr.bf16.gmra.mxu1 %v1989_v39 }
  0x6b   : > { %1798 = vmatprep.mubr.bf16.mxu0 %v1990_v40  ;;  %1862 = vmatprep.mubr.bf16.mxu1 %v1991_v41 }
  0x72   : > { %1799 = vmatmul.mubr.bf16.gmra.mxu0 %v1992_v42  ;;  %1863 = vmatmul.mubr.bf16.gmra.mxu1 %v1993_v43 }
  0x73   : > { %1802 = vmatprep.mubr.bf16.mxu0 %v1994_v44  ;;  %1866 = vmatprep.mubr.bf16.mxu1 %v1995_v45 }
  0x7a   : > { %1803 = vmatmul.mubr.bf16.gmra.mxu0 %v1996_v46  ;;  %1867 = vmatmul.mubr.bf16.gmra.mxu1 %v1997_v47 }
  0x7b   : > { %1806 = vmatprep.mubr.bf16.mxu0 %v1998_v48  ;;  %1870 = vmatprep.mubr.bf16.mxu1 %v1999_v49 }
  0x82   : > { %1807 = vmatmul.mubr.bf16.gmra.mxu0 %v2000_v50  ;;  %1871 = vmatmul.mubr.bf16.gmra.mxu1 %v2001_v51 }
  0x83   : > { %1810 = vmatprep.mubr.bf16.mxu0 %v2002_v52  ;;  %1874 = vmatprep.mubr.bf16.mxu1 %v2003_v53 }
  0x8a   : > { %1811 = vmatmul.mubr.bf16.gmra.mxu0 %v2004_v54  ;;  %1875 = vmatmul.mubr.bf16.gmra.mxu1 %v2005_v55 }
  0x8b   : > { %1814 = vmatprep.mubr.bf16.mxu0 %v2006_v56  ;;  %1878 = vmatprep.mubr.bf16.mxu1 %v2007_v57 }
  0x92   : > { %1815 = vmatmul.mubr.bf16.gmra.mxu0 %v2008_v58  ;;  %1879 = vmatmul.mubr.bf16.gmra.mxu1 %v2009_v59 }
  0x93   : > { %1818 = vmatprep.mubr.bf16.mxu0 %v2010_v60  ;;  %1882 = vmatprep.mubr.bf16.mxu1 %v2011_v61 }
  0x9a   : > { %1819 = vmatmul.mubr.bf16.gmra.mxu0 %v2012_v62  ;;  %1883 = vmatmul.mubr.bf16.gmra.mxu1 %v2013_v63 }
  0x9b   : > { %1822 = vmatprep.mubr.bf16.mxu0 %v2014_v0  ;;  %1886 = vmatprep.mubr.bf16.mxu1 %v2015_v1 }
  0xa2   : > { %1823 = vmatmul.mubr.bf16.gmra.mxu0 %v2016_v2  ;;  %1887 = vmatmul.mubr.bf16.gmra.mxu1 %v2017_v3 }
  0xa3   : > { %1826 = vmatprep.mubr.bf16.mxu0 %v2018_v4  ;;  %1890 = vmatprep.mubr.bf16.mxu1 %v2019_v5 }
  0xaa   : > { %1827 = vmatmul.mubr.bf16.gmra.mxu0 %v2020_v6  ;;  %1891 = vmatmul.mubr.bf16.gmra.mxu1 %v2021_v7 }
  0xf2   : > { %v1768_v9 = vpop.f32.mrf.mxu0  ;;  %v1832_v10 = vpop.f32.mrf.mxu1 }
  0xf3   : > { %v857_v11 = vadd.f32 %v1768_v9, %v2201_v8  ;;  %v1113_v12 = vadd.f32 %v1832_v10, %v2201_v8 }
  0xf4   : > { %v848_v13 = vpop.f32.mrf.mxu0  ;;  %v1104_v14 = vpop.f32.mrf.mxu1 }
  0xf5   : > { %1361 = vst [vmem:[%s2206_s8 + $0x10] sm:$0xff] %v857_v11  ;;  %1425 = vst [vmem:[%s2206_s8 + $0x210] sm:$0xff] %v1113_v12  ;;  %v849_v15 = vadd.f32 %v2201_v8, %v848_v13  ;;  %v1105_v16 = vadd.f32 %v2201_v8, %v1104_v14 }
  0xf6   : > { %v1769_v17 = vpop.f32.mrf.mxu0  ;;  %v1833_v18 = vpop.f32.mrf.mxu1 }
  0xf7   : > { %1359 = vst [vmem:[%s2206_s8] sm:$0xff] %v849_v15  ;;  %1423 = vst [vmem:[%s2206_s8 + $0x200] sm:$0xff] %v1105_v16  ;;  %v860_v19 = vadd.f32 %v1769_v17, %v2201_v8  ;;  %v1116_v20 = vadd.f32 %v1833_v18, %v2201_v8 }
  0xf8   : > { %v851_v21 = vpop.f32.mrf.mxu0  ;;  %v1107_v22 = vpop.f32.mrf.mxu1 }
  0xf9   : > { %1362 = vst [vmem:[%s2206_s8 + $0x18] sm:$0xff] %v860_v19  ;;  %1426 = vst [vmem:[%s2206_s8 + $0x218] sm:$0xff] %v1116_v20  ;;  %v852_v23 = vadd.f32 %v2201_v8, %v851_v21  ;;  %v1108_v24 = vadd.f32 %v2201_v8, %v1107_v22 }
  0xfa   : > { %v1772_v25 = vpop.f32.mrf.mxu0  ;;  %v1836_v26 = vpop.f32.mrf.mxu1 }
  0xfb   : > { %1360 = vst [vmem:[%s2206_s8 + $0x8] sm:$0xff] %v852_v23  ;;  %1424 = vst [vmem:[%s2206_s8 + $0x208] sm:$0xff] %v1108_v24  ;;  %v873_v27 = vadd.f32 %v1772_v25, %v2201_v8  ;;  %v1129_v28 = vadd.f32 %v1836_v26, %v2201_v8 }
  0xfc   : > { %v864_v29 = vpop.f32.mrf.mxu0  ;;  %v1120_v30 = vpop.f32.mrf.mxu1 }
  0xfd   : > { %1365 = vst [vmem:[%s2206_s8 + $0x30] sm:$0xff] %v873_v27  ;;  %1429 = vst [vmem:[%s2206_s8 + $0x230] sm:$0xff] %v1129_v28  ;;  %v865_v31 = vadd.f32 %v2201_v8, %v864_v29  ;;  %v1121_v32 = vadd.f32 %v2201_v8, %v1120_v30 }
  0xfe   : > { %v1773_v33 = vpop.f32.mrf.mxu0  ;;  %v1837_v34 = vpop.f32.mrf.mxu1 }
  0xff   : > { %1363 = vst [vmem:[%s2206_s8 + $0x20] sm:$0xff] %v865_v31  ;;  %1427 = vst [vmem:[%s2206_s8 + $0x220] sm:$0xff] %v1121_v32  ;;  %v876_v35 = vadd.f32 %v1773_v33, %v2201_v8  ;;  %v1132_v36 = vadd.f32 %v1837_v34, %v2201_v8 }
 0x100   : > { %v867_v37 = vpop.f32.mrf.mxu0  ;;  %v1123_v38 = vpop.f32.mrf.mxu1 }
 0x101   : > { %1366 = vst [vmem:[%s2206_s8 + $0x38] sm:$0xff] %v876_v35  ;;  %1430 = vst [vmem:[%s2206_s8 + $0x238] sm:$0xff] %v1132_v36  ;;  %v868_v39 = vadd.f32 %v2201_v8, %v867_v37  ;;  %v1124_v40 = vadd.f32 %v2201_v8, %v1123_v38 }
 0x102   : > { %v1776_v41 = vpop.f32.mrf.mxu0  ;;  %v1840_v42 = vpop.f32.mrf.mxu1 }
 0x103   : > { %1364 = vst [vmem:[%s2206_s8 + $0x28] sm:$0xff] %v868_v39  ;;  %1428 = vst [vmem:[%s2206_s8 + $0x228] sm:$0xff] %v1124_v40  ;;  %v889_v43 = vadd.f32 %v1776_v41, %v2201_v8  ;;  %v1145_v44 = vadd.f32 %v1840_v42, %v2201_v8 }
 0x104   : > { %v880_v45 = vpop.f32.mrf.mxu0  ;;  %v1136_v46 = vpop.f32.mrf.mxu1 }
 0x105   : > { %1369 = vst [vmem:[%s2206_s8 + $0x50] sm:$0xff] %v889_v43  ;;  %1433 = vst [vmem:[%s2206_s8 + $0x250] sm:$0xff] %v1145_v44  ;;  %v881_v47 = vadd.f32 %v2201_v8, %v880_v45  ;;  %v1137_v48 = vadd.f32 %v2201_v8, %v1136_v46 }
 0x106   : > { %v1777_v49 = vpop.f32.mrf.mxu0  ;;  %v1841_v50 = vpop.f32.mrf.mxu1 }
 0x107   : > { %1367 = vst [vmem:[%s2206_s8 + $0x40] sm:$0xff] %v881_v47  ;;  %1431 = vst [vmem:[%s2206_s8 + $0x240] sm:$0xff] %v1137_v48  ;;  %v892_v51 = vadd.f32 %v1777_v49, %v2201_v8  ;;  %v1148_v52 = vadd.f32 %v1841_v50, %v2201_v8 }
 0x108   : > { %v883_v53 = vpop.f32.mrf.mxu0  ;;  %v1139_v54 = vpop.f32.mrf.mxu1 }
 0x109   : > { %1370 = vst [vmem:[%s2206_s8 + $0x58] sm:$0xff] %v892_v51  ;;  %1434 = vst [vmem:[%s2206_s8 + $0x258] sm:$0xff] %v1148_v52  ;;  %v884_v55 = vadd.f32 %v2201_v8, %v883_v53  ;;  %v1140_v56 = vadd.f32 %v2201_v8, %v1139_v54 }
 0x10a   : > { %v1780_v57 = vpop.f32.mrf.mxu0  ;;  %v1844_v58 = vpop.f32.mrf.mxu1 }
 0x10b   : > { %1368 = vst [vmem:[%s2206_s8 + $0x48] sm:$0xff] %v884_v55  ;;  %1432 = vst [vmem:[%s2206_s8 + $0x248] sm:$0xff] %v1140_v56  ;;  %v905_v59 = vadd.f32 %v1780_v57, %v2201_v8  ;;  %v1161_v60 = vadd.f32 %v1844_v58, %v2201_v8 }
 0x10c   : > { %v896_v61 = vpop.f32.mrf.mxu0  ;;  %v1152_v62 = vpop.f32.mrf.mxu1 }
 0x10d   : > { %1373 = vst [vmem:[%s2206_s8 + $0x70] sm:$0xff] %v905_v59  ;;  %1437 = vst [vmem:[%s2206_s8 + $0x270] sm:$0xff] %v1161_v60  ;;  %v897_v63 = vadd.f32 %v2201_v8, %v896_v61  ;;  %v1153_v0 = vadd.f32 %v2201_v8, %v1152_v62 }
 0x10e   : > { %v1781_v1 = vpop.f32.mrf.mxu0  ;;  %v1845_v2 = vpop.f32.mrf.mxu1 }
 0x10f   : > { %1371 = vst [vmem:[%s2206_s8 + $0x60] sm:$0xff] %v897_v63  ;;  %1435 = vst [vmem:[%s2206_s8 + $0x260] sm:$0xff] %v1153_v0  ;;  %v908_v3 = vadd.f32 %v1781_v1, %v2201_v8  ;;  %v1164_v4 = vadd.f32 %v1845_v2, %v2201_v8 }
 0x110   : > { %v899_v5 = vpop.f32.mrf.mxu0  ;;  %v1155_v6 = vpop.f32.mrf.mxu1 }
 0x111   : > { %1374 = vst [vmem:[%s2206_s8 + $0x78] sm:$0xff] %v908_v3  ;;  %1438 = vst [vmem:[%s2206_s8 + $0x278] sm:$0xff] %v1164_v4  ;;  %v900_v7 = vadd.f32 %v2201_v8, %v899_v5  ;;  %v1156_v9 = vadd.f32 %v2201_v8, %v1155_v6 }
 0x112   : > { %v1784_v10 = vpop.f32.mrf.mxu0  ;;  %v1848_v11 = vpop.f32.mrf.mxu1 }
 0x113   : > { %1372 = vst [vmem:[%s2206_s8 + $0x68] sm:$0xff] %v900_v7  ;;  %1436 = vst [vmem:[%s2206_s8 + $0x268] sm:$0xff] %v1156_v9  ;;  %v921_v12 = vadd.f32 %v1784_v10, %v2201_v8  ;;  %v1177_v13 = vadd.f32 %v1848_v11, %v2201_v8 }
 0x114   : > { %v912_v14 = vpop.f32.mrf.mxu0  ;;  %v1168_v15 = vpop.f32.mrf.mxu1 }
 0x115   : > { %1377 = vst [vmem:[%s2206_s8 + $0x90] sm:$0xff] %v921_v12  ;;  %1441 = vst [vmem:[%s2206_s8 + $0x290] sm:$0xff] %v1177_v13  ;;  %v913_v16 = vadd.f32 %v2201_v8, %v912_v14  ;;  %v1169_v17 = vadd.f32 %v2201_v8, %v1168_v15 }
 0x116   : > { %v1785_v18 = vpop.f32.mrf.mxu0  ;;  %v1849_v19 = vpop.f32.mrf.mxu1 }
 0x117   : > { %1375 = vst [vmem:[%s2206_s8 + $0x80] sm:$0xff] %v913_v16  ;;  %1439 = vst [vmem:[%s2206_s8 + $0x280] sm:$0xff] %v1169_v17  ;;  %v924_v20 = vadd.f32 %v1785_v18, %v2201_v8  ;;  %v1180_v21 = vadd.f32 %v1849_v19, %v2201_v8 }
 0x118   : > { %v915_v22 = vpop.f32.mrf.mxu0  ;;  %v1171_v23 = vpop.f32.mrf.mxu1 }
 0x119   : > { %1378 = vst [vmem:[%s2206_s8 + $0x98] sm:$0xff] %v924_v20  ;;  %1442 = vst [vmem:[%s2206_s8 + $0x298] sm:$0xff] %v1180_v21  ;;  %v916_v24 = vadd.f32 %v2201_v8, %v915_v22  ;;  %v1172_v25 = vadd.f32 %v2201_v8, %v1171_v23 }
 0x11a   : > { %v1788_v26 = vpop.f32.mrf.mxu0  ;;  %v1852_v27 = vpop.f32.mrf.mxu1 }
 0x11b   : > { %1376 = vst [vmem:[%s2206_s8 + $0x88] sm:$0xff] %v916_v24  ;;  %1440 = vst [vmem:[%s2206_s8 + $0x288] sm:$0xff] %v1172_v25  ;;  %v937_v28 = vadd.f32 %v1788_v26, %v2201_v8  ;;  %v1193_v29 = vadd.f32 %v1852_v27, %v2201_v8 }
 0x11c   : > { %v928_v30 = vpop.f32.mrf.mxu0  ;;  %v1184_v31 = vpop.f32.mrf.mxu1 }
 0x11d   : > { %1381 = vst [vmem:[%s2206_s8 + $0xb0] sm:$0xff] %v937_v28  ;;  %1445 = vst [vmem:[%s2206_s8 + $0x2b0] sm:$0xff] %v1193_v29  ;;  %v929_v32 = vadd.f32 %v2201_v8, %v928_v30  ;;  %v1185_v33 = vadd.f32 %v2201_v8, %v1184_v31 }
 0x11e   : > { %v1789_v34 = vpop.f32.mrf.mxu0  ;;  %v1853_v35 = vpop.f32.mrf.mxu1 }
 0x11f   : > { %1379 = vst [vmem:[%s2206_s8 + $0xa0] sm:$0xff] %v929_v32  ;;  %1443 = vst [vmem:[%s2206_s8 + $0x2a0] sm:$0xff] %v1185_v33  ;;  %v940_v36 = vadd.f32 %v1789_v34, %v2201_v8  ;;  %v1196_v37 = vadd.f32 %v1853_v35, %v2201_v8 }
 0x120   : > { %v931_v38 = vpop.f32.mrf.mxu0  ;;  %v1187_v39 = vpop.f32.mrf.mxu1 }
 0x121   : > { %1382 = vst [vmem:[%s2206_s8 + $0xb8] sm:$0xff] %v940_v36  ;;  %1446 = vst [vmem:[%s2206_s8 + $0x2b8] sm:$0xff] %v1196_v37  ;;  %v932_v40 = vadd.f32 %v2201_v8, %v931_v38  ;;  %v1188_v41 = vadd.f32 %v2201_v8, %v1187_v39 }
 0x122   : > { %v1792_v42 = vpop.f32.mrf.mxu0  ;;  %v1856_v43 = vpop.f32.mrf.mxu1 }
 0x123   : > { %1380 = vst [vmem:[%s2206_s8 + $0xa8] sm:$0xff] %v932_v40  ;;  %1444 = vst [vmem:[%s2206_s8 + $0x2a8] sm:$0xff] %v1188_v41  ;;  %v953_v44 = vadd.f32 %v1792_v42, %v2201_v8  ;;  %v1209_v45 = vadd.f32 %v1856_v43, %v2201_v8 }
 0x124   : > { %v944_v46 = vpop.f32.mrf.mxu0  ;;  %v1200_v47 = vpop.f32.mrf.mxu1 }
 0x125   : > { %1385 = vst [vmem:[%s2206_s8 + $0xd0] sm:$0xff] %v953_v44  ;;  %1449 = vst [vmem:[%s2206_s8 + $0x2d0] sm:$0xff] %v1209_v45  ;;  %v945_v48 = vadd.f32 %v2201_v8, %v944_v46  ;;  %v1201_v49 = vadd.f32 %v2201_v8, %v1200_v47 }
 0x126   : > { %v1793_v50 = vpop.f32.mrf.mxu0  ;;  %v1857_v51 = vpop.f32.mrf.mxu1 }
 0x127   : > { %1383 = vst [vmem:[%s2206_s8 + $0xc0] sm:$0xff] %v945_v48  ;;  %1447 = vst [vmem:[%s2206_s8 + $0x2c0] sm:$0xff] %v1201_v49  ;;  %v956_v52 = vadd.f32 %v1793_v50, %v2201_v8  ;;  %v1212_v53 = vadd.f32 %v1857_v51, %v2201_v8 }
 0x128   : > { %v947_v54 = vpop.f32.mrf.mxu0  ;;  %v1203_v55 = vpop.f32.mrf.mxu1 }
 0x129   : > { %1386 = vst [vmem:[%s2206_s8 + $0xd8] sm:$0xff] %v956_v52  ;;  %1450 = vst [vmem:[%s2206_s8 + $0x2d8] sm:$0xff] %v1212_v53  ;;  %v948_v56 = vadd.f32 %v2201_v8, %v947_v54  ;;  %v1204_v57 = vadd.f32 %v2201_v8, %v1203_v55 }
 0x12a   : > { %v1796_v58 = vpop.f32.mrf.mxu0  ;;  %v1860_v59 = vpop.f32.mrf.mxu1 }
 0x12b   : > { %1384 = vst [vmem:[%s2206_s8 + $0xc8] sm:$0xff] %v948_v56  ;;  %1448 = vst [vmem:[%s2206_s8 + $0x2c8] sm:$0xff] %v1204_v57  ;;  %v969_v60 = vadd.f32 %v1796_v58, %v2201_v8  ;;  %v1225_v61 = vadd.f32 %v1860_v59, %v2201_v8 }
 0x12c   : > { %v960_v62 = vpop.f32.mrf.mxu0  ;;  %v1216_v63 = vpop.f32.mrf.mxu1 }
 0x12d   : > { %1389 = vst [vmem:[%s2206_s8 + $0xf0] sm:$0xff] %v969_v60  ;;  %1453 = vst [vmem:[%s2206_s8 + $0x2f0] sm:$0xff] %v1225_v61  ;;  %v961_v0 = vadd.f32 %v2201_v8, %v960_v62  ;;  %v1217_v1 = vadd.f32 %v2201_v8, %v1216_v63 }
 0x12e   : > { %v1797_v2 = vpop.f32.mrf.mxu0  ;;  %v1861_v3 = vpop.f32.mrf.mxu1 }
 0x12f   : > { %1387 = vst [vmem:[%s2206_s8 + $0xe0] sm:$0xff] %v961_v0  ;;  %1451 = vst [vmem:[%s2206_s8 + $0x2e0] sm:$0xff] %v1217_v1  ;;  %v972_v4 = vadd.f32 %v1797_v2, %v2201_v8  ;;  %v1228_v5 = vadd.f32 %v1861_v3, %v2201_v8 }
 0x130   : > { %v963_v6 = vpop.f32.mrf.mxu0  ;;  %v1219_v7 = vpop.f32.mrf.mxu1 }
 0x131   : > { %1390 = vst [vmem:[%s2206_s8 + $0xf8] sm:$0xff] %v972_v4  ;;  %1454 = vst [vmem:[%s2206_s8 + $0x2f8] sm:$0xff] %v1228_v5  ;;  %v964_v9 = vadd.f32 %v2201_v8, %v963_v6  ;;  %v1220_v10 = vadd.f32 %v2201_v8, %v1219_v7 }
 0x132   : > { %v1800_v11 = vpop.f32.mrf.mxu0  ;;  %v1864_v12 = vpop.f32.mrf.mxu1 }
 0x133   : > { %1388 = vst [vmem:[%s2206_s8 + $0xe8] sm:$0xff] %v964_v9  ;;  %1452 = vst [vmem:[%s2206_s8 + $0x2e8] sm:$0xff] %v1220_v10  ;;  %v985_v13 = vadd.f32 %v1800_v11, %v2201_v8  ;;  %v1241_v14 = vadd.f32 %v1864_v12, %v2201_v8 }
 0x134   : > { %v976_v15 = vpop.f32.mrf.mxu0  ;;  %v1232_v16 = vpop.f32.mrf.mxu1 }
 0x135   : > { %1393 = vst [vmem:[%s2206_s8 + $0x110] sm:$0xff] %v985_v13  ;;  %1457 = vst [vmem:[%s2206_s8 + $0x310] sm:$0xff] %v1241_v14  ;;  %v977_v17 = vadd.f32 %v2201_v8, %v976_v15  ;;  %v1233_v18 = vadd.f32 %v2201_v8, %v1232_v16 }
 0x136   : > { %v1801_v19 = vpop.f32.mrf.mxu0  ;;  %v1865_v20 = vpop.f32.mrf.mxu1 }
 0x137   : > { %1391 = vst [vmem:[%s2206_s8 + $0x100] sm:$0xff] %v977_v17  ;;  %1455 = vst [vmem:[%s2206_s8 + $0x300] sm:$0xff] %v1233_v18  ;;  %v988_v21 = vadd.f32 %v1801_v19, %v2201_v8  ;;  %v1244_v22 = vadd.f32 %v1865_v20, %v2201_v8 }
 0x138   : > { %v979_v23 = vpop.f32.mrf.mxu0  ;;  %v1235_v24 = vpop.f32.mrf.mxu1 }
 0x139   : > { %1394 = vst [vmem:[%s2206_s8 + $0x118] sm:$0xff] %v988_v21  ;;  %1458 = vst [vmem:[%s2206_s8 + $0x318] sm:$0xff] %v1244_v22  ;;  %v980_v25 = vadd.f32 %v2201_v8, %v979_v23  ;;  %v1236_v26 = vadd.f32 %v2201_v8, %v1235_v24 }
 0x13a   : > { %v1804_v27 = vpop.f32.mrf.mxu0  ;;  %v1868_v28 = vpop.f32.mrf.mxu1 }
 0x13b   : > { %1392 = vst [vmem:[%s2206_s8 + $0x108] sm:$0xff] %v980_v25  ;;  %1456 = vst [vmem:[%s2206_s8 + $0x308] sm:$0xff] %v1236_v26  ;;  %v1001_v29 = vadd.f32 %v1804_v27, %v2201_v8  ;;  %v1257_v30 = vadd.f32 %v1868_v28, %v2201_v8 }
 0x13c   : > { %v992_v31 = vpop.f32.mrf.mxu0  ;;  %v1248_v32 = vpop.f32.mrf.mxu1 }
 0x13d   : > { %1397 = vst [vmem:[%s2206_s8 + $0x130] sm:$0xff] %v1001_v29  ;;  %1461 = vst [vmem:[%s2206_s8 + $0x330] sm:$0xff] %v1257_v30  ;;  %v993_v33 = vadd.f32 %v2201_v8, %v992_v31  ;;  %v1249_v34 = vadd.f32 %v2201_v8, %v1248_v32 }
 0x13e   : > { %v1805_v35 = vpop.f32.mrf.mxu0  ;;  %v1869_v36 = vpop.f32.mrf.mxu1 }
 0x13f   : > { %1395 = vst [vmem:[%s2206_s8 + $0x120] sm:$0xff] %v993_v33  ;;  %1459 = vst [vmem:[%s2206_s8 + $0x320] sm:$0xff] %v1249_v34  ;;  %v1004_v37 = vadd.f32 %v1805_v35, %v2201_v8  ;;  %v1260_v38 = vadd.f32 %v1869_v36, %v2201_v8 }
 0x140   : > { %v995_v39 = vpop.f32.mrf.mxu0  ;;  %v1251_v40 = vpop.f32.mrf.mxu1 }
 0x141   : > { %1398 = vst [vmem:[%s2206_s8 + $0x138] sm:$0xff] %v1004_v37  ;;  %1462 = vst [vmem:[%s2206_s8 + $0x338] sm:$0xff] %v1260_v38  ;;  %v996_v41 = vadd.f32 %v2201_v8, %v995_v39  ;;  %v1252_v42 = vadd.f32 %v2201_v8, %v1251_v40 }
 0x142   : > { %v1808_v43 = vpop.f32.mrf.mxu0  ;;  %v1872_v44 = vpop.f32.mrf.mxu1 }
 0x143   : > { %1396 = vst [vmem:[%s2206_s8 + $0x128] sm:$0xff] %v996_v41  ;;  %1460 = vst [vmem:[%s2206_s8 + $0x328] sm:$0xff] %v1252_v42  ;;  %v1017_v45 = vadd.f32 %v1808_v43, %v2201_v8  ;;  %v1273_v46 = vadd.f32 %v1872_v44, %v2201_v8 }
 0x144   : > { %v1008_v47 = vpop.f32.mrf.mxu0  ;;  %v1264_v48 = vpop.f32.mrf.mxu1 }
 0x145   : > { %1401 = vst [vmem:[%s2206_s8 + $0x150] sm:$0xff] %v1017_v45  ;;  %1465 = vst [vmem:[%s2206_s8 + $0x350] sm:$0xff] %v1273_v46  ;;  %v1009_v49 = vadd.f32 %v2201_v8, %v1008_v47  ;;  %v1265_v50 = vadd.f32 %v2201_v8, %v1264_v48 }
 0x146   : > { %v1809_v51 = vpop.f32.mrf.mxu0  ;;  %v1873_v52 = vpop.f32.mrf.mxu1 }
 0x147   : > { %1399 = vst [vmem:[%s2206_s8 + $0x140] sm:$0xff] %v1009_v49  ;;  %1463 = vst [vmem:[%s2206_s8 + $0x340] sm:$0xff] %v1265_v50  ;;  %v1020_v53 = vadd.f32 %v1809_v51, %v2201_v8  ;;  %v1276_v54 = vadd.f32 %v1873_v52, %v2201_v8 }
 0x148   : > { %v1011_v55 = vpop.f32.mrf.mxu0  ;;  %v1267_v56 = vpop.f32.mrf.mxu1 }
 0x149   : > { %1402 = vst [vmem:[%s2206_s8 + $0x158] sm:$0xff] %v1020_v53  ;;  %1466 = vst [vmem:[%s2206_s8 + $0x358] sm:$0xff] %v1276_v54  ;;  %v1012_v57 = vadd.f32 %v2201_v8, %v1011_v55  ;;  %v1268_v58 = vadd.f32 %v2201_v8, %v1267_v56 }
 0x14a   : > { %v1812_v59 = vpop.f32.mrf.mxu0  ;;  %v1876_v60 = vpop.f32.mrf.mxu1 }
 0x14b   : > { %1400 = vst [vmem:[%s2206_s8 + $0x148] sm:$0xff] %v1012_v57  ;;  %1464 = vst [vmem:[%s2206_s8 + $0x348] sm:$0xff] %v1268_v58  ;;  %v1033_v61 = vadd.f32 %v1812_v59, %v2201_v8  ;;  %v1289_v62 = vadd.f32 %v1876_v60, %v2201_v8 }
 0x14c   : > { %v1024_v63 = vpop.f32.mrf.mxu0  ;;  %v1280_v0 = vpop.f32.mrf.mxu1 }
 0x14d   : > { %1405 = vst [vmem:[%s2206_s8 + $0x170] sm:$0xff] %v1033_v61  ;;  %1469 = vst [vmem:[%s2206_s8 + $0x370] sm:$0xff] %v1289_v62  ;;  %v1025_v1 = vadd.f32 %v2201_v8, %v1024_v63  ;;  %v1281_v2 = vadd.f32 %v2201_v8, %v1280_v0 }
 0x14e   : > { %v1813_v3 = vpop.f32.mrf.mxu0  ;;  %v1877_v4 = vpop.f32.mrf.mxu1 }
 0x14f   : > { %1403 = vst [vmem:[%s2206_s8 + $0x160] sm:$0xff] %v1025_v1  ;;  %1467 = vst [vmem:[%s2206_s8 + $0x360] sm:$0xff] %v1281_v2  ;;  %v1036_v5 = vadd.f32 %v1813_v3, %v2201_v8  ;;  %v1292_v6 = vadd.f32 %v1877_v4, %v2201_v8 }
 0x150   : > { %v1027_v7 = vpop.f32.mrf.mxu0  ;;  %v1283_v9 = vpop.f32.mrf.mxu1 }
 0x151   : > { %1406 = vst [vmem:[%s2206_s8 + $0x178] sm:$0xff] %v1036_v5  ;;  %1470 = vst [vmem:[%s2206_s8 + $0x378] sm:$0xff] %v1292_v6  ;;  %v1028_v10 = vadd.f32 %v2201_v8, %v1027_v7  ;;  %v1284_v11 = vadd.f32 %v2201_v8, %v1283_v9 }
 0x152   : > { %v1816_v12 = vpop.f32.mrf.mxu0  ;;  %v1880_v13 = vpop.f32.mrf.mxu1 }
 0x153   : > { %1404 = vst [vmem:[%s2206_s8 + $0x168] sm:$0xff] %v1028_v10  ;;  %1468 = vst [vmem:[%s2206_s8 + $0x368] sm:$0xff] %v1284_v11  ;;  %v1049_v14 = vadd.f32 %v1816_v12, %v2201_v8  ;;  %v1305_v15 = vadd.f32 %v1880_v13, %v2201_v8 }
 0x154   : > { %v1040_v16 = vpop.f32.mrf.mxu0  ;;  %v1296_v17 = vpop.f32.mrf.mxu1 }
 0x155   : > { %1409 = vst [vmem:[%s2206_s8 + $0x190] sm:$0xff] %v1049_v14  ;;  %1473 = vst [vmem:[%s2206_s8 + $0x390] sm:$0xff] %v1305_v15  ;;  %v1041_v18 = vadd.f32 %v2201_v8, %v1040_v16  ;;  %v1297_v19 = vadd.f32 %v2201_v8, %v1296_v17 }
 0x156   : > { %v1817_v20 = vpop.f32.mrf.mxu0  ;;  %v1881_v21 = vpop.f32.mrf.mxu1 }
 0x157   : > { %1407 = vst [vmem:[%s2206_s8 + $0x180] sm:$0xff] %v1041_v18  ;;  %1471 = vst [vmem:[%s2206_s8 + $0x380] sm:$0xff] %v1297_v19  ;;  %v1052_v22 = vadd.f32 %v1817_v20, %v2201_v8  ;;  %v1308_v23 = vadd.f32 %v1881_v21, %v2201_v8 }
 0x158   : > { %v1043_v24 = vpop.f32.mrf.mxu0  ;;  %v1299_v25 = vpop.f32.mrf.mxu1 }
 0x159   : > { %1410 = vst [vmem:[%s2206_s8 + $0x198] sm:$0xff] %v1052_v22  ;;  %1474 = vst [vmem:[%s2206_s8 + $0x398] sm:$0xff] %v1308_v23  ;;  %v1044_v26 = vadd.f32 %v2201_v8, %v1043_v24  ;;  %v1300_v27 = vadd.f32 %v2201_v8, %v1299_v25 }
 0x15a   : > { %v1820_v28 = vpop.f32.mrf.mxu0  ;;  %v1884_v29 = vpop.f32.mrf.mxu1 }
 0x15b   : > { %1408 = vst [vmem:[%s2206_s8 + $0x188] sm:$0xff] %v1044_v26  ;;  %1472 = vst [vmem:[%s2206_s8 + $0x388] sm:$0xff] %v1300_v27  ;;  %v1065_v30 = vadd.f32 %v1820_v28, %v2201_v8  ;;  %v1321_v31 = vadd.f32 %v1884_v29, %v2201_v8 }
 0x15c   : > { %v1056_v32 = vpop.f32.mrf.mxu0  ;;  %v1312_v33 = vpop.f32.mrf.mxu1 }
 0x15d   : > { %1413 = vst [vmem:[%s2206_s8 + $0x1b0] sm:$0xff] %v1065_v30  ;;  %1477 = vst [vmem:[%s2206_s8 + $0x3b0] sm:$0xff] %v1321_v31  ;;  %v1057_v34 = vadd.f32 %v2201_v8, %v1056_v32  ;;  %v1313_v35 = vadd.f32 %v2201_v8, %v1312_v33 }
 0x15e   : > { %v1821_v36 = vpop.f32.mrf.mxu0  ;;  %v1885_v37 = vpop.f32.mrf.mxu1 }
 0x15f   : > { %1411 = vst [vmem:[%s2206_s8 + $0x1a0] sm:$0xff] %v1057_v34  ;;  %1475 = vst [vmem:[%s2206_s8 + $0x3a0] sm:$0xff] %v1313_v35  ;;  %v1068_v38 = vadd.f32 %v1821_v36, %v2201_v8  ;;  %v1324_v39 = vadd.f32 %v1885_v37, %v2201_v8 }
 0x160   : > { %v1059_v40 = vpop.f32.mrf.mxu0  ;;  %v1315_v41 = vpop.f32.mrf.mxu1 }
 0x161   : > { %1414 = vst [vmem:[%s2206_s8 + $0x1b8] sm:$0xff] %v1068_v38  ;;  %1478 = vst [vmem:[%s2206_s8 + $0x3b8] sm:$0xff] %v1324_v39  ;;  %v1060_v42 = vadd.f32 %v2201_v8, %v1059_v40  ;;  %v1316_v43 = vadd.f32 %v2201_v8, %v1315_v41 }
 0x162   : > { %v1824_v44 = vpop.f32.mrf.mxu0  ;;  %v1888_v45 = vpop.f32.mrf.mxu1 }
 0x163   : > { %1412 = vst [vmem:[%s2206_s8 + $0x1a8] sm:$0xff] %v1060_v42  ;;  %1476 = vst [vmem:[%s2206_s8 + $0x3a8] sm:$0xff] %v1316_v43  ;;  %v1081_v46 = vadd.f32 %v1824_v44, %v2201_v8  ;;  %v1337_v47 = vadd.f32 %v1888_v45, %v2201_v8 }
 0x164   : > { %v1072_v48 = vpop.f32.mrf.mxu0  ;;  %v1328_v49 = vpop.f32.mrf.mxu1 }
 0x165   : > { %1417 = vst [vmem:[%s2206_s8 + $0x1d0] sm:$0xff] %v1081_v46  ;;  %1481 = vst [vmem:[%s2206_s8 + $0x3d0] sm:$0xff] %v1337_v47  ;;  %v1073_v50 = vadd.f32 %v2201_v8, %v1072_v48  ;;  %v1329_v51 = vadd.f32 %v2201_v8, %v1328_v49 }
 0x166   : > { %v1825_v52 = vpop.f32.mrf.mxu0  ;;  %v1889_v53 = vpop.f32.mrf.mxu1 }
 0x167   : > { %1415 = vst [vmem:[%s2206_s8 + $0x1c0] sm:$0xff] %v1073_v50  ;;  %1479 = vst [vmem:[%s2206_s8 + $0x3c0] sm:$0xff] %v1329_v51  ;;  %v1084_v54 = vadd.f32 %v1825_v52, %v2201_v8  ;;  %v1340_v55 = vadd.f32 %v1889_v53, %v2201_v8 }
 0x168   : > { %v1075_v56 = vpop.f32.mrf.mxu0  ;;  %v1331_v57 = vpop.f32.mrf.mxu1 }
 0x169   : > { %1418 = vst [vmem:[%s2206_s8 + $0x1d8] sm:$0xff] %v1084_v54  ;;  %1482 = vst [vmem:[%s2206_s8 + $0x3d8] sm:$0xff] %v1340_v55  ;;  %v1076_v58 = vadd.f32 %v2201_v8, %v1075_v56  ;;  %v1332_v59 = vadd.f32 %v2201_v8, %v1331_v57 }
 0x16a   : > { %v1828_v60 = vpop.f32.mrf.mxu0  ;;  %v1892_v61 = vpop.f32.mrf.mxu1 }
 0x16b   : > { %1416 = vst [vmem:[%s2206_s8 + $0x1c8] sm:$0xff] %v1076_v58  ;;  %1480 = vst [vmem:[%s2206_s8 + $0x3c8] sm:$0xff] %v1332_v59  ;;  %v1097_v62 = vadd.f32 %v1828_v60, %v2201_v8  ;;  %v1353_v63 = vadd.f32 %v1892_v61, %v2201_v8 }
 0x16c   : > { %v1088_v0 = vpop.f32.mrf.mxu0  ;;  %v1344_v1 = vpop.f32.mrf.mxu1 }
 0x16d   : > { %1421 = vst [vmem:[%s2206_s8 + $0x1f0] sm:$0xff] %v1097_v62  ;;  %1485 = vst [vmem:[%s2206_s8 + $0x3f0] sm:$0xff] %v1353_v63  ;;  %v1089_v2 = vadd.f32 %v2201_v8, %v1088_v0  ;;  %v1345_v3 = vadd.f32 %v2201_v8, %v1344_v1 }
 0x16e   : > { %v1829_v4 = vpop.f32.mrf.mxu0  ;;  %v1893_v5 = vpop.f32.mrf.mxu1 }
 0x16f   : > { %1419 = vst [vmem:[%s2206_s8 + $0x1e0] sm:$0xff] %v1089_v2  ;;  %1483 = vst [vmem:[%s2206_s8 + $0x3e0] sm:$0xff] %v1345_v3  ;;  %v1100_v6 = vadd.f32 %v1829_v4, %v2201_v8  ;;  %v1356_v7 = vadd.f32 %v1893_v5, %v2201_v8 }
 0x170   : > { %v1091_v9 = vpop.f32.mrf.mxu0  ;;  %v1347_v10 = vpop.f32.mrf.mxu1 }
 0x171   : > { %1422 = vst [vmem:[%s2206_s8 + $0x1f8] sm:$0xff] %v1100_v6  ;;  %1486 = vst [vmem:[%s2206_s8 + $0x3f8] sm:$0xff] %v1356_v7  ;;  %v1092_v11 = vadd.f32 %v2201_v8, %v1091_v9  ;;  %v1348_v12 = vadd.f32 %v2201_v8, %v1347_v10 }
 0x173   : > { %1420 = vst [vmem:[%s2206_s8 + $0x1e8] sm:$0xff] %v1092_v11  ;;  %1484 = vst [vmem:[%s2206_s8 + $0x3e8] sm:$0xff] %v1348_v12 }
 0x174 PF: > { %s13_s16 = sadd.s32 1, %s2060_s16   ;;  %s2483_s12 = smov %s2052_s14 }
 0x175   : > { %p10_p7 = scmp.ge.s32.totalorder %s13_s16, 18   ;;  %s2484_s13 = smov %s2056_s15 }
 0x176   : > { %s2485_s14 = smov %s2488_s17  ;;  %s2486_s15 = smov %s2492_s18 }
 0x177   :  { %12 = sbr.rel (!%p10_p7) target bundleno = 3 (0x3), region = 65 }

</bundles_post_ra>
